<compile_context>
chip_gen: v7x
topology: tpu7x:2x2x1
jax: 0.10.0
libtpu: 0.0.40
codegen_flags: <defaults>
</compile_context>

<pallas_src>
import jax
import jax.numpy as jnp
from jax.experimental import pallas as pl
from jax.experimental.pallas import tpu as pltpu

_LANE = 128
_NEG_BIG = -1e30  # finite "-inf": exp() underflows to exactly 0, never NaN


def _round_up(n, m):
    return ((n + m - 1) // m) * m


def _pointer_attention_kernel(x_ref, ctx_ref, bias_ref,
                              w_in_ref, b_in_ref, w_ctx_ref, b_ctx_ref, v_ref,
                              hidden_ref, alpha_ref):
    TB, Lp, Dp = ctx_ref.shape
    Hp = w_in_ref.shape[1]

    # inp = input_linear(input)                                (TB, Hp) f32
    inp = jnp.dot(x_ref[...], w_in_ref[...],
                  preferred_element_type=jnp.float32) + b_in_ref[...]

    # ctx = context_linear(context) : kernel-size-1 Conv1d is a per-position
    # linear map -> one tall 2-D MXU matmul (TB*Lp, Dp) @ (Dp, Hp).
    ctx2d = jnp.dot(ctx_ref[...].reshape(TB * Lp, Dp), w_ctx_ref[...],
                    preferred_element_type=jnp.float32) + b_ctx_ref[...]
    ctx = ctx2d.reshape(TB, Lp, Hp)                            # (TB, Lp, Hp) f32

    # att[b,l] = sum_h V[h] * tanh(inp[b,h] + ctx[b,l,h])      (EUP tanh + VPU/XLU)
    t = jnp.tanh(inp[:, None, :] + ctx)
    att = jnp.sum(t * v_ref[...][None, :, :], axis=-1)         # (TB, Lp)

    # masking: additive bias (0 / -1e30) precomputed in the wrapper; it also
    # covers the padded L positions.
    att = att + bias_ref[...]

    # softmax over the sequence axis
    att_max = jnp.max(att, axis=-1, keepdims=True)
    e = jnp.exp(att - att_max)
    denom = jnp.sum(e, axis=-1, keepdims=True)
    alpha = e * pl.reciprocal(denom, approx=True)               # EUP, ~free
    alpha_ref[...] = alpha.astype(alpha_ref.dtype)

    # hidden_state[b,h] = sum_l ctx[b,l,h] * alpha[b,l]
    hidden_ref[...] = jnp.sum(ctx * alpha[:, :, None], axis=1).astype(hidden_ref.dtype)


def pointer_attention(x, context, mask, w_in, b_in, w_ctx, b_ctx, v,
                      *, compute_dtype=jnp.float32, batch_tile=8):
    """x:(B,D)  context:(B,L,D)  mask:(B,L) nonzero==masked.
    Params in PyTorch shapes: w_in (H,D), b_in (H,), w_ctx (H,D,1), b_ctx (H,),
    v (H,).  Returns (hidden:(B,H) f32, alpha:(B,L) f32)."""
    B, L, D = context.shape
    H = w_in.shape[0]
    f32 = jnp.float32
    cdt = jnp.dtype(compute_dtype)

    # Pad lane-facing dims to multiples of 128 and batch to the batch tile.
    # Zero padding is exact: padded D/H columns contribute 0, padded L gets a
    # -1e30 bias, padded B rows are discarded after the call.
    Dp = _round_up(D, _LANE)
    Hp = _round_up(H, _LANE)
    Lp = _round_up(L, _LANE)
    TB = int(batch_tile)
    Bp = _round_up(B, TB)

    # ---- parameter prep (plain-JAX glue, done once) ----
    w_in_p = jnp.zeros((Dp, Hp), cdt).at[:D, :H].set(
        jnp.transpose(w_in).astype(cdt))
    w_ctx_p = jnp.zeros((Dp, Hp), cdt).at[:D, :H].set(
        jnp.transpose(w_ctx[:, :, 0]).astype(cdt))
    b_in_p = jnp.zeros((1, Hp), f32).at[0, :H].set(b_in.astype(f32))
    b_ctx_p = jnp.zeros((1, Hp), f32).at[0, :H].set(b_ctx.astype(f32))
    v_p = jnp.zeros((1, Hp), f32).at[0, :H].set(v.astype(f32))

    # ---- activation prep (built directly in compute dtype; no f32 copy of the
    # full padded context) ----
    x_p = jnp.zeros((Bp, Dp), cdt).at[:B, :D].set(x.astype(cdt))
    ctx_p = jnp.zeros((Bp, Lp, Dp), cdt).at[:B, :L, :D].set(context.astype(cdt))

    # mask -> additive bias (f32), covering both the user mask and L padding.
    bias = jnp.where(mask.astype(f32) > 0, f32(_NEG_BIG), f32(0.0))
    bias_p = jnp.full((Bp, Lp), _NEG_BIG, dtype=f32).at[:B, :L].set(bias)

    nb = Bp // TB
    cd_bytes = cdt.itemsize
    cost = pl.CostEstimate(
        flops=2 * Bp * Lp * Dp * Hp + 2 * Bp * Dp * Hp + 6 * Bp * Lp * Hp,
        transcendentals=Bp * Lp * Hp + Bp * Lp,
        bytes_accessed=(Bp * Lp * Dp + Bp * Dp + 2 * Dp * Hp) * cd_bytes
                       + (Bp * Lp + 3 * Hp + Bp * Hp + Bp * Lp) * 4,
    )

    hidden_p, alpha_p = pl.pallas_call(
        _pointer_attention_kernel,
        grid=(nb,),
        in_specs=[
            pl.BlockSpec((TB, Dp), lambda i: (i, 0)),           # x
            pl.BlockSpec((TB, Lp, Dp), lambda i: (i, 0, 0)),    # context (pipelined)
            pl.BlockSpec((TB, Lp), lambda i: (i, 0)),           # mask bias
            pl.BlockSpec((Dp, Hp), lambda i: (0, 0)),           # W_in  (VMEM-resident)
            pl.BlockSpec((1, Hp), lambda i: (0, 0)),            # b_in
            pl.BlockSpec((Dp, Hp), lambda i: (0, 0)),           # W_ctx (VMEM-resident)
            pl.BlockSpec((1, Hp), lambda i: (0, 0)),            # b_ctx
            pl.BlockSpec((1, Hp), lambda i: (0, 0)),            # V
        ],
        out_specs=(
            pl.BlockSpec((TB, Hp), lambda i: (i, 0)),           # hidden (lane-dense)
            pl.BlockSpec((TB, Lp), lambda i: (i, 0)),           # alpha  (lane-dense)
        ),
        out_shape=(jax.ShapeDtypeStruct((Bp, Hp), f32),
                   jax.ShapeDtypeStruct((Bp, Lp), f32)),
        compiler_params=pltpu.CompilerParams(
            dimension_semantics=("parallel",),       # v7x: both TCs split the batch
            vmem_limit_bytes=32 * 1024 * 1024,       # safe on v5e/v6e/v7x
        ),
        cost_estimate=cost,
    )(x_p, ctx_p, bias_p, w_in_p, b_in_p, w_ctx_p, b_ctx_p, v_p)

    return hidden_p[:B, :H], alpha_p[:B, :L]


def pointer_attention_ref(x, context, mask, w_in, b_in, w_ctx, b_ctx, v):
    """Pure-JAX reference mirroring the PyTorch forward (uses literal -inf)."""
    inp = x @ w_in.T + b_in                                            # (B, H)
    ctx = jnp.einsum('bld,hd->blh', context, w_ctx[:, :, 0]) + b_ctx   # (B, L, H)
    att = jnp.sum(jnp.tanh(inp[:, None, :] + ctx) * v[None, None, :], axis=-1)
    att = jnp.where(mask > 0, -jnp.inf, att)
    alpha = jax.nn.softmax(att, axis=1)
    hidden = jnp.einsum('blh,bl->bh', ctx, alpha)
    return hidden, alpha


if __name__ == "__main__":
    B, L, D, H = 2, 8, 32, 32   # batch, seq, input_dim, hidden_dim

    key = jax.random.PRNGKey(0)
    k1, k2, k3, k4, k5, k6, k7 = jax.random.split(key, 7)

    x = jax.random.normal(k1, (B, D), dtype=jnp.float32)
    context = jax.random.normal(k2, (B, L, D), dtype=jnp.float32)
    # mask: last two sequence positions masked out in every batch row
    mask = jnp.zeros((B, L), dtype=jnp.float32).at[:, -2:].set(1.0)

    bound = 1.0 / (D ** 0.5)
    w_in = jax.random.uniform(k3, (H, D), minval=-bound, maxval=bound)
    b_in = jax.random.uniform(k4, (H,), minval=-bound, maxval=bound)
    w_ctx = jax.random.uniform(k5, (H, D, 1), minval=-bound, maxval=bound)
    b_ctx = jax.random.uniform(k6, (H,), minval=-bound, maxval=bound)
    v = jax.random.uniform(k7, (H,), minval=-1.0, maxval=1.0)

    hidden_r, alpha_r = pointer_attention_ref(x, context, mask, w_in, b_in,
                                              w_ctx, b_ctx, v)

    # f32 matmul path (tight check; only the approx reciprocal relaxes it)
    hidden, alpha = pointer_attention(x, context, mask, w_in, b_in, w_ctx,
                                      b_ctx, v, compute_dtype=jnp.float32)
    jax.block_until_ready((hidden, alpha))
    assert hidden.shape == (B, H) and alpha.shape == (B, L)
    assert bool(jnp.allclose(hidden, hidden_r, atol=5e-3, rtol=5e-3))
    assert bool(jnp.allclose(alpha, alpha_r, atol=5e-3, rtol=5e-3))
    assert bool(jnp.allclose(alpha.sum(axis=1), 1.0, atol=1e-2))

    # bf16 matmul-input path (v6e/v7x MXU fast path; f32 accum/tanh/softmax)
    hidden_b, alpha_b = pointer_attention(x, context, mask, w_in, b_in, w_ctx,
                                          b_ctx, v, compute_dtype=jnp.bfloat16)
    jax.block_until_ready((hidden_b, alpha_b))
    assert bool(jnp.allclose(hidden_b, hidden_r, atol=6e-2, rtol=6e-2))
    assert bool(jnp.allclose(alpha_b, alpha_r, atol=6e-2, rtol=6e-2))

    print("KERNEL_OK")
</pallas_src>

<mosaic_0001>
module attributes {stable_mosaic.version = 11 : i64} {
  func.func @_pointer_attention_kernel(%arg0: i32, %arg1: memref<8x128xf32, #tpu.memory_space<vmem>>, %arg2: memref<8x128x128xf32, #tpu.memory_space<vmem>>, %arg3: memref<8x128xf32, #tpu.memory_space<vmem>>, %arg4: memref<128x128xf32, #tpu.memory_space<vmem>>, %arg5: memref<1x128xf32, #tpu.memory_space<vmem>>, %arg6: memref<128x128xf32, #tpu.memory_space<vmem>>, %arg7: memref<1x128xf32, #tpu.memory_space<vmem>>, %arg8: memref<1x128xf32, #tpu.memory_space<vmem>>, %arg9: memref<8x128xf32, #tpu.memory_space<vmem>>, %arg10: memref<8x128xf32, #tpu.memory_space<vmem>>) attributes {dimension_semantics = [#tpu.dimension_semantics<parallel>], iteration_bounds = array<i64: 1>, scalar_prefetch = 0 : i64, scratch_operands = 0 : i64, tpu.core_type = #tpu.core_type<tc>, window_params = [{transform_indices = @transform_0, window_bounds = array<i64: 8, 128>}, {transform_indices = @transform_1, window_bounds = array<i64: 8, 128, 128>}, {transform_indices = @transform_2, window_bounds = array<i64: 8, 128>}, {pipeline_mode = #tpu.pipeline_mode<synchronous>, transform_indices = @transform_3, window_bounds = array<i64: 128, 128>}, {pipeline_mode = #tpu.pipeline_mode<synchronous>, transform_indices = @transform_4, window_bounds = array<i64: 1, 128>}, {pipeline_mode = #tpu.pipeline_mode<synchronous>, transform_indices = @transform_5, window_bounds = array<i64: 128, 128>}, {pipeline_mode = #tpu.pipeline_mode<synchronous>, transform_indices = @transform_6, window_bounds = array<i64: 1, 128>}, {pipeline_mode = #tpu.pipeline_mode<synchronous>, transform_indices = @transform_7, window_bounds = array<i64: 1, 128>}, {transform_indices = @transform_8, window_bounds = array<i64: 8, 128>}, {transform_indices = @transform_9, window_bounds = array<i64: 8, 128>}]} {
    %c0 = arith.constant 0 : index
    %c0_0 = arith.constant 0 : index
    %0 = vector.load %arg1[%c0, %c0_0] : memref<8x128xf32, #tpu.memory_space<vmem>>, vector<8x128xf32>
    %c0_1 = arith.constant 0 : index
    %c0_2 = arith.constant 0 : index
    %1 = vector.load %arg4[%c0_1, %c0_2] : memref<128x128xf32, #tpu.memory_space<vmem>>, vector<128x128xf32>
    %cst = arith.constant dense<0.000000e+00> : vector<8x128xf32>
    %2 = tpu.matmul %0, %1, %cst {dimension_numbers = #tpu.dot_dimension_numbers<[1], [0], [0], [1], [0, 0, 1, 1], [], []>} : vector<8x128xf32>, vector<128x128xf32>, vector<8x128xf32> -> vector<8x128xf32>
    %c0_3 = arith.constant 0 : index
    %c0_4 = arith.constant 0 : index
    %3 = vector.load %arg5[%c0_3, %c0_4] : memref<1x128xf32, #tpu.memory_space<vmem>>, vector<1x128xf32>
    %4 = vector.broadcast %3 : vector<1x128xf32> to vector<8x128xf32>
    %5 = arith.addf %2, %4 : vector<8x128xf32>
    %c0_5 = arith.constant 0 : index
    %c0_6 = arith.constant 0 : index
    %c0_7 = arith.constant 0 : index
    %6 = vector.load %arg2[%c0_5, %c0_6, %c0_7] : memref<8x128x128xf32, #tpu.memory_space<vmem>>, vector<8x128x128xf32>
    %7 = vector.shape_cast %6 : vector<8x128x128xf32> to vector<1024x128xf32>
    %c0_8 = arith.constant 0 : index
    %c0_9 = arith.constant 0 : index
    %8 = vector.load %arg6[%c0_8, %c0_9] : memref<128x128xf32, #tpu.memory_space<vmem>>, vector<128x128xf32>
    %cst_10 = arith.constant dense<0.000000e+00> : vector<1024x128xf32>
    %9 = tpu.matmul %7, %8, %cst_10 {dimension_numbers = #tpu.dot_dimension_numbers<[1], [0], [0], [1], [0, 0, 1, 1], [], []>} : vector<1024x128xf32>, vector<128x128xf32>, vector<1024x128xf32> -> vector<1024x128xf32>
    %c0_11 = arith.constant 0 : index
    %c0_12 = arith.constant 0 : index
    %10 = vector.load %arg7[%c0_11, %c0_12] : memref<1x128xf32, #tpu.memory_space<vmem>>, vector<1x128xf32>
    %11 = vector.broadcast %10 : vector<1x128xf32> to vector<1024x128xf32>
    %12 = arith.addf %9, %11 : vector<1024x128xf32>
    %13 = vector.shape_cast %12 : vector<1024x128xf32> to vector<8x128x128xf32>
    %14 = vector.shape_cast %5 : vector<8x128xf32> to vector<8x1x128xf32>
    %15 = vector.broadcast %14 : vector<8x1x128xf32> to vector<8x128x128xf32>
    %16 = arith.addf %15, %13 : vector<8x128x128xf32>
    %17 = math.tanh %16 : vector<8x128x128xf32>
    %c0_13 = arith.constant 0 : index
    %c0_14 = arith.constant 0 : index
    %18 = vector.load %arg8[%c0_13, %c0_14] : memref<1x128xf32, #tpu.memory_space<vmem>>, vector<1x128xf32>
    %19 = vector.shape_cast %18 : vector<1x128xf32> to vector<1x1x128xf32>
    %20 = vector.broadcast %19 : vector<1x1x128xf32> to vector<8x128x128xf32>
    %21 = arith.mulf %17, %20 : vector<8x128x128xf32>
    %cst_15 = arith.constant dense<0.000000e+00> : vector<8x128xf32>
    %22 = vector.multi_reduction <add>, %21, %cst_15 [2] : vector<8x128x128xf32> to vector<8x128xf32>
    %c0_16 = arith.constant 0 : index
    %c0_17 = arith.constant 0 : index
    %23 = vector.load %arg3[%c0_16, %c0_17] : memref<8x128xf32, #tpu.memory_space<vmem>>, vector<8x128xf32>
    %24 = arith.addf %22, %23 : vector<8x128xf32>
    %cst_18 = arith.constant dense<0xFF800000> : vector<8xf32>
    %25 = vector.multi_reduction <maximumf>, %24, %cst_18 [1] : vector<8x128xf32> to vector<8xf32>
    %26 = vector.shape_cast %25 : vector<8xf32> to vector<8x1xf32>
    %27 = vector.broadcast %26 : vector<8x1xf32> to vector<8x128xf32>
    %28 = arith.subf %24, %27 : vector<8x128xf32>
    %29 = math.exp %28 : vector<8x128xf32>
    %cst_19 = arith.constant dense<0.000000e+00> : vector<8xf32>
    %30 = vector.multi_reduction <add>, %29, %cst_19 [1] : vector<8x128xf32> to vector<8xf32>
    %31 = vector.shape_cast %30 : vector<8xf32> to vector<8x1xf32>
    %32 = tpu.reciprocal %31 {approx = true} : vector<8x1xf32> -> vector<8x1xf32>
    %33 = vector.broadcast %32 : vector<8x1xf32> to vector<8x128xf32>
    %34 = arith.mulf %29, %33 : vector<8x128xf32>
    %c0_20 = arith.constant 0 : index
    %c0_21 = arith.constant 0 : index
    %35 = vector.load %arg10[%c0_20, %c0_21] : memref<8x128xf32, #tpu.memory_space<vmem>>, vector<8x128xf32>
    tpu.vector_store %arg10[%c0_20, %c0_21], %34 {strides = array<i32>} : memref<8x128xf32, #tpu.memory_space<vmem>>, vector<8x128xf32>,
    %36 = vector.shape_cast %34 : vector<8x128xf32> to vector<8x128x1xf32>
    %37 = vector.broadcast %36 : vector<8x128x1xf32> to vector<8x128x128xf32>
    %38 = arith.mulf %13, %37 : vector<8x128x128xf32>
    %cst_22 = arith.constant dense<0.000000e+00> : vector<8x128xf32>
    %39 = vector.multi_reduction <add>, %38, %cst_22 [1] : vector<8x128x128xf32> to vector<8x128xf32>
    %c0_23 = arith.constant 0 : index
    %c0_24 = arith.constant 0 : index
    %40 = vector.load %arg9[%c0_23, %c0_24] : memref<8x128xf32, #tpu.memory_space<vmem>>, vector<8x128xf32>
    tpu.vector_store %arg9[%c0_23, %c0_24], %39 {strides = array<i32>} : memref<8x128xf32, #tpu.memory_space<vmem>>, vector<8x128xf32>,
    return
  }
  func.func @transform_0(%arg0: i32) -> (i32, i32) {
    %c0_i32 = arith.constant 0 : i32
    %c0_i32_0 = arith.constant 0 : i32
    return %arg0, %c0_i32 : i32, i32
  }
  func.func @transform_1(%arg0: i32) -> (i32, i32, i32) {
    %c0_i32 = arith.constant 0 : i32
    %c0_i32_0 = arith.constant 0 : i32
    %c0_i32_1 = arith.constant 0 : i32
    return %arg0, %c0_i32, %c0_i32_0 : i32, i32, i32
  }
  func.func @transform_2(%arg0: i32) -> (i32, i32) {
    %c0_i32 = arith.constant 0 : i32
    %c0_i32_0 = arith.constant 0 : i32
    return %arg0, %c0_i32 : i32, i32
  }
  func.func @transform_3(%arg0: i32) -> (i32, i32) {
    %c0_i32 = arith.constant 0 : i32
    %c0_i32_0 = arith.constant 0 : i32
    %c0_i32_1 = arith.constant 0 : i32
    return %c0_i32, %c0_i32_0 : i32, i32
  }
  func.func @transform_4(%arg0: i32) -> (i32, i32) {
    %c0_i32 = arith.constant 0 : i32
    %c0_i32_0 = arith.constant 0 : i32
    %c0_i32_1 = arith.constant 0 : i32
    return %c0_i32, %c0_i32_0 : i32, i32
  }
  func.func @transform_5(%arg0: i32) -> (i32, i32) {
    %c0_i32 = arith.constant 0 : i32
    %c0_i32_0 = arith.constant 0 : i32
    %c0_i32_1 = arith.constant 0 : i32
    return %c0_i32, %c0_i32_0 : i32, i32
  }
  func.func @transform_6(%arg0: i32) -> (i32, i32) {
    %c0_i32 = arith.constant 0 : i32
    %c0_i32_0 = arith.constant 0 : i32
    %c0_i32_1 = arith.constant 0 : i32
    return %c0_i32, %c0_i32_0 : i32, i32
  }
  func.func @transform_7(%arg0: i32) -> (i32, i32) {
    %c0_i32 = arith.constant 0 : i32
    %c0_i32_0 = arith.constant 0 : i32
    %c0_i32_1 = arith.constant 0 : i32
    return %c0_i32, %c0_i32_0 : i32, i32
  }
  func.func @transform_8(%arg0: i32) -> (i32, i32) {
    %c0_i32 = arith.constant 0 : i32
    %c0_i32_0 = arith.constant 0 : i32
    return %arg0, %c0_i32 : i32, i32
  }
  func.func @transform_9(%arg0: i32) -> (i32, i32) {
    %c0_i32 = arith.constant 0 : i32
    %c0_i32_0 = arith.constant 0 : i32
    return %arg0, %c0_i32 : i32, i32
  }
}

</mosaic_0001>

<bundles_post_ra>
// kernel: tpu_custom_call.1
= control target key start
LH: loop header
LB: loop body
LE: loop exit
PB: predicated region body
PF: predicated region fallthrough
CT: control target
= control target key end

     0   :  { %15 = vsyncpa [#allocation3], 0  ;;  %s13984_s0 = inlined_call_operand.hbm [shape: f32[8,128], index: 0, kind: input, shape index: {}]   ;;  %s13985_s1 = inlined_call_operand.hbm [shape: f32[8,128,128], index: 1, kind: input, shape index: {}]   ;;  %s13986_s2 = inlined_call_operand.hbm [shape: f32[8,128], index: 2, kind: input, shape index: {}]   ;;  %s13987_s3 = inlined_call_operand.hbm [shape: f32[128,128], index: 3, kind: input, shape index: {}]   ;;  %s13988_s4 = inlined_call_operand.vmem [shape: f32[1,128], index: 4, kind: input, shape index: {}]   ;;  %s13989_s5 = inlined_call_operand.hbm [shape: f32[128,128], index: 5, kind: input, shape index: {}]   ;;  %s13990_s6 = inlined_call_operand.vmem [shape: f32[1,128], index: 6, kind: input, shape index: {}]   ;;  %s13991_s7 = inlined_call_operand.vmem [shape: f32[1,128], index: 7, kind: input, shape index: {}]   ;;  %s13992_s8 = inlined_call_operand.hbm [shape: f32[8,128], index: 8, kind: output, shape index: {0}]   ;;  %s13993_s9 = inlined_call_operand.hbm [shape: f32[8,128], index: 9, kind: output, shape index: {1}]  }
   0x1   :  { %16 = vsyncpa [#allocation6], 0 }
   0x2   :  { %17 = vsyncpa [#allocation9], 0 }
   0x3   :  { %18 = vsyncpa [#allocation4], 0 }
   0x4   :  { %19 = vsyncpa [#allocation13], 0  ;;  %s8337_s30 = smov [#allocation5]   ;;  %s8173_s13 = scalar_lea.hbm %s13985_s1, 16384 }
   0x5   :  { %s35_s10 = sshll.u32 %s8337_s30, 4  ;;  %p8174_p0 = scmp.ne.s32.totalorder %s13985_s1, %s8173_s13  ;;  %s36_s10 = int_to_ptr.vmem [resolvable:$true] %s35_s10 }
   0x6   :  { %p8177_p1 = scmp.lt.u32.totalorder %s8173_s13, %s13985_s1 }
   0x8   :  { %p8179_p2 = pnand %p8177_p1, %p8174_p0 }
   0xa   :  { %8182 = shalt.err (!%p8179_p2)
}
   0xb   :  { %s8183_s18 = scalar_lea.vmem %s36_s10, 16384  ;;  %p8188_p4 = scmp.lt.s32.totalorder %s36_s10, %s36_s10 }
   0xc   :  { %p8184_p3 = scmp.ne.s32.totalorder %s36_s10, %s8183_s18  ;;  %p8189_p5 = scmp.lt.s32.totalorder %s8183_s18, %s8183_s18 }
   0xe   :  { %p8190_p6 = por %p8189_p5, %p8188_p4 }
  0x10   :  { %p8191_p7 = pnand %p8190_p6, %p8184_p3 }
  0x12   :  { %8194 = shalt.err (!%p8191_p7)
}
  0x13   :  { %s8338_s19 = smov 128   ;;  %s8339_s20 = smov 8  }
  0x14   :  { %41 = dma.hbm_to_vmem [thread:$0]  %s13985_s1, 16384, %s36_s10, [#allocation6], %s8338_s19, %s8338_s19, %s8339_s20  }
  0x15   :  { %s8340_s23 = smov [#allocation8]   ;;  %s8341_s25 = smov [#allocation2]  }
  0x16   :  { %s57_s24 = sshll.u32 %s8340_s23, 4  ;;  %s26_s26 = sshll.u32 %s8341_s25, 4  ;;  %s58_s24 = int_to_ptr.vmem [resolvable:$true] %s57_s24  ;;  %s27_s26 = int_to_ptr.vmem [resolvable:$true] %s26_s26 }
  0x17   :  { %s8195_s29 = scalar_lea.hbm %s13987_s3, 2048 }
  0x18   :  { %p8196_p8 = scmp.ne.s32.totalorder %s13987_s3, %s8195_s29  ;;  %p8199_p9 = scmp.lt.u32.totalorder %s8195_s29, %s13987_s3 }
  0x1a   :  { %p8201_p10 = pnand %p8199_p9, %p8196_p8 }
  0x1c   :  { %8204 = shalt.err (!%p8201_p10)
}
  0x1d   :  { %s8205_s1 = scalar_lea.vmem %s58_s24, 2048  ;;  %p8210_p12 = scmp.lt.s32.totalorder %s58_s24, %s58_s24 }
  0x1e   :  { %p8206_p11 = scmp.ne.s32.totalorder %s58_s24, %s8205_s1  ;;  %p8211_p13 = scmp.lt.s32.totalorder %s8205_s1, %s8205_s1 }
  0x20   :  { %p8212_p0 = por %p8211_p13, %p8210_p12 }
  0x22   :  { %p8213_p1 = pnand %p8212_p0, %p8206_p11 }
  0x24   :  { %8216 = shalt.err (!%p8213_p1)
}
  0x25   :  { %63 = dma.hbm_to_vmem [thread:$0]  %s13987_s3, 2048, %s58_s24, [#allocation9], %s8338_s19, %s8338_s19, %s8339_s20  }
  0x26   :  { %s8217_s17 = scalar_lea.hbm %s13984_s0, 128 }
  0x27   :  { %p8218_p2 = scmp.ne.s32.totalorder %s13984_s0, %s8217_s17  ;;  %p8221_p3 = scmp.lt.u32.totalorder %s8217_s17, %s13984_s0 }
  0x29   :  { %p8223_p4 = pnand %p8221_p3, %p8218_p2 }
  0x2b   :  { %8226 = shalt.err (!%p8223_p4)
}
  0x2c   :  { %s8227_s25 = scalar_lea.vmem %s27_s26, 128  ;;  %p8232_p6 = scmp.lt.s32.totalorder %s27_s26, %s27_s26 }
  0x2d   :  { %p8228_p5 = scmp.ne.s32.totalorder %s27_s26, %s8227_s25  ;;  %p8233_p7 = scmp.lt.s32.totalorder %s8227_s25, %s8227_s25 }
  0x2f   :  { %p8234_p8 = por %p8233_p7, %p8232_p6 }
  0x31   :  { %p8235_p9 = pnand %p8234_p8, %p8228_p5 }
  0x33   :  { %8238 = shalt.err (!%p8235_p9)
}
  0x34   :  { %29 = dma.hbm_to_vmem [thread:$0]  %s13984_s0, 128, %s27_s26, [#allocation3]  }
  0x35   :  { %s8342_s27 = smov [#allocation7]   ;;  %s8343_s29 = smov [#allocation10]  }
  0x36   :  { %s48_s28 = sshll.u32 %s8342_s27, 4  ;;  %s71_s30 = sshll.u32 %s8343_s29, 4  ;;  %s49_s28 = int_to_ptr.vmem [resolvable:$true] %s48_s28  ;;  %s72_s30 = int_to_ptr.vmem [resolvable:$true] %s71_s30 }
  0x37   :  { %s8239_s13 = scalar_lea.hbm %s13986_s2, 128 }
  0x38   :  { %p8240_p10 = scmp.ne.s32.totalorder %s13986_s2, %s8239_s13  ;;  %p8243_p11 = scmp.lt.u32.totalorder %s8239_s13, %s13986_s2 }
  0x3a   :  { %p8245_p12 = pnand %p8243_p11, %p8240_p10 }
  0x3c   :  { %8248 = shalt.err (!%p8245_p12)
}
  0x3d   :  { %s8249_s0 = scalar_lea.vmem %s49_s28, 128  ;;  %p8254_p0 = scmp.lt.s32.totalorder %s49_s28, %s49_s28 }
  0x3e   :  { %p8250_p13 = scmp.ne.s32.totalorder %s49_s28, %s8249_s0  ;;  %p8255_p1 = scmp.lt.s32.totalorder %s8249_s0, %s8249_s0 }
  0x40   :  { %p8256_p2 = por %p8255_p1, %p8254_p0 }
  0x42   :  { %p8257_p3 = pnand %p8256_p2, %p8250_p13 }
  0x44   :  { %8260 = shalt.err (!%p8257_p3)
}
  0x45   :  { %51 = dma.hbm_to_vmem [thread:$0]  %s13986_s2, 128, %s49_s28, [#allocation6]  }
  0x46   :  { %s8261_s21 = scalar_lea.hbm %s13989_s5, 2048 }
  0x47   :  { %p8262_p4 = scmp.ne.s32.totalorder %s13989_s5, %s8261_s21  ;;  %p8265_p5 = scmp.lt.u32.totalorder %s8261_s21, %s13989_s5 }
  0x49   :  { %p8267_p6 = pnand %p8265_p5, %p8262_p4 }
  0x4b   :  { %8270 = shalt.err (!%p8267_p6)
}
  0x4c   :  { %s8271_s24 = scalar_lea.vmem %s72_s30, 2048  ;;  %p8276_p8 = scmp.lt.s32.totalorder %s72_s30, %s72_s30 }
  0x4d   :  { %p8272_p7 = scmp.ne.s32.totalorder %s72_s30, %s8271_s24  ;;  %p8277_p9 = scmp.lt.s32.totalorder %s8271_s24, %s8271_s24 }
  0x4f   :  { %p8278_p10 = por %p8277_p9, %p8276_p8 }
  0x51   :  { %p8279_p11 = pnand %p8278_p10, %p8272_p7 }
  0x53   :  { %8282 = shalt.err (!%p8279_p11)
}
  0x54   :  { %77 = dma.hbm_to_vmem [thread:$0]  %s13989_s5, 2048, %s72_s30, [#allocation9], %s8338_s19, %s8338_s19, %s8339_s20  }
  0x55   :  { %8327 = dma.done.wait [#allocation3], 128  }
  0x56   :  { %8328 = vsyncadd [#allocation3], 4294967168 }
  0x57   :  { %8329 = dma.done.wait [#allocation6], 16512  }
  0x58   :  { %8330 = vsyncadd [#allocation6], 4294950784 }
  0x59   :  { %8331 = dma.done.wait [#allocation9], 4096  }
  0x5a   :  { %8332 = vsyncadd [#allocation9], 4294963200  ;;  %v8344_v0 = vmov 0.0|0.0   ;;  %vm8345_vm0 = vmmov 0   ;;  %v8346_v1 = vmov 0.0   ;;  %v98_v2 = vld [vmem:[#allocation8] sm:$0xff]  ;;  %v13994_v37 = vlaneseq }
  0x5b   :  { %7568 = vmatprep.subr.bf16.mxu0 %v8344_v0  ;;  %7341 = vmatprep.mubr.msk.f32.mxu0 %vm8345_vm0, %v8346_v1  ;;  %v99_v3 = vld [vmem:[#allocation8 + $0x8] sm:$0xff]  ;;  %v319_v4 = vld [vmem:[#allocation10] sm:$0xff]  ;;  %v100_v7 = vld [vmem:[#allocation8 + $0x10] sm:$0xff]  ;;  %vm3101_vm1 = vcmask 130112   ;;  %vm3108_vm2 = vcmask 195712   ;;  %vm3115_vm3 = vcmask 261312  }
  0x5c   :  { %v7569_v5 = vpack.c.bf16 %v99_v3, %v98_v2  ;;  %v320_v6 = vld [vmem:[#allocation10 + $0x8] sm:$0xff]  ;;  %v101_v8 = vld [vmem:[#allocation8 + $0x18] sm:$0xff]  ;;  %v321_v10 = vld [vmem:[#allocation10 + $0x10] sm:$0xff]  ;;  %v8498_v44 = vshrl.u32 %v13994_v37, 7  ;;  %vm3122_vm4 = vcmask 326912   ;;  %vm14276_vm5 = vcmask 392512  }
  0x5d   :  { %v8471_v9 = vpack.c.bf16 %v320_v6, %v319_v4  ;;  %v322_v11 = vld [vmem:[#allocation10 + $0x18] sm:$0xff]  ;;  %v7572_v12 = vpack.c.bf16 %v101_v8, %v100_v7  ;;  %v323_v14 = vld [vmem:[#allocation10 + $0x20] sm:$0xff]  ;;  %v324_v15 = vld [vmem:[#allocation10 + $0x28] sm:$0xff]  ;;  %vm14277_vm6 = vcmask 458112   ;;  %vm3143_vm7 = vcmask 523712  }
  0x5e   :  { %7570 = vmatpush3.bf16.msra.mxu0 %v7569_v5  ;;  %v8473_v13 = vpack.c.bf16 %v322_v11, %v321_v10  ;;  %v102_v16 = vld [vmem:[#allocation8 + $0x20] sm:$0xff]  ;;  %v103_v17 = vld [vmem:[#allocation8 + $0x28] sm:$0xff]  ;;  %v8479_v18 = vpack.c.bf16 %v324_v15, %v323_v14  ;;  %v325_v20 = vld [vmem:[#allocation10 + $0x30] sm:$0xff]  ;;  %14434 = vst [vmem:[#allocation19_spill] sm:$0xff] %v8498_v44  ;;  %v8506_v51 = vsub.s32 0, %v8498_v44  ;;  %v8546_v5 = vsub.s32 1, %v8498_v44 }
  0x5f   :  { %7624 = vmatprep.subr.bf16.mxu1 %v8471_v9  ;;  %7571 = vmatprep.subr.bf16.mxu0 %v8344_v0  ;;  %v7575_v19 = vpack.c.bf16 %v103_v17, %v102_v16  ;;  %v326_v21 = vld [vmem:[#allocation10 + $0x38] sm:$0xff]  ;;  %v104_v22 = vld [vmem:[#allocation8 + $0x30] sm:$0xff]  ;;  %v327_v26 = vld [vmem:[#allocation10 + $0x40] sm:$0xff]  ;;  %vm3150_vm8 = vcmask 589312   ;;  %vm14279_vm9 = vcmask 654912   ;;  %vm14278_vm10 = vcmask 720512  }
  0x60   :  { %7632 = vmatpush3.bf16.msra.mxu1 %v8471_v9  ;;  %v105_v23 = vld [vmem:[#allocation8 + $0x38] sm:$0xff]  ;;  %v8484_v24 = vpack.c.bf16 %v326_v21, %v325_v20  ;;  %v328_v27 = vld [vmem:[#allocation10 + $0x48] sm:$0xff]  ;;  %v106_v29 = vld [vmem:[#allocation8 + $0x40] sm:$0xff]  ;;  %14435 = vst [vmem:[#allocation20_spill] sm:$0xff] %v8506_v51  ;;  %vm14280_vm11 = vcmask 786112   ;;  %vm3178_vm12 = vcmask 851712  }
  0x61   :  { %7625 = vmatprep.subr.bf16.mxu1 %v8473_v13  ;;  %v7578_v25 = vpack.c.bf16 %v105_v23, %v104_v22  ;;  %v247_v28 = vld [vmem:[#allocation5 + $0x1c0] sm:$0xff]  ;;  %v107_v30 = vld [vmem:[#allocation8 + $0x48] sm:$0xff]  ;;  %v8489_v31 = vpack.c.bf16 %v328_v27, %v327_v26  ;;  %v329_v33 = vld [vmem:[#allocation10 + $0x50] sm:$0xff]  ;;  %14436 = vst [vmem:[#allocation21_spill] sm:$0xff] %v8546_v5  ;;  %vm3185_vm13 = vcmask 917312   ;;  %vm3192_vm14 = vcmask 982912  }
  0x62   :  { %7573 = vmatpush3.bf16.msra.mxu0 %v7572_v12  ;;  %7460 = vmatprep.mubr.f32.mxu1 %v247_v28  ;;  %v7581_v32 = vpack.c.bf16 %v107_v30, %v106_v29  ;;  %v330_v34 = vld [vmem:[#allocation10 + $0x58] sm:$0xff]  ;;  %v108_v35 = vld [vmem:[#allocation8 + $0x50] sm:$0xff]  ;;  %v331_v40 = vld [vmem:[#allocation10 + $0x60] sm:$0xff]  ;;  %vm3199_vm15 = vcmask 1048512   ;;  %vm14281_vm0 = vcmask 1041409  }
  0x63   :  { %7574 = vmatprep.subr.bf16.mxu0 %v8344_v0  ;;  %v109_v36 = vld [vmem:[#allocation8 + $0x58] sm:$0xff]  ;;  %v8494_v38 = vpack.c.bf16 %v330_v34, %v329_v33  ;;  %v332_v41 = vld [vmem:[#allocation10 + $0x68] sm:$0xff]  ;;  %v110_v42 = vld [vmem:[#allocation8 + $0x60] sm:$0xff] }
  0x64   :  { %7633 = vmatpush3.bf16.msra.mxu1 %v8473_v13  ;;  %v7584_v39 = vpack.c.bf16 %v109_v36, %v108_v35  ;;  %v111_v43 = vld [vmem:[#allocation8 + $0x68] sm:$0xff]  ;;  %v8502_v45 = vpack.c.bf16 %v332_v41, %v331_v40  ;;  %v333_v47 = vld [vmem:[#allocation10 + $0x70] sm:$0xff]  ;;  %v334_v48 = vld [vmem:[#allocation10 + $0x78] sm:$0xff]  ;;  %v8574_v35 = vsub.s32 2, %v8498_v44 }
  0x65   :  { %7626 = vmatprep.subr.bf16.mxu1 %v8479_v18  ;;  %v7587_v46 = vpack.c.bf16 %v111_v43, %v110_v42  ;;  %v112_v49 = vld [vmem:[#allocation8 + $0x70] sm:$0xff]  ;;  %v113_v50 = vld [vmem:[#allocation8 + $0x78] sm:$0xff]  ;;  %v8510_v52 = vpack.c.bf16 %v334_v48, %v333_v47  ;;  %v248_v58 = vld [vmem:[#allocation5 + $0x1c8] sm:$0xff] }
  0x66   :  { %7576 = vmatpush3.bf16.msra.mxu0 %v7575_v19  ;;  %v7590_v53 = vpack.c.bf16 %v113_v50, %v112_v49  ;;  %v8512_v54 = vld [vmem:[#allocation7] sm:$0xff]  ;;  %v97_v56 = vld [vmem:[#allocation2] sm:$0xff]  ;;  %v249_v59 = vld [vmem:[#allocation5 + $0x1d0] sm:$0xff]  ;;  %14437 = vst [vmem:[#allocation22_spill] sm:$0xff] %v8574_v35 }
  0x67   :  { %7577 = vmatprep.subr.bf16.mxu0 %v8344_v0  ;;  %v8517_v55 = vrot.slane %v8512_v54, %v8506_v51  ;;  %v191_v57 = vld [vmem:[#allocation5] sm:$0xff]  ;;  %v250_v60 = vld [vmem:[#allocation5 + $0x1d8] sm:$0xff]  ;;  %v252_v62 = vld [vmem:[#allocation5 + $0x1e8] sm:$0xff]  ;;  %v8554_v8 = vrot.slane %v8512_v54, %v8546_v5  ;;  %v8580_v41 = vrot.slane %v8512_v54, %v8574_v35 }
  0x68   :  { %7634 = vmatpush3.bf16.msra.mxu1 %v8479_v18  ;;  %v251_v61 = vld [vmem:[#allocation5 + $0x1e0] sm:$0xff]  ;;  %v253_v63 = vld [vmem:[#allocation5 + $0x1f0] sm:$0xff]  ;;  %v256_v2 = vld [vmem:[#allocation5 + $0x208] sm:$0xff] }
  0x69   :  { %7627 = vmatprep.subr.bf16.mxu1 %v8484_v24  ;;  %1795 = vbcast.lane.b32.xlu1 %v8517_v55, 264  ;;  %v255_v1 = vld [vmem:[#allocation5 + $0x200] sm:$0xff]  ;;  %v257_v3 = vld [vmem:[#allocation5 + $0x210] sm:$0xff]  ;;  %v258_v4 = vld [vmem:[#allocation5 + $0x218] sm:$0xff] }
  0x6a   :  { %7579 = vmatpush3.bf16.msra.mxu0 %v7578_v25  ;;  %1791 = vbcast.lane.b32.xlu0 %v8517_v55, 256  ;;  %v259_v6 = vld [vmem:[#allocation5 + $0x220] sm:$0xff]  ;;  %v260_v7 = vld [vmem:[#allocation5 + $0x228] sm:$0xff]  ;;  %v262_v10 = vld [vmem:[#allocation5 + $0x238] sm:$0xff] }
  0x6b   :  { %7580 = vmatprep.subr.bf16.mxu0 %v8344_v0  ;;  %v263_v11 = vld [vmem:[#allocation5 + $0x240] sm:$0xff]  ;;  %v192_v12 = vld [vmem:[#allocation5 + $0x8] sm:$0xff]  ;;  %v265_v15 = vld [vmem:[#allocation5 + $0x250] sm:$0xff] }
  0x6c   :  { %7635 = vmatpush3.bf16.msra.mxu1 %v8484_v24  ;;  %v264_v14 = vld [vmem:[#allocation5 + $0x248] sm:$0xff]  ;;  %v194_v16 = vld [vmem:[#allocation5 + $0x18] sm:$0xff]  ;;  %v195_v17 = vld [vmem:[#allocation5 + $0x20] sm:$0xff] }
  0x6d   :  { %7628 = vmatprep.subr.bf16.mxu1 %v8489_v31  ;;  %1799 = vbcast.lane.b32.xlu1 %v8517_v55, 272  ;;  %v267_v19 = vld [vmem:[#allocation5 + $0x260] sm:$0xff]  ;;  %v196_v20 = vld [vmem:[#allocation5 + $0x28] sm:$0xff]  ;;  %v197_v21 = vld [vmem:[#allocation5 + $0x30] sm:$0xff] }
  0x6e   :  { %7582 = vmatpush3.bf16.msra.mxu0 %v7581_v32  ;;  %1807 = vbcast.lane.b32.xlu0 %v8517_v55, 288  ;;  %v268_v22 = vld [vmem:[#allocation5 + $0x268] sm:$0xff]  ;;  %v269_v23 = vld [vmem:[#allocation5 + $0x270] sm:$0xff]  ;;  %v199_v25 = vld [vmem:[#allocation5 + $0x40] sm:$0xff] }
  0x6f   :  { %7583 = vmatprep.subr.bf16.mxu0 %v8344_v0  ;;  %v270_v26 = vld [vmem:[#allocation5 + $0x278] sm:$0xff]  ;;  %v271_v27 = vld [vmem:[#allocation5 + $0x280] sm:$0xff]  ;;  %v200_v28 = vld [vmem:[#allocation5 + $0x48] sm:$0xff] }
  0x70   :  { %7636 = vmatpush3.bf16.msra.mxu1 %v8489_v31  ;;  %v201_v29 = vld [vmem:[#allocation5 + $0x50] sm:$0xff]  ;;  %v272_v30 = vld [vmem:[#allocation5 + $0x288] sm:$0xff]  ;;  %v202_v32 = vld [vmem:[#allocation5 + $0x58] sm:$0xff] }
  0x71   :  { %7629 = vmatprep.subr.bf16.mxu1 %v8494_v38  ;;  %1803 = vbcast.lane.b32.xlu1 %v8517_v55, 280  ;;  %v203_v33 = vld [vmem:[#allocation5 + $0x60] sm:$0xff]  ;;  %v274_v34 = vld [vmem:[#allocation5 + $0x298] sm:$0xff]  ;;  %v276_v40 = vld [vmem:[#allocation5 + $0x2a8] sm:$0xff] }
  0x72   :  { %7585 = vmatpush3.bf16.msra.mxu0 %v7584_v39  ;;  %1815 = vbcast.lane.b32.xlu0 %v8517_v55, 304  ;;  %v275_v36 = vld [vmem:[#allocation5 + $0x2a0] sm:$0xff]  ;;  %v205_v39 = vld [vmem:[#allocation5 + $0x70] sm:$0xff]  ;;  %v206_v43 = vld [vmem:[#allocation5 + $0x78] sm:$0xff] }
  0x73   :  { %7586 = vmatprep.subr.bf16.mxu0 %v8344_v0  ;;  %v277_v42 = vld [vmem:[#allocation5 + $0x2b0] sm:$0xff]  ;;  %v279_v47 = vld [vmem:[#allocation5 + $0x2c0] sm:$0xff]  ;;  %v208_v48 = vld [vmem:[#allocation5 + $0x88] sm:$0xff] }
  0x74   :  { %7637 = vmatpush3.bf16.msra.mxu1 %v8494_v38  ;;  %v209_v49 = vld [vmem:[#allocation5 + $0x90] sm:$0xff]  ;;  %v280_v50 = vld [vmem:[#allocation5 + $0x2c8] sm:$0xff] }
  0x75   :  { %7630 = vmatprep.subr.bf16.mxu1 %v8502_v45  ;;  %1811 = vbcast.lane.b32.xlu1 %v8517_v55, 296 }
  0x76   :  { %7588 = vmatpush3.bf16.msra.mxu0 %v7587_v46  ;;  %1823 = vbcast.lane.b32.xlu0 %v8517_v55, 320  ;;  %v278_v46 = vld [vmem:[#allocation5 + $0x2b8] sm:$0xff] }
  0x77   :  { %7589 = vmatprep.subr.bf16.mxu0 %v8344_v0  ;;  %v254_v0 = vld [vmem:[#allocation5 + $0x1f8] sm:$0xff] }
  0x78   :  { %7638 = vmatpush3.bf16.msra.mxu1 %v8502_v45 }
  0x79   :  { %7631 = vmatprep.subr.bf16.mxu1 %v8510_v52  ;;  %1819 = vbcast.lane.b32.xlu1 %v8517_v55, 312 }
  0x7a   :  { %7591 = vmatpush3.bf16.msra.mxu0 %v7590_v53  ;;  %1831 = vbcast.lane.b32.xlu0 %v8517_v55, 336  ;;  %v210_v53 = vld [vmem:[#allocation5 + $0x98] sm:$0xff] }
  0x7b   :  { %7593 = vmatprep.subr.bf16.mxu0 %v8471_v9 }
  0x7c   :  { %7639 = vmatpush3.bf16.msra.mxu1 %v8510_v52 }
  0x7d   :  { %7342 = vmatmul.mubr.f32.vlgmr.msra.gmra.mrb[0].mxu0 %v97_v56  ;;  %1827 = vbcast.lane.b32.xlu1 %v8517_v55, 328  ;;  %v282_v56 = vld [vmem:[#allocation5 + $0x2d8] sm:$0xff] }
  0x7e   :  { %7595 = vmatpush3.bf16.msra.mxu0 %v8471_v9  ;;  %7376 = vmatprep.mubr.f32.mxu0 %v191_v57  ;;  %v261_v9 = vld [vmem:[#allocation5 + $0x230] sm:$0xff]  ;;  %v283_v57 = vld [vmem:[#allocation5 + $0x2e0] sm:$0xff] }
  0x7f   :  { %7461 = vmatmul.mubr.f32.vlgmr.msra.gmra.mrb[0].mxu1 %v248_v58  ;;  %7597 = vmatprep.subr.bf16.mxu0 %v8473_v13  ;;  %v212_v58 = vld [vmem:[#allocation5 + $0xa8] sm:$0xff] }
  0x80   :  { %7463 = vmatprep.mubr.f32.mxu1 %v249_v59  ;;  %1839 = vbcast.lane.b32.xlu0 %v8517_v55, 352  ;;  %v213_v59 = vld [vmem:[#allocation5 + $0xb0] sm:$0xff] }
  0x81   :  { %1835 = vbcast.lane.b32.xlu1 %v8517_v55, 344 }
  0x82   :  { %7599 = vmatpush3.bf16.msra.mxu0 %v8473_v13  ;;  %v193_v13 = vld [vmem:[#allocation5 + $0x10] sm:$0xff] }
  0x83   :  { %7464 = vmatmul.mubr.f32.gmra.mrb[2].mxu1 %v250_v60  ;;  %7601 = vmatprep.subr.bf16.mxu0 %v8479_v18  ;;  %v284_v60 = vld [vmem:[#allocation5 + $0x2e8] sm:$0xff] }
  0x84   :  { %7466 = vmatprep.mubr.f32.mxu1 %v251_v61  ;;  %1847 = vbcast.lane.b32.xlu0 %v8517_v55, 368  ;;  %v285_v61 = vld [vmem:[#allocation5 + $0x2f0] sm:$0xff] }
  0x85   :  { %1843 = vbcast.lane.b32.xlu1 %v8517_v55, 360 }
  0x86   :  { %7603 = vmatpush3.bf16.msra.mxu0 %v8479_v18  ;;  %v266_v18 = vld [vmem:[#allocation5 + $0x258] sm:$0xff] }
  0x87   :  { %7467 = vmatmul.mubr.f32.gmra.mrb[4].mxu1 %v252_v62  ;;  %7605 = vmatprep.subr.bf16.mxu0 %v8484_v24  ;;  %v214_v62 = vld [vmem:[#allocation5 + $0xb8] sm:$0xff] }
  0x88   :  { %7469 = vmatprep.mubr.f32.mxu1 %v253_v63  ;;  %1858 = vbcast.lane.b32.xlu0 %v8554_v8, 256  ;;  %v215_v63 = vld [vmem:[#allocation5 + $0xc0] sm:$0xff] }
  0x89   :  { %1851 = vbcast.lane.b32.xlu1 %v8517_v55, 376  ;;  %v211_v55 = vld [vmem:[#allocation5 + $0xa0] sm:$0xff] }
  0x8a   :  { %7607 = vmatpush3.bf16.msra.mxu0 %v8484_v24  ;;  %v198_v24 = vld [vmem:[#allocation5 + $0x38] sm:$0xff] }
  0x8b   :  { %7470 = vmatmul.mubr.f32.gmra.mrb[6].mxu1 %v254_v0  ;;  %7609 = vmatprep.subr.bf16.mxu0 %v8489_v31  ;;  %v286_v0 = vld [vmem:[#allocation5 + $0x2f8] sm:$0xff] }
  0x8c   :  { %7472 = vmatprep.mubr.f32.mxu1 %v255_v1  ;;  %1866 = vbcast.lane.b32.xlu0 %v8554_v8, 272  ;;  %v287_v1 = vld [vmem:[#allocation5 + $0x300] sm:$0xff] }
  0x8d   :  { %1862 = vbcast.lane.b32.xlu1 %v8554_v8, 264 }
  0x8e   :  { %7611 = vmatpush3.bf16.msra.mxu0 %v8489_v31  ;;  %v273_v31 = vld [vmem:[#allocation5 + $0x290] sm:$0xff] }
  0x8f   :  { %7473 = vmatmul.mubr.f32.gmra.mrb[8].mxu1 %v256_v2  ;;  %7613 = vmatprep.subr.bf16.mxu0 %v8494_v38  ;;  %v216_v2 = vld [vmem:[#allocation5 + $0xc8] sm:$0xff] }
  0x90   :  { %7475 = vmatprep.mubr.f32.mxu1 %v257_v3  ;;  %1874 = vbcast.lane.b32.xlu0 %v8554_v8, 288  ;;  %v217_v3 = vld [vmem:[#allocation5 + $0xd0] sm:$0xff] }
  0x91   :  { %1870 = vbcast.lane.b32.xlu1 %v8554_v8, 280 }
  0x92   :  { %7615 = vmatpush3.bf16.msra.mxu0 %v8494_v38  ;;  %v204_v38 = vld [vmem:[#allocation5 + $0x68] sm:$0xff] }
  0x93   :  { %7476 = vmatmul.mubr.f32.gmra.mrb[10].mxu1 %v258_v4  ;;  %7617 = vmatprep.subr.bf16.mxu0 %v8502_v45  ;;  %v288_v4 = vld [vmem:[#allocation5 + $0x308] sm:$0xff] }
  0x94   :  { %7478 = vmatprep.mubr.f32.mxu1 %v259_v6  ;;  %1882 = vbcast.lane.b32.xlu0 %v8554_v8, 304  ;;  %v289_v6 = vld [vmem:[#allocation5 + $0x310] sm:$0xff] }
  0x95   :  { %1878 = vbcast.lane.b32.xlu1 %v8554_v8, 296 }
  0x96   :  { %7619 = vmatpush3.bf16.msra.mxu0 %v8502_v45  ;;  %v207_v45 = vld [vmem:[#allocation5 + $0x80] sm:$0xff] }
  0x97   :  { %7479 = vmatmul.mubr.f32.gmra.mrb[12].mxu1 %v260_v7  ;;  %7621 = vmatprep.subr.bf16.mxu0 %v8510_v52  ;;  %v218_v7 = vld [vmem:[#allocation5 + $0xd8] sm:$0xff] }
  0x98   :  { %7481 = vmatprep.mubr.f32.mxu1 %v261_v9  ;;  %1890 = vbcast.lane.b32.xlu0 %v8554_v8, 320  ;;  %v290_v9 = vld [vmem:[#allocation5 + $0x318] sm:$0xff] }
  0x99   :  { %1886 = vbcast.lane.b32.xlu1 %v8554_v8, 312 }
  0x9a   :  { %7623 = vmatpush3.bf16.msra.mxu0 %v8510_v52  ;;  %v281_v52 = vld [vmem:[#allocation5 + $0x2d0] sm:$0xff] }
  0x9b   :  { %7482 = vmatmul.mubr.f32.gmra.mrb[14].mxu1 %v262_v10  ;;  %v8597_v10 = vsub.s32 3, %v8498_v44 }
  0x9c   :  { %7484 = vmatprep.mubr.f32.mxu1 %v263_v11  ;;  %1898 = vbcast.lane.b32.xlu0 %v8554_v8, 336  ;;  %v291_v11 = vld [vmem:[#allocation5 + $0x320] sm:$0xff] }
  0x9d   :  { %7377 = vmatmul.mubr.f32.vlgmr.msra.gmra.mrb[2].mxu0 %v192_v12  ;;  %1894 = vbcast.lane.b32.xlu1 %v8554_v8, 328  ;;  %14438 = vst [vmem:[#allocation23_spill] sm:$0xff] %v8597_v10  ;;  %v220_v12 = vld [vmem:[#allocation5 + $0xe8] sm:$0xff] }
  0x9e   :  { %7379 = vmatprep.mubr.f32.mxu0 %v193_v13  ;;  %v221_v13 = vld [vmem:[#allocation5 + $0xf0] sm:$0xff] }
  0x9f   :  { %7485 = vmatmul.mubr.f32.gmra.mrb[16].mxu1 %v264_v14  ;;  %v292_v14 = vld [vmem:[#allocation5 + $0x328] sm:$0xff] }
  0xa0   :  { %7487 = vmatprep.mubr.f32.mxu1 %v265_v15  ;;  %1906 = vbcast.lane.b32.xlu0 %v8554_v8, 352  ;;  %v8603_v15 = vrot.slane %v8512_v54, %v8597_v10 }
  0xa1   :  { %7380 = vmatmul.mubr.f32.gmra.mrb[4].mxu0 %v194_v16  ;;  %1902 = vbcast.lane.b32.xlu1 %v8554_v8, 344  ;;  %v293_v16 = vld [vmem:[#allocation5 + $0x330] sm:$0xff] }
  0xa2   :  { %7382 = vmatprep.mubr.f32.mxu0 %v195_v17  ;;  %v222_v17 = vld [vmem:[#allocation5 + $0xf8] sm:$0xff] }
  0xa3   :  { %7488 = vmatmul.mubr.f32.gmra.mrb[18].mxu1 %v266_v18  ;;  %v223_v18 = vld [vmem:[#allocation5 + $0x100] sm:$0xff] }
  0xa4   :  { %7490 = vmatprep.mubr.f32.mxu1 %v267_v19  ;;  %1914 = vbcast.lane.b32.xlu0 %v8554_v8, 368  ;;  %v294_v19 = vld [vmem:[#allocation5 + $0x338] sm:$0xff] }
  0xa5   :  { %7383 = vmatmul.mubr.f32.gmra.mrb[6].mxu0 %v196_v20  ;;  %1910 = vbcast.lane.b32.xlu1 %v8554_v8, 360  ;;  %v295_v20 = vld [vmem:[#allocation5 + $0x340] sm:$0xff] }
  0xa6   :  { %7385 = vmatprep.mubr.f32.mxu0 %v197_v21  ;;  %v224_v21 = vld [vmem:[#allocation5 + $0x108] sm:$0xff] }
  0xa7   :  { %7491 = vmatmul.mubr.f32.gmra.mrb[20].mxu1 %v268_v22  ;;  %v225_v22 = vld [vmem:[#allocation5 + $0x110] sm:$0xff] }
  0xa8   :  { %7493 = vmatprep.mubr.f32.mxu1 %v269_v23  ;;  %1925 = vbcast.lane.b32.xlu0 %v8580_v41, 256  ;;  %v296_v23 = vld [vmem:[#allocation5 + $0x348] sm:$0xff] }
  0xa9   :  { %7386 = vmatmul.mubr.f32.gmra.mrb[8].mxu0 %v198_v24  ;;  %1918 = vbcast.lane.b32.xlu1 %v8554_v8, 376  ;;  %v219_v8 = vld [vmem:[#allocation5 + $0xe0] sm:$0xff]  ;;  %v297_v24 = vld [vmem:[#allocation5 + $0x350] sm:$0xff] }
  0xaa   :  { %7388 = vmatprep.mubr.f32.mxu0 %v199_v25  ;;  %v226_v25 = vld [vmem:[#allocation5 + $0x118] sm:$0xff] }
  0xab   :  { %7494 = vmatmul.mubr.f32.gmra.mrb[22].mxu1 %v270_v26  ;;  %v227_v26 = vld [vmem:[#allocation5 + $0x120] sm:$0xff] }
  0xac   :  { %7496 = vmatprep.mubr.f32.mxu1 %v271_v27  ;;  %1933 = vbcast.lane.b32.xlu0 %v8580_v41, 272  ;;  %v298_v27 = vld [vmem:[#allocation5 + $0x358] sm:$0xff] }
  0xad   :  { %7389 = vmatmul.mubr.f32.gmra.mrb[10].mxu0 %v200_v28  ;;  %1929 = vbcast.lane.b32.xlu1 %v8580_v41, 264  ;;  %v299_v28 = vld [vmem:[#allocation5 + $0x360] sm:$0xff] }
  0xae   :  { %7391 = vmatprep.mubr.f32.mxu0 %v201_v29  ;;  %v228_v29 = vld [vmem:[#allocation5 + $0x128] sm:$0xff] }
  0xaf   :  { %7497 = vmatmul.mubr.f32.gmra.mrb[24].mxu1 %v272_v30  ;;  %v229_v30 = vld [vmem:[#allocation5 + $0x130] sm:$0xff] }
  0xb0   :  { %7499 = vmatprep.mubr.f32.mxu1 %v273_v31  ;;  %1941 = vbcast.lane.b32.xlu0 %v8580_v41, 288  ;;  %v300_v31 = vld [vmem:[#allocation5 + $0x368] sm:$0xff] }
  0xb1   :  { %7392 = vmatmul.mubr.f32.gmra.mrb[12].mxu0 %v202_v32  ;;  %1937 = vbcast.lane.b32.xlu1 %v8580_v41, 280  ;;  %v301_v32 = vld [vmem:[#allocation5 + $0x370] sm:$0xff] }
  0xb2   :  { %7394 = vmatprep.mubr.f32.mxu0 %v203_v33  ;;  %v230_v33 = vld [vmem:[#allocation5 + $0x138] sm:$0xff] }
  0xb3   :  { %7500 = vmatmul.mubr.f32.gmra.mrb[26].mxu1 %v274_v34  ;;  %v231_v34 = vld [vmem:[#allocation5 + $0x140] sm:$0xff] }
  0xb4   :  { %7502 = vmatprep.mubr.f32.mxu1 %v275_v36  ;;  %1949 = vbcast.lane.b32.xlu0 %v8580_v41, 304  ;;  %v302_v36 = vld [vmem:[#allocation5 + $0x378] sm:$0xff] }
  0xb5   :  { %7395 = vmatmul.mubr.f32.gmra.mrb[14].mxu0 %v204_v38  ;;  %1945 = vbcast.lane.b32.xlu1 %v8580_v41, 296  ;;  %v303_v38 = vld [vmem:[#allocation5 + $0x380] sm:$0xff] }
  0xb6   :  { %7397 = vmatprep.mubr.f32.mxu0 %v205_v39  ;;  %v232_v39 = vld [vmem:[#allocation5 + $0x148] sm:$0xff] }
  0xb7   :  { %7503 = vmatmul.mubr.f32.gmra.mrb[28].mxu1 %v276_v40  ;;  %v233_v40 = vld [vmem:[#allocation5 + $0x150] sm:$0xff] }
  0xb8   :  { %7505 = vmatprep.mubr.f32.mxu1 %v277_v42  ;;  %1957 = vbcast.lane.b32.xlu0 %v8580_v41, 320  ;;  %v305_v42 = vld [vmem:[#allocation5 + $0x390] sm:$0xff] }
  0xb9   :  { %7398 = vmatmul.mubr.f32.gmra.mrb[16].mxu0 %v206_v43  ;;  %1953 = vbcast.lane.b32.xlu1 %v8580_v41, 312  ;;  %v234_v43 = vld [vmem:[#allocation5 + $0x158] sm:$0xff] }
  0xba   :  { %7400 = vmatprep.mubr.f32.mxu0 %v207_v45  ;;  %v235_v45 = vld [vmem:[#allocation5 + $0x160] sm:$0xff] }
  0xbb   :  { %7506 = vmatmul.mubr.f32.gmra.mrb[30].mxu1 %v278_v46  ;;  %v306_v46 = vld [vmem:[#allocation5 + $0x398] sm:$0xff] }
  0xbc   :  { %7508 = vmatprep.mubr.f32.mxu1 %v279_v47  ;;  %1965 = vbcast.lane.b32.xlu0 %v8580_v41, 336  ;;  %v8620_v47 = vsub.s32 4, %v8498_v44 }
  0xbd   :  { %7401 = vmatmul.mubr.f32.gmra.mrb[18].mxu0 %v208_v48  ;;  %1961 = vbcast.lane.b32.xlu1 %v8580_v41, 328  ;;  %v307_v48 = vld [vmem:[#allocation5 + $0x3a0] sm:$0xff] }
  0xbe   :  { %7403 = vmatprep.mubr.f32.mxu0 %v209_v49  ;;  %14439 = vst [vmem:[#allocation24_spill] sm:$0xff] %v8620_v47  ;;  %v236_v49 = vld [vmem:[#allocation5 + $0x168] sm:$0xff] }
  0xbf   :  { %7509 = vmatmul.mubr.f32.gmra.mrb[32].mxu1 %v280_v50  ;;  %v237_v50 = vld [vmem:[#allocation5 + $0x170] sm:$0xff] }
  0xc0   :  { %7511 = vmatprep.mubr.f32.mxu1 %v281_v52  ;;  %1973 = vbcast.lane.b32.xlu0 %v8580_v41, 352  ;;  %v308_v52 = vld [vmem:[#allocation5 + $0x3a8] sm:$0xff] }
  0xc1   :  { %7404 = vmatmul.mubr.f32.gmra.mrb[20].mxu0 %v210_v53  ;;  %1969 = vbcast.lane.b32.xlu1 %v8580_v41, 344  ;;  %v8626_v53 = vrot.slane %v8512_v54, %v8620_v47  ;;  %v241_v54 = vld [vmem:[#allocation5 + $0x190] sm:$0xff] }
  0xc2   :  { %7406 = vmatprep.mubr.f32.mxu0 %v211_v55  ;;  %v309_v55 = vld [vmem:[#allocation5 + $0x3b0] sm:$0xff] }
  0xc3   :  { %7512 = vmatmul.mubr.f32.gmra.mrb[34].mxu1 %v282_v56  ;;  %14440 = vst [vmem:[#allocation25_spill] sm:$0xff] %v8626_v53  ;;  %v238_v56 = vld [vmem:[#allocation5 + $0x178] sm:$0xff] }
  0xc4   :  { %7514 = vmatprep.mubr.f32.mxu1 %v283_v57  ;;  %1981 = vbcast.lane.b32.xlu0 %v8580_v41, 368  ;;  %v239_v57 = vld [vmem:[#allocation5 + $0x180] sm:$0xff] }
  0xc5   :  { %7407 = vmatmul.mubr.f32.gmra.mrb[22].mxu0 %v212_v58  ;;  %1977 = vbcast.lane.b32.xlu1 %v8580_v41, 360  ;;  %v310_v58 = vld [vmem:[#allocation5 + $0x3b8] sm:$0xff] }
  0xc6   :  { %7409 = vmatprep.mubr.f32.mxu0 %v213_v59  ;;  %v311_v59 = vld [vmem:[#allocation5 + $0x3c0] sm:$0xff] }
  0xc7   :  { %7515 = vmatmul.mubr.f32.gmra.mrb[36].mxu1 %v284_v60  ;;  %v240_v60 = vld [vmem:[#allocation5 + $0x188] sm:$0xff] }
  0xc8   :  { %7517 = vmatprep.mubr.f32.mxu1 %v285_v61  ;;  %1992 = vbcast.lane.b32.xlu0 %v8603_v15, 256  ;;  %v312_v61 = vld [vmem:[#allocation5 + $0x3c8] sm:$0xff] }
  0xc9   :  { %7410 = vmatmul.mubr.f32.gmra.mrb[24].mxu0 %v214_v62  ;;  %1985 = vbcast.lane.b32.xlu1 %v8580_v41, 376  ;;  %v304_v41 = vld [vmem:[#allocation5 + $0x388] sm:$0xff]  ;;  %v313_v62 = vld [vmem:[#allocation5 + $0x3d0] sm:$0xff] }
  0xca   :  { %7412 = vmatprep.mubr.f32.mxu0 %v215_v63  ;;  %v242_v63 = vld [vmem:[#allocation5 + $0x198] sm:$0xff] }
  0xcb   :  { %7518 = vmatmul.mubr.f32.gmra.mrb[38].mxu1 %v286_v0  ;;  %v243_v0 = vld [vmem:[#allocation5 + $0x1a0] sm:$0xff] }
  0xcc   :  { %7520 = vmatprep.mubr.f32.mxu1 %v287_v1  ;;  %2000 = vbcast.lane.b32.xlu0 %v8603_v15, 272  ;;  %v314_v1 = vld [vmem:[#allocation5 + $0x3d8] sm:$0xff] }
  0xcd   :  { %7413 = vmatmul.mubr.f32.gmra.mrb[26].mxu0 %v216_v2  ;;  %1996 = vbcast.lane.b32.xlu1 %v8603_v15, 264  ;;  %v315_v2 = vld [vmem:[#allocation5 + $0x3e0] sm:$0xff] }
  0xce   :  { %7415 = vmatprep.mubr.f32.mxu0 %v217_v3  ;;  %v244_v3 = vld [vmem:[#allocation5 + $0x1a8] sm:$0xff] }
  0xcf   :  { %7521 = vmatmul.mubr.f32.gmra.mrb[40].mxu1 %v288_v4  ;;  %v245_v4 = vld [vmem:[#allocation5 + $0x1b0] sm:$0xff] }
  0xd0   :  { %7523 = vmatprep.mubr.f32.mxu1 %v289_v6  ;;  %2008 = vbcast.lane.b32.xlu0 %v8603_v15, 288  ;;  %v316_v6 = vld [vmem:[#allocation5 + $0x3e8] sm:$0xff] }
  0xd1   :  { %7416 = vmatmul.mubr.f32.gmra.mrb[28].mxu0 %v218_v7  ;;  %2004 = vbcast.lane.b32.xlu1 %v8603_v15, 280  ;;  %v317_v7 = vld [vmem:[#allocation5 + $0x3f0] sm:$0xff] }
  0xd2   :  { %7418 = vmatprep.mubr.f32.mxu0 %v219_v8  ;;  %v246_v8 = vld [vmem:[#allocation5 + $0x1b8] sm:$0xff] }
  0xd3   :  { %7524 = vmatmul.mubr.f32.gmra.mrb[42].mxu1 %v290_v9  ;;  %v318_v9 = vld [vmem:[#allocation5 + $0x3f8] sm:$0xff] }
  0xd4   :  { %7526 = vmatprep.mubr.f32.mxu1 %v291_v11  ;;  %2016 = vbcast.lane.b32.xlu0 %v8603_v15, 304 }
  0xd5   :  { %7419 = vmatmul.mubr.f32.gmra.mrb[30].mxu0 %v220_v12  ;;  %2012 = vbcast.lane.b32.xlu1 %v8603_v15, 296 }
  0xd6   :  { %7421 = vmatprep.mubr.f32.mxu0 %v221_v13 }
  0xd7   :  { %7527 = vmatmul.mubr.f32.gmra.mrb[44].mxu1 %v292_v14 }
  0xd8   :  { %7529 = vmatprep.mubr.f32.mxu1 %v293_v16  ;;  %2024 = vbcast.lane.b32.xlu0 %v8603_v15, 320 }
  0xd9   :  { %7422 = vmatmul.mubr.f32.gmra.mrb[32].mxu0 %v222_v17  ;;  %2020 = vbcast.lane.b32.xlu1 %v8603_v15, 312 }
  0xda   :  { %7424 = vmatprep.mubr.f32.mxu0 %v223_v18 }
  0xdb   :  { %7530 = vmatmul.mubr.f32.gmra.mrb[46].mxu1 %v294_v19  ;;  %v8637_v11 = vpop.permute.xlu1 %1795 }
  0xdc   :  { %7532 = vmatprep.mubr.f32.mxu1 %v295_v20  ;;  %2032 = vbcast.lane.b32.xlu0 %v8603_v15, 336  ;;  %14441 = vst [vmem:[#allocation26_spill] sm:$0xff] %v8637_v11  ;;  %v8641_v13 = vpop.permute.xlu0 %1791 }
  0xdd   :  { %7425 = vmatmul.mubr.f32.gmra.mrb[34].mxu0 %v224_v21  ;;  %2028 = vbcast.lane.b32.xlu1 %v8603_v15, 328  ;;  %14443 = vst [vmem:[#allocation28_spill] sm:$0xff] %v8641_v13 }
  0xde   :  { %7427 = vmatprep.mubr.f32.mxu0 %v225_v22 }
  0xdf   :  { %7533 = vmatmul.mubr.f32.gmra.mrb[48].mxu1 %v296_v23  ;;  %v8639_v12 = vpop.permute.xlu1 %1799  ;;  %v8347_v23 = vmov 1966171168  }
  0xe0   :  { %7535 = vmatprep.mubr.f32.mxu1 %v297_v24  ;;  %2040 = vbcast.lane.b32.xlu0 %v8603_v15, 352  ;;  %14442 = vst [vmem:[#allocation27_spill] sm:$0xff] %v8639_v12  ;;  %v1050_v24 = vunpack.c.l.s4 %v8347_v23 }
  0xe1   :  { %7428 = vmatmul.mubr.f32.gmra.mrb[36].mxu0 %v226_v25  ;;  %2036 = vbcast.lane.b32.xlu1 %v8603_v15, 344 }
  0xe2   :  { %7430 = vmatprep.mubr.f32.mxu0 %v227_v26  ;;  %v1051_v26 = vunpack.c.0.s8 %v1050_v24 }
  0xe3   :  { %7536 = vmatmul.mubr.f32.gmra.mrb[50].mxu1 %v298_v27  ;;  %v8643_v14 = vpop.permute.xlu1 %1803 }
  0xe4   :  { %7538 = vmatprep.mubr.f32.mxu1 %v299_v28  ;;  %2048 = vbcast.lane.b32.xlu0 %v8603_v15, 368  ;;  %14444 = vst [vmem:[#allocation29_spill] sm:$0xff] %v8643_v14 }
  0xe5   :  { %7431 = vmatmul.mubr.f32.gmra.mrb[38].mxu0 %v228_v29  ;;  %2044 = vbcast.lane.b32.xlu1 %v8603_v15, 360  ;;  %v7145_v29 = vld [vmem:[%s13988_s4] ss:$0 sm:$0xff] }
  0xe6   :  { %7433 = vmatprep.mubr.f32.mxu0 %v229_v30  ;;  %v8671_v30 = vsub.s32 %v1051_v26, %v8498_v44 }
  0xe7   :  { %7539 = vmatmul.mubr.f32.gmra.mrb[52].mxu1 %v300_v31  ;;  %v8647_v16 = vpop.permute.xlu1 %1811 }
  0xe8   :  { %7541 = vmatprep.mubr.f32.mxu1 %v301_v32  ;;  %2059 = vbcast.lane.b32.xlu0 %v8626_v53, 256  ;;  %14446 = vst [vmem:[#allocation31_spill] sm:$0xff] %v8647_v16 }
  0xe9   :  { %7434 = vmatmul.mubr.f32.gmra.mrb[40].mxu0 %v230_v33  ;;  %2052 = vbcast.lane.b32.xlu1 %v8603_v15, 376  ;;  %v8645_v15 = vpop.permute.xlu0 %1807 }
  0xea   :  { %7436 = vmatprep.mubr.f32.mxu0 %v231_v34  ;;  %14445 = vst [vmem:[#allocation30_spill] sm:$0xff] %v8645_v15 }
  0xeb   :  { %7542 = vmatmul.mubr.f32.gmra.mrb[54].mxu1 %v302_v36  ;;  %v8651_v18 = vpop.permute.xlu1 %1819 }
  0xec   :  { %7544 = vmatprep.mubr.f32.mxu1 %v303_v38  ;;  %2067 = vbcast.lane.b32.xlu0 %v8626_v53, 272  ;;  %14448 = vst [vmem:[#allocation33_spill] sm:$0xff] %v8651_v18 }
  0xed   :  { %7437 = vmatmul.mubr.f32.gmra.mrb[42].mxu0 %v232_v39  ;;  %2063 = vbcast.lane.b32.xlu1 %v8626_v53, 264  ;;  %v8649_v17 = vpop.permute.xlu0 %1815 }
  0xee   :  { %7439 = vmatprep.mubr.f32.mxu0 %v233_v40  ;;  %14447 = vst [vmem:[#allocation32_spill] sm:$0xff] %v8649_v17 }
  0xef   :  { %7545 = vmatmul.mubr.f32.gmra.mrb[56].mxu1 %v304_v41  ;;  %v8655_v20 = vpop.permute.xlu1 %1827 }
  0xf0   :  { %7547 = vmatprep.mubr.f32.mxu1 %v305_v42  ;;  %2075 = vbcast.lane.b32.xlu0 %v8626_v53, 288  ;;  %14450 = vst [vmem:[#allocation35_spill] sm:$0xff] %v8655_v20 }
  0xf1   :  { %7440 = vmatmul.mubr.f32.gmra.mrb[44].mxu0 %v234_v43  ;;  %2071 = vbcast.lane.b32.xlu1 %v8626_v53, 280  ;;  %v8653_v19 = vpop.permute.xlu0 %1823 }
  0xf2   :  { %7442 = vmatprep.mubr.f32.mxu0 %v235_v45  ;;  %14449 = vst [vmem:[#allocation34_spill] sm:$0xff] %v8653_v19  ;;  %v8686_v45 = vld [vmem:[%s13990_s6] ss:$0 sm:$0xff] }
  0xf3   :  { %7548 = vmatmul.mubr.f32.gmra.mrb[58].mxu1 %v306_v46  ;;  %v8659_v22 = vpop.permute.xlu1 %1835 }
  0xf4   :  { %7550 = vmatprep.mubr.f32.mxu1 %v307_v48  ;;  %2083 = vbcast.lane.b32.xlu0 %v8626_v53, 304  ;;  %14452 = vst [vmem:[#allocation37_spill] sm:$0xff] %v8659_v22 }
  0xf5   :  { %7443 = vmatmul.mubr.f32.gmra.mrb[46].mxu0 %v236_v49  ;;  %2079 = vbcast.lane.b32.xlu1 %v8626_v53, 296  ;;  %v8657_v21 = vpop.permute.xlu0 %1831 }
  0xf6   :  { %7445 = vmatprep.mubr.f32.mxu0 %v237_v50  ;;  %14451 = vst [vmem:[#allocation36_spill] sm:$0xff] %v8657_v21 }
  0xf7   :  { %7551 = vmatmul.mubr.f32.gmra.mrb[60].mxu1 %v308_v52  ;;  %v8663_v27 = vpop.permute.xlu1 %1843 }
  0xf8   :  { %7553 = vmatprep.mubr.f32.mxu1 %v309_v55  ;;  %14454 = vst [vmem:[#allocation39_spill] sm:$0xff] %v8663_v27 }
  0xf9   :  { %7446 = vmatmul.mubr.f32.gmra.mrb[48].mxu0 %v238_v56  ;;  %v8661_v25 = vpop.permute.xlu0 %1839 }
  0xfa   :  { %7448 = vmatprep.mubr.f32.mxu0 %v239_v57  ;;  %14453 = vst [vmem:[#allocation38_spill] sm:$0xff] %v8661_v25 }
  0xfb   :  { %7554 = vmatmul.mubr.f32.gmra.mrb[62].mxu1 %v310_v58  ;;  %v8673_v36 = vpop.permute.xlu1 %1851 }
  0xfc   :  { %7556 = vmatprep.mubr.f32.mxu1 %v311_v59  ;;  %14456 = vst [vmem:[#allocation41_spill] sm:$0xff] %v8673_v36 }
  0xfd   :  { %7449 = vmatmul.mubr.f32.gmra.mrb[50].mxu0 %v240_v60  ;;  %v8665_v28 = vpop.permute.xlu0 %1847 }
  0xfe   :  { %7451 = vmatprep.mubr.f32.mxu0 %v241_v54  ;;  %14455 = vst [vmem:[#allocation40_spill] sm:$0xff] %v8665_v28 }
  0xff   :  { %7557 = vmatmul.mubr.f32.gmra.mrb[64].mxu1 %v312_v61  ;;  %v8699_v57 = vpop.permute.xlu1 %1862 }
 0x100   :  { %7559 = vmatprep.mubr.f32.mxu1 %v313_v62  ;;  %14460 = vst [vmem:[#allocation45_spill] sm:$0xff] %v8699_v57 }
 0x101   :  { %7452 = vmatmul.mubr.f32.gmra.mrb[52].mxu0 %v242_v63  ;;  %v8678_v41 = vpop.permute.xlu0 %1858 }
 0x102   :  { %7454 = vmatprep.mubr.f32.mxu0 %v243_v0  ;;  %14457 = vst [vmem:[#allocation42_spill] sm:$0xff] %v8678_v41 }
 0x103   :  { %7560 = vmatmul.mubr.f32.gmra.mrb[66].mxu1 %v314_v1 }
 0x104   :  { %7562 = vmatprep.mubr.f32.mxu1 %v315_v2 }
 0x105   :  { %7455 = vmatmul.mubr.f32.gmra.mrb[54].mxu0 %v244_v3  ;;  %v8707_v60 = vpop.permute.xlu0 %1866 }
 0x106   :  { %7457 = vmatprep.mubr.f32.mxu0 %v245_v4  ;;  %14463 = vst [vmem:[#allocation48_spill] sm:$0xff] %v8707_v60 }
 0x107   :  { %7563 = vmatmul.mubr.f32.gmra.mrb[68].mxu1 %v316_v6 }
 0x108   :  { %7565 = vmatprep.mubr.f32.mxu1 %v317_v7 }
 0x109   :  { %7458 = vmatmul.mubr.f32.gmra.mrb[56].mxu0 %v246_v8  ;;  %v8729_v8 = vpop.permute.xlu1 %1870  ;;  %v8731_v23 = vpop.permute.xlu0 %1874 }
 0x10a   :  { %14468 = vst [vmem:[#allocation53_spill] sm:$0xff] %v8729_v8  ;;  %14469 = vst [vmem:[#allocation54_spill] sm:$0xff] %v8731_v23 }
 0x10b   :  { %7566 = vmatmul.mubr.f32.gmra.mrb[70].mxu1 %v318_v9 }
 0x150   :  { %v187_v31 = vpop.f32.mrb[0].mxu0 }
 0x151   :  { %v188_v32 = vadd.f32 %v7145_v29, %v187_v31  ;;  %v7343_v33 = vpop.f32.mrb[1].mxu0 }
 0x152   :  { %v7462_v34 = vpop.f32.mrb[0].mxu1 }
 0x153   :  { %v1048_v38 = vcombine.high %v188_v32, %v188_v32  ;;  %v8676_v39 = vrot.slane %v188_v32, %v8671_v30  ;;  %v688_v40 = vpop.f32.mrb[1].mxu1  ;;  %v8692_v52 = vadd.f32 %v7462_v34, %v8686_v45 }
 0x154   :  { %v8702_v58 = vadd.f32 %v8686_v45, %v688_v40 }
 0x155   :  { %v1062_v42 = vrot.slane %v1048_v38, %v8671_v30  ;;  %v1063_v43 = vcombine.high %v8676_v39, %v8676_v39  ;;  %14458 = vst [vmem:[#allocation43_spill] sm:$0xff] %v8692_v52  ;;  %v8746_v38 = vpop.permute.xlu1 %1878 }
 0x156   :  { %v7465_v46 = vpop.f32.mrb[2].mxu1  ;;  %14461 = vst [vmem:[#allocation46_spill] sm:$0xff] %v8702_v58  ;;  %14472 = vst [vmem:[#allocation57_spill] sm:$0xff] %v8746_v38 }
 0x157   :  { %v1064_v48 = vcombine.high %v1062_v42, %v1062_v42  ;;  %v8689_v49 = vrot.slane %v1063_v43, %v8671_v30  ;;  %v698_v50 = vpop.f32.mrb[3].mxu1  ;;  %v8705_v59 = vadd.f32 %v7465_v46, %v8686_v45  ;;  %v8744_v33 = vrot.slane %v1062_v42, %v8671_v30 }
 0x158   :  { %v8710_v54 = vadd.f32 %v8686_v45, %v698_v50 }
 0x159   :  { %v8695_v55 = vrot.slane %v1064_v48, %v8671_v30  ;;  %v1095_v56 = vcombine.high %v8689_v49, %v8689_v49  ;;  %14462 = vst [vmem:[#allocation47_spill] sm:$0xff] %v8705_v59  ;;  %v8755_v48 = vpop.permute.xlu0 %1882 }
 0x15a   :  { %14464 = vst [vmem:[#allocation49_spill] sm:$0xff] %v8710_v54  ;;  %v7468_v61 = vpop.f32.mrb[4].mxu1  ;;  %14474 = vst [vmem:[#allocation59_spill] sm:$0xff] %v8755_v48 }
 0x15b   :  { %14459 = vst [vmem:[#allocation44_spill] sm:$0xff] %v8695_v55  ;;  %v8713_v62 = vrot.slane %v1095_v56, %v8506_v51  ;;  %v708_v63 = vpop.f32.mrb[5].mxu1  ;;  %v8722_v3 = vadd.f32 %v7468_v61, %v8686_v45  ;;  %v8762_v56 = vrot.slane %v8744_v33, %v8506_v51 }
 0x15c   :  { %v8727_v6 = vadd.f32 %v8686_v45, %v708_v63  ;;  %v8767_v63 = vld [vmem:[%s13991_s7] ss:$0 sm:$0xff] }
 0x15d   :  { %14465 = vst [vmem:[#allocation50_spill] sm:$0xff] %v8713_v62  ;;  %v1194_v0 = vadd.f32 %v8713_v62, %v8692_v52  ;;  %v1193_v1 = vadd.f32 %v8713_v62, %v8702_v58  ;;  %v1196_v2 = vadd.f32 %v8713_v62, %v8705_v59  ;;  %14466 = vst [vmem:[#allocation51_spill] sm:$0xff] %v8722_v3 }
 0x15e   :  { %v1195_v4 = vadd.f32 %v8713_v62, %v8710_v54  ;;  %14467 = vst [vmem:[#allocation52_spill] sm:$0xff] %v8727_v6  ;;  %v7471_v7 = vpop.f32.mrb[6].mxu1  ;;  %v1198_v24 = vadd.f32 %v8713_v62, %v8722_v3  ;;  %v1197_v29 = vadd.f32 %v8713_v62, %v8727_v6 }
 0x15f   :  { %7656 = vtanh.f32 %v1194_v0  ;;  %v718_v9 = vpop.f32.mrb[7].mxu1  ;;  %v8736_v26 = vadd.f32 %v7471_v7, %v8686_v45 }
 0x160   :  { %7658 = vtanh.f32 %v1193_v1  ;;  %v8741_v31 = vadd.f32 %v8686_v45, %v718_v9 }
 0x161   :  { %7660 = vtanh.f32 %v1196_v2  ;;  %14470 = vst [vmem:[#allocation55_spill] sm:$0xff] %v8736_v26  ;;  %v1200_v40 = vadd.f32 %v8713_v62, %v8736_v26 }
 0x162   :  { %7662 = vtanh.f32 %v1195_v4  ;;  %14471 = vst [vmem:[#allocation56_spill] sm:$0xff] %v8741_v31  ;;  %v7474_v32 = vpop.f32.mrb[8].mxu1  ;;  %v1199_v46 = vadd.f32 %v8713_v62, %v8741_v31 }
 0x163   :  { %v728_v34 = vpop.f32.mrb[9].mxu1  ;;  %7664 = vtanh.f32 %v1198_v24  ;;  %v8751_v43 = vadd.f32 %v7474_v32, %v8686_v45 }
 0x164   :  { %7666 = vtanh.f32 %v1197_v29  ;;  %v8758_v50 = vadd.f32 %v8686_v45, %v728_v34  ;;  %v8780_v34 = vpop.permute.xlu1 %1886 }
 0x165   :  { %14473 = vst [vmem:[#allocation58_spill] sm:$0xff] %v8751_v43  ;;  %7668 = vtanh.f32 %v1200_v40  ;;  %v1202_v1 = vadd.f32 %v8762_v56, %v8751_v43  ;;  %14478 = vst [vmem:[#allocation63_spill] sm:$0xff] %v8780_v34 }
 0x166   :  { %14475 = vst [vmem:[#allocation60_spill] sm:$0xff] %v8758_v50  ;;  %v7477_v42 = vpop.f32.mrb[10].mxu1  ;;  %7670 = vtanh.f32 %v1199_v46  ;;  %v1201_v7 = vadd.f32 %v8762_v56, %v8758_v50 }
 0x167   :  { %v738_v61 = vpop.f32.mrb[11].mxu1  ;;  %v8772_v2 = vadd.f32 %v7477_v42, %v8686_v45  ;;  %v8783_v42 = vpop.permute.xlu0 %1890  ;;  %7672 = vtanh.f32 %v1202_v1 }
 0x168   :  { %v8777_v9 = vadd.f32 %v8686_v45, %v738_v61  ;;  %14479 = vst [vmem:[#allocation64_spill] sm:$0xff] %v8783_v42  ;;  %7674 = vtanh.f32 %v1201_v7 }
 0x169   :  { %v7657_v0 = vpop.eup %7656  ;;  %14476 = vst [vmem:[#allocation61_spill] sm:$0xff] %v8772_v2  ;;  %v1204_v46 = vadd.f32 %v8762_v56, %v8772_v2 }
 0x16a   :  { %v7659_v4 = vpop.eup %7658  ;;  %14477 = vst [vmem:[#allocation62_spill] sm:$0xff] %v8777_v9  ;;  %v7480_v24 = vpop.f32.mrb[12].mxu1  ;;  %v1457_v29 = vmul.f32 %v7657_v0, %v8767_v63  ;;  %v1203_v0 = vadd.f32 %v8762_v56, %v8777_v9 }
 0x16b   :  { %v7661_v32 = vpop.eup %7660  ;;  %v748_v40 = vpop.f32.mrb[13].mxu1  ;;  %v1456_v37 = vmul.f32 %v7659_v4, %v8767_v63  ;;  %v8788_v61 = vadd.f32 %v7480_v24, %v8686_v45  ;;  %7676 = vtanh.f32 %v1204_v46 }
 0x16c   :  { %v7663_v43 = vpop.eup %7662  ;;  %1642 = vadd.xlane.f32.xlu1 %v1457_v29  ;;  %v8793_v50 = vadd.f32 %v8686_v45, %v748_v40  ;;  %v1459_v26 = vmul.f32 %v7661_v32, %v8767_v63  ;;  %v8797_v24 = vpop.permute.xlu1 %1894  ;;  %7678 = vtanh.f32 %v1203_v0 }
 0x16d   :  { %14480 = vst [vmem:[#allocation65_spill] sm:$0xff] %v8788_v61  ;;  %1640 = vadd.xlane.f32.xlu0 %v1456_v37  ;;  %v7665_v31 = vpop.eup %7664  ;;  %v1458_v1 = vmul.f32 %v7663_v43, %v8767_v63  ;;  %14482 = vst [vmem:[#allocation67_spill] sm:$0xff] %v8797_v24  ;;  %v1206_v37 = vadd.f32 %v8762_v56, %v8788_v61  ;;  %v8804_v32 = vpop.permute.xlu0 %1898 }
 0x16e   :  { %14481 = vst [vmem:[#allocation66_spill] sm:$0xff] %v8793_v50  ;;  %v7483_v4 = vpop.f32.mrb[14].mxu1  ;;  %v7667_v3 = vpop.eup %7666  ;;  %14484 = vst [vmem:[#allocation69_spill] sm:$0xff] %v8804_v32  ;;  %v1205_v43 = vadd.f32 %v8762_v56, %v8793_v50  ;;  %v1461_v46 = vmul.f32 %v7665_v31, %v8767_v63 }
 0x16f   :  { %v758_v29 = vpop.f32.mrb[15].mxu1  ;;  %v8802_v7 = vadd.f32 %v7483_v4, %v8686_v45  ;;  %v7669_v6 = vpop.eup %7668  ;;  %v1460_v61 = vmul.f32 %v7667_v3, %v8767_v63  ;;  %7680 = vtanh.f32 %v1206_v37 }
 0x170   :  { %1646 = vadd.xlane.f32.xlu1 %v1459_v26  ;;  %v7378_v2 = vpop.f32.mrb[2].mxu0  ;;  %v8809_v26 = vadd.f32 %v8686_v45, %v758_v29  ;;  %v7671_v4 = vpop.eup %7670  ;;  %7682 = vtanh.f32 %v1205_v43 }
 0x171   :  { %14483 = vst [vmem:[#allocation68_spill] sm:$0xff] %v8802_v7  ;;  %1644 = vadd.xlane.f32.xlu0 %v1458_v1  ;;  %v408_v40 = vpop.f32.mrb[3].mxu0  ;;  %v8815_v1 = vrot.slane %v8676_v39, %v8671_v30  ;;  %v1208_v50 = vadd.f32 %v8762_v56, %v8802_v7  ;;  %v8825_v54 = vadd.f32 %v7378_v2, %v8686_v45  ;;  %v8828_v37 = vpop.permute.xlu1 %1902 }
 0x172   :  { %14485 = vst [vmem:[#allocation70_spill] sm:$0xff] %v8809_v26  ;;  %v7486_v9 = vpop.f32.mrb[16].mxu1  ;;  %v1207_v3 = vadd.f32 %v8762_v56, %v8809_v26  ;;  %v1463_v39 = vmul.f32 %v7669_v6, %v8767_v63  ;;  %14488 = vst [vmem:[#allocation73_spill] sm:$0xff] %v8828_v37  ;;  %v1462_v7 = vmul.f32 %v7671_v4, %v8767_v63  ;;  %v8835_v43 = vpop.permute.xlu0 %1906 }
 0x173   :  { %v768_v59 = vpop.f32.mrb[17].mxu1  ;;  %v8820_v29 = vadd.f32 %v7486_v9, %v8686_v45  ;;  %14487 = vst [vmem:[#allocation72_spill] sm:$0xff] %v8825_v54  ;;  %14489 = vst [vmem:[#allocation74_spill] sm:$0xff] %v8835_v43  ;;  %7684 = vtanh.f32 %v1208_v50  ;;  %v8845_v47 = vadd.f32 %v8686_v45, %v408_v40 }
 0x174   :  { %1650 = vadd.xlane.f32.xlu1 %v1461_v46  ;;  %v7381_v0 = vpop.f32.mrb[4].mxu0  ;;  %v7673_v46 = vpop.eup %7672  ;;  %7686 = vtanh.f32 %v1207_v3 }
 0x175   :  { %14486 = vst [vmem:[#allocation71_spill] sm:$0xff] %v8820_v29  ;;  %1648 = vadd.xlane.f32.xlu0 %v1460_v61  ;;  %v418_v31 = vpop.f32.mrb[5].mxu0  ;;  %v7675_v9 = vpop.eup %7674  ;;  %v8833_v61 = vrot.slane %v8815_v1, %v8506_v51  ;;  %v1210_v2 = vadd.f32 %v8762_v56, %v8820_v29  ;;  %v8840_v6 = vadd.f32 %v7381_v0, %v8686_v45  ;;  %14491 = vst [vmem:[#allocation76_spill] sm:$0xff] %v8845_v47 }
 0x176   :  { %v7489_v30 = vpop.f32.mrb[18].mxu1  ;;  %v7677_v50 = vpop.eup %7676  ;;  %v1464_v29 = vmul.f32 %v7675_v9, %v8767_v63 }
 0x177   :  { %v778_v52 = vpop.f32.mrb[19].mxu1  ;;  %14490 = vst [vmem:[#allocation75_spill] sm:$0xff] %v8840_v6  ;;  %v1138_v4 = vadd.f32 %v8833_v61, %v8825_v54  ;;  %v7679_v0 = vpop.eup %7678  ;;  %7688 = vtanh.f32 %v1210_v2  ;;  %v1140_v40 = vadd.f32 %v8833_v61, %v8840_v6  ;;  %v8860_v54 = vadd.f32 %v8686_v45, %v418_v31 }
 0x178   :  { %1654 = vadd.xlane.f32.xlu1 %v1463_v39  ;;  %v7384_v26 = vpop.f32.mrb[6].mxu0  ;;  %v1465_v39 = vmul.f32 %v7673_v46, %v8767_v63  ;;  %v8855_v3 = vpop.permute.xlu1 %1910  ;;  %v1137_v9 = vadd.f32 %v8833_v61, %v8845_v47  ;;  %v1467_v2 = vmul.f32 %v7677_v50, %v8767_v63 }
 0x179   :  { %1652 = vadd.xlane.f32.xlu0 %v1462_v7  ;;  %v428_v58 = vpop.f32.mrb[7].mxu0  ;;  %14492 = vst [vmem:[#allocation77_spill] sm:$0xff] %v8855_v3  ;;  %14493 = vst [vmem:[#allocation78_spill] sm:$0xff] %v8860_v54  ;;  %v8864_v5 = vpop.permute.xlu0 %1914  ;;  %7690 = vtanh.f32 %v1138_v4  ;;  %v1139_v4 = vadd.f32 %v8833_v61, %v8860_v54 }
 0x17a   :  { %v8847_v10 = vpop.f32.mrb[20].mxu1  ;;  %14494 = vst [vmem:[#allocation79_spill] sm:$0xff] %v8864_v5  ;;  %v7681_v6 = vpop.eup %7680  ;;  %7692 = vtanh.f32 %v1140_v40 }
 0x17b   :  { %v8850_v35 = vpop.f32.mrb[21].mxu1  ;;  %v7683_v31 = vpop.eup %7682  ;;  %7694 = vtanh.f32 %v1137_v9  ;;  %v1469_v40 = vmul.f32 %v7681_v6, %v8767_v63 }
 0x17c   :  { %1658 = vadd.xlane.f32.xlu1 %v1465_v39  ;;  %v8853_v7 = vpop.f32.mrb[8].mxu0  ;;  %v8869_v39 = vadd.f32 %v8686_v45, %v768_v59  ;;  %v8882_v59 = vadd.f32 %v7489_v30, %v8686_v45  ;;  %v8894_v32 = vpop.permute.xlu1 %1918  ;;  %v1468_v30 = vmul.f32 %v7683_v31, %v8767_v63  ;;  %7696 = vtanh.f32 %v1139_v4 }
 0x17d   :  { %1656 = vadd.xlane.f32.xlu0 %v1464_v29  ;;  %v8862_v46 = vpop.f32.mrb[9].mxu0  ;;  %v1466_v29 = vmul.f32 %v7679_v0, %v8767_v63  ;;  %v8889_v0 = vadd.f32 %v8686_v45, %v778_v52  ;;  %v7685_v5 = vpop.eup %7684  ;;  %14498 = vst [vmem:[#allocation83_spill] sm:$0xff] %v8894_v32  ;;  %v8913_v32 = vadd.f32 %v8686_v45, %v428_v58 }
 0x17e   :  { %14495 = vst [vmem:[#allocation80_spill] sm:$0xff] %v8869_v39  ;;  %v8871_v3 = vpop.f32.mrb[22].mxu1  ;;  %14496 = vst [vmem:[#allocation81_spill] sm:$0xff] %v8882_v59  ;;  %v1209_v50 = vadd.f32 %v8762_v56, %v8869_v39  ;;  %v8899_v24 = vpop.permute.xlu0 %1925  ;;  %v1212_v52 = vadd.f32 %v8762_v56, %v8882_v59  ;;  %v8906_v39 = vadd.f32 %v7384_v26, %v8686_v45 }
 0x17f   :  { %v8874_v43 = vpop.f32.mrb[23].mxu1  ;;  %14497 = vst [vmem:[#allocation82_spill] sm:$0xff] %v8889_v0  ;;  %14499 = vst [vmem:[#allocation84_spill] sm:$0xff] %v8899_v24  ;;  %v1211_v31 = vadd.f32 %v8762_v56, %v8889_v0  ;;  %v1471_v4 = vmul.f32 %v7685_v5, %v8767_v63  ;;  %v8929_v0 = vadd.f32 %v8847_v10, %v8686_v45 }
 0x180   :  { %1662 = vadd.xlane.f32.xlu1 %v1467_v2  ;;  %v8877_v37 = vpop.f32.mrb[10].mxu0  ;;  %14500 = vst [vmem:[#allocation85_spill] sm:$0xff] %v8906_v39  ;;  %7698 = vtanh.f32 %v1209_v50  ;;  %14501 = vst [vmem:[#allocation86_spill] sm:$0xff] %v8913_v32  ;;  %v8923_v50 = vpop.permute.xlu1 %1929  ;;  %v1142_v58 = vadd.f32 %v8833_v61, %v8906_v39 }
 0x181   :  { %1660 = vadd.xlane.f32.xlu0 %v1466_v29  ;;  %v8884_v47 = vpop.f32.mrb[11].mxu0  ;;  %v7687_v29 = vpop.eup %7686  ;;  %14502 = vst [vmem:[#allocation87_spill] sm:$0xff] %v8923_v50  ;;  %7700 = vtanh.f32 %v1212_v52  ;;  %14503 = vst [vmem:[#allocation88_spill] sm:$0xff] %v8929_v0 }
 0x182   :  { %v8891_v2 = vpop.f32.mrb[24].mxu1  ;;  %v7689_v24 = vpop.eup %7688  ;;  %v1470_v26 = vmul.f32 %v7687_v29, %v8767_v63  ;;  %7702 = vtanh.f32 %v1211_v31  ;;  %v1141_v29 = vadd.f32 %v8833_v61, %v8913_v32  ;;  %v1214_v32 = vadd.f32 %v8762_v56, %v8929_v0 }
 0x183   :  { %v8896_v54 = vpop.f32.mrb[25].mxu1  ;;  %v7691_v59 = vpop.eup %7690  ;;  %v1473_v39 = vmul.f32 %v7689_v24, %v8767_v63  ;;  %7704 = vtanh.f32 %v1142_v58 }
 0x184   :  { %1666 = vadd.xlane.f32.xlu1 %v1469_v40  ;;  %v8901_v9 = vpop.f32.mrb[12].mxu0  ;;  %v8933_v34 = vpop.permute.xlu0 %1933  ;;  %7706 = vtanh.f32 %v1141_v29 }
 0x185   :  { %1664 = vadd.xlane.f32.xlu0 %v1468_v30  ;;  %v8908_v6 = vpop.f32.mrb[13].mxu0  ;;  %14504 = vst [vmem:[#allocation89_spill] sm:$0xff] %v8933_v34  ;;  %v7693_v50 = vpop.eup %7692  ;;  %7708 = vtanh.f32 %v1214_v32  ;;  %v9057_v28 = vadd.f32 %v8901_v9, %v8686_v45 }
 0x186   :  { %v8915_v40 = vpop.f32.mrb[26].mxu1  ;;  %v7695_v48 = vpop.eup %7694  ;;  %v1403_v58 = vmul.f32 %v7693_v50, %v8767_v63  ;;  %v8979_v50 = vadd.f32 %v8871_v3, %v8686_v45 }
 0x187   :  { %v8918_v42 = vpop.f32.mrb[27].mxu1  ;;  %v7697_v0 = vpop.eup %7696  ;;  %14520 = vst [vmem:[#allocation105_spill] sm:$0xff] %v9057_v28 }
 0x188   :  { %1670 = vadd.xlane.f32.xlu1 %v1471_v4  ;;  %v8921_v30 = vpop.f32.mrb[14].mxu0  ;;  %v8939_v4 = vadd.f32 %v8686_v45, %v8850_v35  ;;  %v8953_v35 = vadd.f32 %v8853_v7, %v8686_v45  ;;  %v8966_v38 = vpop.permute.xlu1 %1937  ;;  %14510 = vst [vmem:[#allocation95_spill] sm:$0xff] %v8979_v50  ;;  %v1402_v32 = vmul.f32 %v7697_v0, %v8767_v63 }
 0x189   :  { %1668 = vadd.xlane.f32.xlu0 %v1470_v26  ;;  %v8931_v5 = vpop.f32.mrb[15].mxu0  ;;  %v1401_v26 = vmul.f32 %v7691_v59, %v8767_v63  ;;  %14508 = vst [vmem:[#allocation93_spill] sm:$0xff] %v8966_v38  ;;  %v8971_v29 = vpop.permute.xlu0 %1941 }
 0x18a   :  { %14505 = vst [vmem:[#allocation90_spill] sm:$0xff] %v8939_v4  ;;  %v8941_v52 = vpop.f32.mrb[28].mxu1  ;;  %14506 = vst [vmem:[#allocation91_spill] sm:$0xff] %v8953_v35  ;;  %v1213_v24 = vadd.f32 %v8762_v56, %v8939_v4  ;;  %v7699_v23 = vpop.eup %7698 }
 0x18b   :  { %v8944_v10 = vpop.f32.mrb[29].mxu1  ;;  %14509 = vst [vmem:[#allocation94_spill] sm:$0xff] %v8971_v29  ;;  %v1472_v3 = vmul.f32 %v7699_v23, %v8767_v63 }
 0x18c   :  { %1674 = vadd.xlane.f32.xlu1 %v1473_v39  ;;  %v8947_v31 = vpop.f32.mrb[16].mxu0  ;;  %v8961_v39 = vadd.f32 %v8686_v45, %v8862_v46  ;;  %v1144_v46 = vadd.f32 %v8833_v61, %v8953_v35  ;;  %7710 = vtanh.f32 %v1213_v24  ;;  %v7701_v35 = vpop.eup %7700 }
 0x18d   :  { %1530 = vadd.xlane.f32.xlu0 %v1401_v26  ;;  %v8955_v34 = vpop.f32.mrb[17].mxu0  ;;  %v1400_v26 = vmul.f32 %v7695_v48, %v8767_v63  ;;  %v8997_v24 = vpop.permute.xlu1 %1945 }
 0x18e   :  { %14507 = vst [vmem:[#allocation92_spill] sm:$0xff] %v8961_v39  ;;  %v8963_v59 = vpop.f32.mrb[30].mxu1  ;;  %v1143_v48 = vadd.f32 %v8833_v61, %v8961_v39  ;;  %14512 = vst [vmem:[#allocation97_spill] sm:$0xff] %v8997_v24  ;;  %7712 = vtanh.f32 %v1144_v46  ;;  %v9003_v39 = vadd.f32 %v8877_v37, %v8686_v45  ;;  %v9009_v57 = vpop.permute.xlu0 %1949 }
 0x18f   :  { %v8968_v7 = vpop.f32.mrb[31].mxu1  ;;  %14514 = vst [vmem:[#allocation99_spill] sm:$0xff] %v9009_v57 }
 0x190   :  { %1534 = vadd.xlane.f32.xlu1 %v1403_v58  ;;  %v8973_v4 = vpop.f32.mrb[18].mxu0  ;;  %v8987_v58 = vadd.f32 %v8686_v45, %v8874_v43  ;;  %v1216_v43 = vadd.f32 %v8762_v56, %v8979_v50  ;;  %14513 = vst [vmem:[#allocation98_spill] sm:$0xff] %v9003_v39  ;;  %7714 = vtanh.f32 %v1143_v48  ;;  %v1475_v50 = vmul.f32 %v7701_v35, %v8767_v63 }
 0x191   :  { %1528 = vadd.xlane.f32.xlu0 %v1400_v26  ;;  %v8981_v38 = vpop.f32.mrb[19].mxu0  ;;  %v7703_v26 = vpop.eup %7702 }
 0x192   :  { %14511 = vst [vmem:[#allocation96_spill] sm:$0xff] %v8987_v58  ;;  %v8989_v29 = vpop.f32.mrb[32].mxu1  ;;  %v1215_v23 = vadd.f32 %v8762_v56, %v8987_v58  ;;  %v7705_v24 = vpop.eup %7704  ;;  %7716 = vtanh.f32 %v1216_v43  ;;  %v1146_v56 = vadd.f32 %v8833_v61, %v9003_v39 }
 0x193   :  { %v8992_v8 = vpop.f32.mrb[33].mxu1  ;;  %v7707_v41 = vpop.eup %7706  ;;  %v1405_v43 = vmul.f32 %v7705_v24, %v8767_v63 }
 0x194   :  { %v8995_v60 = vpop.f32.mrb[20].mxu0  ;;  %1532 = vadd.xlane.f32.xlu1 %v1402_v32  ;;  %v9013_v32 = vadd.f32 %v8686_v45, %v8884_v47  ;;  %v9027_v47 = vadd.f32 %v8891_v2, %v8686_v45  ;;  %7718 = vtanh.f32 %v1215_v23  ;;  %v7709_v39 = vpop.eup %7708  ;;  %v9042_v2 = vrot.slane %v8695_v55, %v8506_v51 }
 0x195   :  { %1672 = vadd.xlane.f32.xlu0 %v1472_v3  ;;  %v9005_v0 = vpop.f32.mrb[21].mxu0  ;;  %v1474_v3 = vmul.f32 %v7703_v26, %v8767_v63  ;;  %v9035_v26 = vadd.f32 %v8686_v45, %v8896_v54  ;;  %v1404_v23 = vmul.f32 %v7707_v41, %v8767_v63  ;;  %v9049_v36 = vpop.permute.xlu0 %1957  ;;  %7720 = vtanh.f32 %v1146_v56 }
 0x196   :  { %14515 = vst [vmem:[#allocation100_spill] sm:$0xff] %v9013_v32  ;;  %v9015_v46 = vpop.f32.mrb[34].mxu1  ;;  %14516 = vst [vmem:[#allocation101_spill] sm:$0xff] %v9027_v47  ;;  %v1145_v35 = vadd.f32 %v8833_v61, %v9013_v32  ;;  %v7711_v32 = vpop.eup %7710  ;;  %v1218_v24 = vadd.f32 %v9042_v2, %v9027_v47  ;;  %v1477_v56 = vmul.f32 %v7709_v39, %v8767_v63 }
 0x197   :  { %v9018_v37 = vpop.f32.mrb[35].mxu1  ;;  %14517 = vst [vmem:[#allocation102_spill] sm:$0xff] %v9035_v26  ;;  %14519 = vst [vmem:[#allocation104_spill] sm:$0xff] %v9049_v36  ;;  %v1217_v41 = vadd.f32 %v9042_v2, %v9035_v26  ;;  %v9065_v36 = vadd.f32 %v8686_v45, %v8908_v6  ;;  %v1476_v9 = vmul.f32 %v7711_v32, %v8767_v63 }
 0x198   :  { %v9021_v48 = vpop.f32.mrb[22].mxu0  ;;  %1678 = vadd.xlane.f32.xlu1 %v1475_v50  ;;  %7722 = vtanh.f32 %v1145_v35  ;;  %v7713_v47 = vpop.eup %7712  ;;  %v1148_v6 = vadd.f32 %v8833_v61, %v9057_v28  ;;  %v9081_v26 = vadd.f32 %v8915_v40, %v8686_v45 }
 0x199   :  { %1676 = vadd.xlane.f32.xlu0 %v1474_v3  ;;  %v9029_v58 = vpop.f32.mrb[23].mxu0  ;;  %v9044_v3 = vpop.permute.xlu1 %1953  ;;  %14521 = vst [vmem:[#allocation106_spill] sm:$0xff] %v9065_v36  ;;  %7724 = vtanh.f32 %v1218_v24  ;;  %v1147_v32 = vadd.f32 %v8833_v61, %v9065_v36  ;;  %v1407_v28 = vmul.f32 %v7713_v47, %v8767_v63  ;;  %v9105_v36 = vadd.f32 %v8921_v30, %v8686_v45 }
 0x19a   :  { %v9037_v50 = vpop.f32.mrb[36].mxu1  ;;  %14518 = vst [vmem:[#allocation103_spill] sm:$0xff] %v9044_v3  ;;  %14523 = vst [vmem:[#allocation108_spill] sm:$0xff] %v9081_v26  ;;  %7726 = vtanh.f32 %v1217_v41  ;;  %v9091_v24 = vpop.permute.xlu0 %1965 }
 0x19b   :  { %v9046_v57 = vpop.f32.mrb[37].mxu1  ;;  %14525 = vst [vmem:[#allocation110_spill] sm:$0xff] %v9091_v24  ;;  %7728 = vtanh.f32 %v1148_v6  ;;  %14526 = vst [vmem:[#allocation111_spill] sm:$0xff] %v9105_v36 }
 0x19c   :  { %v9051_v54 = vpop.f32.mrb[24].mxu0  ;;  %1538 = vadd.xlane.f32.xlu1 %v1405_v43  ;;  %7730 = vtanh.f32 %v1147_v32 }
 0x19d   :  { %1536 = vadd.xlane.f32.xlu0 %v1404_v23  ;;  %v9059_v3 = vpop.f32.mrb[25].mxu0  ;;  %v7715_v23 = vpop.eup %7714 }
 0x19e   :  { %v9067_v43 = vpop.f32.mrb[38].mxu1  ;;  %v9075_v35 = vpop.permute.xlu1 %1961 }
 0x19f   :  { %v9070_v27 = vpop.f32.mrb[39].mxu1  ;;  %14522 = vst [vmem:[#allocation107_spill] sm:$0xff] %v9075_v35  ;;  %v7717_v22 = vpop.eup %7716 }
 0x1a0   :  { %v9073_v25 = vpop.f32.mrb[26].mxu0  ;;  %1682 = vadd.xlane.f32.xlu1 %v1477_v56  ;;  %v9089_v56 = vadd.f32 %v8686_v45, %v8918_v42  ;;  %v7719_v21 = vpop.eup %7718  ;;  %v1220_v42 = vadd.f32 %v9042_v2, %v9081_v26  ;;  %v1479_v6 = vmul.f32 %v7717_v22, %v8767_v63  ;;  %v9131_v22 = vadd.f32 %v8941_v52, %v8686_v45 }
 0x1a1   :  { %1680 = vadd.xlane.f32.xlu0 %v1476_v9  ;;  %v9083_v39 = vpop.f32.mrb[27].mxu0  ;;  %v1406_v9 = vmul.f32 %v7715_v23, %v8767_v63  ;;  %v9113_v23 = vadd.f32 %v8686_v45, %v8931_v5  ;;  %v7721_v26 = vpop.eup %7720  ;;  %v1150_v5 = vadd.f32 %v8833_v61, %v9105_v36 }
 0x1a2   :  { %14524 = vst [vmem:[#allocation109_spill] sm:$0xff] %v9089_v56  ;;  %v9093_v35 = vpop.f32.mrb[40].mxu1  ;;  %v1219_v47 = vadd.f32 %v9042_v2, %v9089_v56  ;;  %v9118_v20 = vpop.permute.xlu1 %1969  ;;  %7732 = vtanh.f32 %v1220_v42  ;;  %14530 = vst [vmem:[#allocation115_spill] sm:$0xff] %v9131_v22  ;;  %v1409_v42 = vmul.f32 %v7721_v26, %v8767_v63 }
 0x1a3   :  { %v9096_v40 = vpop.f32.mrb[41].mxu1  ;;  %14527 = vst [vmem:[#allocation112_spill] sm:$0xff] %v9113_v23  ;;  %14528 = vst [vmem:[#allocation113_spill] sm:$0xff] %v9118_v20  ;;  %v7723_v19 = vpop.eup %7722 }
 0x1a4   :  { %v9099_v41 = vpop.f32.mrb[28].mxu0  ;;  %1542 = vadd.xlane.f32.xlu1 %v1407_v28  ;;  %v9123_v32 = vpop.permute.xlu0 %1973  ;;  %7734 = vtanh.f32 %v1219_v47  ;;  %v1408_v52 = vmul.f32 %v7723_v19, %v8767_v63  ;;  %v1222_v47 = vadd.f32 %v9042_v2, %v9131_v22 }
 0x1a5   :  { %1540 = vadd.xlane.f32.xlu0 %v1406_v9  ;;  %v9107_v24 = vpop.f32.mrb[29].mxu0  ;;  %v1478_v9 = vmul.f32 %v7719_v21, %v8767_v63  ;;  %14529 = vst [vmem:[#allocation114_spill] sm:$0xff] %v9123_v32  ;;  %v1149_v21 = vadd.f32 %v8833_v61, %v9113_v23  ;;  %v9139_v32 = vadd.f32 %v8686_v45, %v8944_v10  ;;  %v7725_v36 = vpop.eup %7724  ;;  %7736 = vtanh.f32 %v1150_v5 }
 0x1a6   :  { %v9115_v28 = vpop.f32.mrb[42].mxu1  ;;  %v9151_v23 = vpop.permute.xlu1 %1977  ;;  %v9155_v10 = vadd.f32 %v8947_v31, %v8686_v45 }
 0x1a7   :  { %v9120_v30 = vpop.f32.mrb[43].mxu1  ;;  %14531 = vst [vmem:[#allocation116_spill] sm:$0xff] %v9139_v32  ;;  %14532 = vst [vmem:[#allocation117_spill] sm:$0xff] %v9151_v23  ;;  %7738 = vtanh.f32 %v1149_v21  ;;  %v1221_v19 = vadd.f32 %v9042_v2, %v9139_v32  ;;  %v1481_v23 = vmul.f32 %v7725_v36, %v8767_v63  ;;  %v9179_v32 = vadd.f32 %v8963_v59, %v8686_v45 }
 0x1a8   :  { %v9125_v18 = vpop.f32.mrb[30].mxu0  ;;  %1686 = vadd.xlane.f32.xlu1 %v1479_v6  ;;  %14533 = vst [vmem:[#allocation118_spill] sm:$0xff] %v9155_v10  ;;  %v9165_v5 = vpop.permute.xlu0 %1981  ;;  %7740 = vtanh.f32 %v1222_v47 }
 0x1a9   :  { %1684 = vadd.xlane.f32.xlu0 %v1478_v9  ;;  %v9133_v56 = vpop.f32.mrb[31].mxu0  ;;  %v7727_v9 = vpop.eup %7726  ;;  %14535 = vst [vmem:[#allocation120_spill] sm:$0xff] %v9165_v5  ;;  %14536 = vst [vmem:[#allocation121_spill] sm:$0xff] %v9179_v32  ;;  %7742 = vtanh.f32 %v1221_v19 }
 0x1aa   :  { %v9141_v6 = vpop.f32.mrb[44].mxu1  ;;  %v7729_v16 = vpop.eup %7728 }
 0x1ab   :  { %v9144_v20 = vpop.f32.mrb[45].mxu1  ;;  %v7731_v15 = vpop.eup %7730  ;;  %v1411_v47 = vmul.f32 %v7729_v16, %v8767_v63  ;;  %v9205_v16 = vadd.f32 %v8973_v4, %v8686_v45  ;;  %v9220_v4 = vrot.slane %v8689_v49, %v8506_v51 }
 0x1ac   :  { %v9147_v17 = vpop.f32.mrb[32].mxu0  ;;  %1546 = vadd.xlane.f32.xlu1 %v1409_v42  ;;  %v9163_v42 = vadd.f32 %v8686_v45, %v8955_v34  ;;  %v1152_v34 = vadd.f32 %v8833_v61, %v9155_v10  ;;  %v7733_v10 = vpop.eup %7732 }
 0x1ad   :  { %1544 = vadd.xlane.f32.xlu0 %v1408_v52  ;;  %v9157_v26 = vpop.f32.mrb[33].mxu0  ;;  %v1480_v52 = vmul.f32 %v7727_v9, %v8767_v63  ;;  %v9187_v9 = vadd.f32 %v8686_v45, %v8968_v7  ;;  %v9192_v14 = vpop.permute.xlu1 %1985  ;;  %14540 = vst [vmem:[#allocation125_spill] sm:$0xff] %v9205_v16 }
 0x1ae   :  { %14534 = vst [vmem:[#allocation119_spill] sm:$0xff] %v9163_v42  ;;  %v9167_v22 = vpop.f32.mrb[46].mxu1  ;;  %v1151_v36 = vadd.f32 %v8833_v61, %v9163_v42  ;;  %14538 = vst [vmem:[#allocation123_spill] sm:$0xff] %v9192_v14  ;;  %v7735_v12 = vpop.eup %7734  ;;  %7744 = vtanh.f32 %v1152_v34  ;;  %v1224_v61 = vadd.f32 %v9042_v2, %v9179_v32  ;;  %v9213_v42 = vadd.f32 %v8686_v45, %v8981_v38 }
 0x1af   :  { %v9170_v31 = vpop.f32.mrb[47].mxu1  ;;  %14537 = vst [vmem:[#allocation122_spill] sm:$0xff] %v9187_v9  ;;  %v9197_v19 = vpop.permute.xlu0 %1992  ;;  %v1483_v34 = vmul.f32 %v7733_v10, %v8767_v63  ;;  %v1154_v38 = vadd.f32 %v9220_v4, %v9205_v16  ;;  %v9231_v10 = vadd.f32 %v8989_v29, %v8686_v45 }
 0x1b0   :  { %v9173_v21 = vpop.f32.mrb[34].mxu0  ;;  %1690 = vadd.xlane.f32.xlu1 %v1481_v23  ;;  %14539 = vst [vmem:[#allocation124_spill] sm:$0xff] %v9197_v19  ;;  %7746 = vtanh.f32 %v1151_v36  ;;  %14541 = vst [vmem:[#allocation126_spill] sm:$0xff] %v9213_v42  ;;  %v7737_v32 = vpop.eup %7736  ;;  %v1482_v36 = vmul.f32 %v7735_v12, %v8767_v63  ;;  %v1153_v12 = vadd.f32 %v9220_v4, %v9213_v42 }
 0x1b1   :  { %1688 = vadd.xlane.f32.xlu0 %v1480_v52  ;;  %v9181_v5 = vpop.f32.mrb[35].mxu0  ;;  %v1410_v52 = vmul.f32 %v7731_v15, %v8767_v63  ;;  %v1223_v15 = vadd.f32 %v9042_v2, %v9187_v9  ;;  %v7739_v19 = vpop.eup %7738  ;;  %7748 = vtanh.f32 %v1224_v61  ;;  %14542 = vst [vmem:[#allocation127_spill] sm:$0xff] %v9231_v10  ;;  %v1413_v29 = vmul.f32 %v7737_v32, %v8767_v63 }
 0x1b2   :  { %v9189_v23 = vpop.f32.mrb[48].mxu1  ;;  %v9233_v9 = vpop.permute.xlu1 %1996  ;;  %v9257_v42 = vadd.f32 %v8995_v60, %v8686_v45 }
 0x1b3   :  { %v9194_v59 = vpop.f32.mrb[49].mxu1  ;;  %14543 = vst [vmem:[#allocation128_spill] sm:$0xff] %v9233_v9  ;;  %7750 = vtanh.f32 %v1223_v15  ;;  %v9243_v61 = vpop.permute.xlu0 %2000 }
 0x1b4   :  { %v9199_v13 = vpop.f32.mrb[36].mxu0  ;;  %1550 = vadd.xlane.f32.xlu1 %v1411_v47  ;;  %14545 = vst [vmem:[#allocation130_spill] sm:$0xff] %v9243_v61  ;;  %v7741_v11 = vpop.eup %7740  ;;  %7752 = vtanh.f32 %v1154_v38  ;;  %14546 = vst [vmem:[#allocation131_spill] sm:$0xff] %v9257_v42 }
 0x1b5   :  { %1548 = vadd.xlane.f32.xlu0 %v1410_v52  ;;  %v9207_v7 = vpop.f32.mrb[37].mxu0  ;;  %v7743_v9 = vpop.eup %7742  ;;  %7754 = vtanh.f32 %v1153_v12  ;;  %v1485_v38 = vmul.f32 %v7741_v11, %v8767_v63  ;;  %v9283_v11 = vadd.f32 %v9015_v46, %v8686_v45 }
 0x1b6   :  { %v9215_v47 = vpop.f32.mrb[50].mxu1  ;;  %v9270_v53 = vpop.permute.xlu1 %2004 }
 0x1b7   :  { %v9222_v52 = vpop.f32.mrb[51].mxu1  ;;  %14548 = vst [vmem:[#allocation133_spill] sm:$0xff] %v9270_v53  ;;  %v9275_v12 = vpop.permute.xlu0 %2008  ;;  %14551 = vst [vmem:[#allocation136_spill] sm:$0xff] %v9283_v11 }
 0x1b8   :  { %v9225_v14 = vpop.f32.mrb[38].mxu0  ;;  %1694 = vadd.xlane.f32.xlu1 %v1483_v34  ;;  %v9241_v34 = vadd.f32 %v8686_v45, %v8992_v8  ;;  %v1226_v8 = vadd.f32 %v9042_v2, %v9231_v10  ;;  %v7745_v10 = vpop.eup %7744  ;;  %14549 = vst [vmem:[#allocation134_spill] sm:$0xff] %v9275_v12  ;;  %v9291_v12 = vadd.f32 %v8686_v45, %v9018_v37 }
 0x1b9   :  { %1692 = vadd.xlane.f32.xlu0 %v1482_v36  ;;  %v9235_v49 = vpop.f32.mrb[39].mxu0  ;;  %v1412_v36 = vmul.f32 %v7739_v19, %v8767_v63  ;;  %v9265_v19 = vadd.f32 %v8686_v45, %v9005_v0  ;;  %v1156_v0 = vadd.f32 %v9220_v4, %v9257_v42  ;;  %v9305_v37 = vadd.f32 %v9021_v48, %v8686_v45 }
 0x1ba   :  { %14544 = vst [vmem:[#allocation129_spill] sm:$0xff] %v9241_v34  ;;  %v9245_v16 = vpop.f32.mrb[52].mxu1  ;;  %v1225_v32 = vadd.f32 %v9042_v2, %v9241_v34  ;;  %v7747_v62 = vpop.eup %7746  ;;  %7756 = vtanh.f32 %v1226_v8  ;;  %14552 = vst [vmem:[#allocation137_spill] sm:$0xff] %v9291_v12  ;;  %v1415_v8 = vmul.f32 %v7745_v10, %v8767_v63 }
 0x1bb   :  { %v9248_v44 = vpop.f32.mrb[53].mxu1  ;;  %14547 = vst [vmem:[#allocation132_spill] sm:$0xff] %v9265_v19  ;;  %v7749_v42 = vpop.eup %7748  ;;  %v1414_v46 = vmul.f32 %v7747_v62, %v8767_v63  ;;  %14555 = vst [vmem:[#allocation140_spill] sm:$0xff] %v9305_v37  ;;  %v1227_v62 = vadd.f32 %v9042_v2, %v9291_v12  ;;  %v9331_v12 = vadd.f32 %v9037_v50, %v8686_v45 }
 0x1bc   :  { %v9251_v15 = vpop.f32.mrb[40].mxu0  ;;  %1554 = vadd.xlane.f32.xlu1 %v1413_v29  ;;  %7758 = vtanh.f32 %v1225_v32  ;;  %v1228_v32 = vadd.f32 %v9042_v2, %v9283_v11  ;;  %v1487_v48 = vmul.f32 %v7749_v42, %v8767_v63 }
 0x1bd   :  { %1552 = vadd.xlane.f32.xlu0 %v1412_v36  ;;  %v9259_v61 = vpop.f32.mrb[41].mxu0  ;;  %v1484_v36 = vmul.f32 %v7743_v9, %v8767_v63  ;;  %v1155_v9 = vadd.f32 %v9220_v4, %v9265_v19  ;;  %7760 = vtanh.f32 %v1156_v0  ;;  %v9307_v19 = vpop.permute.xlu1 %2012  ;;  %14561 = vst [vmem:[#allocation146_spill] sm:$0xff] %v9331_v12 }
 0x1be   :  { %v9267_v29 = vpop.f32.mrb[54].mxu1  ;;  %14556 = vst [vmem:[#allocation141_spill] sm:$0xff] %v9307_v19  ;;  %v9317_v0 = vpop.permute.xlu0 %2016 }
 0x1bf   :  { %v9272_v60 = vpop.f32.mrb[55].mxu1  ;;  %7762 = vtanh.f32 %v1155_v9  ;;  %14558 = vst [vmem:[#allocation143_spill] sm:$0xff] %v9317_v0 }
 0x1c0   :  { %v9277_v55 = vpop.f32.mrb[42].mxu0  ;;  %1698 = vadd.xlane.f32.xlu1 %v1485_v38  ;;  %7764 = vtanh.f32 %v1228_v32 }
 0x1c1   :  { %14550 = vst [vmem:[#allocation135_spill] sm:$0xff] %v9277_v55  ;;  %1696 = vadd.xlane.f32.xlu0 %v1484_v36  ;;  %v9285_v34 = vpop.f32.mrb[43].mxu0  ;;  %v7751_v36 = vpop.eup %7750  ;;  %7766 = vtanh.f32 %v1227_v62 }
 0x1c2   :  { %v9293_v38 = vpop.f32.mrb[56].mxu1  ;;  %v9349_v62 = vpop.permute.xlu0 %2024 }
 0x1c3   :  { %v9296_v53 = vpop.f32.mrb[57].mxu1  ;;  %14565 = vst [vmem:[#allocation150_spill] sm:$0xff] %v9349_v62  ;;  %v9365_v62 = vadd.f32 %v8686_v45, %v9059_v3  ;;  %v9379_v3 = vadd.f32 %v9067_v43, %v8686_v45 }
 0x1c4   :  { %14553 = vst [vmem:[#allocation138_spill] sm:$0xff] %v9296_v53  ;;  %v9299_v55 = vpop.f32.mrb[44].mxu0  ;;  %1558 = vadd.xlane.f32.xlu1 %v1415_v8  ;;  %v9315_v8 = vadd.f32 %v8686_v45, %v9029_v58  ;;  %v1158_v58 = vadd.f32 %v9220_v4, %v9305_v37 }
 0x1c5   :  { %14554 = vst [vmem:[#allocation139_spill] sm:$0xff] %v9299_v55  ;;  %1556 = vadd.xlane.f32.xlu0 %v1414_v46  ;;  %v9309_v10 = vpop.f32.mrb[45].mxu0  ;;  %v7753_v55 = vpop.eup %7752  ;;  %v1486_v46 = vmul.f32 %v7751_v36, %v8767_v63  ;;  %v9339_v36 = vadd.f32 %v8686_v45, %v9046_v57  ;;  %v1230_v57 = vadd.f32 %v9042_v2, %v9331_v12  ;;  %14568 = vst [vmem:[#allocation153_spill] sm:$0xff] %v9365_v62 }
 0x1c6   :  { %14557 = vst [vmem:[#allocation142_spill] sm:$0xff] %v9315_v8  ;;  %v9319_v11 = vpop.f32.mrb[58].mxu1  ;;  %v7755_v19 = vpop.eup %7754  ;;  %v1157_v42 = vadd.f32 %v9220_v4, %v9315_v8  ;;  %v1417_v32 = vmul.f32 %v7753_v55, %v8767_v63  ;;  %7768 = vtanh.f32 %v1158_v58  ;;  %v9357_v55 = vadd.f32 %v9051_v54, %v8686_v45  ;;  %14571 = vst [vmem:[#allocation156_spill] sm:$0xff] %v9379_v3 }
 0x1c7   :  { %v9322_v53 = vpop.f32.mrb[59].mxu1  ;;  %14563 = vst [vmem:[#allocation148_spill] sm:$0xff] %v9339_v36  ;;  %v7757_v37 = vpop.eup %7756 }
 0x1c8   :  { %14559 = vst [vmem:[#allocation144_spill] sm:$0xff] %v9322_v53  ;;  %v9325_v9 = vpop.f32.mrb[46].mxu0  ;;  %1702 = vadd.xlane.f32.xlu1 %v1487_v48  ;;  %14567 = vst [vmem:[#allocation152_spill] sm:$0xff] %v9357_v55  ;;  %7770 = vtanh.f32 %v1157_v42  ;;  %v1489_v58 = vmul.f32 %v7757_v37, %v8767_v63  ;;  %v1160_v42 = vadd.f32 %v9220_v4, %v9357_v55 }
 0x1c9   :  { %14560 = vst [vmem:[#allocation145_spill] sm:$0xff] %v9325_v9  ;;  %1700 = vadd.xlane.f32.xlu0 %v1486_v46  ;;  %v9333_v0 = vpop.f32.mrb[47].mxu0  ;;  %v9344_v9 = vpop.permute.xlu1 %2020  ;;  %v1416_v46 = vmul.f32 %v7755_v19, %v8767_v63  ;;  %v1229_v19 = vadd.f32 %v9042_v2, %v9339_v36  ;;  %7772 = vtanh.f32 %v1230_v57 }
 0x1ca   :  { %14562 = vst [vmem:[#allocation147_spill] sm:$0xff] %v9333_v0  ;;  %v9341_v48 = vpop.f32.mrb[60].mxu1  ;;  %14564 = vst [vmem:[#allocation149_spill] sm:$0xff] %v9344_v9  ;;  %v7759_v0 = vpop.eup %7758 }
 0x1cb   :  { %v9346_v50 = vpop.f32.mrb[61].mxu1  ;;  %v7761_v12 = vpop.eup %7760  ;;  %v1488_v54 = vmul.f32 %v7759_v0, %v8767_v63  ;;  %7774 = vtanh.f32 %v1229_v19  ;;  %v1159_v0 = vadd.f32 %v9220_v4, %v9365_v62 }
 0x1cc   :  { %v9351_v53 = vpop.f32.mrb[48].mxu0  ;;  %1562 = vadd.xlane.f32.xlu1 %v1417_v32  ;;  %v9391_v57 = vpop.permute.xlu0 %2032  ;;  %v1419_v43 = vmul.f32 %v7761_v12, %v8767_v63  ;;  %7776 = vtanh.f32 %v1160_v42 }
 0x1cd   :  { %14566 = vst [vmem:[#allocation151_spill] sm:$0xff] %v9351_v53  ;;  %1560 = vadd.xlane.f32.xlu0 %v1416_v46  ;;  %v9359_v8 = vpop.f32.mrb[49].mxu0  ;;  %v7763_v46 = vpop.eup %7762  ;;  %14574 = vst [vmem:[#allocation159_spill] sm:$0xff] %v9391_v57  ;;  %7778 = vtanh.f32 %v1159_v0 }
 0x1ce   :  { %v9367_v32 = vpop.f32.mrb[62].mxu1  ;;  %v9381_v36 = vpop.permute.xlu1 %2028 }
 0x1cf   :  { %v9370_v9 = vpop.f32.mrb[63].mxu1  ;;  %14572 = vst [vmem:[#allocation157_spill] sm:$0xff] %v9381_v36 }
 0x1d0   :  { %14569 = vst [vmem:[#allocation154_spill] sm:$0xff] %v9370_v9  ;;  %v9373_v53 = vpop.f32.mrb[50].mxu0  ;;  %1706 = vadd.xlane.f32.xlu1 %v1489_v58  ;;  %v9389_v58 = vadd.f32 %v8686_v45, %v9070_v27  ;;  %v1232_v27 = vadd.f32 %v9042_v2, %v9379_v3  ;;  %v9406_v45 = vld [vmem:[%s13990_s6] ss:$0 sm:$0xff] }
 0x1d1   :  { %14570 = vst [vmem:[#allocation155_spill] sm:$0xff] %v9373_v53  ;;  %1704 = vadd.xlane.f32.xlu0 %v1488_v54  ;;  %v9383_v37 = vpop.f32.mrb[51].mxu0  ;;  %v7765_v53 = vpop.eup %7764  ;;  %v1418_v54 = vmul.f32 %v7763_v46, %v8767_v63  ;;  %v9410_v12 = vadd.f32 %v9406_v45, %v9073_v25  ;;  %v9418_v42 = vadd.f32 %v9406_v45, %v9083_v39 }
 0x1d2   :  { %14573 = vst [vmem:[#allocation158_spill] sm:$0xff] %v9389_v58  ;;  %v9393_v55 = vpop.f32.mrb[64].mxu1  ;;  %v7767_v36 = vpop.eup %7766  ;;  %v1231_v46 = vadd.f32 %v9042_v2, %v9389_v58  ;;  %v1491_v3 = vmul.f32 %v7765_v53, %v8767_v63  ;;  %v1094_v25 = vcombine.high %v8744_v33, %v8744_v33  ;;  %7780 = vtanh.f32 %v1232_v27 }
 0x1d3   :  { %v9396_v9 = vpop.f32.mrb[65].mxu1  ;;  %14576 = vst [vmem:[#allocation161_spill] sm:$0xff] %v9410_v12  ;;  %14578 = vst [vmem:[#allocation163_spill] sm:$0xff] %v9418_v42  ;;  %v7769_v57 = vpop.eup %7768  ;;  %v1490_v0 = vmul.f32 %v7767_v36, %v8767_v63  ;;  %v1162_v53 = vadd.f32 %v9220_v4, %v9410_v12  ;;  %v9438_v39 = vadd.f32 %v9406_v45, %v9093_v35 }
 0x1d4   :  { %v9399_v19 = vpop.f32.mrb[52].mxu0  ;;  %1566 = vadd.xlane.f32.xlu1 %v1419_v43  ;;  %v9430_v2 = vpop.permute.xlu0 %2040  ;;  %7782 = vtanh.f32 %v1231_v46  ;;  %v1161_v36 = vadd.f32 %v9220_v4, %v9418_v42  ;;  %v1421_v27 = vmul.f32 %v7769_v57, %v8767_v63  ;;  %v9463_v42 = vadd.f32 %v9406_v45, %v9099_v41  ;;  %v9482_v41 = vld [vmem:[%s13991_s7] ss:$0 sm:$0xff]  ;;  %s8349_s7 = smov [#allocation12]  }
 0x1d5   :  { %14575 = vst [vmem:[#allocation160_spill] sm:$0xff] %v9399_v19  ;;  %1564 = vadd.xlane.f32.xlu0 %v1418_v54  ;;  %v9412_v62 = vpop.f32.mrb[53].mxu0  ;;  %v9425_v19 = vpop.permute.xlu1 %2036  ;;  %14580 = vst [vmem:[#allocation165_spill] sm:$0xff] %v9430_v2  ;;  %v9446_v2 = vadd.f32 %v9406_v45, %v9096_v40  ;;  %7784 = vtanh.f32 %v1162_v53  ;;  %s7130_s13 = sshll.u32 %s8349_s7, 4  ;;  %s7131_s13 = int_to_ptr.vmem [resolvable:$true] %s7130_s13 }
 0x1d6   :  { %14577 = vst [vmem:[#allocation162_spill] sm:$0xff] %v9412_v62  ;;  %v9420_v43 = vpop.f32.mrb[66].mxu1  ;;  %14579 = vst [vmem:[#allocation164_spill] sm:$0xff] %v9425_v19  ;;  %v7771_v62 = vpop.eup %7770  ;;  %v9452_v19 = vrot.slane %v1094_v25, %v8506_v51  ;;  %7786 = vtanh.f32 %v1161_v36  ;;  %s8283_s1 = scalar_lea.vmem %s7131_s13, 128  ;;  %p8288_p13 = scmp.lt.s32.totalorder %s7131_s13, %s7131_s13 }
 0x1d7   :  { %v9427_v54 = vpop.f32.mrb[67].mxu1  ;;  %14581 = vst [vmem:[#allocation166_spill] sm:$0xff] %v9438_v39  ;;  %14583 = vst [vmem:[#allocation168_spill] sm:$0xff] %v9446_v2  ;;  %v7773_v12 = vpop.eup %7772  ;;  %p8284_p12 = scmp.ne.s32.totalorder %s7131_s13, %s8283_s1  ;;  %p8289_p0 = scmp.lt.s32.totalorder %s8283_s1, %s8283_s1 }
 0x1d8   :  { %v9432_v58 = vpop.f32.mrb[54].mxu0  ;;  %1710 = vadd.xlane.f32.xlu1 %v1491_v3  ;;  %v7775_v46 = vpop.eup %7774  ;;  %v1234_v40 = vadd.f32 %v9452_v19, %v9438_v39  ;;  %14584 = vst [vmem:[#allocation169_spill] sm:$0xff] %v9463_v42 }
 0x1d9   :  { %1708 = vadd.xlane.f32.xlu0 %v1490_v0  ;;  %v9440_v33 = vpop.f32.mrb[55].mxu0  ;;  %v1420_v0 = vmul.f32 %v7771_v62, %v8767_v63  ;;  %v9465_v57 = vpop.permute.xlu1 %2044  ;;  %v1233_v63 = vadd.f32 %v9452_v19, %v9446_v2  ;;  %v9473_v62 = vadd.f32 %v9406_v45, %v9107_v24  ;;  %v1492_v2 = vmul.f32 %v9482_v41, %v7775_v46  ;;  %p8290_p1 = por %p8289_p0, %p8288_p13 }
 0x1da   :  { %14582 = vst [vmem:[#allocation167_spill] sm:$0xff] %v9440_v33  ;;  %v9448_v3 = vpop.f32.mrb[68].mxu1  ;;  %14585 = vst [vmem:[#allocation170_spill] sm:$0xff] %v9465_v57  ;;  %v9475_v53 = vpop.permute.xlu0 %2048  ;;  %7788 = vtanh.f32 %v1234_v40  ;;  %v1164_v24 = vadd.f32 %v9220_v4, %v9463_v42 }
 0x1db   :  { %v9454_v35 = vpop.f32.mrb[69].mxu1  ;;  %14587 = vst [vmem:[#allocation172_spill] sm:$0xff] %v9473_v62  ;;  %14588 = vst [vmem:[#allocation173_spill] sm:$0xff] %v9475_v53  ;;  %v7777_v39 = vpop.eup %7776  ;;  %v9492_v53 = vadd.f32 %v9406_v45, %v9115_v28  ;;  %7790 = vtanh.f32 %v1233_v63  ;;  %p8291_p2 = pnand %p8290_p1, %p8284_p12 }
 0x1dc   :  { %v9457_v33 = vpop.f32.mrb[56].mxu0  ;;  %1570 = vadd.xlane.f32.xlu1 %v1421_v27  ;;  %v7779_v57 = vpop.eup %7778  ;;  %v1423_v46 = vmul.f32 %v9482_v41, %v7777_v39  ;;  %7792 = vtanh.f32 %v1164_v24  ;;  %v9516_v39 = vadd.f32 %v9406_v45, %v9133_v56 }
 0x1dd   :  { %1568 = vadd.xlane.f32.xlu0 %v1420_v0  ;;  %v9467_v25 = vpop.f32.mrb[57].mxu0  ;;  %v1493_v0 = vmul.f32 %v9482_v41, %v7773_v12  ;;  %14591 = vst [vmem:[#allocation176_spill] sm:$0xff] %v9492_v53  ;;  %v1163_v12 = vadd.f32 %v9220_v4, %v9473_v62  ;;  %v9501_v40 = vpop.permute.xlu1 %2052  ;;  %v1422_v42 = vmul.f32 %v9482_v41, %v7779_v57 }
 0x1de   :  { %14586 = vst [vmem:[#allocation171_spill] sm:$0xff] %v9467_v25  ;;  %v9477_v27 = vpop.f32.mrb[70].mxu1  ;;  %14593 = vst [vmem:[#allocation178_spill] sm:$0xff] %v9501_v40  ;;  %v9504_v25 = vpop.permute.xlu0 %2059  ;;  %v1236_v28 = vadd.f32 %v9452_v19, %v9492_v53  ;;  %v1165_v56 = vadd.f32 %v9220_v4, %v9516_v39 }
 0x1df   :  { %14589 = vst [vmem:[#allocation174_spill] sm:$0xff] %v9477_v27  ;;  %v9485_v36 = vpop.f32.mrb[71].mxu1  ;;  %14594 = vst [vmem:[#allocation179_spill] sm:$0xff] %v9504_v25  ;;  %7794 = vtanh.f32 %v1163_v12 }
 0x1e0   :  { %14590 = vst [vmem:[#allocation175_spill] sm:$0xff] %v9485_v36  ;;  %1714 = vadd.xlane.f32.xlu1 %v1493_v0  ;;  %v9498_v36 = vadd.f32 %v9406_v45, %v9120_v30  ;;  %v7781_v0 = vpop.eup %7780  ;;  %14596 = vst [vmem:[#allocation181_spill] sm:$0xff] %v9516_v39  ;;  %7796 = vtanh.f32 %v1236_v28 }
 0x1e1   :  { %1712 = vadd.xlane.f32.xlu0 %v1492_v2  ;;  %v7783_v27 = vpop.eup %7782  ;;  %v9510_v2 = vadd.f32 %v9406_v45, %v9125_v18  ;;  %v1495_v57 = vmul.f32 %v9482_v41, %v7781_v0  ;;  %v9526_v12 = vpop.permute.xlu1 %2063 }
 0x1e2   :  { %14592 = vst [vmem:[#allocation177_spill] sm:$0xff] %v9498_v36  ;;  %v1235_v30 = vadd.f32 %v9452_v19, %v9498_v36  ;;  %v7785_v63 = vpop.eup %7784  ;;  %v1494_v24 = vmul.f32 %v9482_v41, %v7783_v27  ;;  %14598 = vst [vmem:[#allocation183_spill] sm:$0xff] %v9526_v12  ;;  %v9532_v27 = vadd.f32 %v9406_v45, %v9144_v20  ;;  %v9534_v0 = vpop.permute.xlu0 %2067 }
 0x1e3   :  { %14595 = vst [vmem:[#allocation180_spill] sm:$0xff] %v9510_v2  ;;  %v1166_v18 = vadd.f32 %v9220_v4, %v9510_v2  ;;  %14600 = vst [vmem:[#allocation185_spill] sm:$0xff] %v9534_v0  ;;  %v1425_v28 = vmul.f32 %v9482_v41, %v7785_v63  ;;  %v9548_v63 = vadd.f32 %v9406_v45, %v9157_v26 }
 0x1e4   :  { %1574 = vadd.xlane.f32.xlu1 %v1423_v46  ;;  %v7787_v46 = vpop.eup %7786  ;;  %7798 = vtanh.f32 %v1235_v30  ;;  %14599 = vst [vmem:[#allocation184_spill] sm:$0xff] %v9532_v27  ;;  %v1237_v20 = vadd.f32 %v9452_v19, %v9532_v27 }
 0x1e5   :  { %1572 = vadd.xlane.f32.xlu0 %v1422_v42  ;;  %v9524_v42 = vadd.f32 %v9406_v45, %v9141_v6  ;;  %v1424_v53 = vmul.f32 %v9482_v41, %v7787_v46  ;;  %7800 = vtanh.f32 %v1166_v18  ;;  %14602 = vst [vmem:[#allocation187_spill] sm:$0xff] %v9548_v63  ;;  %v9551_v18 = vpop.permute.xlu1 %2071  ;;  %v1167_v26 = vadd.f32 %v9220_v4, %v9548_v63 }
 0x1e6   :  { %7802 = vtanh.f32 %v1165_v56  ;;  %14603 = vst [vmem:[#allocation188_spill] sm:$0xff] %v9551_v18  ;;  %v9554_v2 = vpop.permute.xlu0 %2075  ;;  %v9566_v56 = vadd.f32 %v9406_v45, %v9170_v31 }
 0x1e7   :  { %14597 = vst [vmem:[#allocation182_spill] sm:$0xff] %v9524_v42  ;;  %v1238_v30 = vadd.f32 %v9452_v19, %v9524_v42  ;;  %14604 = vst [vmem:[#allocation189_spill] sm:$0xff] %v9554_v2 }
 0x1e8   :  { %1718 = vadd.xlane.f32.xlu1 %v1495_v57  ;;  %v7789_v57 = vpop.eup %7788  ;;  %14606 = vst [vmem:[#allocation191_spill] sm:$0xff] %v9566_v56 }
 0x1e9   :  { %1716 = vadd.xlane.f32.xlu0 %v1494_v24  ;;  %v7791_v6 = vpop.eup %7790  ;;  %v9542_v24 = vadd.f32 %v9406_v45, %v9147_v17  ;;  %v1497_v46 = vmul.f32 %v9482_v41, %v7789_v57  ;;  %7804 = vtanh.f32 %v1238_v30  ;;  %v1093_v30 = vcombine.high %v8815_v1, %v8815_v1  ;;  %v9578_v31 = vpop.permute.xlu1 %2079 }
 0x1ea   :  { %v1496_v42 = vmul.f32 %v9482_v41, %v7791_v6  ;;  %7806 = vtanh.f32 %v1237_v20  ;;  %v9584_v1 = vadd.f32 %v9406_v45, %v9181_v5  ;;  %v9597_v5 = vadd.f32 %v9406_v45, %v9189_v23 }
 0x1eb   :  { %14601 = vst [vmem:[#allocation186_spill] sm:$0xff] %v9542_v24  ;;  %v1168_v17 = vadd.f32 %v9220_v4, %v9542_v24  ;;  %v9576_v4 = vadd.f32 %v9406_v45, %v9173_v21  ;;  %v14656_v24 = vld [vmem:[#allocation147_spill] sm:$0xff] }
 0x1ec   :  { %1578 = vadd.xlane.f32.xlu1 %v1425_v28  ;;  %v7793_v28 = vpop.eup %7792  ;;  %14608 = vst [vmem:[#allocation193_spill] sm:$0xff] %v9584_v1  ;;  %14609 = vst [vmem:[#allocation194_spill] sm:$0xff] %v9597_v5 }
 0x1ed   :  { %1576 = vadd.xlane.f32.xlu0 %v1424_v53  ;;  %v7795_v36 = vpop.eup %7794  ;;  %v9560_v53 = vadd.f32 %v9406_v45, %v9167_v22  ;;  %v1427_v57 = vmul.f32 %v9482_v41, %v7793_v28  ;;  %7808 = vtanh.f32 %v1168_v17  ;;  %14607 = vst [vmem:[#allocation192_spill] sm:$0xff] %v9576_v4  ;;  %v9590_v17 = vrot.slane %v1093_v30, %v8506_v51 }
 0x1ee   :  { %v7797_v6 = vpop.eup %7796  ;;  %7810 = vtanh.f32 %v1167_v26 }
 0x1ef   :  { %14605 = vst [vmem:[#allocation190_spill] sm:$0xff] %v9560_v53  ;;  %v7799_v27 = vpop.eup %7798  ;;  %v1240_v22 = vadd.f32 %v9452_v19, %v9560_v53  ;;  %v1499_v20 = vmul.f32 %v9482_v41, %v7797_v6  ;;  %v1170_v26 = vadd.f32 %v9590_v17, %v9576_v4  ;;  %v1169_v6 = vadd.f32 %v9590_v17, %v9584_v1 }
 0x1f0   :  { %1722 = vadd.xlane.f32.xlu1 %v1497_v46  ;;  %v1426_v46 = vmul.f32 %v9482_v41, %v7795_v36  ;;  %v9586_v36 = vpop.permute.xlu0 %2083  ;;  %v7801_v28 = vpop.eup %7800  ;;  %v1498_v21 = vmul.f32 %v9482_v41, %v7799_v27  ;;  %v9605_v27 = vadd.f32 %v9406_v45, %v9194_v59 }
 0x1f1   :  { %1720 = vadd.xlane.f32.xlu0 %v1496_v42  ;;  %v1239_v42 = vadd.f32 %v9452_v19, %v9566_v56  ;;  %7812 = vtanh.f32 %v1240_v22  ;;  %v1429_v22 = vmul.f32 %v9482_v41, %v7801_v28 }
 0x1f2   :  { %14611 = vst [vmem:[#allocation196_spill] sm:$0xff] %v9605_v27  ;;  %v1241_v28 = vadd.f32 %v9452_v19, %v9605_v27 }
 0x1f3   :  { %7814 = vtanh.f32 %v1239_v42  ;;  %v1242_v42 = vadd.f32 %v9452_v19, %v9597_v5 }
 0x1f4   :  { %1582 = vadd.xlane.f32.xlu1 %v1427_v57  ;;  %v7803_v57 = vpop.eup %7802  ;;  %7816 = vtanh.f32 %v1170_v26 }
 0x1f5   :  { %1580 = vadd.xlane.f32.xlu0 %v1426_v46  ;;  %v1428_v53 = vmul.f32 %v9482_v41, %v7803_v57  ;;  %7818 = vtanh.f32 %v1169_v6  ;;  %v9623_v57 = vadd.f32 %v9406_v45, %v9207_v7  ;;  %v9633_v6 = vadd.f32 %v9406_v45, %v9215_v47 }
 0x1f6   :  { %7820 = vtanh.f32 %v1242_v42 }
 0x1f7   :  { %14614 = vst [vmem:[#allocation199_spill] sm:$0xff] %v9623_v57  ;;  %14616 = vst [vmem:[#allocation201_spill] sm:$0xff] %v9633_v6  ;;  %7822 = vtanh.f32 %v1241_v28  ;;  %v9651_v28 = vadd.f32 %v9406_v45, %v9225_v14 }
 0x1f8   :  { %1726 = vadd.xlane.f32.xlu1 %v1499_v20  ;;  %v7805_v20 = vpop.eup %7804 }
 0x1f9   :  { %1724 = vadd.xlane.f32.xlu0 %v1498_v21  ;;  %v9599_v46 = vpop.xlane.xlu1 %1642  ;;  %v7807_v23 = vpop.eup %7806  ;;  %v9615_v21 = vadd.f32 %v9406_v45, %v9199_v13  ;;  %v1501_v26 = vmul.f32 %v9482_v41, %v7805_v20  ;;  %v1171_v20 = vadd.f32 %v9590_v17, %v9623_v57  ;;  %14620 = vst [vmem:[#allocation205_spill] sm:$0xff] %v9651_v28 }
 0x1fa   :  { %14610 = vst [vmem:[#allocation195_spill] sm:$0xff] %v9599_v46  ;;  %v9607_v30 = vpop.xlane.xlu0 %1640  ;;  %v7809_v5 = vpop.eup %7808  ;;  %v1500_v56 = vmul.f32 %v9482_v41, %v7807_v23  ;;  %v9641_v23 = vadd.f32 %v9406_v45, %v9222_v52 }
 0x1fb   :  { %14612 = vst [vmem:[#allocation197_spill] sm:$0xff] %v9615_v21  ;;  %v7811_v13 = vpop.eup %7810  ;;  %v1431_v42 = vmul.f32 %v9482_v41, %v7809_v5 }
 0x1fc   :  { %1586 = vadd.xlane.f32.xlu1 %v1429_v22  ;;  %14618 = vst [vmem:[#allocation203_spill] sm:$0xff] %v9641_v23  ;;  %v7813_v27 = vpop.eup %7812  ;;  %v1243_v5 = vadd.f32 %v9452_v19, %v9641_v23 }
 0x1fd   :  { %1584 = vadd.xlane.f32.xlu0 %v1428_v53  ;;  %v9617_v59 = vpop.xlane.xlu1 %1646  ;;  %v1172_v53 = vadd.f32 %v9590_v17, %v9615_v21  ;;  %v1430_v21 = vmul.f32 %v9482_v41, %v7811_v13  ;;  %v7815_v47 = vpop.eup %7814  ;;  %v9659_v13 = vadd.f32 %v9406_v45, %v9235_v49  ;;  %v9673_v49 = vadd.f32 %v9406_v45, %v9248_v44 }
 0x1fe   :  { %14613 = vst [vmem:[#allocation198_spill] sm:$0xff] %v9617_v59  ;;  %v9625_v22 = vpop.xlane.xlu0 %1644  ;;  %v1502_v57 = vmul.f32 %v9482_v41, %v7815_v47 }
 0x1ff   :  { %14615 = vst [vmem:[#allocation200_spill] sm:$0xff] %v9625_v22  ;;  %7824 = vtanh.f32 %v1172_v53  ;;  %14622 = vst [vmem:[#allocation207_spill] sm:$0xff] %v9659_v13  ;;  %v1503_v53 = vmul.f32 %v9482_v41, %v7813_v27  ;;  %v1173_v27 = vadd.f32 %v9590_v17, %v9659_v13  ;;  %v1245_v44 = vadd.f32 %v9452_v19, %v9673_v49  ;;  %v14750_v22 = vld [vmem:[#allocation27_spill] sm:$0xff] }
 0x200   :  { %1730 = vadd.xlane.f32.xlu1 %v1501_v26  ;;  %7826 = vtanh.f32 %v1171_v20  ;;  %v1174_v20 = vadd.f32 %v9590_v17, %v9651_v28  ;;  %14625 = vst [vmem:[#allocation210_spill] sm:$0xff] %v9673_v49 }
 0x201   :  { %1728 = vadd.xlane.f32.xlu0 %v1500_v56  ;;  %v9635_v7 = vpop.xlane.xlu1 %1650  ;;  %v1244_v56 = vadd.f32 %v9452_v19, %v9633_v6  ;;  %v7817_v6 = vpop.eup %7816 }
 0x202   :  { %14617 = vst [vmem:[#allocation202_spill] sm:$0xff] %v9635_v7  ;;  %v9643_v26 = vpop.xlane.xlu0 %1648  ;;  %v7819_v14 = vpop.eup %7818 }
 0x203   :  { %14619 = vst [vmem:[#allocation204_spill] sm:$0xff] %v9643_v26  ;;  %7828 = vtanh.f32 %v1244_v56  ;;  %v1432_v56 = vmul.f32 %v9482_v41, %v7819_v14  ;;  %v14746_v26 = vld [vmem:[#allocation28_spill] sm:$0xff] }
 0x204   :  { %1590 = vadd.xlane.f32.xlu1 %v1431_v42  ;;  %7830 = vtanh.f32 %v1243_v5 }
 0x205   :  { %1588 = vadd.xlane.f32.xlu0 %v1430_v21  ;;  %v9653_v52 = vpop.xlane.xlu1 %1654  ;;  %v9667_v21 = vadd.f32 %v9406_v45, %v9245_v16  ;;  %v1433_v16 = vmul.f32 %v9482_v41, %v7817_v6  ;;  %7832 = vtanh.f32 %v1174_v20  ;;  %v9695_v6 = vadd.f32 %v9406_v45, %v9259_v61 }
 0x206   :  { %14621 = vst [vmem:[#allocation206_spill] sm:$0xff] %v9653_v52  ;;  %v9661_v42 = vpop.xlane.xlu0 %1652  ;;  %7834 = vtanh.f32 %v1173_v27  ;;  %v9705_v27 = vadd.f32 %v9406_v45, %v9267_v29 }
 0x207   :  { %14623 = vst [vmem:[#allocation208_spill] sm:$0xff] %v9661_v42  ;;  %14624 = vst [vmem:[#allocation209_spill] sm:$0xff] %v9667_v21  ;;  %v1246_v28 = vadd.f32 %v9452_v19, %v9667_v21 }
 0x208   :  { %1734 = vadd.xlane.f32.xlu1 %v1503_v53  ;;  %v7821_v53 = vpop.eup %7820  ;;  %14630 = vst [vmem:[#allocation215_spill] sm:$0xff] %v9695_v6  ;;  %14632 = vst [vmem:[#allocation217_spill] sm:$0xff] %v9705_v27 }
 0x209   :  { %1732 = vadd.xlane.f32.xlu0 %v1502_v57  ;;  %v9675_v23 = vpop.xlane.xlu1 %1658  ;;  %v7823_v1 = vpop.eup %7822  ;;  %v9689_v57 = vadd.f32 %v9406_v45, %v9251_v15  ;;  %7836 = vtanh.f32 %v1246_v28 }
 0x20a   :  { %14626 = vst [vmem:[#allocation211_spill] sm:$0xff] %v9675_v23  ;;  %v9679_v47 = vpop.xlane.xlu0 %1656  ;;  %v7825_v20 = vpop.eup %7824  ;;  %v1504_v21 = vmul.f32 %v9482_v41, %v7823_v1  ;;  %7838 = vtanh.f32 %v1245_v44 }
 0x20b   :  { %14627 = vst [vmem:[#allocation212_spill] sm:$0xff] %v9679_v47  ;;  %14628 = vst [vmem:[#allocation213_spill] sm:$0xff] %v9689_v57  ;;  %v7827_v49 = vpop.eup %7826  ;;  %v1176_v15 = vadd.f32 %v9590_v17, %v9689_v57  ;;  %v1435_v44 = vmul.f32 %v9482_v41, %v7825_v20 }
 0x20c   :  { %1594 = vadd.xlane.f32.xlu1 %v1433_v16  ;;  %v1505_v16 = vmul.f32 %v9482_v41, %v7821_v53  ;;  %v9711_v53 = vadd.f32 %v9406_v45, %v9272_v60  ;;  %v1434_v29 = vmul.f32 %v9482_v41, %v7827_v49  ;;  %v9732_v49 = vadd.f32 %v9406_v45, %v9285_v34 }
 0x20d   :  { %1592 = vadd.xlane.f32.xlu0 %v1432_v56  ;;  %v9691_v5 = vpop.xlane.xlu1 %1662  ;;  %v1175_v56 = vadd.f32 %v9590_v17, %v9695_v6  ;;  %7840 = vtanh.f32 %v1176_v15  ;;  %v14636_v6 = vld [vmem:[#allocation135_spill] sm:$0xff]  ;;  %v9745_v34 = vadd.f32 %v9406_v45, %v9293_v38 }
 0x20e   :  { %14629 = vst [vmem:[#allocation214_spill] sm:$0xff] %v9691_v5  ;;  %v9697_v14 = vpop.xlane.xlu0 %1660  ;;  %14633 = vst [vmem:[#allocation218_spill] sm:$0xff] %v9711_v53  ;;  %v9724_v60 = vadd.f32 %v9406_v45, %v14636_v6  ;;  %v1247_v20 = vadd.f32 %v9452_v19, %v9711_v53 }
 0x20f   :  { %14631 = vst [vmem:[#allocation216_spill] sm:$0xff] %v9697_v14  ;;  %7842 = vtanh.f32 %v1175_v56  ;;  %14639 = vst [vmem:[#allocation222_spill] sm:$0xff] %v9732_v49 }
 0x210   :  { %1738 = vadd.xlane.f32.xlu1 %v1505_v16  ;;  %v7829_v16 = vpop.eup %7828  ;;  %14637 = vst [vmem:[#allocation135_spill] sm:$0xff] %v9724_v60  ;;  %14642 = vst [vmem:[#allocation223_spill] sm:$0xff] %v9745_v34 }
 0x211   :  { %1736 = vadd.xlane.f32.xlu0 %v1504_v21  ;;  %v1667_v61 = vpop.xlane.xlu1 %1666  ;;  %v7831_v57 = vpop.eup %7830  ;;  %v1248_v21 = vadd.f32 %v9452_v19, %v9705_v27  ;;  %v1507_v15 = vmul.f32 %v9482_v41, %v7829_v16  ;;  %v14640_v27 = vld [vmem:[#allocation44_spill] sm:$0xff]  ;;  %v1178_v19 = vadd.f32 %v9590_v17, %v9724_v60  ;;  %v14646_v60 = vld [vmem:[#allocation139_spill] sm:$0xff] }
 0x212   :  { %v9714_v1 = vadd.f32 %v9578_v31, %v1667_v61  ;;  %v9716_v28 = vpop.xlane.xlu0 %1664  ;;  %v1096_v13 = vcombine.high %v14640_v27, %v14640_v27  ;;  %v14644_v27 = vld [vmem:[#allocation138_spill] sm:$0xff] }
 0x213   :  { %14635 = vst [vmem:[#allocation220_spill] sm:$0xff] %v9716_v28  ;;  %7844 = vtanh.f32 %v1248_v21 }
 0x214   :  { %14634 = vst [vmem:[#allocation219_spill] sm:$0xff] %v9714_v1  ;;  %1598 = vadd.xlane.f32.xlu1 %v1435_v44  ;;  %v7833_v44 = vpop.eup %7832  ;;  %7846 = vtanh.f32 %v1247_v20  ;;  %v9759_v38 = vrot.slane %v1096_v13, %v8506_v51  ;;  %v9774_v13 = vadd.f32 %v9406_v45, %v9309_v10 }
 0x215   :  { %1596 = vadd.xlane.f32.xlu0 %v1434_v29  ;;  %v9726_v31 = vpop.xlane.xlu1 %1670  ;;  %v1506_v29 = vmul.f32 %v9482_v41, %v7831_v57  ;;  %v7835_v56 = vpop.eup %7834  ;;  %v9753_v57 = vadd.f32 %v9406_v45, %v14644_v27  ;;  %7848 = vtanh.f32 %v1178_v19 }
 0x216   :  { %14638 = vst [vmem:[#allocation221_spill] sm:$0xff] %v9726_v31  ;;  %v1669_v61 = vpop.xlane.xlu0 %1668  ;;  %v7837_v53 = vpop.eup %7836  ;;  %v1250_v20 = vadd.f32 %v9759_v38, %v9745_v34  ;;  %14648 = vst [vmem:[#allocation225_spill] sm:$0xff] %v9774_v13 }
 0x217   :  { %v9738_v6 = vadd.f32 %v9586_v36, %v1669_v61  ;;  %v1177_v36 = vadd.f32 %v9590_v17, %v9732_v49  ;;  %14645 = vst [vmem:[#allocation138_spill] sm:$0xff] %v9753_v57  ;;  %v1437_v61 = vmul.f32 %v9482_v41, %v7833_v44  ;;  %v9766_v49 = vadd.f32 %v9406_v45, %v14646_v60 }
 0x218   :  { %1742 = vadd.xlane.f32.xlu1 %v1507_v15  ;;  %v7839_v15 = vpop.eup %7838  ;;  %v1249_v44 = vadd.f32 %v9759_v38, %v9753_v57  ;;  %v1509_v19 = vmul.f32 %v9482_v41, %v7837_v53  ;;  %v1179_v53 = vadd.f32 %v9590_v17, %v9774_v13  ;;  %v14650_v57 = vld [vmem:[#allocation144_spill] sm:$0xff] }
 0x219   :  { %14641 = vst [vmem:[#allocation44_spill] sm:$0xff] %v9738_v6  ;;  %1740 = vadd.xlane.f32.xlu0 %v1506_v29  ;;  %v9747_v16 = vpop.xlane.xlu1 %1674  ;;  %v1436_v29 = vmul.f32 %v9482_v41, %v7835_v56  ;;  %14647 = vst [vmem:[#allocation139_spill] sm:$0xff] %v9766_v49  ;;  %7850 = vtanh.f32 %v1177_v36  ;;  %v1508_v34 = vmul.f32 %v9482_v41, %v7839_v15 }
 0x21a   :  { %14643 = vst [vmem:[#allocation224_spill] sm:$0xff] %v9747_v16  ;;  %v9755_v21 = vpop.xlane.xlu0 %1530  ;;  %7852 = vtanh.f32 %v1250_v20  ;;  %v1180_v36 = vadd.f32 %v9590_v17, %v9766_v49  ;;  %v9792_v15 = vadd.f32 %v9406_v45, %v14650_v57 }
 0x21b   :  { %7854 = vtanh.f32 %v1249_v44  ;;  %v14653_v44 = vld [vmem:[#allocation145_spill] sm:$0xff] }
 0x21c   :  { %1602 = vadd.xlane.f32.xlu1 %v1437_v61  ;;  %v7841_v61 = vpop.eup %7840  ;;  %14651 = vst [vmem:[#allocation144_spill] sm:$0xff] %v9792_v15  ;;  %7856 = vtanh.f32 %v1180_v36  ;;  %v9802_v13 = vadd.f32 %v9406_v45, %v14653_v44 }
 0x21d   :  { %1600 = vadd.xlane.f32.xlu0 %v1436_v29  ;;  %v9768_v27 = vpop.xlane.xlu1 %1534  ;;  %v7843_v60 = vpop.eup %7842  ;;  %v9784_v29 = vadd.f32 %v9406_v45, %v9319_v11  ;;  %v1439_v20 = vmul.f32 %v9482_v41, %v7841_v61  ;;  %7858 = vtanh.f32 %v1179_v53  ;;  %v1251_v61 = vadd.f32 %v9759_v38, %v9792_v15 }
 0x21e   :  { %v9776_v56 = vpop.xlane.xlu0 %1528  ;;  %v7845_v49 = vpop.eup %7844  ;;  %v1438_v4 = vmul.f32 %v9482_v41, %v7843_v60  ;;  %14654 = vst [vmem:[#allocation145_spill] sm:$0xff] %v9802_v13  ;;  %v9810_v60 = vadd.f32 %v9406_v45, %v14656_v24  ;;  %v9820_v53 = vadd.f32 %v9406_v45, %v9341_v48 }
 0x21f   :  { %14649 = vst [vmem:[#allocation226_spill] sm:$0xff] %v9784_v29  ;;  %v7847_v11 = vpop.eup %7846  ;;  %v1511_v36 = vmul.f32 %v9482_v41, %v7845_v49  ;;  %v10212_v59 = vadd.f32 %v14746_v26, %v9776_v56  ;;  %v14754_v56 = vld [vmem:[#allocation30_spill] sm:$0xff] }
 0x220   :  { %1746 = vadd.xlane.f32.xlu1 %v1509_v19  ;;  %14657 = vst [vmem:[#allocation147_spill] sm:$0xff] %v9810_v60  ;;  %v1510_v63 = vmul.f32 %v9482_v41, %v7847_v11  ;;  %14659 = vst [vmem:[#allocation230_spill] sm:$0xff] %v9820_v53  ;;  %v1181_v49 = vadd.f32 %v9590_v17, %v9810_v60  ;;  %v9828_v11 = vadd.f32 %v9406_v45, %v9346_v50 }
 0x221   :  { %1744 = vadd.xlane.f32.xlu0 %v1508_v34  ;;  %v9786_v10 = vpop.xlane.xlu1 %1532  ;;  %v1252_v34 = vadd.f32 %v9759_v38, %v9784_v29  ;;  %v7849_v29 = vpop.eup %7848  ;;  %14747 = vst [vmem:[#allocation28_spill] sm:$0xff] %v10212_v59 }
 0x222   :  { %v9794_v19 = vpop.xlane.xlu0 %1672  ;;  %14660 = vst [vmem:[#allocation231_spill] sm:$0xff] %v9828_v11  ;;  %v10221_v46 = vadd.f32 %v14750_v22, %v9786_v10  ;;  %v14756_v22 = vld [vmem:[#allocation31_spill] sm:$0xff] }
 0x223   :  { %14652 = vst [vmem:[#allocation227_spill] sm:$0xff] %v9794_v19  ;;  %v7851_v44 = vpop.eup %7850  ;;  %7860 = vtanh.f32 %v1252_v34  ;;  %v1441_v34 = vmul.f32 %v9482_v41, %v7849_v29  ;;  %v1253_v29 = vadd.f32 %v9759_v38, %v9828_v11  ;;  %v14667_v11 = vld [vmem:[#allocation154_spill] sm:$0xff] }
 0x224   :  { %1606 = vadd.xlane.f32.xlu1 %v1439_v20  ;;  %7862 = vtanh.f32 %v1251_v61  ;;  %v7853_v15 = vpop.eup %7852  ;;  %v14661_v61 = vld [vmem:[#allocation151_spill] sm:$0xff]  ;;  %14751 = vst [vmem:[#allocation27_spill] sm:$0xff] %v10221_v46 }
 0x225   :  { %1604 = vadd.xlane.f32.xlu0 %v1438_v4  ;;  %v9804_v57 = vpop.xlane.xlu1 %1678  ;;  %v1182_v4 = vadd.f32 %v9590_v17, %v9802_v13  ;;  %v1440_v13 = vmul.f32 %v9482_v41, %v7851_v44  ;;  %v7855_v48 = vpop.eup %7854  ;;  %v9838_v60 = vadd.f32 %v9406_v45, %v14661_v61  ;;  %v9846_v44 = vadd.f32 %v9406_v45, %v9359_v8 }
 0x226   :  { %14655 = vst [vmem:[#allocation228_spill] sm:$0xff] %v9804_v57  ;;  %v9812_v20 = vpop.xlane.xlu0 %1676  ;;  %v1512_v39 = vmul.f32 %v9482_v41, %v7855_v48  ;;  %v9864_v48 = vadd.f32 %v9406_v45, %v14667_v11 }
 0x227   :  { %14658 = vst [vmem:[#allocation229_spill] sm:$0xff] %v9812_v20  ;;  %7864 = vtanh.f32 %v1182_v4  ;;  %14662 = vst [vmem:[#allocation151_spill] sm:$0xff] %v9838_v60  ;;  %v1513_v4 = vmul.f32 %v9482_v41, %v7853_v15  ;;  %v1183_v15 = vadd.f32 %v9590_v17, %v9846_v44 }
 0x228   :  { %1750 = vadd.xlane.f32.xlu1 %v1511_v36  ;;  %7866 = vtanh.f32 %v1181_v49  ;;  %14664 = vst [vmem:[#allocation233_spill] sm:$0xff] %v9846_v44  ;;  %v9856_v49 = vadd.f32 %v9406_v45, %v9367_v32  ;;  %14668 = vst [vmem:[#allocation154_spill] sm:$0xff] %v9864_v48 }
 0x229   :  { %1748 = vadd.xlane.f32.xlu0 %v1510_v63  ;;  %v9822_v24 = vpop.xlane.xlu1 %1538  ;;  %v1254_v63 = vadd.f32 %v9759_v38, %v9820_v53  ;;  %v7857_v53 = vpop.eup %7856 }
 0x22a   :  { %v9830_v36 = vpop.xlane.xlu0 %1536  ;;  %v7859_v61 = vpop.eup %7858  ;;  %14666 = vst [vmem:[#allocation235_spill] sm:$0xff] %v9856_v49  ;;  %v10240_v10 = vadd.f32 %v14756_v22, %v9822_v24  ;;  %v14764_v22 = vld [vmem:[#allocation34_spill] sm:$0xff] }
 0x22b   :  { %7868 = vtanh.f32 %v1254_v63  ;;  %v1443_v63 = vmul.f32 %v9482_v41, %v7857_v53  ;;  %v1442_v62 = vmul.f32 %v9482_v41, %v7859_v61  ;;  %v1255_v53 = vadd.f32 %v9759_v38, %v9864_v48 }
 0x22c   :  { %1610 = vadd.xlane.f32.xlu1 %v1441_v34  ;;  %7870 = vtanh.f32 %v1253_v29  ;;  %v14669_v29 = vld [vmem:[#allocation155_spill] sm:$0xff]  ;;  %v9882_v61 = vadd.f32 %v9406_v45, %v9383_v37  ;;  %v9892_v48 = vadd.f32 %v9406_v45, %v9393_v55  ;;  %14757 = vst [vmem:[#allocation31_spill] sm:$0xff] %v10240_v10 }
 0x22d   :  { %1608 = vadd.xlane.f32.xlu0 %v1440_v13  ;;  %v9840_v50 = vpop.xlane.xlu1 %1682  ;;  %v1184_v13 = vadd.f32 %v9590_v17, %v9838_v60  ;;  %v7861_v60 = vpop.eup %7860  ;;  %v9874_v17 = vadd.f32 %v9406_v45, %v14669_v29 }
 0x22e   :  { %14663 = vst [vmem:[#allocation232_spill] sm:$0xff] %v9840_v50  ;;  %v9848_v34 = vpop.xlane.xlu0 %1680  ;;  %v7863_v32 = vpop.eup %7862  ;;  %14672 = vst [vmem:[#allocation237_spill] sm:$0xff] %v9882_v61 }
 0x22f   :  { %14665 = vst [vmem:[#allocation234_spill] sm:$0xff] %v9848_v34  ;;  %7872 = vtanh.f32 %v1184_v13  ;;  %14670 = vst [vmem:[#allocation155_spill] sm:$0xff] %v9874_v17  ;;  %v1515_v13 = vmul.f32 %v9482_v41, %v7861_v60  ;;  %v1514_v44 = vmul.f32 %v9482_v41, %v7863_v32  ;;  %v9900_v32 = vadd.f32 %v9406_v45, %v9396_v9 }
 0x230   :  { %1754 = vadd.xlane.f32.xlu1 %v1513_v4  ;;  %7874 = vtanh.f32 %v1183_v15 }
 0x231   :  { %1752 = vadd.xlane.f32.xlu0 %v1512_v39  ;;  %v9858_v8 = vpop.xlane.xlu1 %1542  ;;  %v1256_v39 = vadd.f32 %v9759_v38, %v9856_v49  ;;  %v7865_v49 = vpop.eup %7864  ;;  %14676 = vst [vmem:[#allocation239_spill] sm:$0xff] %v9900_v32 }
 0x232   :  { %v9866_v4 = vpop.xlane.xlu0 %1540  ;;  %v7867_v29 = vpop.eup %7866 }
 0x233   :  { %7876 = vtanh.f32 %v1256_v39  ;;  %v1445_v39 = vmul.f32 %v9482_v41, %v7865_v49  ;;  %v1444_v51 = vmul.f32 %v9482_v41, %v7867_v29  ;;  %v1257_v49 = vadd.f32 %v9759_v38, %v9900_v32 }
 0x234   :  { %1614 = vadd.xlane.f32.xlu1 %v1443_v63  ;;  %7878 = vtanh.f32 %v1255_v53  ;;  %v14677_v53 = vld [vmem:[#allocation160_spill] sm:$0xff] }
 0x235   :  { %1612 = vadd.xlane.f32.xlu0 %v1442_v62  ;;  %v9876_v11 = vpop.xlane.xlu1 %1686  ;;  %v14674_v62 = vld [vmem:[#allocation50_spill] sm:$0xff] }
 0x236   :  { %14671 = vst [vmem:[#allocation236_spill] sm:$0xff] %v9876_v11  ;;  %v9884_v63 = vpop.xlane.xlu0 %1684  ;;  %v1186_v15 = vadd.f32 %v14674_v62, %v9874_v17  ;;  %14675 = vst [vmem:[#allocation50_spill] sm:$0xff] %v9892_v48  ;;  %v1185_v60 = vadd.f32 %v14674_v62, %v9882_v61  ;;  %v7869_v17 = vpop.eup %7868  ;;  %v9910_v61 = vadd.f32 %v9406_v45, %v14677_v53  ;;  %v14680_v11 = vld [vmem:[#allocation162_spill] sm:$0xff] }
 0x237   :  { %14673 = vst [vmem:[#allocation238_spill] sm:$0xff] %v9884_v63  ;;  %v7871_v55 = vpop.eup %7870  ;;  %v9918_v29 = vadd.f32 %v9406_v45, %v14680_v11 }
 0x238   :  { %1758 = vadd.xlane.f32.xlu1 %v1515_v13  ;;  %7880 = vtanh.f32 %v1186_v15  ;;  %14678 = vst [vmem:[#allocation160_spill] sm:$0xff] %v9910_v61  ;;  %v1517_v15 = vmul.f32 %v9482_v41, %v7869_v17  ;;  %v1516_v63 = vmul.f32 %v9482_v41, %v7871_v55  ;;  %v9936_v55 = vadd.f32 %v9406_v45, %v9427_v54 }
 0x239   :  { %1756 = vadd.xlane.f32.xlu0 %v1514_v44  ;;  %v9894_v37 = vpop.xlane.xlu1 %1546  ;;  %v1258_v44 = vadd.f32 %v9759_v38, %v9892_v48  ;;  %7882 = vtanh.f32 %v1185_v60  ;;  %14681 = vst [vmem:[#allocation162_spill] sm:$0xff] %v9918_v29  ;;  %v7873_v48 = vpop.eup %7872  ;;  %v9928_v60 = vadd.f32 %v9406_v45, %v9420_v43  ;;  %v1187_v17 = vadd.f32 %v14674_v62, %v9918_v29  ;;  %v14687_v29 = vld [vmem:[#allocation167_spill] sm:$0xff] }
 0x23a   :  { %v9902_v13 = vpop.xlane.xlu0 %1544  ;;  %v7875_v53 = vpop.eup %7874  ;;  %14684 = vst [vmem:[#allocation243_spill] sm:$0xff] %v9936_v55 }
 0x23b   :  { %7884 = vtanh.f32 %v1258_v44  ;;  %14683 = vst [vmem:[#allocation242_spill] sm:$0xff] %v9928_v60  ;;  %v1447_v44 = vmul.f32 %v9482_v41, %v7873_v48  ;;  %v1259_v48 = vadd.f32 %v9759_v38, %v9936_v55 }
 0x23c   :  { %1618 = vadd.xlane.f32.xlu1 %v1445_v39  ;;  %7886 = vtanh.f32 %v1257_v49  ;;  %v9946_v49 = vadd.f32 %v9406_v45, %v9432_v58 }
 0x23d   :  { %1616 = vadd.xlane.f32.xlu0 %v1444_v51  ;;  %v9912_v9 = vpop.xlane.xlu1 %1690  ;;  %v1188_v51 = vadd.f32 %v14674_v62, %v9910_v61  ;;  %v7877_v32 = vpop.eup %7876  ;;  %v1446_v61 = vmul.f32 %v9482_v41, %v7875_v53  ;;  %v9954_v53 = vadd.f32 %v9406_v45, %v14687_v29 }
 0x23e   :  { %14679 = vst [vmem:[#allocation240_spill] sm:$0xff] %v9912_v9  ;;  %v9920_v39 = vpop.xlane.xlu0 %1688  ;;  %v7879_v43 = vpop.eup %7878  ;;  %14685 = vst [vmem:[#allocation244_spill] sm:$0xff] %v9946_v49 }
 0x23f   :  { %14682 = vst [vmem:[#allocation241_spill] sm:$0xff] %v9920_v39  ;;  %7888 = vtanh.f32 %v1188_v51  ;;  %14688 = vst [vmem:[#allocation167_spill] sm:$0xff] %v9954_v53  ;;  %v1519_v51 = vmul.f32 %v9482_v41, %v7877_v32  ;;  %v1518_v9 = vmul.f32 %v9482_v41, %v7879_v43  ;;  %v1189_v32 = vadd.f32 %v14674_v62, %v9954_v53  ;;  %v14694_v53 = vld [vmem:[#allocation171_spill] sm:$0xff] }
 0x240   :  { %1762 = vadd.xlane.f32.xlu1 %v1517_v15  ;;  %7890 = vtanh.f32 %v1187_v17  ;;  %v9964_v17 = vadd.f32 %v9406_v45, %v9448_v3  ;;  %v9972_v43 = vadd.f32 %v9406_v45, %v9454_v35 }
 0x241   :  { %1760 = vadd.xlane.f32.xlu0 %v1516_v63  ;;  %v9930_v11 = vpop.xlane.xlu1 %1550  ;;  %v1260_v63 = vadd.f32 %v9759_v38, %v9928_v60 }
 0x242   :  { %v9938_v15 = vpop.xlane.xlu0 %1548  ;;  %v7881_v60 = vpop.eup %7880  ;;  %14690 = vst [vmem:[#allocation247_spill] sm:$0xff] %v9964_v17  ;;  %14691 = vst [vmem:[#allocation248_spill] sm:$0xff] %v9972_v43 }
 0x243   :  { %v7883_v58 = vpop.eup %7882  ;;  %7892 = vtanh.f32 %v1260_v63  ;;  %v1449_v63 = vmul.f32 %v9482_v41, %v7881_v60  ;;  %v1261_v60 = vadd.f32 %v9759_v38, %v9972_v43 }
 0x244   :  { %1622 = vadd.xlane.f32.xlu1 %v1447_v44  ;;  %7894 = vtanh.f32 %v1259_v48  ;;  %v9982_v48 = vadd.f32 %v9406_v45, %v9457_v33 }
 0x245   :  { %1620 = vadd.xlane.f32.xlu0 %v1446_v61  ;;  %v9948_v54 = vpop.xlane.xlu1 %1694  ;;  %v1190_v61 = vadd.f32 %v14674_v62, %v9946_v49  ;;  %v7885_v55 = vpop.eup %7884  ;;  %v1448_v49 = vmul.f32 %v9482_v41, %v7883_v58  ;;  %v9990_v58 = vadd.f32 %v9406_v45, %v14694_v53 }
 0x246   :  { %14686 = vst [vmem:[#allocation245_spill] sm:$0xff] %v9948_v54  ;;  %v9956_v44 = vpop.xlane.xlu0 %1692  ;;  %v7887_v3 = vpop.eup %7886  ;;  %14692 = vst [vmem:[#allocation249_spill] sm:$0xff] %v9982_v48 }
 0x247   :  { %14689 = vst [vmem:[#allocation246_spill] sm:$0xff] %v9956_v44  ;;  %7896 = vtanh.f32 %v1190_v61  ;;  %14695 = vst [vmem:[#allocation171_spill] sm:$0xff] %v9990_v58  ;;  %v1521_v61 = vmul.f32 %v9482_v41, %v7885_v55  ;;  %v1520_v54 = vmul.f32 %v9482_v41, %v7887_v3  ;;  %v1191_v55 = vadd.f32 %v14674_v62, %v9990_v58  ;;  %v10093_v44 = vld [vmem:[#allocation7] sm:$0xff] }
 0x248   :  { %1766 = vadd.xlane.f32.xlu1 %v1519_v51  ;;  %7898 = vtanh.f32 %v1189_v32  ;;  %v14697_v32 = vld [vmem:[#allocation174_spill] sm:$0xff] }
 0x249   :  { %1764 = vadd.xlane.f32.xlu0 %v1518_v9  ;;  %v9966_v29 = vpop.xlane.xlu1 %1554  ;;  %v1262_v9 = vadd.f32 %v9759_v38, %v9964_v17  ;;  %v7889_v17 = vpop.eup %7888  ;;  %v10000_v43 = vadd.f32 %v9406_v45, %v14697_v32 }
 0x24a   :  { %v9974_v51 = vpop.xlane.xlu0 %1552  ;;  %v7891_v33 = vpop.eup %7890 }
 0x24b   :  { %7900 = vtanh.f32 %v1262_v9  ;;  %14698 = vst [vmem:[#allocation174_spill] sm:$0xff] %v10000_v43  ;;  %v1451_v9 = vmul.f32 %v9482_v41, %v7889_v17 }
 0x24c   :  { %1626 = vadd.xlane.f32.xlu1 %v1449_v63  ;;  %7902 = vtanh.f32 %v1261_v60 }
 0x24d   :  { %1624 = vadd.xlane.f32.xlu0 %v1448_v49  ;;  %v9984_v35 = vpop.xlane.xlu1 %1698  ;;  %v1192_v49 = vadd.f32 %v14674_v62, %v9982_v48  ;;  %v7893_v48 = vpop.eup %7892 }
 0x24e   :  { %14693 = vst [vmem:[#allocation250_spill] sm:$0xff] %v9984_v35  ;;  %v9992_v63 = vpop.xlane.xlu0 %1696  ;;  %v14699_v35 = vld [vmem:[#allocation175_spill] sm:$0xff]  ;;  %v7895_v32 = vpop.eup %7894  ;;  %v1523_v17 = vmul.f32 %v9482_v41, %v7893_v48 }
 0x24f   :  { %14696 = vst [vmem:[#allocation251_spill] sm:$0xff] %v9992_v63  ;;  %v10008_v3 = vadd.f32 %v9406_v45, %v14699_v35  ;;  %v1450_v63 = vmul.f32 %v9482_v41, %v7891_v33  ;;  %7904 = vtanh.f32 %v1192_v49  ;;  %v1522_v33 = vmul.f32 %v9482_v41, %v7895_v32 }
 0x250   :  { %1770 = vadd.xlane.f32.xlu1 %v1521_v61  ;;  %7906 = vtanh.f32 %v1191_v55 }
 0x251   :  { %1768 = vadd.xlane.f32.xlu0 %v1520_v54  ;;  %v10002_v53 = vpop.xlane.xlu1 %1558  ;;  %14700 = vst [vmem:[#allocation175_spill] sm:$0xff] %v10008_v3  ;;  %v1264_v54 = vadd.f32 %v9759_v38, %v10000_v43  ;;  %v1263_v45 = vadd.f32 %v9759_v38, %v10008_v3  ;;  %v7897_v35 = vpop.eup %7896 }
 0x252   :  { %v10010_v61 = vpop.xlane.xlu0 %1556  ;;  %v7899_v58 = vpop.eup %7898  ;;  %v1453_v55 = vmul.f32 %v9482_v41, %v7897_v35 }
 0x253   :  { %7908 = vtanh.f32 %v1264_v54  ;;  %v1452_v38 = vmul.f32 %v9482_v41, %v7899_v58 }
 0x254   :  { %1630 = vadd.xlane.f32.xlu1 %v1451_v9  ;;  %7910 = vtanh.f32 %v1263_v45 }
 0x255   :  { %1628 = vadd.xlane.f32.xlu0 %v1450_v63  ;;  %v10016_v60 = vpop.xlane.xlu1 %1702  ;;  %v7901_v9 = vpop.eup %7900 }
 0x256   :  { %14701 = vst [vmem:[#allocation252_spill] sm:$0xff] %v10016_v60  ;;  %v10020_v62 = vpop.xlane.xlu0 %1700  ;;  %v7903_v43 = vpop.eup %7902  ;;  %v1525_v54 = vmul.f32 %v9482_v41, %v7901_v9 }
 0x257   :  { %14702 = vst [vmem:[#allocation253_spill] sm:$0xff] %v10020_v62 }
 0x258   :  { %1774 = vadd.xlane.f32.xlu1 %v1523_v17 }
 0x259   :  { %1772 = vadd.xlane.f32.xlu0 %v1522_v33  ;;  %v10024_v49 = vpop.xlane.xlu1 %1562  ;;  %v7905_v17 = vpop.eup %7904  ;;  %v1524_v33 = vmul.f32 %v9482_v41, %v7903_v43 }
 0x25a   :  { %v10026_v63 = vpop.xlane.xlu0 %1560  ;;  %v7907_v45 = vpop.eup %7906  ;;  %v1455_v58 = vmul.f32 %v9482_v41, %v7905_v17  ;;  %v8348_v17 = vmov 0  }
 0x25b   :  { %7655 = vset.pattern.permute.xlu1 %v8348_v17  ;;  %7654 = vset.pattern.permute.xlu0 %v8348_v17 }
 0x25c   :  { %1634 = vadd.xlane.f32.xlu1 %v1453_v55 }
 0x25d   :  { %1632 = vadd.xlane.f32.xlu0 %v1452_v38  ;;  %v10030_v48 = vpop.xlane.xlu1 %1706  ;;  %v7909_v55 = vpop.eup %7908  ;;  %v1454_v38 = vmul.f32 %v9482_v41, %v7907_v45 }
 0x25e   :  { %14703 = vst [vmem:[#allocation254_spill] sm:$0xff] %v10030_v48  ;;  %v10032_v32 = vpop.xlane.xlu0 %1704  ;;  %v7911_v48 = vpop.eup %7910  ;;  %v1527_v43 = vmul.f32 %v9482_v41, %v7909_v55 }
 0x25f   :  { %14704 = vst [vmem:[#allocation255_spill] sm:$0xff] %v10032_v32 }
 0x260   :  { %1778 = vadd.xlane.f32.xlu1 %v1525_v54  ;;  %v1526_v54 = vmul.f32 %v9482_v41, %v7911_v48  ;;  %v14711_v48 = vld [vmem:[#allocation25_spill] sm:$0xff] }
 0x261   :  { %1776 = vadd.xlane.f32.xlu0 %v1524_v33  ;;  %v10036_v3 = vpop.xlane.xlu1 %1566 }
 0x262   :  { %v10038_v35 = vpop.xlane.xlu0 %1564 }
 0x264   :  { %1638 = vadd.xlane.f32.xlu1 %v1455_v58 }
 0x265   :  { %1636 = vadd.xlane.f32.xlu0 %v1454_v38  ;;  %v10042_v32 = vpop.xlane.xlu1 %1710 }
 0x266   :  { %14705 = vst [vmem:[#allocation256_spill] sm:$0xff] %v10042_v32  ;;  %v10044_v9 = vpop.xlane.xlu0 %1708 }
 0x267   :  { %14706 = vst [vmem:[#allocation257_spill] sm:$0xff] %v10044_v9  ;;  %v14715_v9 = vld [vmem:[#allocation19_spill] sm:$0xff] }
 0x268   :  { %1782 = vadd.xlane.f32.xlu1 %v1527_v43  ;;  %v10085_v62 = vsub.s32 5, %v14715_v9 }
 0x269   :  { %1780 = vadd.xlane.f32.xlu0 %v1526_v54  ;;  %v10048_v33 = vpop.xlane.xlu1 %1570 }
 0x26a   :  { %v10050_v60 = vpop.xlane.xlu0 %1568  ;;  %14716 = vst [vmem:[#allocation264_spill] sm:$0xff] %v10085_v62  ;;  %v2124_v39 = vrot.slane %v10093_v44, %v10085_v62 }
 0x26d   :  { %v10052_v45 = vpop.xlane.xlu1 %1714 }
 0x26e   :  { %14707 = vst [vmem:[#allocation258_spill] sm:$0xff] %v10052_v45  ;;  %v10054_v58 = vpop.xlane.xlu0 %1712 }
 0x26f   :  { %14708 = vst [vmem:[#allocation259_spill] sm:$0xff] %v10054_v58 }
 0x271   :  { %v10056_v38 = vpop.xlane.xlu1 %1574 }
 0x272   :  { %v10058_v32 = vpop.xlane.xlu0 %1572 }
 0x275   :  { %v10060_v55 = vpop.xlane.xlu1 %1718 }
 0x276   :  { %14709 = vst [vmem:[#allocation260_spill] sm:$0xff] %v10060_v55  ;;  %v10062_v41 = vpop.xlane.xlu0 %1716 }
 0x277   :  { %14710 = vst [vmem:[#allocation261_spill] sm:$0xff] %v10062_v41 }
 0x279   :  { %2087 = vbcast.lane.b32.xlu1 %v14711_v48, 312  ;;  %v10065_v43 = vpop.xlane.xlu1 %1578 }
 0x27a   :  { %v10067_v54 = vpop.xlane.xlu0 %1576 }
 0x27d   :  { %2095 = vbcast.lane.b32.xlu1 %v14711_v48, 328  ;;  %v10070_v17 = vpop.xlane.xlu1 %1722 }
 0x27e   :  { %14712 = vst [vmem:[#allocation25_spill] sm:$0xff] %v10070_v17  ;;  %v10072_v45 = vpop.xlane.xlu0 %1720 }
 0x27f   :  { %14713 = vst [vmem:[#allocation262_spill] sm:$0xff] %v10072_v45  ;;  %2091 = vbcast.lane.b32.xlu0 %v14711_v48, 320 }
 0x281   :  { %2103 = vbcast.lane.b32.xlu1 %v14711_v48, 344  ;;  %v10076_v58 = vpop.xlane.xlu1 %1582 }
 0x282   :  { %v10078_v55 = vpop.xlane.xlu0 %1580 }
 0x283   :  { %2099 = vbcast.lane.b32.xlu0 %v14711_v48, 336 }
 0x285   :  { %2111 = vbcast.lane.b32.xlu1 %v14711_v48, 360  ;;  %v10082_v41 = vpop.xlane.xlu1 %1726 }
 0x286   :  { %14714 = vst [vmem:[#allocation263_spill] sm:$0xff] %v10082_v41  ;;  %v10087_v17 = vpop.xlane.xlu0 %1724 }
 0x287   :  { %14717 = vst [vmem:[#allocation265_spill] sm:$0xff] %v10087_v17  ;;  %2107 = vbcast.lane.b32.xlu0 %v14711_v48, 352 }
 0x289   :  { %2119 = vbcast.lane.b32.xlu1 %v14711_v48, 376  ;;  %v10091_v45 = vpop.xlane.xlu1 %1586 }
 0x28a   :  { %v10097_v50 = vpop.xlane.xlu0 %1584 }
 0x28b   :  { %2115 = vbcast.lane.b32.xlu0 %v14711_v48, 368 }
 0x28d   :  { %2130 = vbcast.lane.b32.xlu1 %v2124_v39, 264  ;;  %v10100_v41 = vpop.xlane.xlu1 %1730 }
 0x28e   :  { %14718 = vst [vmem:[#allocation266_spill] sm:$0xff] %v10100_v41  ;;  %v10102_v34 = vpop.xlane.xlu0 %1728 }
 0x28f   :  { %14719 = vst [vmem:[#allocation267_spill] sm:$0xff] %v10102_v34  ;;  %2126 = vbcast.lane.b32.xlu0 %v2124_v39, 256 }
 0x291   :  { %2138 = vbcast.lane.b32.xlu1 %v2124_v39, 280  ;;  %v10104_v17 = vpop.xlane.xlu1 %1590 }
 0x292   :  { %v10106_v57 = vpop.xlane.xlu0 %1588 }
 0x293   :  { %2134 = vbcast.lane.b32.xlu0 %v2124_v39, 272 }
 0x295   :  { %2146 = vbcast.lane.b32.xlu1 %v2124_v39, 296  ;;  %v10108_v20 = vpop.xlane.xlu1 %1734 }
 0x296   :  { %14720 = vst [vmem:[#allocation268_spill] sm:$0xff] %v10108_v20  ;;  %v10110_v62 = vpop.xlane.xlu0 %1732 }
 0x297   :  { %14721 = vst [vmem:[#allocation269_spill] sm:$0xff] %v10110_v62  ;;  %2142 = vbcast.lane.b32.xlu0 %v2124_v39, 288  ;;  %v10127_v62 = vsub.s32 6, %v14715_v9 }
 0x299   :  { %2154 = vbcast.lane.b32.xlu1 %v2124_v39, 312  ;;  %v10112_v48 = vpop.xlane.xlu1 %1594  ;;  %14725 = vst [vmem:[#allocation273_spill] sm:$0xff] %v10127_v62 }
 0x29a   :  { %v10114_v16 = vpop.xlane.xlu0 %1592 }
 0x29b   :  { %2150 = vbcast.lane.b32.xlu0 %v2124_v39, 304 }
 0x29d   :  { %2162 = vbcast.lane.b32.xlu1 %v2124_v39, 328  ;;  %v10116_v41 = vpop.xlane.xlu1 %1738 }
 0x29e   :  { %14722 = vst [vmem:[#allocation270_spill] sm:$0xff] %v10116_v41  ;;  %v10118_v34 = vpop.xlane.xlu0 %1736 }
 0x29f   :  { %14723 = vst [vmem:[#allocation271_spill] sm:$0xff] %v10118_v34  ;;  %2158 = vbcast.lane.b32.xlu0 %v2124_v39, 320  ;;  %v2191_v34 = vrot.slane %v10093_v44, %v10127_v62 }
 0x2a1   :  { %2170 = vbcast.lane.b32.xlu1 %v2124_v39, 344  ;;  %v10120_v19 = vpop.xlane.xlu1 %1598 }
 0x2a2   :  { %v10122_v6 = vpop.xlane.xlu0 %1596 }
 0x2a3   :  { %2166 = vbcast.lane.b32.xlu0 %v2124_v39, 336 }
 0x2a5   :  { %2178 = vbcast.lane.b32.xlu1 %v2124_v39, 360  ;;  %v10124_v20 = vpop.xlane.xlu1 %1742 }
 0x2a6   :  { %14724 = vst [vmem:[#allocation272_spill] sm:$0xff] %v10124_v20  ;;  %v10129_v31 = vpop.xlane.xlu0 %1740 }
 0x2a7   :  { %14726 = vst [vmem:[#allocation274_spill] sm:$0xff] %v10129_v31  ;;  %2174 = vbcast.lane.b32.xlu0 %v2124_v39, 352 }
 0x2a9   :  { %2186 = vbcast.lane.b32.xlu1 %v2124_v39, 376  ;;  %v10131_v41 = vpop.xlane.xlu1 %1602 }
 0x2aa   :  { %v10135_v1 = vpop.xlane.xlu0 %1600 }
 0x2ab   :  { %2182 = vbcast.lane.b32.xlu0 %v2124_v39, 368 }
 0x2ad   :  { %2197 = vbcast.lane.b32.xlu1 %v2191_v34, 264  ;;  %v10137_v2 = vpop.xlane.xlu1 %1746 }
 0x2ae   :  { %14727 = vst [vmem:[#allocation275_spill] sm:$0xff] %v10137_v2  ;;  %v10139_v28 = vpop.xlane.xlu0 %1744 }
 0x2af   :  { %14728 = vst [vmem:[#allocation276_spill] sm:$0xff] %v10139_v28  ;;  %2193 = vbcast.lane.b32.xlu0 %v2191_v34, 256 }
 0x2b1   :  { %2205 = vbcast.lane.b32.xlu1 %v2191_v34, 280  ;;  %v10141_v20 = vpop.xlane.xlu1 %1606 }
 0x2b2   :  { %v10143_v31 = vpop.xlane.xlu0 %1604 }
 0x2b3   :  { %2201 = vbcast.lane.b32.xlu0 %v2191_v34, 272 }
 0x2b5   :  { %2213 = vbcast.lane.b32.xlu1 %v2191_v34, 296  ;;  %v10145_v18 = vpop.xlane.xlu1 %1750 }
 0x2b6   :  { %14729 = vst [vmem:[#allocation277_spill] sm:$0xff] %v10145_v18  ;;  %v10147_v5 = vpop.xlane.xlu0 %1748 }
 0x2b7   :  { %14730 = vst [vmem:[#allocation278_spill] sm:$0xff] %v10147_v5  ;;  %2209 = vbcast.lane.b32.xlu0 %v2191_v34, 288  ;;  %v10164_v5 = vsub.s32 7, %v14715_v9 }
 0x2b9   :  { %2221 = vbcast.lane.b32.xlu1 %v2191_v34, 312  ;;  %v10149_v39 = vpop.xlane.xlu1 %1610  ;;  %14734 = vst [vmem:[#allocation282_spill] sm:$0xff] %v10164_v5 }
 0x2ba   :  { %v10151_v62 = vpop.xlane.xlu0 %1608 }
 0x2bb   :  { %2217 = vbcast.lane.b32.xlu0 %v2191_v34, 304 }
 0x2bd   :  { %2229 = vbcast.lane.b32.xlu1 %v2191_v34, 328  ;;  %v10153_v2 = vpop.xlane.xlu1 %1754 }
 0x2be   :  { %14731 = vst [vmem:[#allocation279_spill] sm:$0xff] %v10153_v2  ;;  %v10155_v28 = vpop.xlane.xlu0 %1752 }
 0x2bf   :  { %14732 = vst [vmem:[#allocation280_spill] sm:$0xff] %v10155_v28  ;;  %2225 = vbcast.lane.b32.xlu0 %v2191_v34, 320  ;;  %v2258_v28 = vrot.slane %v10093_v44, %v10164_v5 }
 0x2c1   :  { %2237 = vbcast.lane.b32.xlu1 %v2191_v34, 344  ;;  %v10157_v0 = vpop.xlane.xlu1 %1614 }
 0x2c2   :  { %v10159_v14 = vpop.xlane.xlu0 %1612 }
 0x2c3   :  { %2233 = vbcast.lane.b32.xlu0 %v2191_v34, 336 }
 0x2c5   :  { %2245 = vbcast.lane.b32.xlu1 %v2191_v34, 360  ;;  %v10161_v18 = vpop.xlane.xlu1 %1758 }
 0x2c6   :  { %14733 = vst [vmem:[#allocation281_spill] sm:$0xff] %v10161_v18  ;;  %v10166_v12 = vpop.xlane.xlu0 %1756 }
 0x2c7   :  { %14735 = vst [vmem:[#allocation283_spill] sm:$0xff] %v10166_v12  ;;  %2241 = vbcast.lane.b32.xlu0 %v2191_v34, 352 }
 0x2c9   :  { %2253 = vbcast.lane.b32.xlu1 %v2191_v34, 376  ;;  %v10168_v2 = vpop.xlane.xlu1 %1618 }
 0x2ca   :  { %v10172_v23 = vpop.xlane.xlu0 %1616 }
 0x2cb   :  { %2249 = vbcast.lane.b32.xlu0 %v2191_v34, 368 }
 0x2cd   :  { %2264 = vbcast.lane.b32.xlu1 %v2258_v28, 264  ;;  %v10174_v25 = vpop.xlane.xlu1 %1762 }
 0x2ce   :  { %14736 = vst [vmem:[#allocation284_spill] sm:$0xff] %v10174_v25  ;;  %v10176_v47 = vpop.xlane.xlu0 %1760 }
 0x2cf   :  { %14737 = vst [vmem:[#allocation285_spill] sm:$0xff] %v10176_v47  ;;  %2260 = vbcast.lane.b32.xlu0 %v2258_v28, 256 }
 0x2d1   :  { %2272 = vbcast.lane.b32.xlu1 %v2258_v28, 280  ;;  %v10178_v9 = vpop.xlane.xlu1 %1622 }
 0x2d2   :  { %v10180_v18 = vpop.xlane.xlu0 %1620 }
 0x2d3   :  { %2268 = vbcast.lane.b32.xlu0 %v2258_v28, 272 }
 0x2d5   :  { %2280 = vbcast.lane.b32.xlu1 %v2258_v28, 296  ;;  %v10182_v12 = vpop.xlane.xlu1 %1766 }
 0x2d6   :  { %14738 = vst [vmem:[#allocation286_spill] sm:$0xff] %v10182_v12  ;;  %v10184_v40 = vpop.xlane.xlu0 %1764 }
 0x2d7   :  { %14739 = vst [vmem:[#allocation287_spill] sm:$0xff] %v10184_v40  ;;  %2276 = vbcast.lane.b32.xlu0 %v2258_v28, 288 }
 0x2d9   :  { %2288 = vbcast.lane.b32.xlu1 %v2258_v28, 312  ;;  %v10186_v34 = vpop.xlane.xlu1 %1626 }
 0x2da   :  { %v10188_v44 = vpop.xlane.xlu0 %1624 }
 0x2db   :  { %2284 = vbcast.lane.b32.xlu0 %v2258_v28, 304 }
 0x2dd   :  { %2296 = vbcast.lane.b32.xlu1 %v2258_v28, 328  ;;  %v10190_v5 = vpop.xlane.xlu1 %1770 }
 0x2de   :  { %14740 = vst [vmem:[#allocation288_spill] sm:$0xff] %v10190_v5  ;;  %v10192_v25 = vpop.xlane.xlu0 %1768  ;;  %v14744_v5 = vld [vmem:[#allocation26_spill] sm:$0xff] }
 0x2df   :  { %14741 = vst [vmem:[#allocation289_spill] sm:$0xff] %v10192_v25  ;;  %2292 = vbcast.lane.b32.xlu0 %v2258_v28, 320  ;;  %v10208_v25 = vadd.f32 %v14744_v5, %v9755_v21  ;;  %v14752_v5 = vld [vmem:[#allocation29_spill] sm:$0xff] }
 0x2e0   :  { %v10226_v21 = vadd.f32 %v14752_v5, %v9768_v27  ;;  %v14760_v5 = vld [vmem:[#allocation32_spill] sm:$0xff] }
 0x2e1   :  { %2304 = vbcast.lane.b32.xlu1 %v2258_v28, 344  ;;  %v10194_v47 = vpop.xlane.xlu1 %1630  ;;  %14745 = vst [vmem:[#allocation26_spill] sm:$0xff] %v10208_v25 }
 0x2e2   :  { %v10196_v52 = vpop.xlane.xlu0 %1628  ;;  %14753 = vst [vmem:[#allocation29_spill] sm:$0xff] %v10226_v21 }
 0x2e3   :  { %2300 = vbcast.lane.b32.xlu0 %v2258_v28, 336 }
 0x2e5   :  { %2312 = vbcast.lane.b32.xlu1 %v2258_v28, 360  ;;  %v10198_v12 = vpop.xlane.xlu1 %1774 }
 0x2e6   :  { %14742 = vst [vmem:[#allocation290_spill] sm:$0xff] %v10198_v12  ;;  %v10200_v40 = vpop.xlane.xlu0 %1772 }
 0x2e7   :  { %14743 = vst [vmem:[#allocation291_spill] sm:$0xff] %v10200_v40  ;;  %2308 = vbcast.lane.b32.xlu0 %v2258_v28, 352 }
 0x2e9   :  { %2320 = vbcast.lane.b32.xlu1 %v2258_v28, 376  ;;  %v10202_v42 = vpop.xlane.xlu1 %1634 }
 0x2ea   :  { %v10204_v7 = vpop.xlane.xlu0 %1632 }
 0x2eb   :  { %2316 = vbcast.lane.b32.xlu0 %v2258_v28, 368 }
 0x2ed   :  { %2710 = vperm.xlu1 %7655, %v10208_v25   ;;  %v10215_v12 = vpop.xlane.xlu1 %1778  ;;  %v10235_v25 = vadd.f32 %v14754_v56, %v9830_v36  ;;  %v14762_v36 = vld [vmem:[#allocation33_spill] sm:$0xff] }
 0x2ee   :  { %14748 = vst [vmem:[#allocation292_spill] sm:$0xff] %v10215_v12  ;;  %v10217_v40 = vpop.xlane.xlu0 %1776  ;;  %v10254_v56 = vadd.f32 %v14762_v36, %v9858_v8  ;;  %v14768_v36 = vld [vmem:[#allocation36_spill] sm:$0xff] }
 0x2ef   :  { %14749 = vst [vmem:[#allocation293_spill] sm:$0xff] %v10217_v40  ;;  %2707 = vperm.xlu0 %7654, %v10212_v59   ;;  %14755 = vst [vmem:[#allocation30_spill] sm:$0xff] %v10235_v25 }
 0x2f0   :  { %14763 = vst [vmem:[#allocation33_spill] sm:$0xff] %v10254_v56 }
 0x2f1   :  { %2713 = vperm.xlu1 %7655, %v10221_v46   ;;  %v10229_v26 = vpop.xlane.xlu1 %1638  ;;  %v10249_v46 = vadd.f32 %v14760_v5, %v9866_v4  ;;  %v14766_v4 = vld [vmem:[#allocation35_spill] sm:$0xff] }
 0x2f2   :  { %v10231_v28 = vpop.xlane.xlu0 %1636  ;;  %v10268_v5 = vadd.f32 %v14766_v4, %v9894_v37  ;;  %v14772_v4 = vld [vmem:[#allocation38_spill] sm:$0xff] }
 0x2f3   :  { %2716 = vperm.xlu0 %7654, %v10226_v21   ;;  %14761 = vst [vmem:[#allocation32_spill] sm:$0xff] %v10249_v46 }
 0x2f4   :  { %14767 = vst [vmem:[#allocation35_spill] sm:$0xff] %v10268_v5 }
 0x2f5   :  { %v10242_v59 = vpop.xlane.xlu1 %1782  ;;  %2719 = vperm.xlu1 %7655, %v10235_v25   ;;  %v10263_v25 = vadd.f32 %v14764_v22, %v9902_v13  ;;  %v14770_v13 = vld [vmem:[#allocation37_spill] sm:$0xff] }
 0x2f6   :  { %14758 = vst [vmem:[#allocation294_spill] sm:$0xff] %v10242_v59  ;;  %v10245_v27 = vpop.xlane.xlu0 %1780  ;;  %v10282_v22 = vadd.f32 %v14770_v13, %v9930_v11  ;;  %v14776_v13 = vld [vmem:[#allocation40_spill] sm:$0xff] }
 0x2f7   :  { %14759 = vst [vmem:[#allocation295_spill] sm:$0xff] %v10245_v27  ;;  %2722 = vperm.xlu0 %7654, %v10240_v10   ;;  %14765 = vst [vmem:[#allocation34_spill] sm:$0xff] %v10263_v25 }
 0x2f8   :  { %14771 = vst [vmem:[#allocation37_spill] sm:$0xff] %v10282_v22 }
 0x2f9   :  { %v10256_v21 = vpop.permute.xlu1 %2087  ;;  %2725 = vperm.xlu1 %7655, %v10249_v46   ;;  %v10277_v46 = vadd.f32 %v14768_v36, %v9938_v15  ;;  %v14774_v15 = vld [vmem:[#allocation39_spill] sm:$0xff] }
 0x2fa   :  { %v10259_v24 = vpop.permute.xlu0 %2091  ;;  %v10296_v36 = vadd.f32 %v14774_v15, %v9966_v29  ;;  %v14780_v15 = vld [vmem:[#allocation42_spill] sm:$0xff] }
 0x2fb   :  { %2728 = vperm.xlu0 %7654, %v10254_v56   ;;  %14769 = vst [vmem:[#allocation36_spill] sm:$0xff] %v10277_v46 }
 0x2fc   :  { %14775 = vst [vmem:[#allocation39_spill] sm:$0xff] %v10296_v36 }
 0x2fd   :  { %v10270_v10 = vpop.permute.xlu1 %2095  ;;  %2731 = vperm.xlu1 %7655, %v10263_v25   ;;  %v10291_v25 = vadd.f32 %v14772_v4, %v9974_v51  ;;  %v14778_v51 = vld [vmem:[#allocation41_spill] sm:$0xff] }
 0x2fe   :  { %v10273_v8 = vpop.permute.xlu0 %2099  ;;  %v10310_v4 = vadd.f32 %v14778_v51, %v10002_v53  ;;  %v14784_v51 = vld [vmem:[#allocation48_spill] sm:$0xff] }
 0x2ff   :  { %2734 = vperm.xlu0 %7654, %v10268_v5   ;;  %14773 = vst [vmem:[#allocation38_spill] sm:$0xff] %v10291_v25 }
 0x300   :  { %14779 = vst [vmem:[#allocation41_spill] sm:$0xff] %v10310_v4 }
 0x301   :  { %v10284_v56 = vpop.permute.xlu1 %2103  ;;  %2737 = vperm.xlu1 %7655, %v10277_v46   ;;  %v10305_v46 = vadd.f32 %v14776_v13, %v10010_v61  ;;  %v14782_v61 = vld [vmem:[#allocation45_spill] sm:$0xff] }
 0x302   :  { %v10287_v37 = vpop.permute.xlu0 %2107  ;;  %v10324_v13 = vadd.f32 %v14782_v61, %v10024_v49  ;;  %v14788_v61 = vld [vmem:[#allocation54_spill] sm:$0xff] }
 0x303   :  { %2740 = vperm.xlu0 %7654, %v10282_v22   ;;  %14777 = vst [vmem:[#allocation40_spill] sm:$0xff] %v10305_v46 }
 0x304   :  { %14783 = vst [vmem:[#allocation45_spill] sm:$0xff] %v10324_v13 }
 0x305   :  { %v10298_v5 = vpop.permute.xlu1 %2111  ;;  %2743 = vperm.xlu1 %7655, %v10291_v25   ;;  %v10319_v25 = vadd.f32 %v14780_v15, %v10026_v63  ;;  %v14786_v63 = vld [vmem:[#allocation53_spill] sm:$0xff] }
 0x306   :  { %v10301_v11 = vpop.permute.xlu0 %2115  ;;  %v10338_v15 = vadd.f32 %v14786_v63, %v10036_v3  ;;  %v14792_v63 = vld [vmem:[#allocation59_spill] sm:$0xff] }
 0x307   :  { %2746 = vperm.xlu0 %7654, %v10296_v36   ;;  %14781 = vst [vmem:[#allocation42_spill] sm:$0xff] %v10319_v25 }
 0x308   :  { %14787 = vst [vmem:[#allocation53_spill] sm:$0xff] %v10338_v15 }
 0x309   :  { %v10312_v22 = vpop.permute.xlu1 %2119  ;;  %2749 = vperm.xlu1 %7655, %v10305_v46   ;;  %v10333_v46 = vadd.f32 %v14784_v51, %v10038_v35  ;;  %v14790_v35 = vld [vmem:[#allocation57_spill] sm:$0xff] }
 0x30a   :  { %v10315_v29 = vpop.permute.xlu0 %2126  ;;  %v10352_v51 = vadd.f32 %v14790_v35, %v10048_v33  ;;  %v14796_v35 = vld [vmem:[#allocation64_spill] sm:$0xff] }
 0x30b   :  { %2752 = vperm.xlu0 %7654, %v10310_v4   ;;  %14785 = vst [vmem:[#allocation48_spill] sm:$0xff] %v10333_v46 }
 0x30c   :  { %14791 = vst [vmem:[#allocation57_spill] sm:$0xff] %v10352_v51 }
 0x30d   :  { %v10326_v36 = vpop.permute.xlu1 %2130  ;;  %2755 = vperm.xlu1 %7655, %v10319_v25   ;;  %v10347_v25 = vadd.f32 %v14788_v61, %v10050_v60  ;;  %v14794_v60 = vld [vmem:[#allocation63_spill] sm:$0xff] }
 0x30e   :  { %v10329_v53 = vpop.permute.xlu0 %2134  ;;  %v10366_v61 = vadd.f32 %v14794_v60, %v10056_v38  ;;  %v14800_v60 = vld [vmem:[#allocation69_spill] sm:$0xff] }
 0x30f   :  { %2758 = vperm.xlu0 %7654, %v10324_v13   ;;  %14789 = vst [vmem:[#allocation54_spill] sm:$0xff] %v10347_v25 }
 0x310   :  { %14795 = vst [vmem:[#allocation63_spill] sm:$0xff] %v10366_v61 }
 0x311   :  { %v10340_v4 = vpop.permute.xlu1 %2138  ;;  %2761 = vperm.xlu1 %7655, %v10333_v46   ;;  %v10361_v46 = vadd.f32 %v14792_v63, %v10058_v32  ;;  %v14798_v32 = vld [vmem:[#allocation67_spill] sm:$0xff] }
 0x312   :  { %v10343_v49 = vpop.permute.xlu0 %2142  ;;  %v10380_v63 = vadd.f32 %v14798_v32, %v10065_v43  ;;  %v14804_v32 = vld [vmem:[#allocation74_spill] sm:$0xff] }
 0x313   :  { %2764 = vperm.xlu0 %7654, %v10338_v15   ;;  %14793 = vst [vmem:[#allocation59_spill] sm:$0xff] %v10361_v46 }
 0x314   :  { %14799 = vst [vmem:[#allocation67_spill] sm:$0xff] %v10380_v63 }
 0x315   :  { %v10354_v13 = vpop.permute.xlu1 %2146  ;;  %2767 = vperm.xlu1 %7655, %v10347_v25   ;;  %v10375_v25 = vadd.f32 %v14796_v35, %v10067_v54  ;;  %v14802_v54 = vld [vmem:[#allocation73_spill] sm:$0xff] }
 0x316   :  { %v10357_v3 = vpop.permute.xlu0 %2150  ;;  %v10394_v35 = vadd.f32 %v14802_v54, %v10076_v58  ;;  %v14808_v54 = vld [vmem:[#allocation79_spill] sm:$0xff] }
 0x317   :  { %2770 = vperm.xlu0 %7654, %v10352_v51   ;;  %14797 = vst [vmem:[#allocation64_spill] sm:$0xff] %v10375_v25 }
 0x318   :  { %14803 = vst [vmem:[#allocation73_spill] sm:$0xff] %v10394_v35 }
 0x319   :  { %v10368_v15 = vpop.permute.xlu1 %2154  ;;  %2773 = vperm.xlu1 %7655, %v10361_v46   ;;  %v10389_v46 = vadd.f32 %v14800_v60, %v10078_v55  ;;  %v14806_v55 = vld [vmem:[#allocation77_spill] sm:$0xff] }
 0x31a   :  { %v10371_v33 = vpop.permute.xlu0 %2158  ;;  %v10408_v60 = vadd.f32 %v14806_v55, %v10091_v45  ;;  %v14812_v55 = vld [vmem:[#allocation84_spill] sm:$0xff] }
 0x31b   :  { %2776 = vperm.xlu0 %7654, %v10366_v61   ;;  %14801 = vst [vmem:[#allocation69_spill] sm:$0xff] %v10389_v46 }
 0x31c   :  { %14807 = vst [vmem:[#allocation77_spill] sm:$0xff] %v10408_v60 }
 0x31d   :  { %v10382_v51 = vpop.permute.xlu1 %2162  ;;  %2779 = vperm.xlu1 %7655, %v10375_v25   ;;  %v10403_v25 = vadd.f32 %v14804_v32, %v10097_v50  ;;  %v14810_v50 = vld [vmem:[#allocation83_spill] sm:$0xff] }
 0x31e   :  { %v10385_v38 = vpop.permute.xlu0 %2166  ;;  %v10422_v32 = vadd.f32 %v14810_v50, %v10104_v17  ;;  %v14816_v50 = vld [vmem:[#allocation89_spill] sm:$0xff] }
 0x31f   :  { %2782 = vperm.xlu0 %7654, %v10380_v63   ;;  %14805 = vst [vmem:[#allocation74_spill] sm:$0xff] %v10403_v25 }
 0x320   :  { %14811 = vst [vmem:[#allocation83_spill] sm:$0xff] %v10422_v32 }
 0x321   :  { %v10396_v61 = vpop.permute.xlu1 %2170  ;;  %2785 = vperm.xlu1 %7655, %v10389_v46   ;;  %v10417_v46 = vadd.f32 %v14808_v54, %v10106_v57  ;;  %v14814_v57 = vld [vmem:[#allocation87_spill] sm:$0xff] }
 0x322   :  { %v10399_v43 = vpop.permute.xlu0 %2174  ;;  %v10436_v54 = vadd.f32 %v14814_v57, %v10112_v48  ;;  %v14820_v57 = vld [vmem:[#allocation94_spill] sm:$0xff] }
 0x323   :  { %2788 = vperm.xlu0 %7654, %v10394_v35   ;;  %14809 = vst [vmem:[#allocation79_spill] sm:$0xff] %v10417_v46 }
 0x324   :  { %14815 = vst [vmem:[#allocation87_spill] sm:$0xff] %v10436_v54 }
 0x325   :  { %v10410_v63 = vpop.permute.xlu1 %2178  ;;  %2791 = vperm.xlu1 %7655, %v10403_v25   ;;  %v10431_v25 = vadd.f32 %v14812_v55, %v10114_v16  ;;  %v14818_v16 = vld [vmem:[#allocation93_spill] sm:$0xff] }
 0x326   :  { %v10413_v58 = vpop.permute.xlu0 %2182  ;;  %v10450_v55 = vadd.f32 %v14818_v16, %v10120_v19  ;;  %v14824_v16 = vld [vmem:[#allocation99_spill] sm:$0xff] }
 0x327   :  { %2794 = vperm.xlu0 %7654, %v10408_v60   ;;  %14813 = vst [vmem:[#allocation84_spill] sm:$0xff] %v10431_v25 }
 0x328   :  { %14819 = vst [vmem:[#allocation93_spill] sm:$0xff] %v10450_v55 }
 0x329   :  { %v10424_v35 = vpop.permute.xlu1 %2186  ;;  %2797 = vperm.xlu1 %7655, %v10417_v46   ;;  %v10445_v46 = vadd.f32 %v14816_v50, %v10122_v6  ;;  %v14822_v6 = vld [vmem:[#allocation97_spill] sm:$0xff] }
 0x32a   :  { %v10427_v45 = vpop.permute.xlu0 %2193  ;;  %v10464_v50 = vadd.f32 %v14822_v6, %v10131_v41  ;;  %v14828_v6 = vld [vmem:[#allocation104_spill] sm:$0xff] }
 0x32b   :  { %2800 = vperm.xlu0 %7654, %v10422_v32   ;;  %14817 = vst [vmem:[#allocation89_spill] sm:$0xff] %v10445_v46 }
 0x32c   :  { %14823 = vst [vmem:[#allocation97_spill] sm:$0xff] %v10464_v50 }
 0x32d   :  { %v10438_v60 = vpop.permute.xlu1 %2197  ;;  %2803 = vperm.xlu1 %7655, %v10431_v25   ;;  %v10459_v25 = vadd.f32 %v14820_v57, %v10135_v1  ;;  %v14826_v1 = vld [vmem:[#allocation103_spill] sm:$0xff] }
 0x32e   :  { %v10441_v17 = vpop.permute.xlu0 %2201  ;;  %v10478_v57 = vadd.f32 %v14826_v1, %v10141_v20  ;;  %v14832_v1 = vld [vmem:[#allocation110_spill] sm:$0xff] }
 0x32f   :  { %2806 = vperm.xlu0 %7654, %v10436_v54   ;;  %14821 = vst [vmem:[#allocation94_spill] sm:$0xff] %v10459_v25 }
 0x330   :  { %14827 = vst [vmem:[#allocation103_spill] sm:$0xff] %v10478_v57 }
 0x331   :  { %v10452_v32 = vpop.permute.xlu1 %2205  ;;  %2809 = vperm.xlu1 %7655, %v10445_v46   ;;  %v10473_v46 = vadd.f32 %v14824_v16, %v10143_v31  ;;  %v14830_v31 = vld [vmem:[#allocation107_spill] sm:$0xff] }
 0x332   :  { %v10455_v48 = vpop.permute.xlu0 %2209  ;;  %v10492_v16 = vadd.f32 %v14830_v31, %v10149_v39  ;;  %v14836_v31 = vld [vmem:[#allocation114_spill] sm:$0xff] }
 0x333   :  { %2812 = vperm.xlu0 %7654, %v10450_v55   ;;  %14825 = vst [vmem:[#allocation99_spill] sm:$0xff] %v10473_v46 }
 0x334   :  { %14831 = vst [vmem:[#allocation107_spill] sm:$0xff] %v10492_v16 }
 0x335   :  { %v10466_v54 = vpop.permute.xlu1 %2213  ;;  %2815 = vperm.xlu1 %7655, %v10459_v25   ;;  %v10487_v25 = vadd.f32 %v14828_v6, %v10151_v62  ;;  %v14834_v62 = vld [vmem:[#allocation113_spill] sm:$0xff] }
 0x336   :  { %v10469_v19 = vpop.permute.xlu0 %2217  ;;  %v10506_v6 = vadd.f32 %v14834_v62, %v10157_v0  ;;  %v14840_v62 = vld [vmem:[#allocation120_spill] sm:$0xff] }
 0x337   :  { %2818 = vperm.xlu0 %7654, %v10464_v50   ;;  %14829 = vst [vmem:[#allocation104_spill] sm:$0xff] %v10487_v25 }
 0x338   :  { %14835 = vst [vmem:[#allocation113_spill] sm:$0xff] %v10506_v6 }
 0x339   :  { %v10480_v55 = vpop.permute.xlu1 %2221  ;;  %2821 = vperm.xlu1 %7655, %v10473_v46   ;;  %v10501_v46 = vadd.f32 %v14832_v1, %v10159_v14  ;;  %v14838_v14 = vld [vmem:[#allocation117_spill] sm:$0xff] }
 0x33a   :  { %v10483_v41 = vpop.permute.xlu0 %2225  ;;  %v10520_v1 = vadd.f32 %v14838_v14, %v10168_v2  ;;  %v14844_v14 = vld [vmem:[#allocation124_spill] sm:$0xff] }
 0x33b   :  { %2824 = vperm.xlu0 %7654, %v10478_v57   ;;  %14833 = vst [vmem:[#allocation110_spill] sm:$0xff] %v10501_v46 }
 0x33c   :  { %14839 = vst [vmem:[#allocation117_spill] sm:$0xff] %v10520_v1 }
 0x33d   :  { %v10494_v50 = vpop.permute.xlu1 %2229  ;;  %2827 = vperm.xlu1 %7655, %v10487_v25   ;;  %v10515_v25 = vadd.f32 %v14836_v31, %v10172_v23  ;;  %v14842_v23 = vld [vmem:[#allocation123_spill] sm:$0xff] }
 0x33e   :  { %v10497_v20 = vpop.permute.xlu0 %2233  ;;  %v10534_v31 = vadd.f32 %v14842_v23, %v10178_v9  ;;  %v14848_v23 = vld [vmem:[#allocation130_spill] sm:$0xff] }
 0x33f   :  { %2830 = vperm.xlu0 %7654, %v10492_v16   ;;  %14837 = vst [vmem:[#allocation114_spill] sm:$0xff] %v10515_v25 }
 0x340   :  { %14843 = vst [vmem:[#allocation123_spill] sm:$0xff] %v10534_v31 }
 0x341   :  { %v10508_v57 = vpop.permute.xlu1 %2237  ;;  %2833 = vperm.xlu1 %7655, %v10501_v46   ;;  %v10529_v46 = vadd.f32 %v14840_v62, %v10180_v18  ;;  %v14846_v18 = vld [vmem:[#allocation128_spill] sm:$0xff] }
 0x342   :  { %v10511_v39 = vpop.permute.xlu0 %2241  ;;  %v10548_v62 = vadd.f32 %v14846_v18, %v10186_v34  ;;  %v14852_v18 = vld [vmem:[#allocation134_spill] sm:$0xff] }
 0x343   :  { %2836 = vperm.xlu0 %7654, %v10506_v6   ;;  %14841 = vst [vmem:[#allocation120_spill] sm:$0xff] %v10529_v46 }
 0x344   :  { %14847 = vst [vmem:[#allocation128_spill] sm:$0xff] %v10548_v62 }
 0x345   :  { %v10522_v16 = vpop.permute.xlu1 %2245  ;;  %2839 = vperm.xlu1 %7655, %v10515_v25   ;;  %v10543_v25 = vadd.f32 %v14844_v14, %v10188_v44  ;;  %v14850_v44 = vld [vmem:[#allocation133_spill] sm:$0xff] }
 0x346   :  { %v10525_v0 = vpop.permute.xlu0 %2249  ;;  %v10562_v14 = vadd.f32 %v14850_v44, %v10194_v47  ;;  %v14856_v44 = vld [vmem:[#allocation143_spill] sm:$0xff] }
 0x347   :  { %2842 = vperm.xlu0 %7654, %v10520_v1   ;;  %14845 = vst [vmem:[#allocation124_spill] sm:$0xff] %v10543_v25 }
 0x348   :  { %14851 = vst [vmem:[#allocation133_spill] sm:$0xff] %v10562_v14 }
 0x349   :  { %v10536_v6 = vpop.permute.xlu1 %2253  ;;  %2845 = vperm.xlu1 %7655, %v10529_v46   ;;  %v10557_v46 = vadd.f32 %v14848_v23, %v10196_v52  ;;  %v14854_v52 = vld [vmem:[#allocation141_spill] sm:$0xff] }
 0x34a   :  { %v10539_v2 = vpop.permute.xlu0 %2260  ;;  %v10576_v23 = vadd.f32 %v14854_v52, %v10202_v42  ;;  %v14860_v52 = vld [vmem:[#allocation150_spill] sm:$0xff] }
 0x34b   :  { %2848 = vperm.xlu0 %7654, %v10534_v31   ;;  %14849 = vst [vmem:[#allocation130_spill] sm:$0xff] %v10557_v46 }
 0x34c   :  { %14855 = vst [vmem:[#allocation141_spill] sm:$0xff] %v10576_v23 }
 0x34d   :  { %v10550_v1 = vpop.permute.xlu1 %2264  ;;  %2851 = vperm.xlu1 %7655, %v10543_v25   ;;  %v10571_v25 = vadd.f32 %v14852_v18, %v10204_v7  ;;  %v14858_v7 = vld [vmem:[#allocation149_spill] sm:$0xff] }
 0x34e   :  { %v10553_v9 = vpop.permute.xlu0 %2268  ;;  %v10590_v18 = vadd.f32 %v14858_v7, %v10229_v26  ;;  %v14866_v7 = vld [vmem:[#allocation200_spill] sm:$0xff] }
 0x34f   :  { %2854 = vperm.xlu0 %7654, %v10548_v62   ;;  %14853 = vst [vmem:[#allocation134_spill] sm:$0xff] %v10571_v25 }
 0x350   :  { %14859 = vst [vmem:[#allocation149_spill] sm:$0xff] %v10590_v18 }
 0x351   :  { %v10564_v31 = vpop.permute.xlu1 %2272  ;;  %2857 = vperm.xlu1 %7655, %v10557_v46   ;;  %v10585_v46 = vadd.f32 %v14856_v44, %v10231_v28  ;;  %v14862_v28 = vld [vmem:[#allocation195_spill] sm:$0xff]  ;;  %v14863_v44 = vld [vmem:[#allocation157_spill] sm:$0xff] }
 0x352   :  { %v10567_v34 = vpop.permute.xlu0 %2276  ;;  %v10604_v59 = vadd.f32 %v14863_v44, %v14862_v28  ;;  %v14873_v28 = vld [vmem:[#allocation204_spill] sm:$0xff]  ;;  %v14874_v44 = vld [vmem:[#allocation165_spill] sm:$0xff] }
 0x353   :  { %2860 = vperm.xlu0 %7654, %v10562_v14   ;;  %14857 = vst [vmem:[#allocation143_spill] sm:$0xff] %v10585_v46  ;;  %v10625_v40 = vadd.f32 %v14874_v44, %v14873_v28  ;;  %v14884_v28 = vld [vmem:[#allocation206_spill] sm:$0xff] }
 0x354   :  { %14864 = vst [vmem:[#allocation195_spill] sm:$0xff] %v10604_v59  ;;  %v14885_v44 = vld [vmem:[#allocation178_spill] sm:$0xff] }
 0x355   :  { %v10578_v62 = vpop.permute.xlu1 %2280  ;;  %2863 = vperm.xlu1 %7655, %v10571_v25   ;;  %v10599_v25 = vadd.f32 %v14860_v52, %v9607_v30  ;;  %v14869_v30 = vld [vmem:[#allocation198_spill] sm:$0xff]  ;;  %v14870_v52 = vld [vmem:[#allocation164_spill] sm:$0xff] }
 0x356   :  { %v10581_v47 = vpop.permute.xlu0 %2284  ;;  %v10618_v12 = vadd.f32 %v14870_v52, %v14869_v30  ;;  %14875 = vst [vmem:[#allocation164_spill] sm:$0xff] %v10625_v40  ;;  %v14881_v30 = vld [vmem:[#allocation208_spill] sm:$0xff]  ;;  %v14882_v52 = vld [vmem:[#allocation173_spill] sm:$0xff] }
 0x357   :  { %2866 = vperm.xlu0 %7654, %v10576_v23   ;;  %14861 = vst [vmem:[#allocation150_spill] sm:$0xff] %v10599_v25 }
 0x359   :  { %v10592_v14 = vpop.permute.xlu1 %2288  ;;  %2869 = vperm.xlu1 %7655, %v10585_v46   ;;  %v14867_v46 = vld [vmem:[#allocation159_spill] sm:$0xff] }
 0x35a   :  { %v10595_v42 = vpop.permute.xlu0 %2292  ;;  %v10613_v27 = vadd.f32 %v14867_v46, %v14866_v7  ;;  %14871 = vst [vmem:[#allocation159_spill] sm:$0xff] %v10618_v12  ;;  %v14877_v46 = vld [vmem:[#allocation202_spill] sm:$0xff] }
 0x35b   :  { %2872 = vperm.xlu0 %7654, %v10590_v18   ;;  %v14878_v7 = vld [vmem:[#allocation170_spill] sm:$0xff] }
 0x35c   :  { %14868 = vst [vmem:[#allocation200_spill] sm:$0xff] %v10613_v27 }
 0x35d   :  { %v10606_v23 = vpop.permute.xlu1 %2296  ;;  %2875 = vperm.xlu1 %7655, %v10599_v25  }
 0x35e   :  { %v10609_v26 = vpop.permute.xlu0 %2300 }
 0x35f   :  { %14865 = vst [vmem:[#allocation157_spill] sm:$0xff] %v10609_v26  ;;  %2878 = vperm.xlu0 %7654, %v10604_v59   ;;  %v10632_v26 = vadd.f32 %v14878_v7, %v14877_v46  ;;  %v14889_v7 = vld [vmem:[#allocation212_spill] sm:$0xff] }
 0x361   :  { %v10620_v18 = vpop.permute.xlu1 %2304  ;;  %2881 = vperm.xlu1 %7655, %v10613_v27   ;;  %14879 = vst [vmem:[#allocation165_spill] sm:$0xff] %v10632_v26  ;;  %v10644_v27 = vadd.f32 %v14885_v44, %v14884_v28  ;;  %v14896_v44 = vld [vmem:[#allocation216_spill] sm:$0xff] }
 0x362   :  { %14872 = vst [vmem:[#allocation198_spill] sm:$0xff] %v10620_v18  ;;  %v10628_v25 = vpop.permute.xlu0 %2308  ;;  %v10639_v18 = vadd.f32 %v14882_v52, %v14881_v30  ;;  %v14892_v30 = vld [vmem:[#allocation211_spill] sm:$0xff] }
 0x363   :  { %2884 = vperm.xlu0 %7654, %v10618_v12   ;;  %14876 = vst [vmem:[#allocation204_spill] sm:$0xff] %v10628_v25  ;;  %14886 = vst [vmem:[#allocation208_spill] sm:$0xff] %v10644_v27  ;;  %v14893_v52 = vld [vmem:[#allocation183_spill] sm:$0xff] }
 0x364   :  { %14883 = vst [vmem:[#allocation170_spill] sm:$0xff] %v10639_v18 }
 0x365   :  { %v10634_v59 = vpop.permute.xlu1 %2312  ;;  %2887 = vperm.xlu1 %7655, %v10625_v40   ;;  %v10658_v40 = vadd.f32 %v14893_v52, %v14892_v30  ;;  %v14903_v52 = vld [vmem:[#allocation220_spill] sm:$0xff] }
 0x366   :  { %14880 = vst [vmem:[#allocation202_spill] sm:$0xff] %v10634_v59  ;;  %v10649_v46 = vpop.permute.xlu0 %2316  ;;  %v14890_v59 = vld [vmem:[#allocation179_spill] sm:$0xff] }
 0x367   :  { %2890 = vperm.xlu0 %7654, %v10632_v26   ;;  %14888 = vst [vmem:[#allocation206_spill] sm:$0xff] %v10649_v46  ;;  %v10653_v25 = vadd.f32 %v14890_v59, %v14889_v7  ;;  %14894 = vst [vmem:[#allocation212_spill] sm:$0xff] %v10658_v40  ;;  %v14899_v59 = vld [vmem:[#allocation214_spill] sm:$0xff]  ;;  %v14900_v7 = vld [vmem:[#allocation188_spill] sm:$0xff] }
 0x368   :  { %v10672_v46 = vadd.f32 %v14900_v7, %v14899_v59  ;;  %v14907_v59 = vld [vmem:[#allocation219_spill] sm:$0xff]  ;;  %v14908_v7 = vld [vmem:[#allocation221_spill] sm:$0xff] }
 0x369   :  { %v10646_v12 = vpop.permute.xlu1 %2320  ;;  %2893 = vperm.xlu1 %7655, %v10639_v18   ;;  %14891 = vst [vmem:[#allocation178_spill] sm:$0xff] %v10653_v25  ;;  %v14897_v18 = vld [vmem:[#allocation185_spill] sm:$0xff] }
 0x36a   :  { %14887 = vst [vmem:[#allocation173_spill] sm:$0xff] %v10646_v12  ;;  %v10667_v12 = vadd.f32 %v14897_v18, %v14896_v44  ;;  %14901 = vst [vmem:[#allocation183_spill] sm:$0xff] %v10672_v46 }
 0x36b   :  { %2896 = vperm.xlu0 %7654, %v10644_v27  }
 0x36c   :  { %14898 = vst [vmem:[#allocation211_spill] sm:$0xff] %v10667_v12 }
 0x36d   :  { %v10660_v26 = vpop.permute.xlu1 %2710  ;;  %2899 = vperm.xlu1 %7655, %v10653_v25   ;;  %v14904_v25 = vld [vmem:[#allocation189_spill] sm:$0xff] }
 0x36e   :  { %14895 = vst [vmem:[#allocation179_spill] sm:$0xff] %v10660_v26  ;;  %v10663_v28 = vpop.permute.xlu0 %2707  ;;  %v10681_v26 = vadd.f32 %v14904_v25, %v14903_v52  ;;  %v14911_v52 = vld [vmem:[#allocation227_spill] sm:$0xff] }
 0x36f   :  { %2902 = vperm.xlu0 %7654, %v10658_v40   ;;  %v10692_v40 = vadd.f32 %v10256_v21, %v14908_v7  ;;  %v14915_v7 = vld [vmem:[#allocation229_spill] sm:$0xff] }
 0x370   :  { %14905 = vst [vmem:[#allocation185_spill] sm:$0xff] %v10681_v26 }
 0x371   :  { %v10674_v27 = vpop.permute.xlu1 %2713  ;;  %2905 = vperm.xlu1 %7655, %v10667_v12   ;;  %14909 = vst [vmem:[#allocation188_spill] sm:$0xff] %v10692_v40 }
 0x372   :  { %v10677_v30 = vpop.permute.xlu0 %2716 }
 0x373   :  { %14902 = vst [vmem:[#allocation216_spill] sm:$0xff] %v10677_v30  ;;  %2908 = vperm.xlu0 %7654, %v10672_v46   ;;  %v14910_v30 = vld [vmem:[#allocation44_spill] sm:$0xff]  ;;  %v10701_v46 = vadd.f32 %v10259_v24, %v14911_v52 }
 0x374   :  { %v14917_v24 = vld [vmem:[#allocation228_spill] sm:$0xff] }
 0x375   :  { %v10684_v18 = vpop.permute.xlu1 %2719  ;;  %2911 = vperm.xlu1 %7655, %v10681_v26   ;;  %14912 = vst [vmem:[#allocation220_spill] sm:$0xff] %v10701_v46  ;;  %v14913_v26 = vld [vmem:[#allocation224_spill] sm:$0xff]  ;;  %v10720_v52 = vadd.f32 %v10284_v56, %v14917_v24  ;;  %v14923_v24 = vld [vmem:[#allocation238_spill] sm:$0xff] }
 0x376   :  { %v10687_v44 = vpop.permute.xlu0 %2722 }
 0x377   :  { %14906 = vst [vmem:[#allocation214_spill] sm:$0xff] %v10687_v44  ;;  %2914 = vperm.xlu0 %7654, %v14907_v59   ;;  %v10706_v44 = vadd.f32 %v10270_v10, %v14913_v26  ;;  %14918 = vst [vmem:[#allocation227_spill] sm:$0xff] %v10720_v52  ;;  %v14919_v26 = vld [vmem:[#allocation234_spill] sm:$0xff] }
 0x379   :  { %v10694_v12 = vpop.permute.xlu1 %2725  ;;  %2917 = vperm.xlu1 %7655, %v14910_v30   ;;  %14914 = vst [vmem:[#allocation189_spill] sm:$0xff] %v10706_v44  ;;  %v10715_v30 = vadd.f32 %v10273_v8, %v14915_v7  ;;  %v14921_v8 = vld [vmem:[#allocation232_spill] sm:$0xff] }
 0x37a   :  { %v10697_v25 = vpop.permute.xlu0 %2728  ;;  %v10734_v7 = vadd.f32 %v10298_v5, %v14921_v8  ;;  %v14928_v8 = vld [vmem:[#allocation241_spill] sm:$0xff] }
 0x37b   :  { %2920 = vperm.xlu0 %7654, %v10692_v40   ;;  %14916 = vst [vmem:[#allocation221_spill] sm:$0xff] %v10715_v30 }
 0x37c   :  { %14922 = vst [vmem:[#allocation229_spill] sm:$0xff] %v10734_v7 }
 0x37d   :  { %v10708_v59 = vpop.permute.xlu1 %2731  ;;  %2923 = vperm.xlu1 %7655, %v10701_v46   ;;  %v10729_v46 = vadd.f32 %v10287_v37, %v14919_v26  ;;  %v14925_v37 = vld [vmem:[#allocation236_spill] sm:$0xff] }
 0x37e   :  { %v10711_v21 = vpop.permute.xlu0 %2734  ;;  %v10748_v26 = vadd.f32 %v10312_v22, %v14925_v37  ;;  %v14932_v37 = vld [vmem:[#allocation246_spill] sm:$0xff] }
 0x37f   :  { %2926 = vperm.xlu0 %7654, %v10706_v44   ;;  %14920 = vst [vmem:[#allocation224_spill] sm:$0xff] %v10729_v46 }
 0x380   :  { %14926 = vst [vmem:[#allocation234_spill] sm:$0xff] %v10748_v26 }
 0x381   :  { %v10722_v40 = vpop.permute.xlu1 %2737  ;;  %2929 = vperm.xlu1 %7655, %v10715_v30   ;;  %v10743_v30 = vadd.f32 %v10301_v11, %v14923_v24  ;;  %v14930_v11 = vld [vmem:[#allocation240_spill] sm:$0xff] }
 0x382   :  { %v10725_v10 = vpop.permute.xlu0 %2740  ;;  %v10762_v24 = vadd.f32 %v10326_v36, %v14930_v11  ;;  %v14936_v11 = vld [vmem:[#allocation251_spill] sm:$0xff] }
 0x383   :  { %2932 = vperm.xlu0 %7654, %v10720_v52   ;;  %14924 = vst [vmem:[#allocation228_spill] sm:$0xff] %v10743_v30 }
 0x384   :  { %14931 = vst [vmem:[#allocation236_spill] sm:$0xff] %v10762_v24 }
 0x385   :  { %v10736_v44 = vpop.permute.xlu1 %2743  ;;  %2935 = vperm.xlu1 %7655, %v10729_v46   ;;  %v10757_v46 = vadd.f32 %v10315_v29, %v14928_v8  ;;  %v14934_v29 = vld [vmem:[#allocation245_spill] sm:$0xff] }
 0x386   :  { %v10739_v56 = vpop.permute.xlu0 %2746  ;;  %v10776_v8 = vadd.f32 %v10340_v4, %v14934_v29  ;;  %v14940_v29 = vld [vmem:[#allocation253_spill] sm:$0xff] }
 0x387   :  { %2938 = vperm.xlu0 %7654, %v10734_v7   ;;  %14929 = vst [vmem:[#allocation238_spill] sm:$0xff] %v10757_v46 }
 0x388   :  { %14935 = vst [vmem:[#allocation240_spill] sm:$0xff] %v10776_v8 }
 0x389   :  { %v10750_v52 = vpop.permute.xlu1 %2749  ;;  %2941 = vperm.xlu1 %7655, %v10743_v30   ;;  %v10771_v30 = vadd.f32 %v10329_v53, %v14932_v37  ;;  %v14938_v53 = vld [vmem:[#allocation250_spill] sm:$0xff] }
 0x38a   :  { %v10753_v5 = vpop.permute.xlu0 %2752  ;;  %v10790_v37 = vadd.f32 %v10354_v13, %v14938_v53  ;;  %v14944_v53 = vld [vmem:[#allocation255_spill] sm:$0xff] }
 0x38b   :  { %14927 = vst [vmem:[#allocation232_spill] sm:$0xff] %v10753_v5  ;;  %2944 = vperm.xlu0 %7654, %v10748_v26   ;;  %14933 = vst [vmem:[#allocation241_spill] sm:$0xff] %v10771_v30  ;;  %v15082_v5 = vld [vmem:[#allocation216_spill] sm:$0xff] }
 0x38c   :  { %14939 = vst [vmem:[#allocation245_spill] sm:$0xff] %v10790_v37 }
 0x38d   :  { %v10764_v7 = vpop.permute.xlu1 %2755  ;;  %2947 = vperm.xlu1 %7655, %v10757_v46   ;;  %v10785_v46 = vadd.f32 %v10343_v49, %v14936_v11  ;;  %v14942_v49 = vld [vmem:[#allocation252_spill] sm:$0xff] }
 0x38e   :  { %v10767_v22 = vpop.permute.xlu0 %2758  ;;  %v10804_v11 = vadd.f32 %v10368_v15, %v14942_v49  ;;  %v14948_v49 = vld [vmem:[#allocation257_spill] sm:$0xff] }
 0x38f   :  { %2950 = vperm.xlu0 %7654, %v10762_v24   ;;  %14937 = vst [vmem:[#allocation246_spill] sm:$0xff] %v10785_v46 }
 0x390   :  { %14943 = vst [vmem:[#allocation250_spill] sm:$0xff] %v10804_v11 }
 0x391   :  { %v10778_v26 = vpop.permute.xlu1 %2761  ;;  %2953 = vperm.xlu1 %7655, %v10771_v30   ;;  %v10799_v30 = vadd.f32 %v10357_v3, %v14940_v29  ;;  %v14946_v3 = vld [vmem:[#allocation254_spill] sm:$0xff] }
 0x392   :  { %v10781_v36 = vpop.permute.xlu0 %2764  ;;  %v10818_v29 = vadd.f32 %v10382_v51, %v14946_v3  ;;  %v14952_v3 = vld [vmem:[#allocation259_spill] sm:$0xff] }
 0x393   :  { %2956 = vperm.xlu0 %7654, %v10776_v8   ;;  %14941 = vst [vmem:[#allocation251_spill] sm:$0xff] %v10799_v30 }
 0x394   :  { %14947 = vst [vmem:[#allocation252_spill] sm:$0xff] %v10818_v29 }
 0x395   :  { %v10792_v24 = vpop.permute.xlu1 %2767  ;;  %2959 = vperm.xlu1 %7655, %v10785_v46   ;;  %v10813_v46 = vadd.f32 %v10371_v33, %v14944_v53  ;;  %v14950_v33 = vld [vmem:[#allocation256_spill] sm:$0xff] }
 0x396   :  { %v10795_v4 = vpop.permute.xlu0 %2770  ;;  %v10832_v53 = vadd.f32 %v10396_v61, %v14950_v33  ;;  %v14957_v33 = vld [vmem:[#allocation261_spill] sm:$0xff] }
 0x397   :  { %2962 = vperm.xlu0 %7654, %v10790_v37   ;;  %14945 = vst [vmem:[#allocation253_spill] sm:$0xff] %v10813_v46 }
 0x398   :  { %14951 = vst [vmem:[#allocation254_spill] sm:$0xff] %v10832_v53 }
 0x399   :  { %v10806_v8 = vpop.permute.xlu1 %2773  ;;  %2965 = vperm.xlu1 %7655, %v10799_v30   ;;  %v10827_v30 = vadd.f32 %v10385_v38, %v14948_v49  ;;  %v14954_v38 = vld [vmem:[#allocation258_spill] sm:$0xff] }
 0x39a   :  { %v10809_v13 = vpop.permute.xlu0 %2776  ;;  %v10846_v49 = vadd.f32 %v10410_v63, %v14954_v38  ;;  %v14963_v38 = vld [vmem:[#allocation262_spill] sm:$0xff] }
 0x39b   :  { %2968 = vperm.xlu0 %7654, %v10804_v11   ;;  %14949 = vst [vmem:[#allocation255_spill] sm:$0xff] %v10827_v30 }
 0x39c   :  { %14955 = vst [vmem:[#allocation256_spill] sm:$0xff] %v10846_v49 }
 0x39d   :  { %v10820_v37 = vpop.permute.xlu1 %2779  ;;  %2971 = vperm.xlu1 %7655, %v10813_v46   ;;  %v10841_v46 = vadd.f32 %v10399_v43, %v14952_v3  ;;  %v14959_v43 = vld [vmem:[#allocation260_spill] sm:$0xff] }
 0x39e   :  { %v10823_v15 = vpop.permute.xlu0 %2782  ;;  %v10860_v3 = vadd.f32 %v10424_v35, %v14959_v43  ;;  %v14967_v43 = vld [vmem:[#allocation265_spill] sm:$0xff] }
 0x39f   :  { %2974 = vperm.xlu0 %7654, %v10818_v29   ;;  %14953 = vst [vmem:[#allocation257_spill] sm:$0xff] %v10841_v46 }
 0x3a0   :  { %14960 = vst [vmem:[#allocation261_spill] sm:$0xff] %v10860_v3 }
 0x3a1   :  { %v10834_v11 = vpop.permute.xlu1 %2785  ;;  %2977 = vperm.xlu1 %7655, %v10827_v30   ;;  %v10855_v30 = vadd.f32 %v10413_v58, %v14957_v33  ;;  %v14965_v58 = vld [vmem:[#allocation25_spill] sm:$0xff] }
 0x3a2   :  { %v10837_v51 = vpop.permute.xlu0 %2788  ;;  %v10874_v33 = vadd.f32 %v10438_v60, %v14965_v58  ;;  %v14971_v58 = vld [vmem:[#allocation267_spill] sm:$0xff] }
 0x3a3   :  { %2980 = vperm.xlu0 %7654, %v10832_v53   ;;  %14958 = vst [vmem:[#allocation258_spill] sm:$0xff] %v10855_v30 }
 0x3a4   :  { %14966 = vst [vmem:[#allocation25_spill] sm:$0xff] %v10874_v33 }
 0x3a5   :  { %v10848_v29 = vpop.permute.xlu1 %2791  ;;  %2983 = vperm.xlu1 %7655, %v10841_v46   ;;  %v10869_v46 = vadd.f32 %v10427_v45, %v14963_v38  ;;  %v14969_v45 = vld [vmem:[#allocation263_spill] sm:$0xff] }
 0x3a6   :  { %v10851_v61 = vpop.permute.xlu0 %2794  ;;  %v10888_v38 = vadd.f32 %v10452_v32, %v14969_v45  ;;  %v14975_v45 = vld [vmem:[#allocation269_spill] sm:$0xff] }
 0x3a7   :  { %14956 = vst [vmem:[#allocation259_spill] sm:$0xff] %v10851_v61  ;;  %2986 = vperm.xlu0 %7654, %v10846_v49   ;;  %14964 = vst [vmem:[#allocation262_spill] sm:$0xff] %v10869_v46 }
 0x3a8   :  { %14970 = vst [vmem:[#allocation263_spill] sm:$0xff] %v10888_v38 }
 0x3a9   :  { %v10862_v53 = vpop.permute.xlu1 %2797  ;;  %2989 = vperm.xlu1 %7655, %v10855_v30   ;;  %v10883_v30 = vadd.f32 %v10441_v17, %v14967_v43  ;;  %v14973_v17 = vld [vmem:[#allocation266_spill] sm:$0xff] }
 0x3aa   :  { %14961 = vst [vmem:[#allocation260_spill] sm:$0xff] %v10862_v53  ;;  %v10865_v63 = vpop.permute.xlu0 %2800  ;;  %v10902_v43 = vadd.f32 %v10466_v54, %v14973_v17  ;;  %v14979_v17 = vld [vmem:[#allocation271_spill] sm:$0xff] }
 0x3ab   :  { %14962 = vst [vmem:[#allocation296_spill] sm:$0xff] %v10865_v63  ;;  %2992 = vperm.xlu0 %7654, %v10860_v3   ;;  %14968 = vst [vmem:[#allocation265_spill] sm:$0xff] %v10883_v30 }
 0x3ac   :  { %14974 = vst [vmem:[#allocation266_spill] sm:$0xff] %v10902_v43 }
 0x3ad   :  { %v10876_v49 = vpop.permute.xlu1 %2803  ;;  %2995 = vperm.xlu1 %7655, %v10869_v46   ;;  %v10897_v46 = vadd.f32 %v10455_v48, %v14971_v58  ;;  %v14977_v48 = vld [vmem:[#allocation268_spill] sm:$0xff] }
 0x3ae   :  { %v10879_v35 = vpop.permute.xlu0 %2806  ;;  %v10916_v58 = vadd.f32 %v10480_v55, %v14977_v48  ;;  %v14983_v48 = vld [vmem:[#allocation274_spill] sm:$0xff] }
 0x3af   :  { %2998 = vperm.xlu0 %7654, %v10874_v33   ;;  %14972 = vst [vmem:[#allocation267_spill] sm:$0xff] %v10897_v46 }
 0x3b0   :  { %14978 = vst [vmem:[#allocation268_spill] sm:$0xff] %v10916_v58 }
 0x3b1   :  { %v10890_v3 = vpop.permute.xlu1 %2809  ;;  %3001 = vperm.xlu1 %7655, %v10883_v30   ;;  %v10911_v30 = vadd.f32 %v10469_v19, %v14975_v45  ;;  %v14981_v19 = vld [vmem:[#allocation270_spill] sm:$0xff] }
 0x3b2   :  { %v10893_v60 = vpop.permute.xlu0 %2812  ;;  %v10930_v45 = vadd.f32 %v10494_v50, %v14981_v19  ;;  %v14988_v19 = vld [vmem:[#allocation276_spill] sm:$0xff] }
 0x3b3   :  { %3004 = vperm.xlu0 %7654, %v10888_v38   ;;  %14976 = vst [vmem:[#allocation269_spill] sm:$0xff] %v10911_v30 }
 0x3b4   :  { %14982 = vst [vmem:[#allocation270_spill] sm:$0xff] %v10930_v45 }
 0x3b5   :  { %v10904_v33 = vpop.permute.xlu1 %2815  ;;  %3007 = vperm.xlu1 %7655, %v10897_v46   ;;  %v10925_v46 = vadd.f32 %v10483_v41, %v14979_v17  ;;  %v14985_v41 = vld [vmem:[#allocation272_spill] sm:$0xff] }
 0x3b6   :  { %v10907_v32 = vpop.permute.xlu0 %2818  ;;  %v10944_v17 = vadd.f32 %v10508_v57, %v14985_v41  ;;  %v14994_v41 = vld [vmem:[#allocation278_spill] sm:$0xff] }
 0x3b7   :  { %3010 = vperm.xlu0 %7654, %v10902_v43   ;;  %14980 = vst [vmem:[#allocation271_spill] sm:$0xff] %v10925_v46 }
 0x3b8   :  { %14986 = vst [vmem:[#allocation272_spill] sm:$0xff] %v10944_v17 }
 0x3b9   :  { %v10918_v38 = vpop.permute.xlu1 %2821  ;;  %3013 = vperm.xlu1 %7655, %v10911_v30   ;;  %v10939_v30 = vadd.f32 %v10497_v20, %v14983_v48  ;;  %v14990_v20 = vld [vmem:[#allocation275_spill] sm:$0xff] }
 0x3ba   :  { %v10921_v54 = vpop.permute.xlu0 %2824  ;;  %v10958_v48 = vadd.f32 %v10522_v16, %v14990_v20  ;;  %v15000_v20 = vld [vmem:[#allocation280_spill] sm:$0xff] }
 0x3bb   :  { %3016 = vperm.xlu0 %7654, %v10916_v58   ;;  %14984 = vst [vmem:[#allocation274_spill] sm:$0xff] %v10939_v30 }
 0x3bc   :  { %14991 = vst [vmem:[#allocation275_spill] sm:$0xff] %v10958_v48 }
 0x3bd   :  { %v10932_v43 = vpop.permute.xlu1 %2827  ;;  %3019 = vperm.xlu1 %7655, %v10925_v46   ;;  %v10953_v46 = vadd.f32 %v10511_v39, %v14988_v19  ;;  %v14996_v39 = vld [vmem:[#allocation277_spill] sm:$0xff] }
 0x3be   :  { %v10935_v55 = vpop.permute.xlu0 %2830  ;;  %v10972_v19 = vadd.f32 %v10536_v6, %v14996_v39  ;;  %v15004_v39 = vld [vmem:[#allocation283_spill] sm:$0xff] }
 0x3bf   :  { %3022 = vperm.xlu0 %7654, %v10930_v45   ;;  %14989 = vst [vmem:[#allocation276_spill] sm:$0xff] %v10953_v46 }
 0x3c0   :  { %14997 = vst [vmem:[#allocation277_spill] sm:$0xff] %v10972_v19 }
 0x3c1   :  { %v10946_v58 = vpop.permute.xlu1 %2833  ;;  %3025 = vperm.xlu1 %7655, %v10939_v30   ;;  %v10967_v30 = vadd.f32 %v10525_v0, %v14994_v41  ;;  %v15002_v0 = vld [vmem:[#allocation279_spill] sm:$0xff] }
 0x3c2   :  { %v10949_v50 = vpop.permute.xlu0 %2836  ;;  %v10986_v41 = vadd.f32 %v10550_v1, %v15002_v0  ;;  %v15008_v0 = vld [vmem:[#allocation285_spill] sm:$0xff] }
 0x3c3   :  { %14987 = vst [vmem:[#allocation297_spill] sm:$0xff] %v10949_v50  ;;  %3028 = vperm.xlu0 %7654, %v10944_v17   ;;  %14995 = vst [vmem:[#allocation278_spill] sm:$0xff] %v10967_v30 }
 0x3c4   :  { %15003 = vst [vmem:[#allocation279_spill] sm:$0xff] %v10986_v41 }
 0x3c5   :  { %v10960_v45 = vpop.permute.xlu1 %2839  ;;  %3031 = vperm.xlu1 %7655, %v10953_v46   ;;  %v10981_v46 = vadd.f32 %v10539_v2, %v15000_v20  ;;  %v15006_v2 = vld [vmem:[#allocation281_spill] sm:$0xff] }
 0x3c6   :  { %14992 = vst [vmem:[#allocation298_spill] sm:$0xff] %v10960_v45  ;;  %v10963_v57 = vpop.permute.xlu0 %2842  ;;  %v11000_v20 = vadd.f32 %v10564_v31, %v15006_v2  ;;  %v15013_v2 = vld [vmem:[#allocation287_spill] sm:$0xff] }
 0x3c7   :  { %14993 = vst [vmem:[#allocation299_spill] sm:$0xff] %v10963_v57  ;;  %3034 = vperm.xlu0 %7654, %v10958_v48   ;;  %15001 = vst [vmem:[#allocation280_spill] sm:$0xff] %v10981_v46 }
 0x3c8   :  { %15007 = vst [vmem:[#allocation281_spill] sm:$0xff] %v11000_v20 }
 0x3c9   :  { %v10974_v17 = vpop.permute.xlu1 %2845  ;;  %3037 = vperm.xlu1 %7655, %v10967_v30   ;;  %v10995_v30 = vadd.f32 %v10553_v9, %v15004_v39  ;;  %v15010_v9 = vld [vmem:[#allocation284_spill] sm:$0xff] }
 0x3ca   :  { %14998 = vst [vmem:[#allocation300_spill] sm:$0xff] %v10974_v17  ;;  %v10977_v16 = vpop.permute.xlu0 %2848  ;;  %v11014_v39 = vadd.f32 %v10578_v62, %v15010_v9  ;;  %v15019_v9 = vld [vmem:[#allocation289_spill] sm:$0xff] }
 0x3cb   :  { %14999 = vst [vmem:[#allocation301_spill] sm:$0xff] %v10977_v16  ;;  %3040 = vperm.xlu0 %7654, %v10972_v19   ;;  %15005 = vst [vmem:[#allocation283_spill] sm:$0xff] %v10995_v30 }
 0x3cc   :  { %15011 = vst [vmem:[#allocation284_spill] sm:$0xff] %v11014_v39 }
 0x3cd   :  { %v10988_v48 = vpop.permute.xlu1 %2851  ;;  %3043 = vperm.xlu1 %7655, %v10981_v46   ;;  %v11009_v46 = vadd.f32 %v10567_v34, %v15008_v0  ;;  %v15015_v34 = vld [vmem:[#allocation286_spill] sm:$0xff] }
 0x3ce   :  { %v10991_v6 = vpop.permute.xlu0 %2854  ;;  %v11028_v0 = vadd.f32 %v10592_v14, %v15015_v34  ;;  %v15025_v34 = vld [vmem:[#allocation291_spill] sm:$0xff] }
 0x3cf   :  { %3046 = vperm.xlu0 %7654, %v10986_v41   ;;  %15009 = vst [vmem:[#allocation285_spill] sm:$0xff] %v11009_v46 }
 0x3d0   :  { %15016 = vst [vmem:[#allocation286_spill] sm:$0xff] %v11028_v0 }
 0x3d1   :  { %v11002_v19 = vpop.permute.xlu1 %2857  ;;  %3049 = vperm.xlu1 %7655, %v10995_v30   ;;  %v11023_v30 = vadd.f32 %v10581_v47, %v15013_v2  ;;  %v15021_v47 = vld [vmem:[#allocation288_spill] sm:$0xff] }
 0x3d2   :  { %v11005_v1 = vpop.permute.xlu0 %2860  ;;  %v11042_v2 = vadd.f32 %v10606_v23, %v15021_v47  ;;  %v15033_v47 = vld [vmem:[#allocation293_spill] sm:$0xff] }
 0x3d3   :  { %3052 = vperm.xlu0 %7654, %v11000_v20   ;;  %15014 = vst [vmem:[#allocation287_spill] sm:$0xff] %v11023_v30 }
 0x3d4   :  { %15022 = vst [vmem:[#allocation288_spill] sm:$0xff] %v11042_v2 }
 0x3d5   :  { %v11016_v41 = vpop.permute.xlu1 %2863  ;;  %3055 = vperm.xlu1 %7655, %v11009_v46   ;;  %v11037_v46 = vadd.f32 %v10595_v42, %v15019_v9  ;;  %v15028_v42 = vld [vmem:[#allocation290_spill] sm:$0xff] }
 0x3d6   :  { %v11019_v31 = vpop.permute.xlu0 %2866  ;;  %v15029_v9 = vld [vmem:[#allocation198_spill] sm:$0xff] }
 0x3d7   :  { %15012 = vst [vmem:[#allocation302_spill] sm:$0xff] %v11019_v31  ;;  %3058 = vperm.xlu0 %7654, %v11014_v39   ;;  %15020 = vst [vmem:[#allocation289_spill] sm:$0xff] %v11037_v46  ;;  %v11056_v17 = vadd.f32 %v15029_v9, %v15028_v42  ;;  %v15041_v9 = vld [vmem:[#allocation295_spill] sm:$0xff] }
 0x3d9   :  { %v11030_v20 = vpop.permute.xlu1 %2869  ;;  %3061 = vperm.xlu1 %7655, %v11023_v30   ;;  %v15026_v30 = vld [vmem:[#allocation157_spill] sm:$0xff] }
 0x3da   :  { %15017 = vst [vmem:[#allocation303_spill] sm:$0xff] %v11030_v20  ;;  %v11033_v62 = vpop.permute.xlu0 %2872  ;;  %v11051_v16 = vadd.f32 %v15026_v30, %v15025_v34  ;;  %15030 = vst [vmem:[#allocation157_spill] sm:$0xff] %v11056_v17  ;;  %v15036_v30 = vld [vmem:[#allocation292_spill] sm:$0xff]  ;;  %v15037_v34 = vld [vmem:[#allocation202_spill] sm:$0xff] }
 0x3db   :  { %15018 = vst [vmem:[#allocation304_spill] sm:$0xff] %v11033_v62  ;;  %3064 = vperm.xlu0 %7654, %v11028_v0  }
 0x3dc   :  { %15027 = vst [vmem:[#allocation291_spill] sm:$0xff] %v11051_v16 }
 0x3dd   :  { %v11044_v39 = vpop.permute.xlu1 %2875  ;;  %3067 = vperm.xlu1 %7655, %v11037_v46   ;;  %v15034_v46 = vld [vmem:[#allocation204_spill] sm:$0xff] }
 0x3de   :  { %15023 = vst [vmem:[#allocation305_spill] sm:$0xff] %v11044_v39  ;;  %v11047_v14 = vpop.permute.xlu0 %2878  ;;  %v11065_v57 = vadd.f32 %v15034_v46, %v15033_v47  ;;  %v15044_v46 = vld [vmem:[#allocation294_spill] sm:$0xff]  ;;  %v15045_v47 = vld [vmem:[#allocation173_spill] sm:$0xff] }
 0x3df   :  { %15024 = vst [vmem:[#allocation306_spill] sm:$0xff] %v11047_v14  ;;  %3070 = vperm.xlu0 %7654, %v11042_v2   ;;  %v11070_v14 = vadd.f32 %v15037_v34, %v15036_v30 }
 0x3e0   :  { %15035 = vst [vmem:[#allocation293_spill] sm:$0xff] %v11065_v57 }
 0x3e1   :  { %v11058_v0 = vpop.permute.xlu1 %2881  ;;  %3073 = vperm.xlu1 %7655, %v11051_v16   ;;  %15038 = vst [vmem:[#allocation204_spill] sm:$0xff] %v11070_v14  ;;  %v15042_v16 = vld [vmem:[#allocation206_spill] sm:$0xff] }
 0x3e2   :  { %15031 = vst [vmem:[#allocation290_spill] sm:$0xff] %v11058_v0  ;;  %v11061_v23 = vpop.permute.xlu0 %2884  ;;  %v11079_v0 = vadd.f32 %v15042_v16, %v15041_v9 }
 0x3e3   :  { %15032 = vst [vmem:[#allocation198_spill] sm:$0xff] %v11061_v23  ;;  %3076 = vperm.xlu0 %7654, %v11056_v17   ;;  %v11084_v23 = vadd.f32 %v15045_v47, %v15044_v46 }
 0x3e4   :  { %15043 = vst [vmem:[#allocation295_spill] sm:$0xff] %v11079_v0 }
 0x3e5   :  { %v11072_v2 = vpop.permute.xlu1 %2887  ;;  %3079 = vperm.xlu1 %7655, %v11065_v57   ;;  %15046 = vst [vmem:[#allocation206_spill] sm:$0xff] %v11084_v23 }
 0x3e6   :  { %15039 = vst [vmem:[#allocation292_spill] sm:$0xff] %v11072_v2  ;;  %v11075_v42 = vpop.permute.xlu0 %2890 }
 0x3e7   :  { %15040 = vst [vmem:[#allocation202_spill] sm:$0xff] %v11075_v42  ;;  %3082 = vperm.xlu0 %7654, %v11070_v14  }
 0x3e9   :  { %v11086_v17 = vpop.permute.xlu1 %2893  ;;  %3085 = vperm.xlu1 %7655, %v11079_v0  }
 0x3ea   :  { %15047 = vst [vmem:[#allocation294_spill] sm:$0xff] %v11086_v17  ;;  %v11089_v30 = vpop.permute.xlu0 %2896 }
 0x3eb   :  { %15048 = vst [vmem:[#allocation173_spill] sm:$0xff] %v11089_v30  ;;  %3088 = vperm.xlu0 %7654, %v11084_v23  }
 0x3ed   :  { %v11092_v34 = vpop.permute.xlu1 %2899 }
 0x3ee   :  { %15049 = vst [vmem:[#allocation307_spill] sm:$0xff] %v11092_v34  ;;  %v11094_v57 = vpop.permute.xlu0 %2902 }
 0x3ef   :  { %15050 = vst [vmem:[#allocation308_spill] sm:$0xff] %v11094_v57 }
 0x3f1   :  { %v11096_v16 = vpop.permute.xlu1 %2905 }
 0x3f2   :  { %15051 = vst [vmem:[#allocation309_spill] sm:$0xff] %v11096_v16  ;;  %v11098_v9 = vpop.permute.xlu0 %2908 }
 0x3f3   :  { %15052 = vst [vmem:[#allocation310_spill] sm:$0xff] %v11098_v9 }
 0x3f5   :  { %v11100_v14 = vpop.permute.xlu1 %2911 }
 0x3f6   :  { %15053 = vst [vmem:[#allocation311_spill] sm:$0xff] %v11100_v14  ;;  %v11102_v46 = vpop.permute.xlu0 %2914 }
 0x3f7   :  { %15054 = vst [vmem:[#allocation312_spill] sm:$0xff] %v11102_v46 }
 0x3f9   :  { %v11104_v47 = vpop.permute.xlu1 %2917 }
 0x3fa   :  { %15055 = vst [vmem:[#allocation313_spill] sm:$0xff] %v11104_v47  ;;  %v11106_v17 = vpop.permute.xlu0 %2920 }
 0x3fb   :  { %15056 = vst [vmem:[#allocation314_spill] sm:$0xff] %v11106_v17 }
 0x3fd   :  { %v11108_v0 = vpop.permute.xlu1 %2923 }
 0x3fe   :  { %15057 = vst [vmem:[#allocation315_spill] sm:$0xff] %v11108_v0  ;;  %v11110_v30 = vpop.permute.xlu0 %2926 }
 0x3ff   :  { %15058 = vst [vmem:[#allocation316_spill] sm:$0xff] %v11110_v30 }
 0x401   :  { %v11112_v23 = vpop.permute.xlu1 %2929 }
 0x402   :  { %15059 = vst [vmem:[#allocation317_spill] sm:$0xff] %v11112_v23  ;;  %v11114_v42 = vpop.permute.xlu0 %2932 }
 0x403   :  { %15060 = vst [vmem:[#allocation318_spill] sm:$0xff] %v11114_v42  ;;  %v15071_v42 = vlaneseq }
 0x405   :  { %v11116_v2 = vpop.permute.xlu1 %2935 }
 0x406   :  { %15061 = vst [vmem:[#allocation319_spill] sm:$0xff] %v11116_v2  ;;  %v11118_v16 = vpop.permute.xlu0 %2938  ;;  %v11137_v2 = vand.u32 127, %v15071_v42 }
 0x407   :  { %15062 = vst [vmem:[#allocation320_spill] sm:$0xff] %v11118_v16 }
 0x408   :  { %v3110_v42 = vadd.s32 4294967272, %v11137_v2 }
 0x409   :  { %v11120_v9 = vpop.permute.xlu1 %2941 }
 0x40a   :  { %15063 = vst [vmem:[#allocation321_spill] sm:$0xff] %v11120_v9  ;;  %v11122_v14 = vpop.permute.xlu0 %2944 }
 0x40b   :  { %15064 = vst [vmem:[#allocation322_spill] sm:$0xff] %v11122_v14  ;;  %v3096_v14 = vadd.s32 4294967288, %v11137_v2 }
 0x40d   :  { %v11124_v46 = vpop.permute.xlu1 %2947 }
 0x40e   :  { %15065 = vst [vmem:[#allocation323_spill] sm:$0xff] %v11124_v46  ;;  %v11126_v47 = vpop.permute.xlu0 %2950  ;;  %v3103_v46 = vadd.s32 4294967280, %v11137_v2 }
 0x40f   :  { %15066 = vst [vmem:[#allocation324_spill] sm:$0xff] %v11126_v47 }
 0x411   :  { %v11128_v17 = vpop.permute.xlu1 %2953 }
 0x412   :  { %15067 = vst [vmem:[#allocation325_spill] sm:$0xff] %v11128_v17  ;;  %v11130_v0 = vpop.permute.xlu0 %2956 }
 0x413   :  { %15068 = vst [vmem:[#allocation326_spill] sm:$0xff] %v11130_v0  ;;  %v15076_v0 = vld [vmem:[#allocation19_spill] sm:$0xff] }
 0x414   :  { %v11150_v57 = vsub.s32 %v3096_v14, %v15076_v0  ;;  %v15079_v14 = vld [vmem:[#allocation179_spill] sm:$0xff]  ;;  %v11171_v63 = vsub.s32 %v3110_v42, %v15076_v0 }
 0x415   :  { %v11132_v30 = vpop.permute.xlu1 %2959 }
 0x416   :  { %15069 = vst [vmem:[#allocation327_spill] sm:$0xff] %v11132_v30  ;;  %v11134_v23 = vpop.permute.xlu0 %2962  ;;  %v3208_v50 = vrot.slane %v10767_v22, %v11150_v57  ;;  %v3114_v53 = vrot.slane %v15082_v5, %v11171_v63 }
 0x417   :  { %15070 = vst [vmem:[#allocation328_spill] sm:$0xff] %v11134_v23  ;;  %v11154_v23 = vsub.s32 %v11137_v2, %v15076_v0 }
 0x419   :  { %v11139_v16 = vpop.permute.xlu1 %2965  ;;  %v3095_v39 = vrot.slane %v10663_v28, %v11154_v23  ;;  %v3145_v28 = vadd.s32 4294967232, %v11137_v2 }
 0x41a   :  { %15072 = vst [vmem:[#allocation329_spill] sm:$0xff] %v11139_v16  ;;  %v11141_v9 = vpop.permute.xlu0 %2968  ;;  %v11158_v16 = vsub.s32 %v3103_v46, %v15076_v0 }
 0x41b   :  { %15073 = vst [vmem:[#allocation330_spill] sm:$0xff] %v11141_v9  ;;  %v3117_v9 = vadd.s32 4294967264, %v11137_v2  ;;  %v11210_v5 = vsub.s32 %v3145_v28, %v15076_v0 }
 0x41c   :  { %v3107_v46 = vrot.slane %v10674_v27, %v11158_v16  ;;  %v3152_v27 = vadd.s32 4294967224, %v11137_v2 }
 0x41d   :  { %v11145_v47 = vpop.permute.xlu1 %2971 }
 0x41e   :  { %15074 = vst [vmem:[#allocation331_spill] sm:$0xff] %v11145_v47  ;;  %v11147_v17 = vpop.permute.xlu0 %2974  ;;  %v3100_v47 = vrot.slane %v15079_v14, %v11150_v57  ;;  %v3138_v14 = vadd.s32 4294967240, %v11137_v2 }
 0x41f   :  { %15075 = vst [vmem:[#allocation332_spill] sm:$0xff] %v11147_v17  ;;  %v3124_v17 = vadd.s32 4294967256, %v11137_v2 }
 0x420   :  { %v11207_v22 = vsub.s32 %v3138_v14, %v15076_v0  ;;  %v15085_v14 = vld [vmem:[#allocation214_spill] sm:$0xff] }
 0x421   :  { %v11161_v30 = vpop.permute.xlu1 %2977  ;;  %v11186_v42 = vsub.s32 %v3124_v17, %v15076_v0 }
 0x422   :  { %15077 = vst [vmem:[#allocation19_spill] sm:$0xff] %v11161_v30  ;;  %v11163_v34 = vpop.permute.xlu0 %2980  ;;  %v11176_v30 = vsub.s32 %v3117_v9, %v15076_v0  ;;  %v3204_v9 = vrot.slane %v10764_v7, %v11154_v23 }
 0x423   :  { %15078 = vst [vmem:[#allocation333_spill] sm:$0xff] %v11163_v34  ;;  %v3131_v34 = vadd.s32 4294967248, %v11137_v2  ;;  %v3128_v28 = vrot.slane %v15085_v14, %v11186_v42 }
 0x424   :  { %v3121_v20 = vrot.slane %v10684_v18, %v11176_v30  ;;  %v3166_v18 = vadd.s32 4294967208, %v11137_v2 }
 0x425   :  { %v11179_v62 = vpop.permute.xlu1 %2983  ;;  %v11202_v61 = vsub.s32 %v3131_v34, %v15076_v0  ;;  %v3209_v34 = vsel %vm3101_vm1, %v3208_v50, %v3204_v9  ;;  %v3283_v50 = vrot.slane %v10876_v49, %v11154_v23 }
 0x426   :  { %15080 = vst [vmem:[#allocation179_spill] sm:$0xff] %v11179_v62  ;;  %v11183_v45 = vpop.permute.xlu0 %2986  ;;  %v3102_v62 = vsel %vm3101_vm1, %v3100_v47, %v3095_v39  ;;  %v3218_v47 = vrot.slane %v10781_v36, %v11171_v63  ;;  %v3287_v36 = vrot.slane %v10879_v35, %v11150_v57  ;;  %v11247_v49 = vsub.s32 %v3166_v18, %v15076_v0 }
 0x427   :  { %15081 = vst [vmem:[#allocation334_spill] sm:$0xff] %v11183_v45  ;;  %v3213_v45 = vrot.slane %v10778_v26, %v11158_v16  ;;  %v3109_v17 = vsel %vm3108_vm2, %v3107_v46, %v3102_v62  ;;  %v3159_v26 = vadd.s32 4294967216, %v11137_v2  ;;  %v11216_v62 = vsub.s32 %v3152_v27, %v15076_v0 }
 0x428   :  { %v3116_v46 = vsel %vm3115_vm3, %v3114_v53, %v3109_v17  ;;  %v3135_v31 = vrot.slane %v10694_v12, %v11202_v61  ;;  %v3292_v12 = vrot.slane %v10890_v3, %v11158_v16  ;;  %v3187_v35 = vadd.s32 4294967184, %v11137_v2 }
 0x429   :  { %v11204_v7 = vpop.permute.xlu1 %2989  ;;  %v3123_v27 = vsel %vm3122_vm4, %v3121_v20, %v3116_v46  ;;  %v11238_v9 = vsub.s32 %v3159_v26, %v15076_v0  ;;  %v3228_v26 = vrot.slane %v10795_v4, %v11186_v42  ;;  %v3142_v46 = vrot.slane %v10697_v25, %v11207_v22 }
 0x42a   :  { %15083 = vst [vmem:[#allocation216_spill] sm:$0xff] %v11204_v7  ;;  %v11213_v39 = vpop.permute.xlu0 %2992  ;;  %v3214_v7 = vsel %vm3108_vm2, %v3213_v45, %v3209_v34  ;;  %v3180_v45 = vadd.s32 4294967192, %v11137_v2  ;;  %v3130_v34 = vsel %vm14276_vm5, %v3128_v28, %v3123_v27  ;;  %v3233_v3 = vrot.slane %v10806_v8, %v11202_v61 }
 0x42b   :  { %15084 = vst [vmem:[#allocation335_spill] sm:$0xff] %v11213_v39  ;;  %v3223_v39 = vrot.slane %v10792_v24, %v11176_v30  ;;  %v3173_v24 = vadd.s32 4294967200, %v11137_v2  ;;  %v3219_v17 = vsel %vm3115_vm3, %v3218_v47, %v3214_v7  ;;  %v3137_v18 = vsel %vm14277_vm6, %v3135_v31, %v3130_v34 }
 0x42c   :  { %v3288_v7 = vsel %vm3101_vm1, %v3287_v36, %v3283_v50  ;;  %v3297_v4 = vrot.slane %v10893_v60, %v11171_v63  ;;  %v11279_v28 = vsub.s32 %v3187_v35, %v15076_v0  ;;  %v3194_v60 = vadd.s32 4294967176, %v11137_v2 }
 0x42d   :  { %v11235_v53 = vpop.permute.xlu1 %2995  ;;  %v3224_v14 = vsel %vm3122_vm4, %v3223_v39, %v3219_v17  ;;  %v11268_v25 = vsub.s32 %v3173_v24, %v15076_v0  ;;  %v11271_v39 = vsub.s32 %v3180_v45, %v15076_v0  ;;  %v3293_v8 = vsel %vm3108_vm2, %v3292_v12, %v3288_v7 }
 0x42e   :  { %v11244_v20 = vpop.permute.xlu0 %2998  ;;  %15087 = vst [vmem:[#allocation336_spill] sm:$0xff] %v11279_v28  ;;  %v3229_v27 = vsel %vm14276_vm5, %v3228_v26, %v3224_v14  ;;  %v3238_v50 = vrot.slane %v10809_v13, %v11207_v22  ;;  %v3144_v36 = vsel %vm3143_vm7, %v3142_v46, %v3137_v18  ;;  %v3156_v24 = vrot.slane %v10711_v21, %v11216_v62 }
 0x42f   :  { %15086 = vst [vmem:[#allocation214_spill] sm:$0xff] %v11244_v20  ;;  %v3149_v20 = vrot.slane %v10708_v59, %v11210_v5  ;;  %v3302_v59 = vrot.slane %v10904_v33, %v11176_v30  ;;  %v3234_v45 = vsel %vm14277_vm6, %v3233_v3, %v3229_v27  ;;  %v3243_v33 = vrot.slane %v10820_v37, %v11210_v5 }
 0x430   :  { %v3163_v2 = vrot.slane %v10722_v40, %v11238_v9  ;;  %v3298_v35 = vsel %vm3115_vm3, %v3297_v4, %v3293_v8  ;;  %v3307_v13 = vrot.slane %v10907_v32, %v11186_v42  ;;  %v3312_v26 = vrot.slane %v10918_v38, %v11202_v61 }
 0x431   :  { %v11265_v47 = vpop.permute.xlu1 %3001  ;;  %v3151_v12 = vsel %vm3150_vm8, %v3149_v20, %v3144_v36  ;;  %v3303_v21 = vsel %vm3122_vm4, %v3302_v59, %v3298_v35  ;;  %v3362_v37 = vrot.slane %v10988_v48, %v11154_v23  ;;  %v3366_v40 = vrot.slane %v10991_v6, %v11150_v57 }
 0x432   :  { %v11276_v31 = vpop.permute.xlu0 %3004  ;;  %v11309_v34 = vsub.s32 %v3194_v60, %v15076_v0  ;;  %v3239_v32 = vsel %vm3143_vm7, %v3238_v50, %v3234_v45  ;;  %v3248_v46 = vrot.slane %v10823_v15, %v11216_v62  ;;  %v3371_v14 = vrot.slane %v11002_v19, %v11158_v16 }
 0x433   :  { %v3158_v38 = vsel %vm14279_vm9, %v3156_v24, %v3151_v12  ;;  %v3170_v48 = vrot.slane %v10725_v10, %v11247_v49  ;;  %v3244_v6 = vsel %vm3150_vm8, %v3243_v33, %v3239_v32  ;;  %v3253_v3 = vrot.slane %v10834_v11, %v11238_v9 }
 0x434   :  { %15088 = vst [vmem:[#allocation337_spill] sm:$0xff] %v11309_v34  ;;  %v3165_v0 = vsel %vm14278_vm10, %v3163_v2, %v3158_v38  ;;  %v3177_v18 = vrot.slane %v10736_v44, %v11268_v25  ;;  %v3308_v15 = vsel %vm14276_vm5, %v3307_v13, %v3303_v21  ;;  %v3317_v19 = vrot.slane %v10921_v54, %v11207_v22  ;;  %v15090_v21 = vld [vmem:[#allocation259_spill] sm:$0xff] }
 0x435   :  { %v11297_v17 = vpop.permute.xlu1 %3007  ;;  %v3313_v4 = vsel %vm14277_vm6, %v3312_v26, %v3308_v15  ;;  %v3322_v10 = vrot.slane %v10932_v43, %v11210_v5  ;;  %v3367_v8 = vsel %vm3101_vm1, %v3366_v40, %v3362_v37  ;;  %v3376_v11 = vrot.slane %v11005_v1, %v11171_v63  ;;  %v15091_v37 = vld [vmem:[#allocation303_spill] sm:$0xff] }
 0x436   :  { %v11306_v20 = vpop.permute.xlu0 %3010  ;;  %v3249_v44 = vsel %vm14279_vm9, %v3248_v46, %v3244_v6  ;;  %v3258_v60 = vrot.slane %v10837_v51, %v11247_v49  ;;  %v3372_v54 = vsel %vm3108_vm2, %v3371_v14, %v3367_v8  ;;  %v3381_v27 = vrot.slane %v11016_v41, %v11176_v30  ;;  %v15092_v46 = vld [vmem:[#allocation260_spill] sm:$0xff] }
 0x437   :  { %v3172_v50 = vsel %vm14280_vm11, %v3170_v48, %v3165_v0  ;;  %v3184_v43 = vrot.slane %v10739_v56, %v11271_v39  ;;  %v3254_v36 = vsel %vm14278_vm10, %v3253_v3, %v3249_v44  ;;  %v3263_v1 = vrot.slane %v10848_v29, %v11268_v25  ;;  %v15089_v29 = vld [vmem:[#allocation302_spill] sm:$0xff]  ;;  %v15093_v48 = vld [vmem:[#allocation232_spill] sm:$0xff]  ;;  %v15094_v0 = vld [vmem:[#allocation297_spill] sm:$0xff] }
 0x438   :  { %v3179_v24 = vsel %vm3178_vm12, %v3177_v18, %v3172_v50  ;;  %v3191_v51 = vrot.slane %v10750_v52, %v11279_v28  ;;  %v3318_v45 = vsel %vm3143_vm7, %v3317_v19, %v3313_v4  ;;  %v3327_v41 = vrot.slane %v10935_v55, %v11216_v62  ;;  %v15095_v4 = vld [vmem:[#allocation298_spill] sm:$0xff] }
 0x439   :  { %v11328_v7 = vpop.permute.xlu1 %3013  ;;  %v3323_v12 = vsel %vm3150_vm8, %v3322_v10, %v3318_v45  ;;  %v3332_v56 = vrot.slane %v10946_v58, %v11238_v9  ;;  %v3377_v2 = vsel %vm3115_vm3, %v3376_v11, %v3372_v54  ;;  %v3386_v35 = vrot.slane %v15089_v29, %v11186_v42  ;;  %v15096_v11 = vld [vmem:[#allocation304_spill] sm:$0xff] }
 0x43a   :  { %v11336_v59 = vpop.permute.xlu0 %3016  ;;  %v3259_v52 = vsel %vm14280_vm11, %v3258_v60, %v3254_v36  ;;  %v3268_v26 = vrot.slane %v15090_v21, %v11271_v39  ;;  %v3382_v55 = vsel %vm3122_vm4, %v3381_v27, %v3377_v2  ;;  %v3391_v40 = vrot.slane %v15091_v37, %v11202_v61  ;;  %v15097_v27 = vld [vmem:[#allocation296_spill] sm:$0xff]  ;;  %v15098_v36 = vld [vmem:[#allocation305_spill] sm:$0xff]  ;;  %v15101_v2 = vld [vmem:[#allocation299_spill] sm:$0xff] }
 0x43b   :  { %v3186_v32 = vsel %vm3185_vm13, %v3184_v43, %v3179_v24  ;;  %v3264_v58 = vsel %vm3178_vm12, %v3263_v1, %v3259_v52  ;;  %v3273_v14 = vrot.slane %v15092_v46, %v11279_v28  ;;  %v3198_v6 = vrot.slane %v15093_v48, %v11309_v34 }
 0x43c   :  { %v3193_v38 = vsel %vm3192_vm14, %v3191_v51, %v3186_v32  ;;  %v3328_v3 = vsel %vm14279_vm9, %v3327_v41, %v3323_v12  ;;  %v3337_v18 = vrot.slane %v15094_v0, %v11247_v49  ;;  %v3342_v10 = vrot.slane %v15095_v4, %v11268_v25  ;;  %v15099_v51 = vld [vmem:[#allocation307_spill] sm:$0xff]  ;;  %v15100_v41 = vld [vmem:[#allocation308_spill] sm:$0xff] }
 0x43d   :  { %v11356_v33 = vpop.permute.xlu1 %3019  ;;  %v3333_v19 = vsel %vm14278_vm10, %v3332_v56, %v3328_v3  ;;  %v3387_v8 = vsel %vm14276_vm5, %v3386_v35, %v3382_v55  ;;  %v3396_v44 = vrot.slane %v15096_v11, %v11207_v22  ;;  %v3269_v54 = vsel %vm3185_vm13, %v3268_v26, %v3264_v58  ;;  %v15102_v35 = vld [vmem:[#allocation309_spill] sm:$0xff]  ;;  %v15107_v4 = vld [vmem:[#allocation323_spill] sm:$0xff] }
 0x43e   :  { %v11364_v13 = vpop.permute.xlu0 %3022  ;;  %v3278_v50 = vrot.slane %v15097_v27, %v11309_v34  ;;  %v3392_v43 = vsel %vm14277_vm6, %v3391_v40, %v3387_v8  ;;  %v3401_v1 = vrot.slane %v15098_v36, %v11210_v5  ;;  %v3274_v24 = vsel %vm3192_vm14, %v3273_v14, %v3269_v54  ;;  %v15103_v40 = vld [vmem:[#allocation306_spill] sm:$0xff]  ;;  %v15104_v14 = vld [vmem:[#allocation300_spill] sm:$0xff]  ;;  %v15109_v27 = vld [vmem:[#allocation311_spill] sm:$0xff] }
 0x43f   :  { %v3441_v45 = vrot.slane %v15099_v51, %v11154_v23  ;;  %v3445_v12 = vrot.slane %v15100_v41, %v11150_v57  ;;  %v3338_v56 = vsel %vm14280_vm11, %v3337_v18, %v3333_v19  ;;  %v3347_v29 = vrot.slane %v15101_v2, %v11271_v39  ;;  %v15106_v18 = vld [vmem:[#allocation310_spill] sm:$0xff]  ;;  %v15108_v8 = vld [vmem:[#allocation324_spill] sm:$0xff] }
 0x440   :  { %v3450_v52 = vrot.slane %v15102_v35, %v11158_v16  ;;  %v11411_v26 = vsel %vm3199_vm15, %v3198_v6, %v3193_v38  ;;  %v3343_v55 = vsel %vm3178_vm12, %v3342_v10, %v3338_v56  ;;  %v3397_v37 = vsel %vm3143_vm7, %v3396_v44, %v3392_v43  ;;  %v15105_v38 = vld [vmem:[#allocation290_spill] sm:$0xff]  ;;  %v15110_v43 = vld [vmem:[#allocation325_spill] sm:$0xff] }
 0x441   :  { %v11382_v15 = vpop.permute.xlu1 %3025  ;;  %v3406_v32 = vrot.slane %v15103_v40, %v11216_v62  ;;  %v11420_v46 = vsel %vm3199_vm15, %v3278_v50, %v3274_v24  ;;  %v3352_v48 = vrot.slane %v15104_v14, %v11279_v28  ;;  %v3402_v3 = vsel %vm3150_vm8, %v3401_v1, %v3397_v37  ;;  %v15111_v51 = vld [vmem:[#allocation198_spill] sm:$0xff]  ;;  %v15113_v35 = vld [vmem:[#allocation301_spill] sm:$0xff] }
 0x442   :  { %v11390_v60 = vpop.permute.xlu0 %3028  ;;  %v3411_v6 = vrot.slane %v15105_v38, %v11238_v9  ;;  %v3446_v0 = vsel %vm3101_vm1, %v3445_v12, %v3441_v45  ;;  %v3455_v19 = vrot.slane %v15106_v18, %v11171_v63  ;;  %v3520_v10 = vrot.slane %v15107_v4, %v11154_v23  ;;  %v15112_v12 = vld [vmem:[#allocation214_spill] sm:$0xff]  ;;  %v15117_v4 = vld [vmem:[#allocation327_spill] sm:$0xff] }
 0x443   :  { %v3524_v11 = vrot.slane %v15108_v8, %v11150_v57  ;;  %v3348_v44 = vsel %vm3185_vm13, %v3347_v29, %v3343_v55  ;;  %v3451_v54 = vsel %vm3108_vm2, %v3450_v52, %v3446_v0  ;;  %v3460_v50 = vrot.slane %v15109_v27, %v11176_v30  ;;  %v15116_v0 = vld [vmem:[#allocation313_spill] sm:$0xff] }
 0x444   :  { %v3529_v36 = vrot.slane %v15110_v43, %v11158_v16  ;;  %v3407_v24 = vsel %vm14279_vm9, %v3406_v32, %v3402_v3  ;;  %v3416_v45 = vrot.slane %v15111_v51, %v11247_v49  ;;  %v3599_v41 = vrot.slane %v11235_v53, %v11154_v23  ;;  %v15114_v53 = vld [vmem:[#allocation312_spill] sm:$0xff]  ;;  %v15115_v3 = vld [vmem:[#allocation326_spill] sm:$0xff] }
 0x445   :  { %v11408_v21 = vpop.permute.xlu1 %3031  ;;  %v3603_v56 = vrot.slane %v15112_v12, %v11150_v57  ;;  %v11452_v29 = vsel %vm3192_vm14, %v3352_v48, %v3348_v44  ;;  %v3357_v52 = vrot.slane %v15113_v35, %v11309_v34  ;;  %v3412_v55 = vsel %vm14278_vm10, %v3411_v6, %v3407_v24  ;;  %v15118_v44 = vld [vmem:[#allocation292_spill] sm:$0xff]  ;;  %v15119_v51 = vld [vmem:[#allocation202_spill] sm:$0xff] }
 0x446   :  { %v11417_v58 = vpop.permute.xlu0 %3034  ;;  %v3608_v37 = vrot.slane %v11265_v47, %v11158_v16  ;;  %v3456_v40 = vsel %vm3115_vm3, %v3455_v19, %v3451_v54  ;;  %v3465_v32 = vrot.slane %v15114_v53, %v11186_v42  ;;  %v3525_v14 = vsel %vm3101_vm1, %v3524_v11, %v3520_v10  ;;  %v15122_v53 = vld [vmem:[#allocation329_spill] sm:$0xff] }
 0x447   :  { %v3534_v38 = vrot.slane %v15115_v3, %v11171_v63  ;;  %v3461_v48 = vsel %vm3122_vm4, %v3460_v50, %v3456_v40  ;;  %v3470_v18 = vrot.slane %v15116_v0, %v11202_v61  ;;  %v3530_v6 = vsel %vm3108_vm2, %v3529_v36, %v3525_v14  ;;  %v15123_v0 = vld [vmem:[#allocation315_spill] sm:$0xff] }
 0x448   :  { %v3539_v47 = vrot.slane %v15117_v4, %v11176_v30  ;;  %v3417_v19 = vsel %vm14280_vm11, %v3416_v45, %v3412_v55  ;;  %v3421_v54 = vrot.slane %v15118_v44, %v11268_v25  ;;  %v3604_v10 = vsel %vm3101_vm1, %v3603_v56, %v3599_v41  ;;  %v15120_v56 = vld [vmem:[#allocation328_spill] sm:$0xff] }
 0x449   :  { %v11440_v1 = vpop.permute.xlu1 %3037  ;;  %v3613_v11 = vrot.slane %v11276_v31, %v11171_v63  ;;  %v3609_v50 = vsel %vm3108_vm2, %v3608_v37, %v3604_v10  ;;  %v3618_v43 = vrot.slane %v11297_v17, %v11176_v30  ;;  %v3426_v45 = vrot.slane %v15119_v51, %v11271_v39  ;;  %v15121_v37 = vld [vmem:[#allocation314_spill] sm:$0xff] }
 0x44a   :  { %v11449_v2 = vpop.permute.xlu0 %3040  ;;  %v3466_v12 = vsel %vm14276_vm5, %v3465_v32, %v3461_v48  ;;  %v3535_v41 = vsel %vm3115_vm3, %v3534_v38, %v3530_v6  ;;  %v3544_v31 = vrot.slane %v15120_v56, %v11186_v42  ;;  %v3475_v40 = vrot.slane %v15121_v37, %v11207_v22 }
 0x44b   :  { %v3471_v55 = vsel %vm14277_vm6, %v3470_v18, %v3466_v12  ;;  %v3540_v17 = vsel %vm3122_vm4, %v3539_v47, %v3535_v41  ;;  %v3549_v14 = vrot.slane %v15122_v53, %v11202_v61  ;;  %v3480_v4 = vrot.slane %v15123_v0, %v11210_v5  ;;  %v15127_v0 = vld [vmem:[#allocation332_spill] sm:$0xff] }
 0x44c   :  { %v3614_v32 = vsel %vm3115_vm3, %v3613_v11, %v3609_v50  ;;  %v3623_v38 = vrot.slane %v11306_v20, %v11186_v42  ;;  %v3628_v47 = vrot.slane %v11328_v7, %v11202_v61  ;;  %v3422_v10 = vsel %vm3178_vm12, %v3421_v54, %v3417_v19  ;;  %v15124_v11 = vld [vmem:[#allocation330_spill] sm:$0xff] }
 0x44d   :  { %v3044_v8 = vpop.permute.xlu1 %3043  ;;  %v3619_v6 = vsel %vm3122_vm4, %v3618_v43, %v3614_v32  ;;  %v3554_v50 = vrot.slane %v15124_v11, %v11207_v22  ;;  %v3476_v51 = vsel %vm3143_vm7, %v3475_v40, %v3471_v55  ;;  %v15125_v43 = vld [vmem:[#allocation316_spill] sm:$0xff]  ;;  %v3633_v56 = vrot.slane %v11336_v59, %v11207_v22  ;;  %v15128_v32 = vld [vmem:[#allocation294_spill] sm:$0xff] }
 0x44e   :  { %v3047_v27 = vpop.permute.xlu0 %3046  ;;  %v3678_v36 = vrot.slane %v3044_v8, %v11154_v23  ;;  %v3485_v12 = vrot.slane %v15125_v43, %v11216_v62  ;;  %v3481_v19 = vsel %vm3150_vm8, %v3480_v4, %v3476_v51  ;;  %v3624_v54 = vsel %vm14276_vm5, %v3623_v38, %v3619_v6  ;;  %v15130_v6 = vld [vmem:[#allocation19_spill] sm:$0xff] }
 0x44f   :  { %v3682_v24 = vrot.slane %v3047_v27, %v11150_v57  ;;  %v3545_v27 = vsel %vm14276_vm5, %v3544_v31, %v3540_v17  ;;  %v3629_v55 = vsel %vm14277_vm6, %v3628_v47, %v3624_v54  ;;  %v3638_v40 = vrot.slane %v11356_v33, %v11210_v5  ;;  %v15133_v54 = vld [vmem:[#allocation319_spill] sm:$0xff] }
 0x450   :  { %v3550_v7 = vsel %vm14277_vm6, %v3549_v14, %v3545_v27  ;;  %v3427_v14 = vsel %vm3185_vm13, %v3426_v45, %v3422_v10  ;;  %v3564_v4 = vrot.slane %v15127_v0, %v11216_v62  ;;  %v3431_v38 = vrot.slane %v15128_v32, %v11279_v28 }
 0x451   :  { %v3050_v3 = vpop.permute.xlu1 %3049  ;;  %v3683_v8 = vsel %vm3101_vm1, %v3682_v24, %v3678_v36  ;;  %v15126_v36 = vld [vmem:[#allocation331_spill] sm:$0xff]  ;;  %v3569_v47 = vrot.slane %v15130_v6, %v11238_v9  ;;  %v3486_v45 = vsel %vm14279_vm9, %v3485_v12, %v3481_v19  ;;  %v3643_v10 = vrot.slane %v11364_v13, %v11216_v62  ;;  %v15136_v6 = vld [vmem:[#allocation320_spill] sm:$0xff] }
 0x452   :  { %v3687_v48 = vrot.slane %v3050_v3, %v11158_v16  ;;  %v3053_v18 = vpop.permute.xlu0 %3052  ;;  %v3559_v24 = vrot.slane %v15126_v36, %v11210_v5  ;;  %v3555_v3 = vsel %vm3143_vm7, %v3554_v50, %v3550_v7  ;;  %v15131_v7 = vld [vmem:[#allocation318_spill] sm:$0xff]  ;;  %v3658_v32 = vrot.slane %v11408_v21, %v11268_v25 }
 0x453   :  { %v3692_v44 = vrot.slane %v3053_v18, %v11171_v63  ;;  %v3495_v12 = vrot.slane %v15131_v7, %v11247_v49  ;;  %v3663_v7 = vrot.slane %v11417_v58, %v11271_v39 }
 0x454   :  { %v3688_v20 = vsel %vm3108_vm2, %v3687_v48, %v3683_v8  ;;  %v15129_v48 = vld [vmem:[#allocation317_spill] sm:$0xff]  ;;  %v3560_v33 = vsel %vm3150_vm8, %v3559_v24, %v3555_v3  ;;  %v3653_v3 = vrot.slane %v11390_v60, %v11247_v49 }
 0x455   :  { %v3056_v41 = vpop.permute.xlu1 %3055  ;;  %v3693_v17 = vsel %vm3115_vm3, %v3692_v44, %v3688_v20  ;;  %v3490_v18 = vrot.slane %v15129_v48, %v11238_v9  ;;  %v3634_v44 = vsel %vm3143_vm7, %v3633_v56, %v3629_v55  ;;  %v3648_v20 = vrot.slane %v11382_v15, %v11238_v9  ;;  %v15132_v24 = vld [vmem:[#allocation333_spill] sm:$0xff] }
 0x456   :  { %v3697_v31 = vrot.slane %v3056_v41, %v11176_v30  ;;  %v3059_v37 = vpop.permute.xlu0 %3058  ;;  %v3639_v50 = vsel %vm3150_vm8, %v3638_v40, %v3634_v44  ;;  %v3565_v36 = vsel %vm14279_vm9, %v3564_v4, %v3560_v33  ;;  %v3574_v13 = vrot.slane %v15132_v24, %v11247_v49  ;;  %v15135_v40 = vld [vmem:[#allocation173_spill] sm:$0xff] }
 0x457   :  { %v3702_v53 = vrot.slane %v3059_v37, %v11186_v42  ;;  %v3491_v19 = vsel %vm14278_vm10, %v3490_v18, %v3486_v45  ;;  %v3500_v15 = vrot.slane %v15133_v54, %v11268_v25  ;;  %v3570_v56 = vsel %vm14278_vm10, %v3569_v47, %v3565_v36  ;;  %v15137_v44 = vld [vmem:[#allocation321_spill] sm:$0xff] }
 0x458   :  { %v3698_v59 = vsel %vm3122_vm4, %v3697_v31, %v3693_v17  ;;  %v15134_v31 = vld [vmem:[#allocation179_spill] sm:$0xff]  ;;  %v3436_v17 = vrot.slane %v15135_v40, %v11309_v34  ;;  %v3496_v33 = vsel %vm14280_vm11, %v3495_v12, %v3491_v19  ;;  %v3505_v47 = vrot.slane %v15136_v6, %v11271_v39 }
 0x459   :  { %v3062_v8 = vpop.permute.xlu1 %3061  ;;  %v3703_v51 = vsel %vm14276_vm5, %v3702_v53, %v3698_v59  ;;  %v3579_v37 = vrot.slane %v15134_v31, %v11268_v25  ;;  %vm3756_vm5 = vcmask 1042434   ;;  %v3644_v53 = vsel %vm14279_vm9, %v3643_v10, %v3639_v50  ;;  %v15141_v40 = vld [vmem:[#allocation335_spill] sm:$0xff] }
 0x45a   :  { %v3707_v27 = vrot.slane %v3062_v8, %v11202_v61  ;;  %v3065_v11 = vpop.permute.xlu0 %3064  ;;  %v3649_v59 = vsel %vm14278_vm10, %v3648_v20, %v3644_v53  ;;  %v3575_v60 = vsel %vm14280_vm11, %v3574_v13, %v3570_v56  ;;  %v3501_v45 = vsel %vm3178_vm12, %v3500_v15, %v3496_v33  ;;  %v15139_v20 = vld [vmem:[#allocation216_spill] sm:$0xff]  ;;  %v15140_v56 = vld [vmem:[#allocation322_spill] sm:$0xff] }
 0x45b   :  { %v3712_v43 = vrot.slane %v3065_v11, %v11207_v22  ;;  %v3510_v10 = vrot.slane %v15137_v44, %v11279_v28  ;;  %v3580_v21 = vsel %vm3178_vm12, %v3579_v37, %v3575_v60  ;;  %v3668_v13 = vrot.slane %v11440_v1, %v11279_v28 }
 0x45c   :  { %v3708_v41 = vsel %vm14277_vm6, %v3707_v27, %v3703_v51  ;;  %vm14425_vm6 = vcmask 1043459   ;;  %v15138_v27 = vld [vmem:[#allocation334_spill] sm:$0xff]  ;;  %v3589_v51 = vrot.slane %v15139_v20, %v11279_v28  ;;  %v3432_v54 = vsel %vm3192_vm14, %v3431_v38, %v3427_v14 }
 0x45d   :  { %v3068_v55 = vpop.permute.xlu1 %3067  ;;  %v3713_v48 = vsel %vm3143_vm7, %v3712_v43, %v3708_v41  ;;  %v3584_v11 = vrot.slane %v15138_v27, %v11271_v39  ;;  %v3654_v43 = vsel %vm14280_vm11, %v3653_v3, %v3649_v59  ;;  %v3506_v15 = vsel %vm3185_vm13, %v3505_v47, %v3501_v45 }
 0x45e   :  { %v3717_v0 = vrot.slane %v3068_v55, %v11210_v5  ;;  %v3071_v4 = vpop.permute.xlu0 %3070  ;;  %v3659_v24 = vsel %vm3178_vm12, %v3658_v32, %v3654_v43  ;;  %v3515_v31 = vrot.slane %v15140_v56, %v11309_v34  ;;  %v3358_v37 = vsel %vm3199_vm15, %v3357_v52, %v11452_v29 }
 0x45f   :  { %v3722_v18 = vrot.slane %v3071_v4, %v11216_v62  ;;  %v3511_v1 = vsel %vm3192_vm14, %v3510_v10, %v3506_v15  ;;  %v3585_v55 = vsel %vm3185_vm13, %v3584_v11, %v3580_v21  ;;  %v3594_v14 = vrot.slane %v15141_v40, %v11309_v34  ;;  %v15147_v15 = vld [vmem:[#allocation26_spill] sm:$0xff] }
 0x460   :  { %v3718_v8 = vsel %vm3150_vm8, %v3717_v0, %v3713_v48  ;;  %v3590_v53 = vsel %vm3192_vm14, %v3589_v51, %v3585_v55  ;;  %v3664_v3 = vsel %vm3185_vm13, %v3663_v7, %v3659_v24  ;;  %v3673_v0 = vrot.slane %v11449_v2, %v11309_v34  ;;  %v15142_v51 = vld [vmem:[#allocation20_spill] sm:$0xff]  ;;  %v15143_v7 = vld [vmem:[#allocation21_spill] sm:$0xff] }
 0x461   :  { %v3074_v50 = vpop.permute.xlu1 %3073  ;;  %v3723_v41 = vsel %vm14279_vm9, %v3722_v18, %v3718_v8  ;;  %v3437_v29 = vsel %vm3199_vm15, %v3436_v17, %v3432_v54  ;;  %v3669_v52 = vsel %vm3192_vm14, %v3668_v13, %v3664_v3  ;;  %v3755_v48 = vsel %vm14281_vm0, %v11420_v46, %v11411_v26  ;;  %v15145_v13 = vld [vmem:[#allocation28_spill] sm:$0xff]  ;;  %v15150_v3 = vld [vmem:[#allocation53_spill] sm:$0xff] }
 0x462   :  { %v3727_v12 = vrot.slane %v3074_v50, %v11238_v9  ;;  %v3077_v36 = vpop.permute.xlu0 %3076  ;;  %v3516_v18 = vsel %vm3199_vm15, %v3515_v31, %v3511_v1  ;;  %v3757_v2 = vsel %vm3756_vm5, %v3358_v37, %v3755_v48  ;;  %v3595_v6 = vsel %vm3199_vm15, %v3594_v14, %v3590_v53  ;;  %v15148_v1 = vld [vmem:[#allocation45_spill] sm:$0xff]  ;;  %v15149_v14 = vld [vmem:[#allocation27_spill] sm:$0xff] }
 0x463   :  { %v3732_v19 = vrot.slane %v3077_v36, %v11247_v49  ;;  %vm14423_vm9 = vcmask 1045509   ;;  %v3759_v47 = vsel %vm14425_vm6, %v3437_v29, %v3757_v2  ;;  %v3674_v45 = vsel %vm3199_vm15, %v3673_v0, %v3669_v52  ;;  %v15144_v36 = vld [vmem:[#allocation35_spill] sm:$0xff] }
 0x464   :  { %v3728_v58 = vsel %vm14278_vm10, %v3727_v12, %v3723_v41  ;;  %vm14424_vm10 = vcmask 1044484   ;;  %vm14421_vm0 = vcmask 1047559   ;;  %vm15473_vm6 = vcmask 458112  }
 0x465   :  { %v3080_v38 = vpop.permute.xlu1 %3079  ;;  %v3733_v59 = vsel %vm14280_vm11, %v3732_v19, %v3728_v58  ;;  %vm14422_vm11 = vcmask 1046534   ;;  %v3761_v44 = vsel %vm14424_vm10, %v3516_v18, %v3759_v47  ;;  %v15146_v19 = vld [vmem:[#allocation41_spill] sm:$0xff]  ;;  %v15153_v18 = vld [vmem:[#allocation30_spill] sm:$0xff]  ;;  %v15156_v47 = vld [vmem:[#allocation63_spill] sm:$0xff]  ;;  %vm15472_vm10 = vcmask 720512  }
 0x466   :  { %v3737_v4 = vrot.slane %v3080_v38, %v11268_v25  ;;  %v3083_v35 = vpop.permute.xlu0 %3082  ;;  %v3763_v21 = vsel %vm14423_vm9, %v3595_v6, %v3761_v44  ;;  %vm15466_vm9 = vcmask 458112  }
 0x467   :  { %v3742_v32 = vrot.slane %v3083_v35, %v11271_v39  ;;  %v3765_v11 = vsel %vm14422_vm11, %v3674_v45, %v3763_v21  ;;  %v15151_v35 = vld [vmem:[#allocation29_spill] sm:$0xff]  ;;  %v15157_v45 = vld [vmem:[#allocation31_spill] sm:$0xff] }
 0x468   :  { %v3738_v33 = vsel %vm3178_vm12, %v3737_v4, %v3733_v59  ;;  %v15152_v59 = vld [vmem:[#allocation57_spill] sm:$0xff]  ;;  %v15160_v21 = vld [vmem:[#allocation67_spill] sm:$0xff] }
 0x469   :  { %v3086_v17 = vpop.permute.xlu1 %3085  ;;  %v3743_v26 = vsel %vm3185_vm13, %v3742_v32, %v3738_v33 }
 0x46a   :  { %v3747_v60 = vrot.slane %v3086_v17, %v11279_v28  ;;  %v3089_v8 = vpop.permute.xlu0 %3088 }
 0x46b   :  { %v3752_v46 = vrot.slane %v3089_v8, %v11309_v34 }
 0x46c   :  { %v3748_v10 = vsel %vm3192_vm14, %v3747_v60, %v3743_v26 }
 0x46d   :  { %v3753_v27 = vsel %vm3199_vm15, %v3752_v46, %v3748_v10 }
 0x46e   :  { %v3767_v50 = vsel %vm14421_vm0, %v3753_v27, %v3765_v11  ;;  %vm15464_vm0 = vcmask 392512  }
 0x46f   :  { %3769 = vmax.xlane.f32.xlu1 %v3767_v50  ;;  %v15161_v50 = vld [vmem:[#allocation32_spill] sm:$0xff]  ;;  %vm15465_vm11 = vmmov %vm15464_vm0 }
 0x4fc   :  { %v11634_v20 = vpop.xlane.xlu1 %3769 }
 0x4fd   :  { %v11638_v43 = vrot.slane %v11634_v20, %v15142_v51  ;;  %v11642_v12 = vrot.slane %v11634_v20, %v15143_v7 }
 0x4ff   :  { %v3821_v24 = vsub.f32 %v15144_v36, %v11638_v43  ;;  %v3812_v41 = vsub.f32 %v15145_v13, %v11638_v43  ;;  %v3827_v54 = vsub.f32 %v15146_v19, %v11638_v43  ;;  %v3813_v56 = vsub.f32 %v15147_v15, %v11638_v43  ;;  %v15164_v19 = vld [vmem:[#allocation73_spill] sm:$0xff] }
 0x500   :  { %v3829_v55 = vsub.f32 %v15148_v1, %v11642_v12  ;;  %v3814_v38 = vsub.f32 %v15149_v14, %v11638_v43  ;;  %v3831_v0 = vsub.f32 %v15150_v3, %v11642_v12  ;;  %v3815_v29 = vsub.f32 %v15151_v35, %v11638_v43 }
 0x501   :  { %v3958_v31 = vmul.f32 1.442695, %v3821_v24  ;;  %v3940_v58 = vmul.f32 1.442695, %v3812_v41  ;;  %v3970_v37 = vmul.f32 1.442695, %v3827_v54  ;;  %v3833_v32 = vsub.f32 %v15152_v59, %v11642_v12 }
 0x502   :  { %v3942_v40 = vmul.f32 1.442695, %v3813_v56  ;;  %v3974_v53 = vmul.f32 1.442695, %v3829_v55  ;;  %v3944_v4 = vmul.f32 1.442695, %v3814_v38  ;;  %v3816_v33 = vsub.f32 %v15153_v18, %v11638_v43 }
 0x503   :  { %7912 = vpow2.f32 %v3958_v31  ;;  %v3978_v52 = vmul.f32 1.442695, %v3831_v0  ;;  %v3946_v48 = vmul.f32 1.442695, %v3815_v29  ;;  %v3982_v17 = vmul.f32 1.442695, %v3833_v32 }
 0x504   :  { %7914 = vpow2.f32 %v3940_v58  ;;  %v3835_v60 = vsub.f32 %v15156_v47, %v11642_v12  ;;  %v3948_v8 = vmul.f32 1.442695, %v3816_v33  ;;  %v3817_v26 = vsub.f32 %v15157_v45, %v11638_v43  ;;  %v15165_v56 = vld [vmem:[#allocation33_spill] sm:$0xff]  ;;  %v15169_v38 = vld [vmem:[#allocation34_spill] sm:$0xff] }
 0x505   :  { %7916 = vpow2.f32 %v3970_v37  ;;  %v3837_v27 = vsub.f32 %v15160_v21, %v11642_v12  ;;  %v3818_v36 = vsub.f32 %v15161_v50, %v11638_v43  ;;  %v3839_v54 = vsub.f32 %v15164_v19, %v11642_v12  ;;  %v15168_v55 = vld [vmem:[#allocation77_spill] sm:$0xff]  ;;  %v15182_v19 = vld [vmem:[#allocation38_spill] sm:$0xff] }
 0x506   :  { %7918 = vpow2.f32 %v3942_v40  ;;  %v3986_v10 = vmul.f32 1.442695, %v3835_v60  ;;  %v3950_v11 = vmul.f32 1.442695, %v3817_v26  ;;  %v3819_v31 = vsub.f32 %v15165_v56, %v11638_v43  ;;  %v15177_v60 = vld [vmem:[#allocation87_spill] sm:$0xff]  ;;  %v15178_v26 = vld [vmem:[#allocation37_spill] sm:$0xff] }
 0x507   :  { %7920 = vpow2.f32 %v3974_v53  ;;  %v3990_v41 = vmul.f32 1.442695, %v3837_v27  ;;  %v3952_v15 = vmul.f32 1.442695, %v3818_v36  ;;  %v3994_v1 = vmul.f32 1.442695, %v3839_v54 }
 0x508   :  { %7922 = vpow2.f32 %v3944_v4  ;;  %v3841_v40 = vsub.f32 %v15168_v55, %v11642_v12  ;;  %v3954_v14 = vmul.f32 1.442695, %v3819_v31  ;;  %v3820_v53 = vsub.f32 %v15169_v38, %v11638_v43  ;;  %v15172_v4 = vld [vmem:[#allocation22_spill] sm:$0xff]  ;;  %v15181_v50 = vld [vmem:[#allocation93_spill] sm:$0xff] }
 0x509   :  { %7924 = vpow2.f32 %v3978_v52  ;;  %v11711_v35 = vrot.slane %v11634_v20, %v15172_v4  ;;  %v15173_v52 = vld [vmem:[#allocation83_spill] sm:$0xff]  ;;  %v3824_v54 = vsub.f32 %v15182_v19, %v11638_v43 }
 0x50a   :  { %7926 = vpow2.f32 %v3946_v48  ;;  %v3998_v29 = vmul.f32 1.442695, %v3841_v40  ;;  %v3843_v59 = vsub.f32 %v15173_v52, %v11642_v12  ;;  %v3956_v32 = vmul.f32 1.442695, %v3820_v53  ;;  %v15174_v48 = vld [vmem:[#allocation36_spill] sm:$0xff] }
 0x50b   :  { %7928 = vpow2.f32 %v3982_v17  ;;  %v3822_v18 = vsub.f32 %v15174_v48, %v11638_v43  ;;  %v3847_v36 = vsub.f32 %v15181_v50, %v11711_v35  ;;  %v3964_v40 = vmul.f32 1.442695, %v3824_v54  ;;  %v15194_v50 = vld [vmem:[#allocation42_spill] sm:$0xff]  ;;  %v15197_v54 = vld [vmem:[#allocation113_spill] sm:$0xff] }
 0x50c   :  { %7930 = vpow2.f32 %v3948_v8  ;;  %v4002_v47 = vmul.f32 1.442695, %v3843_v59  ;;  %v3845_v8 = vsub.f32 %v15177_v60, %v11711_v35  ;;  %v15189_v59 = vld [vmem:[#allocation103_spill] sm:$0xff] }
 0x50d   :  { %v11664_v2 = vpop.eup %7912  ;;  %7932 = vpow2.f32 %v3986_v10  ;;  %v3960_v45 = vmul.f32 1.442695, %v3822_v18  ;;  %v3823_v10 = vsub.f32 %v15178_v26, %v11638_v43  ;;  %v4010_v31 = vmul.f32 1.442695, %v3847_v36  ;;  %v15190_v18 = vld [vmem:[#allocation40_spill] sm:$0xff]  ;;  %v15193_v26 = vld [vmem:[#allocation107_spill] sm:$0xff] }
 0x50e   :  { %15154 = vst [vmem:[#allocation302_spill] sm:$0xff] %v11664_v2  ;;  %v11666_v6 = vpop.eup %7914  ;;  %4352 = vperm.xlu1 %7655, %v11664_v2   ;;  %7934 = vpow2.f32 %v3950_v11  ;;  %v4006_v11 = vmul.f32 1.442695, %v3845_v8  ;;  %v3828_v36 = vsub.f32 %v15194_v50, %v11642_v12 }
 0x50f   :  { %15155 = vst [vmem:[#allocation259_spill] sm:$0xff] %v11666_v6  ;;  %4325 = vperm.xlu0 %7654, %v11666_v6   ;;  %v11674_v46 = vpop.eup %7916  ;;  %7936 = vpow2.f32 %v3990_v41  ;;  %v3962_v41 = vmul.f32 1.442695, %v3823_v10  ;;  %v3853_v10 = vsub.f32 %v15193_v26, %v11711_v35 }
 0x510   :  { %15158 = vst [vmem:[#allocation303_spill] sm:$0xff] %v11674_v46  ;;  %v11676_v44 = vpop.eup %7918  ;;  %7938 = vpow2.f32 %v3952_v15 }
 0x511   :  { %15159 = vst [vmem:[#allocation260_spill] sm:$0xff] %v11676_v44  ;;  %v11684_v24 = vpop.eup %7920  ;;  %7940 = vpow2.f32 %v3994_v1  ;;  %v15185_v1 = vld [vmem:[#allocation97_spill] sm:$0xff]  ;;  %v4022_v19 = vmul.f32 1.442695, %v3853_v10  ;;  %v15205_v10 = vld [vmem:[#allocation23_spill] sm:$0xff] }
 0x512   :  { %4370 = vperm.xlu1 %7655, %v11674_v46   ;;  %15162 = vst [vmem:[#allocation232_spill] sm:$0xff] %v11684_v24  ;;  %v11686_v13 = vpop.eup %7922  ;;  %7942 = vpow2.f32 %v3954_v14  ;;  %v3849_v55 = vsub.f32 %v15185_v1, %v11711_v35  ;;  %v15186_v14 = vld [vmem:[#allocation39_spill] sm:$0xff]  ;;  %v3972_v1 = vmul.f32 1.442695, %v3828_v36 }
 0x513   :  { %4328 = vperm.xlu0 %7654, %v11676_v44   ;;  %15163 = vst [vmem:[#allocation297_spill] sm:$0xff] %v11686_v13  ;;  %v11694_v58 = vpop.eup %7924  ;;  %7944 = vpow2.f32 %v3998_v29  ;;  %v3825_v38 = vsub.f32 %v15186_v14, %v11638_v43  ;;  %v15206_v36 = vld [vmem:[#allocation123_spill] sm:$0xff] }
 0x514   :  { %15166 = vst [vmem:[#allocation298_spill] sm:$0xff] %v11694_v58  ;;  %v11696_v37 = vpop.eup %7926  ;;  %7946 = vpow2.f32 %v3956_v32  ;;  %v4014_v52 = vmul.f32 1.442695, %v3849_v55  ;;  %v3851_v32 = vsub.f32 %v15189_v59, %v11711_v35  ;;  %v15198_v55 = vld [vmem:[#allocation48_spill] sm:$0xff]  ;;  %v15201_v59 = vld [vmem:[#allocation117_spill] sm:$0xff] }
 0x515   :  { %15167 = vst [vmem:[#allocation304_spill] sm:$0xff] %v11696_v37  ;;  %v11704_v3 = vpop.eup %7928  ;;  %7948 = vpow2.f32 %v4002_v47  ;;  %v3966_v48 = vmul.f32 1.442695, %v3825_v38  ;;  %v3826_v47 = vsub.f32 %v15190_v18, %v11638_v43  ;;  %v15202_v18 = vld [vmem:[#allocation54_spill] sm:$0xff] }
 0x516   :  { %4376 = vperm.xlu1 %7655, %v11684_v24   ;;  %15170 = vst [vmem:[#allocation296_spill] sm:$0xff] %v11704_v3  ;;  %v11706_v0 = vpop.eup %7930  ;;  %7950 = vpow2.f32 %v3960_v45  ;;  %v4018_v45 = vmul.f32 1.442695, %v3851_v32  ;;  %v3857_v32 = vsub.f32 %v15201_v59, %v11711_v35 }
 0x517   :  { %4331 = vperm.xlu0 %7654, %v11686_v13   ;;  %15171 = vst [vmem:[#allocation305_spill] sm:$0xff] %v11706_v0  ;;  %v11718_v33 = vpop.eup %7932  ;;  %7952 = vpow2.f32 %v4006_v11  ;;  %v3968_v11 = vmul.f32 1.442695, %v3826_v47  ;;  %v3832_v47 = vsub.f32 %v15202_v18, %v11642_v12 }
 0x518   :  { %15175 = vst [vmem:[#allocation307_spill] sm:$0xff] %v11718_v33  ;;  %v11720_v17 = vpop.eup %7934  ;;  %7954 = vpow2.f32 %v3962_v41  ;;  %v4030_v50 = vmul.f32 1.442695, %v3857_v32 }
 0x519   :  { %15176 = vst [vmem:[#allocation308_spill] sm:$0xff] %v11720_v17  ;;  %v11728_v21 = vpop.eup %7936  ;;  %7956 = vpow2.f32 %v4010_v31  ;;  %v3855_v31 = vsub.f32 %v15197_v54, %v11711_v35  ;;  %v3980_v54 = vmul.f32 1.442695, %v3832_v47 }
 0x51a   :  { %4382 = vperm.xlu1 %7655, %v11694_v58   ;;  %15179 = vst [vmem:[#allocation299_spill] sm:$0xff] %v11728_v21  ;;  %v11730_v27 = vpop.eup %7938  ;;  %7958 = vpow2.f32 %v3964_v40  ;;  %v3830_v40 = vsub.f32 %v15198_v55, %v11642_v12 }
 0x51b   :  { %4334 = vperm.xlu0 %7654, %v11696_v37   ;;  %15180 = vst [vmem:[#allocation309_spill] sm:$0xff] %v11730_v27  ;;  %v11738_v15 = vpop.eup %7940  ;;  %7960 = vpow2.f32 %v4014_v52  ;;  %v4026_v52 = vmul.f32 1.442695, %v3855_v31  ;;  %v15207_v31 = vld [vmem:[#allocation59_spill] sm:$0xff] }
 0x51c   :  { %15183 = vst [vmem:[#allocation306_spill] sm:$0xff] %v11738_v15  ;;  %v11740_v56 = vpop.eup %7942  ;;  %7962 = vpow2.f32 %v3966_v48  ;;  %v3976_v48 = vmul.f32 1.442695, %v3830_v40 }
 0x51d   :  { %15184 = vst [vmem:[#allocation300_spill] sm:$0xff] %v11740_v56  ;;  %v11748_v53 = vpop.eup %7944  ;;  %7964 = vpow2.f32 %v4018_v45 }
 0x51e   :  { %4388 = vperm.xlu1 %7655, %v11704_v3   ;;  %15187 = vst [vmem:[#allocation290_spill] sm:$0xff] %v11748_v53  ;;  %v11750_v29 = vpop.eup %7946  ;;  %7966 = vpow2.f32 %v3968_v11  ;;  %v11795_v11 = vrot.slane %v11634_v20, %v15205_v10 }
 0x51f   :  { %4337 = vperm.xlu0 %7654, %v11706_v0   ;;  %15188 = vst [vmem:[#allocation310_spill] sm:$0xff] %v11750_v29  ;;  %v11758_v60 = vpop.eup %7948  ;;  %7968 = vpow2.f32 %v4022_v19  ;;  %v3859_v19 = vsub.f32 %v15206_v36, %v11711_v35 }
 0x520   :  { %15191 = vst [vmem:[#allocation323_spill] sm:$0xff] %v11758_v60  ;;  %v11760_v8 = vpop.eup %7950  ;;  %7970 = vpow2.f32 %v3972_v1  ;;  %v3834_v1 = vsub.f32 %v15207_v31, %v11642_v12 }
 0x521   :  { %15192 = vst [vmem:[#allocation324_spill] sm:$0xff] %v11760_v8  ;;  %v11768_v41 = vpop.eup %7952  ;;  %7972 = vpow2.f32 %v4026_v52  ;;  %v4034_v59 = vmul.f32 1.442695, %v3859_v19  ;;  %v15210_v52 = vld [vmem:[#allocation128_spill] sm:$0xff] }
 0x522   :  { %4394 = vperm.xlu1 %7655, %v11718_v33   ;;  %15195 = vst [vmem:[#allocation311_spill] sm:$0xff] %v11768_v41  ;;  %v11770_v43 = vpop.eup %7954  ;;  %7974 = vpow2.f32 %v3976_v48  ;;  %v3861_v32 = vsub.f32 %v15210_v52, %v11795_v11  ;;  %v3984_v18 = vmul.f32 1.442695, %v3834_v1  ;;  %v15211_v48 = vld [vmem:[#allocation64_spill] sm:$0xff] }
 0x523   :  { %4340 = vperm.xlu0 %7654, %v11720_v17   ;;  %15196 = vst [vmem:[#allocation325_spill] sm:$0xff] %v11770_v43  ;;  %v11778_v14 = vpop.eup %7956  ;;  %7976 = vpow2.f32 %v4030_v50  ;;  %v3836_v47 = vsub.f32 %v15211_v48, %v11642_v12  ;;  %v15214_v50 = vld [vmem:[#allocation133_spill] sm:$0xff] }
 0x524   :  { %15199 = vst [vmem:[#allocation198_spill] sm:$0xff] %v11778_v14  ;;  %v11780_v38 = vpop.eup %7958  ;;  %7978 = vpow2.f32 %v3980_v54  ;;  %v4038_v10 = vmul.f32 1.442695, %v3861_v32  ;;  %v3863_v19 = vsub.f32 %v15214_v50, %v11795_v11  ;;  %v15215_v54 = vld [vmem:[#allocation69_spill] sm:$0xff] }
 0x525   :  { %15200 = vst [vmem:[#allocation214_spill] sm:$0xff] %v11780_v38  ;;  %v11788_v45 = vpop.eup %7960  ;;  %7980 = vpow2.f32 %v4034_v59  ;;  %v3988_v52 = vmul.f32 1.442695, %v3836_v47  ;;  %v3838_v1 = vsub.f32 %v15215_v54, %v11642_v12  ;;  %v15218_v59 = vld [vmem:[#allocation141_spill] sm:$0xff] }
 0x526   :  { %4400 = vperm.xlu1 %7655, %v11728_v21   ;;  %15203 = vst [vmem:[#allocation301_spill] sm:$0xff] %v11788_v45  ;;  %v11790_v26 = vpop.eup %7962  ;;  %7982 = vpow2.f32 %v3984_v18  ;;  %v3865_v32 = vsub.f32 %v15218_v59, %v11795_v11  ;;  %v15219_v18 = vld [vmem:[#allocation74_spill] sm:$0xff] }
 0x527   :  { %4343 = vperm.xlu0 %7654, %v11730_v27   ;;  %15204 = vst [vmem:[#allocation312_spill] sm:$0xff] %v11790_v26  ;;  %v11802_v55 = vpop.eup %7964  ;;  %7984 = vpow2.f32 %v4038_v10  ;;  %v3992_v50 = vmul.f32 1.442695, %v3838_v1  ;;  %v3840_v47 = vsub.f32 %v15219_v18, %v11642_v12  ;;  %v15222_v10 = vld [vmem:[#allocation149_spill] sm:$0xff] }
 0x528   :  { %15208 = vst [vmem:[#allocation326_spill] sm:$0xff] %v11802_v55  ;;  %v11804_v40 = vpop.eup %7966  ;;  %7986 = vpow2.f32 %v3988_v52  ;;  %v15223_v52 = vld [vmem:[#allocation79_spill] sm:$0xff] }
 0x529   :  { %15209 = vst [vmem:[#allocation313_spill] sm:$0xff] %v11804_v40  ;;  %v11812_v36 = vpop.eup %7968  ;;  %v3996_v59 = vmul.f32 1.442695, %v3840_v47  ;;  %v3842_v1 = vsub.f32 %v15223_v52, %v11642_v12 }
 0x52a   :  { %4406 = vperm.xlu1 %7655, %v11738_v15   ;;  %15212 = vst [vmem:[#allocation327_spill] sm:$0xff] %v11812_v36  ;;  %v11814_v31 = vpop.eup %7970 }
 0x52b   :  { %4346 = vperm.xlu0 %7654, %v11740_v56   ;;  %15213 = vst [vmem:[#allocation292_spill] sm:$0xff] %v11814_v31 }
 0x52e   :  { %4412 = vperm.xlu1 %7655, %v11748_v53  }
 0x52f   :  { %4349 = vperm.xlu0 %7654, %v11750_v29  }
 0x532   :  { %4418 = vperm.xlu1 %7655, %v11758_v60  }
 0x533   :  { %4355 = vperm.xlu0 %7654, %v11760_v8  }
 0x536   :  { %4424 = vperm.xlu1 %7655, %v11768_v41  }
 0x537   :  { %4358 = vperm.xlu0 %7654, %v11770_v43  }
 0x53a   :  { %4430 = vperm.xlu1 %7655, %v11778_v14  }
 0x53b   :  { %4361 = vperm.xlu0 %7654, %v11780_v38  }
 0x53e   :  { %4436 = vperm.xlu1 %7655, %v11788_v45  }
 0x53f   :  { %4364 = vperm.xlu0 %7654, %v11790_v26  }
 0x542   :  { %4442 = vperm.xlu1 %7655, %v11802_v55  }
 0x543   :  { %4367 = vperm.xlu0 %7654, %v11804_v40   ;;  %v11822_v40 = vpop.eup %7972 }
 0x544   :  { %15216 = vst [vmem:[#allocation202_spill] sm:$0xff] %v11822_v40  ;;  %v11824_v48 = vpop.eup %7974 }
 0x545   :  { %15217 = vst [vmem:[#allocation328_spill] sm:$0xff] %v11824_v48 }
 0x546   :  { %4448 = vperm.xlu1 %7655, %v11812_v36   ;;  %v11832_v36 = vpop.eup %7976 }
 0x547   :  { %4373 = vperm.xlu0 %7654, %v11814_v31   ;;  %v4042_v31 = vmul.f32 1.442695, %v3863_v19  ;;  %15220 = vst [vmem:[#allocation314_spill] sm:$0xff] %v11832_v36  ;;  %v11834_v54 = vpop.eup %7978  ;;  %v3867_v19 = vsub.f32 %v15222_v10, %v11795_v11  ;;  %v4000_v10 = vmul.f32 1.442695, %v3842_v1 }
 0x548   :  { %15221 = vst [vmem:[#allocation329_spill] sm:$0xff] %v11834_v54 }
 0x549   :  { %7988 = vpow2.f32 %v4042_v31  ;;  %v15226_v31 = vld [vmem:[#allocation195_spill] sm:$0xff] }
 0x54a   :  { %4454 = vperm.xlu1 %7655, %v11822_v40   ;;  %7990 = vpow2.f32 %v3992_v50  ;;  %v11842_v40 = vpop.eup %7980  ;;  %v15227_v50 = vld [vmem:[#allocation84_spill] sm:$0xff] }
 0x54b   :  { %4379 = vperm.xlu0 %7654, %v11824_v48   ;;  %v4046_v48 = vmul.f32 1.442695, %v3865_v32  ;;  %15224 = vst [vmem:[#allocation315_spill] sm:$0xff] %v11842_v40  ;;  %v11844_v18 = vpop.eup %7982  ;;  %v3869_v32 = vsub.f32 %v15226_v31, %v11795_v11  ;;  %v3844_v47 = vsub.f32 %v15227_v50, %v11711_v35 }
 0x54c   :  { %15225 = vst [vmem:[#allocation330_spill] sm:$0xff] %v11844_v18 }
 0x54d   :  { %7992 = vpow2.f32 %v4046_v48  ;;  %v4054_v52 = vmul.f32 1.442695, %v3869_v32  ;;  %v15230_v48 = vld [vmem:[#allocation159_spill] sm:$0xff]  ;;  %v4004_v31 = vmul.f32 1.442695, %v3844_v47 }
 0x54e   :  { %4460 = vperm.xlu1 %7655, %v11832_v36   ;;  %7994 = vpow2.f32 %v3996_v59  ;;  %v11852_v36 = vpop.eup %7984  ;;  %v15231_v59 = vld [vmem:[#allocation89_spill] sm:$0xff] }
 0x54f   :  { %4385 = vperm.xlu0 %7654, %v11834_v54   ;;  %v4050_v54 = vmul.f32 1.442695, %v3867_v19  ;;  %15228 = vst [vmem:[#allocation316_spill] sm:$0xff] %v11852_v36  ;;  %v11854_v12 = vpop.eup %7986  ;;  %v3871_v19 = vsub.f32 %v15230_v48, %v11795_v11  ;;  %v3846_v1 = vsub.f32 %v15231_v59, %v11711_v35 }
 0x550   :  { %15229 = vst [vmem:[#allocation331_spill] sm:$0xff] %v11854_v12 }
 0x551   :  { %7996 = vpow2.f32 %v4050_v54  ;;  %v15234_v54 = vld [vmem:[#allocation165_spill] sm:$0xff]  ;;  %v4008_v48 = vmul.f32 1.442695, %v3846_v1 }
 0x552   :  { %4466 = vperm.xlu1 %7655, %v11842_v40   ;;  %7998 = vpow2.f32 %v4000_v10  ;;  %v3873_v32 = vsub.f32 %v15234_v54, %v11795_v11  ;;  %v15235_v10 = vld [vmem:[#allocation94_spill] sm:$0xff]  ;;  %v15238_v40 = vld [vmem:[#allocation24_spill] sm:$0xff]  ;;  %v15240_v54 = vld [vmem:[#allocation99_spill] sm:$0xff] }
 0x553   :  { %4391 = vperm.xlu0 %7654, %v11844_v18   ;;  %v11862_v18 = vpop.eup %7988  ;;  %8000 = vpow2.f32 %v4054_v52  ;;  %v3848_v47 = vsub.f32 %v15235_v10, %v11711_v35  ;;  %v3850_v10 = vsub.f32 %v15240_v54, %v11711_v35 }
 0x554   :  { %15232 = vst [vmem:[#allocation332_spill] sm:$0xff] %v11862_v18  ;;  %v11864_v50 = vpop.eup %7990  ;;  %8002 = vpow2.f32 %v4004_v31  ;;  %v4062_v52 = vmul.f32 1.442695, %v3873_v32 }
 0x555   :  { %15233 = vst [vmem:[#allocation294_spill] sm:$0xff] %v11864_v50  ;;  %v4012_v1 = vmul.f32 1.442695, %v3848_v47 }
 0x556   :  { %4472 = vperm.xlu1 %7655, %v11852_v36  }
 0x557   :  { %4397 = vperm.xlu0 %7654, %v11854_v12   ;;  %v4058_v12 = vmul.f32 1.442695, %v3871_v19  ;;  %v11872_v36 = vpop.eup %7992  ;;  %v15239_v19 = vld [vmem:[#allocation208_spill] sm:$0xff] }
 0x558   :  { %15236 = vst [vmem:[#allocation317_spill] sm:$0xff] %v11872_v36  ;;  %v11874_v59 = vpop.eup %7994  ;;  %v3875_v31 = vsub.f32 %v15239_v19, %v11795_v11  ;;  %v4016_v19 = vmul.f32 1.442695, %v3850_v10 }
 0x559   :  { %15237 = vst [vmem:[#allocation19_spill] sm:$0xff] %v11874_v59  ;;  %8004 = vpow2.f32 %v4058_v12  ;;  %v15243_v12 = vld [vmem:[#allocation212_spill] sm:$0xff] }
 0x55a   :  { %4478 = vperm.xlu1 %7655, %v11862_v18   ;;  %v11879_v18 = vrot.slane %v11634_v20, %v15238_v40  ;;  %8006 = vpow2.f32 %v4008_v48  ;;  %v4066_v40 = vmul.f32 1.442695, %v3875_v31  ;;  %v15244_v48 = vld [vmem:[#allocation104_spill] sm:$0xff] }
 0x55b   :  { %4403 = vperm.xlu0 %7654, %v11864_v50   ;;  %v11886_v50 = vpop.eup %7996  ;;  %8008 = vpow2.f32 %v4062_v52  ;;  %v3852_v47 = vsub.f32 %v15244_v48, %v11711_v35  ;;  %v15247_v52 = vld [vmem:[#allocation183_spill] sm:$0xff] }
 0x55c   :  { %15241 = vst [vmem:[#allocation318_spill] sm:$0xff] %v11886_v50  ;;  %v11888_v55 = vpop.eup %7998  ;;  %v3877_v32 = vsub.f32 %v15243_v12, %v11879_v18  ;;  %8010 = vpow2.f32 %v4012_v1  ;;  %v3879_v31 = vsub.f32 %v15247_v52, %v11879_v18  ;;  %v15248_v1 = vld [vmem:[#allocation110_spill] sm:$0xff] }
 0x55d   :  { %15242 = vst [vmem:[#allocation333_spill] sm:$0xff] %v11888_v55  ;;  %8012 = vpow2.f32 %v4066_v40  ;;  %v4020_v12 = vmul.f32 1.442695, %v3852_v47  ;;  %v3854_v10 = vsub.f32 %v15248_v1, %v11711_v35  ;;  %v15251_v40 = vld [vmem:[#allocation219_spill] sm:$0xff] }
 0x55e   :  { %4484 = vperm.xlu1 %7655, %v11872_v36   ;;  %8014 = vpow2.f32 %v4016_v19  ;;  %v15252_v19 = vld [vmem:[#allocation114_spill] sm:$0xff] }
 0x55f   :  { %4409 = vperm.xlu0 %7654, %v11874_v59   ;;  %v11896_v59 = vpop.eup %8000  ;;  %v4024_v52 = vmul.f32 1.442695, %v3854_v10  ;;  %v3856_v47 = vsub.f32 %v15252_v19, %v11711_v35 }
 0x560   :  { %15245 = vst [vmem:[#allocation319_spill] sm:$0xff] %v11896_v59  ;;  %v11898_v54 = vpop.eup %8002 }
 0x561   :  { %15246 = vst [vmem:[#allocation179_spill] sm:$0xff] %v11898_v54 }
 0x562   :  { %4490 = vperm.xlu1 %7655, %v11886_v50  }
 0x563   :  { %4415 = vperm.xlu0 %7654, %v11888_v55   ;;  %v4070_v55 = vmul.f32 1.442695, %v3877_v32  ;;  %v11906_v50 = vpop.eup %8004  ;;  %v3881_v32 = vsub.f32 %v15251_v40, %v11879_v18  ;;  %v4028_v40 = vmul.f32 1.442695, %v3856_v47 }
 0x564   :  { %15249 = vst [vmem:[#allocation173_spill] sm:$0xff] %v11906_v50  ;;  %v11908_v48 = vpop.eup %8006 }
 0x565   :  { %15250 = vst [vmem:[#allocation320_spill] sm:$0xff] %v11908_v48  ;;  %8016 = vpow2.f32 %v4070_v55  ;;  %v15255_v55 = vld [vmem:[#allocation188_spill] sm:$0xff] }
 0x566   :  { %4496 = vperm.xlu1 %7655, %v11896_v59   ;;  %8018 = vpow2.f32 %v4020_v12  ;;  %v11916_v59 = vpop.eup %8008  ;;  %v15256_v12 = vld [vmem:[#allocation120_spill] sm:$0xff] }
 0x567   :  { %4421 = vperm.xlu0 %7654, %v11898_v54   ;;  %v4074_v54 = vmul.f32 1.442695, %v3879_v31  ;;  %15253 = vst [vmem:[#allocation321_spill] sm:$0xff] %v11916_v59  ;;  %v11918_v1 = vpop.eup %8010  ;;  %v3883_v31 = vsub.f32 %v15255_v55, %v11879_v18  ;;  %v3858_v10 = vsub.f32 %v15256_v12, %v11711_v35 }
 0x568   :  { %15254 = vst [vmem:[#allocation334_spill] sm:$0xff] %v11918_v1 }
 0x569   :  { %8020 = vpow2.f32 %v4074_v54  ;;  %v15259_v54 = vld [vmem:[#allocation189_spill] sm:$0xff]  ;;  %v4032_v55 = vmul.f32 1.442695, %v3858_v10 }
 0x56a   :  { %4502 = vperm.xlu1 %7655, %v11906_v50   ;;  %8022 = vpow2.f32 %v4024_v52  ;;  %v11926_v50 = vpop.eup %8012  ;;  %v15260_v52 = vld [vmem:[#allocation124_spill] sm:$0xff] }
 0x56b   :  { %4427 = vperm.xlu0 %7654, %v11908_v48   ;;  %v4078_v48 = vmul.f32 1.442695, %v3881_v32  ;;  %15257 = vst [vmem:[#allocation216_spill] sm:$0xff] %v11926_v50  ;;  %v11928_v19 = vpop.eup %8014  ;;  %v3885_v32 = vsub.f32 %v15259_v54, %v11879_v18  ;;  %v3860_v47 = vsub.f32 %v15260_v52, %v11795_v11 }
 0x56c   :  { %15258 = vst [vmem:[#allocation322_spill] sm:$0xff] %v11928_v19 }
 0x56d   :  { %8024 = vpow2.f32 %v4078_v48  ;;  %v4086_v12 = vmul.f32 1.442695, %v3885_v32  ;;  %v15263_v48 = vld [vmem:[#allocation227_spill] sm:$0xff]  ;;  %v4036_v54 = vmul.f32 1.442695, %v3860_v47 }
 0x56e   :  { %4508 = vperm.xlu1 %7655, %v11916_v59   ;;  %8026 = vpow2.f32 %v4028_v40  ;;  %v15264_v40 = vld [vmem:[#allocation130_spill] sm:$0xff] }
 0x56f   :  { %4433 = vperm.xlu0 %7654, %v11918_v1   ;;  %v4082_v1 = vmul.f32 1.442695, %v3883_v31  ;;  %v11936_v59 = vpop.eup %8016  ;;  %v3887_v31 = vsub.f32 %v15263_v48, %v11879_v18  ;;  %v3862_v10 = vsub.f32 %v15264_v40, %v11795_v11 }
 0x570   :  { %15261 = vst [vmem:[#allocation335_spill] sm:$0xff] %v11936_v59  ;;  %v11938_v35 = vpop.eup %8018 }
 0x571   :  { %15262 = vst [vmem:[#allocation35_spill] sm:$0xff] %v11938_v35  ;;  %8028 = vpow2.f32 %v4082_v1  ;;  %v15267_v1 = vld [vmem:[#allocation229_spill] sm:$0xff]  ;;  %v4040_v48 = vmul.f32 1.442695, %v3862_v10 }
 0x572   :  { %4514 = vperm.xlu1 %7655, %v11926_v50   ;;  %8030 = vpow2.f32 %v4032_v55  ;;  %v3889_v32 = vsub.f32 %v15267_v1, %v11879_v18  ;;  %v15268_v55 = vld [vmem:[#allocation134_spill] sm:$0xff]  ;;  %v15271_v50 = vld [vmem:[#allocation264_spill] sm:$0xff]  ;;  %v15273_v1 = vld [vmem:[#allocation143_spill] sm:$0xff] }
 0x573   :  { %4439 = vperm.xlu0 %7654, %v11928_v19   ;;  %v11946_v19 = vpop.eup %8020  ;;  %8032 = vpow2.f32 %v4086_v12  ;;  %v3864_v47 = vsub.f32 %v15268_v55, %v11795_v11  ;;  %v3866_v55 = vsub.f32 %v15273_v1, %v11795_v11 }
 0x574   :  { %15265 = vst [vmem:[#allocation28_spill] sm:$0xff] %v11946_v19  ;;  %v11948_v52 = vpop.eup %8022  ;;  %8034 = vpow2.f32 %v4036_v54  ;;  %v4094_v12 = vmul.f32 1.442695, %v3889_v32 }
 0x575   :  { %15266 = vst [vmem:[#allocation41_spill] sm:$0xff] %v11948_v52  ;;  %v4044_v10 = vmul.f32 1.442695, %v3864_v47 }
 0x576   :  { %4520 = vperm.xlu1 %7655, %v11936_v59  }
 0x577   :  { %4445 = vperm.xlu0 %7654, %v11938_v35   ;;  %v4090_v35 = vmul.f32 1.442695, %v3887_v31  ;;  %v11956_v59 = vpop.eup %8024  ;;  %v15272_v31 = vld [vmem:[#allocation234_spill] sm:$0xff] }
 0x578   :  { %15269 = vst [vmem:[#allocation26_spill] sm:$0xff] %v11956_v59  ;;  %v11958_v40 = vpop.eup %8026  ;;  %v3891_v54 = vsub.f32 %v15272_v31, %v11879_v18  ;;  %v4048_v31 = vmul.f32 1.442695, %v3866_v55 }
 0x579   :  { %15270 = vst [vmem:[#allocation45_spill] sm:$0xff] %v11958_v40  ;;  %8036 = vpow2.f32 %v4090_v35  ;;  %v15276_v35 = vld [vmem:[#allocation236_spill] sm:$0xff] }
 0x57a   :  { %4526 = vperm.xlu1 %7655, %v11946_v19   ;;  %v11963_v19 = vrot.slane %v11634_v20, %v15271_v50  ;;  %8038 = vpow2.f32 %v4040_v48  ;;  %v4098_v50 = vmul.f32 1.442695, %v3891_v54  ;;  %v15277_v48 = vld [vmem:[#allocation150_spill] sm:$0xff] }
 0x57b   :  { %4451 = vperm.xlu0 %7654, %v11948_v52   ;;  %v11970_v52 = vpop.eup %8028  ;;  %8040 = vpow2.f32 %v4094_v12  ;;  %v3868_v47 = vsub.f32 %v15277_v48, %v11795_v11  ;;  %v15280_v12 = vld [vmem:[#allocation240_spill] sm:$0xff] }
 0x57c   :  { %15274 = vst [vmem:[#allocation27_spill] sm:$0xff] %v11970_v52  ;;  %v11972_v36 = vpop.eup %8030  ;;  %v3893_v32 = vsub.f32 %v15276_v35, %v11963_v19  ;;  %8042 = vpow2.f32 %v4044_v10  ;;  %v3895_v54 = vsub.f32 %v15280_v12, %v11963_v19  ;;  %v15281_v10 = vld [vmem:[#allocation200_spill] sm:$0xff] }
 0x57d   :  { %15275 = vst [vmem:[#allocation53_spill] sm:$0xff] %v11972_v36  ;;  %8044 = vpow2.f32 %v4098_v50  ;;  %v4052_v35 = vmul.f32 1.442695, %v3868_v47  ;;  %v3870_v55 = vsub.f32 %v15281_v10, %v11795_v11  ;;  %v15284_v50 = vld [vmem:[#allocation245_spill] sm:$0xff] }
 0x57e   :  { %4532 = vperm.xlu1 %7655, %v11956_v59   ;;  %8046 = vpow2.f32 %v4048_v31  ;;  %v15285_v31 = vld [vmem:[#allocation164_spill] sm:$0xff] }
 0x57f   :  { %4457 = vperm.xlu0 %7654, %v11958_v40   ;;  %v11980_v40 = vpop.eup %8032  ;;  %v4056_v12 = vmul.f32 1.442695, %v3870_v55  ;;  %v3872_v47 = vsub.f32 %v15285_v31, %v11795_v11 }
 0x580   :  { %15278 = vst [vmem:[#allocation29_spill] sm:$0xff] %v11980_v40  ;;  %v11982_v1 = vpop.eup %8034 }
 0x581   :  { %15279 = vst [vmem:[#allocation57_spill] sm:$0xff] %v11982_v1  ;;  %v4060_v55 = vmul.f32 1.442695, %v3872_v47 }
 0x582   :  { %4538 = vperm.xlu1 %7655, %v11970_v52  }
 0x583   :  { %4463 = vperm.xlu0 %7654, %v11972_v36   ;;  %v4102_v36 = vmul.f32 1.442695, %v3893_v32  ;;  %v11990_v52 = vpop.eup %8036  ;;  %v3897_v32 = vsub.f32 %v15284_v50, %v11963_v19  ;;  %v15289_v50 = vld [vmem:[#allocation170_spill] sm:$0xff] }
 0x584   :  { %15282 = vst [vmem:[#allocation30_spill] sm:$0xff] %v11990_v52  ;;  %v11992_v48 = vpop.eup %8038  ;;  %v3874_v31 = vsub.f32 %v15289_v50, %v11795_v11  ;;  %v15294_v11 = vld [vmem:[#allocation178_spill] sm:$0xff] }
 0x585   :  { %15283 = vst [vmem:[#allocation63_spill] sm:$0xff] %v11992_v48  ;;  %8048 = vpow2.f32 %v4102_v36  ;;  %v4110_v36 = vmul.f32 1.442695, %v3897_v32  ;;  %v15293_v32 = vld [vmem:[#allocation252_spill] sm:$0xff] }
 0x586   :  { %4544 = vperm.xlu1 %7655, %v11980_v40   ;;  %8050 = vpow2.f32 %v4052_v35  ;;  %v12000_v40 = vpop.eup %8040  ;;  %v4064_v47 = vmul.f32 1.442695, %v3874_v31 }
 0x587   :  { %4469 = vperm.xlu0 %7654, %v11982_v1   ;;  %v4106_v1 = vmul.f32 1.442695, %v3895_v54  ;;  %15286 = vst [vmem:[#allocation31_spill] sm:$0xff] %v12000_v40  ;;  %v12004_v59 = vpop.eup %8042  ;;  %v15288_v54 = vld [vmem:[#allocation250_spill] sm:$0xff] }
 0x588   :  { %15287 = vst [vmem:[#allocation67_spill] sm:$0xff] %v12004_v59  ;;  %v3899_v35 = vsub.f32 %v15288_v54, %v11963_v19  ;;  %v3876_v54 = vsub.f32 %v15294_v11, %v11879_v18 }
 0x589   :  { %8052 = vpow2.f32 %v4106_v1 }
 0x58a   :  { %4550 = vperm.xlu1 %7655, %v11990_v52   ;;  %8054 = vpow2.f32 %v4056_v12  ;;  %v4114_v1 = vmul.f32 1.442695, %v3899_v35  ;;  %v3901_v12 = vsub.f32 %v15293_v32, %v11963_v19  ;;  %v15297_v35 = vld [vmem:[#allocation254_spill] sm:$0xff]  ;;  %v4068_v31 = vmul.f32 1.442695, %v3876_v54  ;;  %v15298_v32 = vld [vmem:[#allocation211_spill] sm:$0xff] }
 0x58b   :  { %4475 = vperm.xlu0 %7654, %v11992_v48   ;;  %v12014_v48 = vpop.eup %8044  ;;  %8056 = vpow2.f32 %v4110_v36  ;;  %v3878_v11 = vsub.f32 %v15298_v32, %v11879_v18 }
 0x58c   :  { %15290 = vst [vmem:[#allocation32_spill] sm:$0xff] %v12014_v48  ;;  %v12018_v45 = vpop.eup %8046  ;;  %8058 = vpow2.f32 %v4060_v55  ;;  %v4118_v36 = vmul.f32 1.442695, %v3901_v12  ;;  %v3903_v55 = vsub.f32 %v15297_v35, %v11963_v19  ;;  %v15301_v12 = vld [vmem:[#allocation256_spill] sm:$0xff]  ;;  %v15302_v35 = vld [vmem:[#allocation185_spill] sm:$0xff] }
 0x58d   :  { %v12002_v10 = vpop.permute.xlu1 %4352  ;;  %15292 = vst [vmem:[#allocation33_spill] sm:$0xff] %v12018_v45  ;;  %8060 = vpow2.f32 %v4114_v1  ;;  %v4072_v54 = vmul.f32 1.442695, %v3878_v11  ;;  %v3880_v32 = vsub.f32 %v15302_v35, %v11879_v18  ;;  %v15306_v11 = vld [vmem:[#allocation261_spill] sm:$0xff] }
 0x58e   :  { %v12006_v26 = vpop.permute.xlu0 %4325  ;;  %4556 = vperm.xlu1 %7655, %v12000_v40   ;;  %8062 = vpow2.f32 %v4064_v47  ;;  %v4122_v1 = vmul.f32 1.442695, %v3903_v55  ;;  %v3905_v47 = vsub.f32 %v15301_v12, %v11963_v19  ;;  %v3907_v12 = vsub.f32 %v15306_v11, %v11963_v19 }
 0x58f   :  { %4481 = vperm.xlu0 %7654, %v12004_v59   ;;  %v12028_v50 = vpop.eup %8048  ;;  %8064 = vpow2.f32 %v4118_v36  ;;  %v15305_v36 = vld [vmem:[#allocation273_spill] sm:$0xff]  ;;  %v4076_v35 = vmul.f32 1.442695, %v3880_v32 }
 0x590   :  { %15295 = vst [vmem:[#allocation77_spill] sm:$0xff] %v12028_v50  ;;  %v12032_v40 = vpop.eup %8050  ;;  %8066 = vpow2.f32 %v4068_v31  ;;  %v12067_v55 = vrot.slane %v11634_v20, %v15305_v36  ;;  %v4126_v31 = vmul.f32 1.442695, %v3905_v47  ;;  %v15310_v47 = vld [vmem:[#allocation25_spill] sm:$0xff] }
 0x591   :  { %v12016_v52 = vpop.permute.xlu1 %4370  ;;  %15296 = vst [vmem:[#allocation34_spill] sm:$0xff] %v12032_v40  ;;  %8068 = vpow2.f32 %v4122_v1  ;;  %v4130_v1 = vmul.f32 1.442695, %v3907_v12  ;;  %v15314_v12 = vld [vmem:[#allocation263_spill] sm:$0xff] }
 0x592   :  { %15291 = vst [vmem:[#allocation73_spill] sm:$0xff] %v12016_v52  ;;  %v12020_v38 = vpop.permute.xlu0 %4328  ;;  %4562 = vperm.xlu1 %7655, %v12014_v48   ;;  %8070 = vpow2.f32 %v4072_v54  ;;  %v3909_v54 = vsub.f32 %v15310_v47, %v12067_v55  ;;  %v15315_v47 = vld [vmem:[#allocation221_spill] sm:$0xff] }
 0x593   :  { %4487 = vperm.xlu0 %7654, %v12018_v45   ;;  %v12042_v45 = vpop.eup %8052  ;;  %8072 = vpow2.f32 %v4126_v31 }
 0x594   :  { %15299 = vst [vmem:[#allocation83_spill] sm:$0xff] %v12042_v45  ;;  %v12046_v43 = vpop.eup %8054  ;;  %8074 = vpow2.f32 %v4076_v35  ;;  %v4134_v31 = vmul.f32 1.442695, %v3909_v54  ;;  %v15318_v54 = vld [vmem:[#allocation266_spill] sm:$0xff] }
 0x595   :  { %v12030_v59 = vpop.permute.xlu1 %4376  ;;  %15300 = vst [vmem:[#allocation36_spill] sm:$0xff] %v12046_v43  ;;  %8076 = vpow2.f32 %v4130_v1 }
 0x596   :  { %v12034_v14 = vpop.permute.xlu0 %4331  ;;  %4568 = vperm.xlu1 %7655, %v12028_v50  }
 0x597   :  { %4493 = vperm.xlu0 %7654, %v12032_v40   ;;  %v12056_v40 = vpop.eup %8056 }
 0x598   :  { %15303 = vst [vmem:[#allocation87_spill] sm:$0xff] %v12056_v40  ;;  %v12060_v4 = vpop.eup %8058 }
 0x599   :  { %v12044_v48 = vpop.permute.xlu1 %4382  ;;  %15304 = vst [vmem:[#allocation37_spill] sm:$0xff] %v12060_v4  ;;  %v12074_v60 = vpop.eup %8060 }
 0x59a   :  { %v12048_v41 = vpop.permute.xlu0 %4334  ;;  %4574 = vperm.xlu1 %7655, %v12042_v45   ;;  %15308 = vst [vmem:[#allocation93_spill] sm:$0xff] %v12074_v60 }
 0x59b   :  { %4499 = vperm.xlu0 %7654, %v12046_v43   ;;  %v15307_v43 = vld [vmem:[#allocation44_spill] sm:$0xff] }
 0x59c   :  { %v3882_v45 = vsub.f32 %v15307_v43, %v11879_v18  ;;  %v15311_v43 = vld [vmem:[#allocation220_spill] sm:$0xff] }
 0x59d   :  { %v12058_v50 = vpop.permute.xlu1 %4388  ;;  %v3884_v11 = vsub.f32 %v15311_v43, %v11879_v18  ;;  %v3886_v43 = vsub.f32 %v15315_v47, %v11879_v18 }
 0x59e   :  { %v12062_v8 = vpop.permute.xlu0 %4337  ;;  %4580 = vperm.xlu1 %7655, %v12056_v40   ;;  %v12078_v40 = vpop.eup %8062  ;;  %v4080_v32 = vmul.f32 1.442695, %v3882_v45  ;;  %v3911_v45 = vsub.f32 %v15314_v12, %v12067_v55  ;;  %v15319_v12 = vld [vmem:[#allocation224_spill] sm:$0xff] }
 0x59f   :  { %4505 = vperm.xlu0 %7654, %v12060_v4   ;;  %15309 = vst [vmem:[#allocation38_spill] sm:$0xff] %v12078_v40  ;;  %v12088_v4 = vpop.eup %8064  ;;  %v4084_v35 = vmul.f32 1.442695, %v3884_v11  ;;  %v4088_v11 = vmul.f32 1.442695, %v3886_v43  ;;  %v3888_v47 = vsub.f32 %v15319_v12, %v11879_v18 }
 0x5a0   :  { %15312 = vst [vmem:[#allocation97_spill] sm:$0xff] %v12088_v4  ;;  %v12092_v56 = vpop.eup %8066  ;;  %8078 = vpow2.f32 %v4080_v32  ;;  %v4138_v1 = vmul.f32 1.442695, %v3911_v45  ;;  %v3913_v32 = vsub.f32 %v15318_v54, %v12067_v55  ;;  %v15323_v45 = vld [vmem:[#allocation268_spill] sm:$0xff] }
 0x5a1   :  { %v12076_v2 = vpop.permute.xlu1 %4394  ;;  %15313 = vst [vmem:[#allocation39_spill] sm:$0xff] %v12092_v56  ;;  %8080 = vpow2.f32 %v4134_v31  ;;  %v4092_v43 = vmul.f32 1.442695, %v3888_v47  ;;  %v15324_v54 = vld [vmem:[#allocation228_spill] sm:$0xff] }
 0x5a2   :  { %v12080_v36 = vpop.permute.xlu0 %4340  ;;  %4586 = vperm.xlu1 %7655, %v12074_v60   ;;  %8082 = vpow2.f32 %v4084_v35  ;;  %v4142_v31 = vmul.f32 1.442695, %v3913_v32  ;;  %v3915_v35 = vsub.f32 %v15323_v45, %v12067_v55  ;;  %v3890_v12 = vsub.f32 %v15324_v54, %v11879_v18  ;;  %v15328_v32 = vld [vmem:[#allocation270_spill] sm:$0xff] }
 0x5a3   :  { %4511 = vperm.xlu0 %7654, %v12078_v40   ;;  %v12102_v40 = vpop.eup %8068  ;;  %8084 = vpow2.f32 %v4138_v1  ;;  %v15329_v18 = vld [vmem:[#allocation238_spill] sm:$0xff] }
 0x5a4   :  { %15316 = vst [vmem:[#allocation103_spill] sm:$0xff] %v12102_v40  ;;  %v12106_v27 = vpop.eup %8070  ;;  %8086 = vpow2.f32 %v4088_v11  ;;  %v4146_v1 = vmul.f32 1.442695, %v3915_v35  ;;  %v3917_v11 = vsub.f32 %v15328_v32, %v12067_v55  ;;  %v4096_v47 = vmul.f32 1.442695, %v3890_v12  ;;  %v15332_v35 = vld [vmem:[#allocation272_spill] sm:$0xff] }
 0x5a5   :  { %v12090_v53 = vpop.permute.xlu1 %4400  ;;  %15317 = vst [vmem:[#allocation40_spill] sm:$0xff] %v12106_v27  ;;  %8088 = vpow2.f32 %v4142_v31  ;;  %v3892_v45 = vsub.f32 %v15329_v18, %v11963_v19  ;;  %v15333_v32 = vld [vmem:[#allocation241_spill] sm:$0xff] }
 0x5a6   :  { %v12094_v15 = vpop.permute.xlu0 %4343  ;;  %4592 = vperm.xlu1 %7655, %v12088_v4   ;;  %8090 = vpow2.f32 %v4092_v43  ;;  %v4150_v31 = vmul.f32 1.442695, %v3917_v11  ;;  %v3919_v43 = vsub.f32 %v15332_v35, %v12067_v55  ;;  %v3894_v18 = vsub.f32 %v15333_v32, %v11963_v19  ;;  %v15336_v11 = vld [vmem:[#allocation275_spill] sm:$0xff]  ;;  %v15337_v35 = vld [vmem:[#allocation246_spill] sm:$0xff] }
 0x5a7   :  { %4517 = vperm.xlu0 %7654, %v12092_v56   ;;  %v12116_v56 = vpop.eup %8072  ;;  %8092 = vpow2.f32 %v4146_v1  ;;  %v4100_v12 = vmul.f32 1.442695, %v3892_v45  ;;  %v3896_v32 = vsub.f32 %v15337_v35, %v11963_v19 }
 0x5a8   :  { %15320 = vst [vmem:[#allocation107_spill] sm:$0xff] %v12116_v56  ;;  %v12120_v17 = vpop.eup %8074  ;;  %8094 = vpow2.f32 %v4096_v47  ;;  %v4154_v1 = vmul.f32 1.442695, %v3919_v43  ;;  %v3921_v47 = vsub.f32 %v15336_v11, %v12067_v55  ;;  %v4104_v45 = vmul.f32 1.442695, %v3894_v18  ;;  %v15341_v18 = vld [vmem:[#allocation277_spill] sm:$0xff] }
 0x5a9   :  { %v12104_v60 = vpop.permute.xlu1 %4406  ;;  %15322 = vst [vmem:[#allocation113_spill] sm:$0xff] %v12120_v17  ;;  %8096 = vpow2.f32 %v4150_v31  ;;  %v15340_v31 = vld [vmem:[#allocation282_spill] sm:$0xff]  ;;  %v3923_v11 = vsub.f32 %v15341_v18, %v12067_v55  ;;  %v4108_v35 = vmul.f32 1.442695, %v3896_v32 }
 0x5aa   :  { %v12108_v21 = vpop.permute.xlu0 %4346  ;;  %4598 = vperm.xlu1 %7655, %v12102_v40   ;;  %8098 = vpow2.f32 %v4100_v12  ;;  %v12183_v43 = vrot.slane %v11634_v20, %v15340_v31  ;;  %v4158_v12 = vmul.f32 1.442695, %v3921_v47  ;;  %v15346_v47 = vld [vmem:[#allocation279_spill] sm:$0xff] }
 0x5ab   :  { %4523 = vperm.xlu0 %7654, %v12106_v27   ;;  %v12130_v27 = vpop.eup %8076  ;;  %8100 = vpow2.f32 %v4154_v1  ;;  %v4162_v1 = vmul.f32 1.442695, %v3923_v11  ;;  %v15351_v11 = vld [vmem:[#allocation281_spill] sm:$0xff] }
 0x5ac   :  { %15325 = vst [vmem:[#allocation48_spill] sm:$0xff] %v12130_v27  ;;  %v12134_v0 = vpop.eup %8078  ;;  %8102 = vpow2.f32 %v4104_v45  ;;  %v3925_v45 = vsub.f32 %v15346_v47, %v12183_v43  ;;  %v15352_v47 = vld [vmem:[#allocation255_spill] sm:$0xff] }
 0x5ad   :  { %v12118_v4 = vpop.permute.xlu1 %4412  ;;  %15327 = vst [vmem:[#allocation54_spill] sm:$0xff] %v12134_v0  ;;  %v12144_v54 = vpop.eup %8080  ;;  %8104 = vpow2.f32 %v4158_v12 }
 0x5ae   :  { %15321 = vst [vmem:[#allocation42_spill] sm:$0xff] %v12118_v4  ;;  %v12122_v33 = vpop.permute.xlu0 %4349  ;;  %4604 = vperm.xlu1 %7655, %v12116_v56   ;;  %15330 = vst [vmem:[#allocation123_spill] sm:$0xff] %v12144_v54  ;;  %v12148_v56 = vpop.eup %8082  ;;  %8106 = vpow2.f32 %v4108_v35  ;;  %v4166_v12 = vmul.f32 1.442695, %v3925_v45  ;;  %v15356_v45 = vld [vmem:[#allocation284_spill] sm:$0xff] }
 0x5af   :  { %4529 = vperm.xlu0 %7654, %v12120_v17   ;;  %15331 = vst [vmem:[#allocation59_spill] sm:$0xff] %v12148_v56  ;;  %8108 = vpow2.f32 %v4162_v1 }
 0x5b1   :  { %v12132_v40 = vpop.permute.xlu1 %4418 }
 0x5b2   :  { %15326 = vst [vmem:[#allocation117_spill] sm:$0xff] %v12132_v40  ;;  %v12136_v3 = vpop.permute.xlu0 %4355  ;;  %4610 = vperm.xlu1 %7655, %v12130_v27  }
 0x5b3   :  { %4535 = vperm.xlu0 %7654, %v12134_v0   ;;  %v12158_v0 = vpop.eup %8084 }
 0x5b4   :  { %15334 = vst [vmem:[#allocation128_spill] sm:$0xff] %v12158_v0  ;;  %v12162_v58 = vpop.eup %8086 }
 0x5b5   :  { %v12146_v17 = vpop.permute.xlu1 %4424  ;;  %15335 = vst [vmem:[#allocation64_spill] sm:$0xff] %v12162_v58 }
 0x5b6   :  { %v12150_v37 = vpop.permute.xlu0 %4358  ;;  %4616 = vperm.xlu1 %7655, %v12144_v54  }
 0x5b7   :  { %4541 = vperm.xlu0 %7654, %v12148_v56   ;;  %v12172_v56 = vpop.eup %8088 }
 0x5b8   :  { %15338 = vst [vmem:[#allocation133_spill] sm:$0xff] %v12172_v56  ;;  %v12176_v24 = vpop.eup %8090 }
 0x5b9   :  { %v12160_v27 = vpop.permute.xlu1 %4430  ;;  %15339 = vst [vmem:[#allocation69_spill] sm:$0xff] %v12176_v24  ;;  %v12190_v44 = vpop.eup %8092 }
 0x5ba   :  { %v12164_v13 = vpop.permute.xlu0 %4361  ;;  %4622 = vperm.xlu1 %7655, %v12158_v0   ;;  %15343 = vst [vmem:[#allocation141_spill] sm:$0xff] %v12190_v44 }
 0x5bb   :  { %4547 = vperm.xlu0 %7654, %v12162_v58   ;;  %v15342_v58 = vld [vmem:[#allocation251_spill] sm:$0xff] }
 0x5bc   :  { %v3898_v0 = vsub.f32 %v15342_v58, %v11963_v19  ;;  %v15347_v58 = vld [vmem:[#allocation253_spill] sm:$0xff] }
 0x5bd   :  { %v12174_v54 = vpop.permute.xlu1 %4436  ;;  %v3900_v18 = vsub.f32 %v15347_v58, %v11963_v19  ;;  %v3902_v58 = vsub.f32 %v15352_v47, %v11963_v19 }
 0x5be   :  { %v12178_v7 = vpop.permute.xlu0 %4364  ;;  %4628 = vperm.xlu1 %7655, %v12172_v56   ;;  %v12194_v56 = vpop.eup %8094  ;;  %v4112_v32 = vmul.f32 1.442695, %v3898_v0  ;;  %v3927_v0 = vsub.f32 %v15351_v11, %v12183_v43  ;;  %v15357_v11 = vld [vmem:[#allocation257_spill] sm:$0xff] }
 0x5bf   :  { %4553 = vperm.xlu0 %7654, %v12176_v24   ;;  %15344 = vst [vmem:[#allocation74_spill] sm:$0xff] %v12194_v56  ;;  %v12204_v24 = vpop.eup %8096  ;;  %v4116_v35 = vmul.f32 1.442695, %v3900_v18  ;;  %v4120_v18 = vmul.f32 1.442695, %v3902_v58  ;;  %v3904_v47 = vsub.f32 %v15357_v11, %v11963_v19 }
 0x5c0   :  { %15348 = vst [vmem:[#allocation79_spill] sm:$0xff] %v12204_v24  ;;  %v12208_v6 = vpop.eup %8098  ;;  %8110 = vpow2.f32 %v4112_v32  ;;  %v4170_v1 = vmul.f32 1.442695, %v3927_v0  ;;  %v3929_v32 = vsub.f32 %v15356_v45, %v12183_v43  ;;  %v15361_v0 = vld [vmem:[#allocation286_spill] sm:$0xff] }
 0x5c1   :  { %v12192_v46 = vpop.permute.xlu1 %4442  ;;  %15350 = vst [vmem:[#allocation84_spill] sm:$0xff] %v12208_v6  ;;  %8112 = vpow2.f32 %v4166_v12  ;;  %v4124_v58 = vmul.f32 1.442695, %v3904_v47  ;;  %v15362_v45 = vld [vmem:[#allocation258_spill] sm:$0xff] }
 0x5c2   :  { %v12196_v20 = vpop.permute.xlu0 %4367  ;;  %4634 = vperm.xlu1 %7655, %v12190_v44   ;;  %v12218_v44 = vpop.eup %8100  ;;  %8114 = vpow2.f32 %v4116_v35  ;;  %v4174_v12 = vmul.f32 1.442695, %v3929_v32  ;;  %v3931_v35 = vsub.f32 %v15361_v0, %v12183_v43  ;;  %v3906_v11 = vsub.f32 %v15362_v45, %v11963_v19  ;;  %v15366_v32 = vld [vmem:[#allocation288_spill] sm:$0xff]  ;;  %v15367_v19 = vld [vmem:[#allocation262_spill] sm:$0xff] }
 0x5c3   :  { %15345 = vst [vmem:[#allocation149_spill] sm:$0xff] %v12196_v20  ;;  %4559 = vperm.xlu0 %7654, %v12194_v56   ;;  %15353 = vst [vmem:[#allocation159_spill] sm:$0xff] %v12218_v44  ;;  %v12222_v51 = vpop.eup %8102  ;;  %8116 = vpow2.f32 %v4170_v1  ;;  %v3908_v0 = vsub.f32 %v15367_v19, %v12067_v55 }
 0x5c4   :  { %15355 = vst [vmem:[#allocation165_spill] sm:$0xff] %v12222_v51  ;;  %8118 = vpow2.f32 %v4120_v18  ;;  %v4178_v1 = vmul.f32 1.442695, %v3931_v35  ;;  %v3933_v18 = vsub.f32 %v15366_v32, %v12183_v43  ;;  %v4128_v47 = vmul.f32 1.442695, %v3906_v11  ;;  %v15371_v35 = vld [vmem:[#allocation157_spill] sm:$0xff] }
 0x5c5   :  { %v12206_v31 = vpop.permute.xlu1 %4448  ;;  %8120 = vpow2.f32 %v4174_v12  ;;  %v4132_v11 = vmul.f32 1.442695, %v3908_v0  ;;  %v15372_v32 = vld [vmem:[#allocation265_spill] sm:$0xff] }
 0x5c6   :  { %15349 = vst [vmem:[#allocation195_spill] sm:$0xff] %v12206_v31  ;;  %v12210_v29 = vpop.permute.xlu0 %4373  ;;  %4640 = vperm.xlu1 %7655, %v12204_v24   ;;  %v12232_v24 = vpop.eup %8104  ;;  %8122 = vpow2.f32 %v4124_v58  ;;  %v4182_v12 = vmul.f32 1.442695, %v3933_v18  ;;  %v3935_v58 = vsub.f32 %v15371_v35, %v12183_v43  ;;  %v3910_v19 = vsub.f32 %v15372_v32, %v12067_v55  ;;  %v15376_v18 = vld [vmem:[#allocation204_spill] sm:$0xff]  ;;  %v15377_v35 = vld [vmem:[#allocation267_spill] sm:$0xff] }
 0x5c7   :  { %4565 = vperm.xlu0 %7654, %v12208_v6   ;;  %15358 = vst [vmem:[#allocation94_spill] sm:$0xff] %v12232_v24  ;;  %8124 = vpow2.f32 %v4178_v1  ;;  %v3912_v32 = vsub.f32 %v15377_v35, %v12067_v55 }
 0x5c8   :  { %8126 = vpow2.f32 %v4128_v47  ;;  %v4186_v1 = vmul.f32 1.442695, %v3935_v58  ;;  %v3937_v47 = vsub.f32 %v15376_v18, %v12183_v43  ;;  %v4136_v0 = vmul.f32 1.442695, %v3910_v19  ;;  %v15381_v58 = vld [vmem:[#allocation206_spill] sm:$0xff]  ;;  %v15382_v18 = vld [vmem:[#allocation269_spill] sm:$0xff] }
 0x5c9   :  { %v12220_v56 = vpop.permute.xlu1 %4454  ;;  %8128 = vpow2.f32 %v4182_v12  ;;  %v4140_v19 = vmul.f32 1.442695, %v3912_v32  ;;  %v3914_v35 = vsub.f32 %v15382_v18, %v12067_v55 }
 0x5ca   :  { %15354 = vst [vmem:[#allocation89_spill] sm:$0xff] %v12220_v56  ;;  %v12224_v40 = vpop.permute.xlu0 %4379  ;;  %4646 = vperm.xlu1 %7655, %v12218_v44   ;;  %v12236_v56 = vpop.eup %8106  ;;  %8130 = vpow2.f32 %v4132_v11  ;;  %v4190_v12 = vmul.f32 1.442695, %v3937_v47  ;;  %v3939_v11 = vsub.f32 %v15381_v58, %v12183_v43 }
 0x5cb   :  { %4571 = vperm.xlu0 %7654, %v12222_v51   ;;  %15360 = vst [vmem:[#allocation99_spill] sm:$0xff] %v12236_v56  ;;  %v12246_v44 = vpop.eup %8108  ;;  %8132 = vpow2.f32 %v4186_v1  ;;  %v4144_v47 = vmul.f32 1.442695, %v3914_v35 }
 0x5cc   :  { %15363 = vst [vmem:[#allocation212_spill] sm:$0xff] %v12246_v44  ;;  %8134 = vpow2.f32 %v4136_v0  ;;  %v4194_v1 = vmul.f32 1.442695, %v3939_v11  ;;  %v15387_v0 = vld [vmem:[#allocation271_spill] sm:$0xff]  ;;  %v15391_v11 = vld [vmem:[#allocation274_spill] sm:$0xff] }
 0x5cd   :  { %v12234_v6 = vpop.permute.xlu1 %4460  ;;  %8136 = vpow2.f32 %v4190_v12  ;;  %v3916_v32 = vsub.f32 %v15387_v0, %v12067_v55 }
 0x5ce   :  { %15359 = vst [vmem:[#allocation208_spill] sm:$0xff] %v12234_v6  ;;  %v12238_v52 = vpop.permute.xlu0 %4385  ;;  %4652 = vperm.xlu1 %7655, %v12232_v24   ;;  %v12250_v6 = vpop.eup %8110  ;;  %8138 = vpow2.f32 %v4140_v19  ;;  %v3918_v19 = vsub.f32 %v15391_v11, %v12067_v55 }
 0x5cf   :  { %4577 = vperm.xlu0 %7654, %v12236_v56   ;;  %15365 = vst [vmem:[#allocation183_spill] sm:$0xff] %v12250_v6  ;;  %v12260_v45 = vpop.eup %8112  ;;  %8140 = vpow2.f32 %v4194_v1  ;;  %v4148_v12 = vmul.f32 1.442695, %v3916_v32  ;;  %v15395_v1 = vld [vmem:[#allocation276_spill] sm:$0xff] }
 0x5d0   :  { %15368 = vst [vmem:[#allocation110_spill] sm:$0xff] %v12260_v45  ;;  %v12264_v56 = vpop.eup %8114  ;;  %8142 = vpow2.f32 %v4144_v47  ;;  %v3920_v47 = vsub.f32 %v15395_v1, %v12067_v55 }
 0x5d1   :  { %v12248_v51 = vpop.permute.xlu1 %4466  ;;  %15370 = vst [vmem:[#allocation114_spill] sm:$0xff] %v12264_v56  ;;  %8144 = vpow2.f32 %v4148_v12  ;;  %v15399_v12 = vld [vmem:[#allocation278_spill] sm:$0xff] }
 0x5d2   :  { %15364 = vst [vmem:[#allocation104_spill] sm:$0xff] %v12248_v51  ;;  %v12252_v34 = vpop.permute.xlu0 %4391  ;;  %4658 = vperm.xlu1 %7655, %v12246_v44   ;;  %v12274_v44 = vpop.eup %8116 }
 0x5d3   :  { %4583 = vperm.xlu0 %7654, %v12250_v6   ;;  %15373 = vst [vmem:[#allocation188_spill] sm:$0xff] %v12274_v44  ;;  %v12278_v31 = vpop.eup %8118 }
 0x5d4   :  { %15375 = vst [vmem:[#allocation189_spill] sm:$0xff] %v12278_v31 }
 0x5d5   :  { %v12262_v24 = vpop.permute.xlu1 %4472 }
 0x5d6   :  { %15369 = vst [vmem:[#allocation219_spill] sm:$0xff] %v12262_v24  ;;  %v12266_v51 = vpop.permute.xlu0 %4397  ;;  %4664 = vperm.xlu1 %7655, %v12260_v45   ;;  %v12288_v45 = vpop.eup %8120 }
 0x5d7   :  { %4589 = vperm.xlu0 %7654, %v12264_v56   ;;  %15378 = vst [vmem:[#allocation124_spill] sm:$0xff] %v12288_v45 }
 0x5d9   :  { %v12276_v6 = vpop.permute.xlu1 %4478 }
 0x5da   :  { %15374 = vst [vmem:[#allocation120_spill] sm:$0xff] %v12276_v6  ;;  %v12280_v4 = vpop.permute.xlu0 %4403  ;;  %4670 = vperm.xlu1 %7655, %v12274_v44   ;;  %v12292_v6 = vpop.eup %8122 }
 0x5db   :  { %4595 = vperm.xlu0 %7654, %v12278_v31   ;;  %15380 = vst [vmem:[#allocation130_spill] sm:$0xff] %v12292_v6  ;;  %v12302_v44 = vpop.eup %8124 }
 0x5dc   :  { %15383 = vst [vmem:[#allocation229_spill] sm:$0xff] %v12302_v44 }
 0x5dd   :  { %v12290_v56 = vpop.permute.xlu1 %4484 }
 0x5de   :  { %15379 = vst [vmem:[#allocation227_spill] sm:$0xff] %v12290_v56  ;;  %v12294_v24 = vpop.permute.xlu0 %4409  ;;  %4676 = vperm.xlu1 %7655, %v12288_v45   ;;  %v12306_v56 = vpop.eup %8126 }
 0x5df   :  { %4601 = vperm.xlu0 %7654, %v12292_v6   ;;  %15385 = vst [vmem:[#allocation234_spill] sm:$0xff] %v12306_v56  ;;  %v12314_v58 = vpop.eup %8128 }
 0x5e0   :  { %15388 = vst [vmem:[#allocation236_spill] sm:$0xff] %v12314_v58  ;;  %v12318_v6 = vpop.eup %8130 }
 0x5e1   :  { %v12304_v31 = vpop.permute.xlu1 %4490  ;;  %15390 = vst [vmem:[#allocation240_spill] sm:$0xff] %v12318_v6  ;;  %v12326_v35 = vpop.eup %8132 }
 0x5e2   :  { %15384 = vst [vmem:[#allocation134_spill] sm:$0xff] %v12304_v31  ;;  %v12308_v20 = vpop.permute.xlu0 %4415  ;;  %4682 = vperm.xlu1 %7655, %v12302_v44   ;;  %15392 = vst [vmem:[#allocation200_spill] sm:$0xff] %v12326_v35  ;;  %v15406_v31 = vld [vmem:[#allocation283_spill] sm:$0xff] }
 0x5e3   :  { %15386 = vst [vmem:[#allocation143_spill] sm:$0xff] %v12308_v20  ;;  %4607 = vperm.xlu0 %7654, %v12306_v56   ;;  %v12330_v56 = vpop.eup %8134 }
 0x5e4   :  { %15394 = vst [vmem:[#allocation164_spill] sm:$0xff] %v12330_v56  ;;  %v12338_v32 = vpop.eup %8136 }
 0x5e5   :  { %v12316_v18 = vpop.permute.xlu1 %4496  ;;  %15396 = vst [vmem:[#allocation250_spill] sm:$0xff] %v12338_v32 }
 0x5e6   :  { %15389 = vst [vmem:[#allocation150_spill] sm:$0xff] %v12316_v18  ;;  %v12320_v45 = vpop.permute.xlu0 %4421  ;;  %4688 = vperm.xlu1 %7655, %v12314_v58   ;;  %v12342_v58 = vpop.eup %8138 }
 0x5e7   :  { %4613 = vperm.xlu0 %7654, %v12318_v6   ;;  %v4152_v6 = vmul.f32 1.442695, %v3918_v19  ;;  %15398 = vst [vmem:[#allocation252_spill] sm:$0xff] %v12342_v58  ;;  %v3922_v19 = vsub.f32 %v15399_v12, %v12067_v55 }
 0x5e9   :  { %v12328_v0 = vpop.permute.xlu1 %4502  ;;  %8146 = vpow2.f32 %v4152_v6  ;;  %v15403_v6 = vld [vmem:[#allocation280_spill] sm:$0xff] }
 0x5ea   :  { %15393 = vst [vmem:[#allocation245_spill] sm:$0xff] %v12328_v0  ;;  %v12332_v44 = vpop.permute.xlu0 %4427  ;;  %4694 = vperm.xlu1 %7655, %v12326_v35   ;;  %v4156_v35 = vmul.f32 1.442695, %v3920_v47  ;;  %v3924_v47 = vsub.f32 %v15403_v6, %v12183_v43 }
 0x5eb   :  { %4619 = vperm.xlu0 %7654, %v12330_v56   ;;  %v12350_v56 = vpop.eup %8140 }
 0x5ec   :  { %15400 = vst [vmem:[#allocation178_spill] sm:$0xff] %v12350_v56  ;;  %v12354_v18 = vpop.eup %8142  ;;  %8148 = vpow2.f32 %v4156_v35 }
 0x5ed   :  { %v12340_v11 = vpop.permute.xlu1 %4508  ;;  %15402 = vst [vmem:[#allocation211_spill] sm:$0xff] %v12354_v18  ;;  %v12364_v55 = vpop.eup %8144 }
 0x5ee   :  { %15397 = vst [vmem:[#allocation170_spill] sm:$0xff] %v12340_v11  ;;  %v12344_v0 = vpop.permute.xlu0 %4433  ;;  %4700 = vperm.xlu1 %7655, %v12338_v32   ;;  %v4160_v32 = vmul.f32 1.442695, %v3922_v19  ;;  %15405 = vst [vmem:[#allocation185_spill] sm:$0xff] %v12364_v55 }
 0x5ef   :  { %4625 = vperm.xlu0 %7654, %v12342_v58  }
 0x5f0   :  { %8150 = vpow2.f32 %v4160_v32 }
 0x5f1   :  { %v12352_v1 = vpop.permute.xlu1 %4514 }
 0x5f2   :  { %15401 = vst [vmem:[#allocation254_spill] sm:$0xff] %v12352_v1  ;;  %v12356_v11 = vpop.permute.xlu0 %4439  ;;  %4706 = vperm.xlu1 %7655, %v12350_v56   ;;  %v4164_v1 = vmul.f32 1.442695, %v3924_v47  ;;  %v3926_v56 = vsub.f32 %v15406_v31, %v12183_v43 }
 0x5f3   :  { %4631 = vperm.xlu0 %7654, %v12354_v18   ;;  %v12373_v35 = vpop.eup %8146  ;;  %v15410_v18 = vld [vmem:[#allocation285_spill] sm:$0xff] }
 0x5f4   :  { %15408 = vst [vmem:[#allocation44_spill] sm:$0xff] %v12373_v35  ;;  %8152 = vpow2.f32 %v4164_v1  ;;  %v4168_v6 = vmul.f32 1.442695, %v3926_v56 }
 0x5f5   :  { %v12362_v58 = vpop.permute.xlu1 %4520 }
 0x5f6   :  { %15404 = vst [vmem:[#allocation256_spill] sm:$0xff] %v12362_v58  ;;  %v12366_v12 = vpop.permute.xlu0 %4445  ;;  %v3928_v58 = vsub.f32 %v15410_v18, %v12183_v43  ;;  %v12382_v32 = vpop.eup %8148  ;;  %8154 = vpow2.f32 %v4168_v6 }
 0x5f7   :  { %4637 = vperm.xlu0 %7654, %v12364_v55   ;;  %15412 = vst [vmem:[#allocation263_spill] sm:$0xff] %v12382_v32  ;;  %v15414_v55 = vld [vmem:[#allocation287_spill] sm:$0xff] }
 0x5f8   :  { %v4172_v31 = vmul.f32 1.442695, %v3928_v58 }
 0x5f9   :  { %v12371_v20 = vpop.permute.xlu1 %4526 }
 0x5fa   :  { %15407 = vst [vmem:[#allocation261_spill] sm:$0xff] %v12371_v20  ;;  %v12375_v19 = vpop.permute.xlu0 %4451  ;;  %v3930_v20 = vsub.f32 %v15414_v55, %v12183_v43  ;;  %v12391_v1 = vpop.eup %8150  ;;  %8156 = vpow2.f32 %v4172_v31 }
 0x5fb   :  { %15409 = vst [vmem:[#allocation25_spill] sm:$0xff] %v12375_v19  ;;  %4643 = vperm.xlu0 %7654, %v12373_v35   ;;  %15416 = vst [vmem:[#allocation224_spill] sm:$0xff] %v12391_v1  ;;  %v15418_v35 = vld [vmem:[#allocation289_spill] sm:$0xff] }
 0x5fc   :  { %v4176_v18 = vmul.f32 1.442695, %v3930_v20 }
 0x5fd   :  { %v12380_v28 = vpop.permute.xlu1 %4532 }
 0x5fe   :  { %15411 = vst [vmem:[#allocation220_spill] sm:$0xff] %v12380_v28  ;;  %v12384_v47 = vpop.permute.xlu0 %4457  ;;  %v3932_v28 = vsub.f32 %v15418_v35, %v12183_v43  ;;  %v12400_v6 = vpop.eup %8152  ;;  %8158 = vpow2.f32 %v4176_v18 }
 0x5ff   :  { %15413 = vst [vmem:[#allocation221_spill] sm:$0xff] %v12384_v47  ;;  %4649 = vperm.xlu0 %7654, %v12382_v32   ;;  %15420 = vst [vmem:[#allocation270_spill] sm:$0xff] %v12400_v6  ;;  %v15422_v32 = vld [vmem:[#allocation291_spill] sm:$0xff] }
 0x600   :  { %v4180_v55 = vmul.f32 1.442695, %v3932_v28  ;;  %v12409_v31 = vpop.eup %8154 }
 0x601   :  { %v12389_v19 = vpop.permute.xlu1 %4538  ;;  %15424 = vst [vmem:[#allocation241_spill] sm:$0xff] %v12409_v31 }
 0x602   :  { %15415 = vst [vmem:[#allocation266_spill] sm:$0xff] %v12389_v19  ;;  %v12393_v56 = vpop.permute.xlu0 %4463  ;;  %v3934_v19 = vsub.f32 %v15422_v32, %v12183_v43  ;;  %8160 = vpow2.f32 %v4180_v55 }
 0x603   :  { %15417 = vst [vmem:[#allocation268_spill] sm:$0xff] %v12393_v56  ;;  %4655 = vperm.xlu0 %7654, %v12391_v1   ;;  %v15426_v1 = vld [vmem:[#allocation293_spill] sm:$0xff] }
 0x604   :  { %v4184_v35 = vmul.f32 1.442695, %v3934_v19  ;;  %v12418_v18 = vpop.eup %8156 }
 0x605   :  { %v12398_v47 = vpop.permute.xlu1 %4544  ;;  %15428 = vst [vmem:[#allocation277_spill] sm:$0xff] %v12418_v18 }
 0x606   :  { %15419 = vst [vmem:[#allocation228_spill] sm:$0xff] %v12398_v47  ;;  %v12402_v58 = vpop.permute.xlu0 %4469  ;;  %v3936_v47 = vsub.f32 %v15426_v1, %v12183_v43  ;;  %8162 = vpow2.f32 %v4184_v35 }
 0x607   :  { %15421 = vst [vmem:[#allocation238_spill] sm:$0xff] %v12402_v58  ;;  %4661 = vperm.xlu0 %7654, %v12400_v6   ;;  %v15429_v6 = vld [vmem:[#allocation295_spill] sm:$0xff] }
 0x608   :  { %v4188_v32 = vmul.f32 1.442695, %v3936_v47  ;;  %v12427_v55 = vpop.eup %8158 }
 0x609   :  { %v12407_v56 = vpop.permute.xlu1 %4550  ;;  %15431 = vst [vmem:[#allocation279_spill] sm:$0xff] %v12427_v55 }
 0x60a   :  { %15423 = vst [vmem:[#allocation272_spill] sm:$0xff] %v12407_v56  ;;  %v12411_v20 = vpop.permute.xlu0 %4475  ;;  %v3938_v56 = vsub.f32 %v15429_v6, %v12183_v43  ;;  %8164 = vpow2.f32 %v4188_v32 }
 0x60b   :  { %15425 = vst [vmem:[#allocation275_spill] sm:$0xff] %v12411_v20  ;;  %4667 = vperm.xlu0 %7654, %v12409_v31  }
 0x60c   :  { %v4192_v1 = vmul.f32 1.442695, %v3938_v56  ;;  %v12432_v31 = vpop.eup %8160 }
 0x60d   :  { %v12416_v58 = vpop.permute.xlu1 %4556  ;;  %15432 = vst [vmem:[#allocation253_spill] sm:$0xff] %v12432_v31 }
 0x60e   :  { %15427 = vst [vmem:[#allocation246_spill] sm:$0xff] %v12416_v58  ;;  %v12420_v28 = vpop.permute.xlu0 %4481  ;;  %8166 = vpow2.f32 %v4192_v1 }
 0x60f   :  { %4673 = vperm.xlu0 %7654, %v12418_v18  }
 0x610   :  { %v12439_v43 = vpop.eup %8162 }
 0x611   :  { %v12425_v20 = vpop.permute.xlu1 %4562  ;;  %15434 = vst [vmem:[#allocation255_spill] sm:$0xff] %v12439_v43 }
 0x612   :  { %15430 = vst [vmem:[#allocation251_spill] sm:$0xff] %v12425_v20  ;;  %v12429_v19 = vpop.permute.xlu0 %4487 }
 0x613   :  { %4679 = vperm.xlu0 %7654, %v12427_v55  }
 0x614   :  { %v12446_v35 = vpop.eup %8164 }
 0x615   :  { %v12436_v18 = vpop.permute.xlu1 %4568  ;;  %15437 = vst [vmem:[#allocation286_spill] sm:$0xff] %v12446_v35 }
 0x616   :  { %v12434_v58 = vpop.permute.xlu0 %4493  ;;  %15433 = vst [vmem:[#allocation281_spill] sm:$0xff] %v12436_v18 }
 0x617   :  { %4685 = vperm.xlu0 %7654, %v12432_v31  }
 0x618   :  { %v12451_v32 = vpop.eup %8166 }
 0x619   :  { %v12444_v6 = vpop.permute.xlu1 %4574  ;;  %15439 = vst [vmem:[#allocation288_spill] sm:$0xff] %v12451_v32 }
 0x61a   :  { %v12441_v47 = vpop.permute.xlu0 %4499  ;;  %15436 = vst [vmem:[#allocation257_spill] sm:$0xff] %v12444_v6 }
 0x61b   :  { %15435 = vst [vmem:[#allocation284_spill] sm:$0xff] %v12441_v47  ;;  %4691 = vperm.xlu0 %7654, %v12439_v43  }
 0x61d   :  { %v12455_v31 = vpop.permute.xlu1 %4580 }
 0x61e   :  { %v12448_v56 = vpop.permute.xlu0 %4505  ;;  %15441 = vst [vmem:[#allocation157_spill] sm:$0xff] %v12455_v31 }
 0x61f   :  { %15438 = vst [vmem:[#allocation258_spill] sm:$0xff] %v12448_v56  ;;  %4697 = vperm.xlu0 %7654, %v12446_v35  }
 0x621   :  { %v12460_v20 = vpop.permute.xlu1 %4586 }
 0x622   :  { %v12453_v55 = vpop.permute.xlu0 %4511  ;;  %15443 = vst [vmem:[#allocation204_spill] sm:$0xff] %v12460_v20 }
 0x623   :  { %15440 = vst [vmem:[#allocation262_spill] sm:$0xff] %v12453_v55  ;;  %4703 = vperm.xlu0 %7654, %v12451_v32  }
 0x625   :  { %v12466_v47 = vpop.permute.xlu1 %4592 }
 0x626   :  { %v12458_v1 = vpop.permute.xlu0 %4517  ;;  %15446 = vst [vmem:[#allocation269_spill] sm:$0xff] %v12466_v47 }
 0x627   :  { %15442 = vst [vmem:[#allocation265_spill] sm:$0xff] %v12458_v1 }
 0x629   :  { %v12470_v35 = vpop.permute.xlu1 %4598 }
 0x62a   :  { %v12462_v43 = vpop.permute.xlu0 %4523  ;;  %15448 = vst [vmem:[#allocation274_spill] sm:$0xff] %v12470_v35 }
 0x62b   :  { %15444 = vst [vmem:[#allocation267_spill] sm:$0xff] %v12462_v43 }
 0x62d   :  { %v12476_v31 = vpop.permute.xlu1 %4604 }
 0x62e   :  { %v12464_v6 = vpop.permute.xlu0 %4529  ;;  %15451 = vst [vmem:[#allocation280_spill] sm:$0xff] %v12476_v31 }
 0x62f   :  { %15445 = vst [vmem:[#allocation206_spill] sm:$0xff] %v12464_v6 }
 0x631   :  { %v12480_v1 = vpop.permute.xlu1 %4610 }
 0x632   :  { %v12468_v56 = vpop.permute.xlu0 %4535  ;;  %15453 = vst [vmem:[#allocation285_spill] sm:$0xff] %v12480_v1 }
 0x633   :  { %15447 = vst [vmem:[#allocation271_spill] sm:$0xff] %v12468_v56 }
 0x635   :  { %v12486_v6 = vpop.permute.xlu1 %4616 }
 0x636   :  { %v12472_v18 = vpop.permute.xlu0 %4541  ;;  %15455 = vst [vmem:[#allocation289_spill] sm:$0xff] %v12486_v6 }
 0x637   :  { %15449 = vst [vmem:[#allocation276_spill] sm:$0xff] %v12472_v18 }
 0x639   :  { %v12490_v56 = vpop.permute.xlu1 %4622 }
 0x63a   :  { %v12474_v55 = vpop.permute.xlu0 %4547  ;;  %15457 = vst [vmem:[#allocation293_spill] sm:$0xff] %v12490_v56  ;;  %v4799_v56 = vrot.slane %v12224_v40, %v11158_v16  ;;  %v4809_v40 = vrot.slane %v12238_v52, %v11176_v30 }
 0x63b   :  { %15450 = vst [vmem:[#allocation278_spill] sm:$0xff] %v12474_v55 }
 0x63d   :  { %v12496_v55 = vpop.permute.xlu1 %4628 }
 0x63e   :  { %v12478_v32 = vpop.permute.xlu0 %4553  ;;  %15459 = vst [vmem:[#allocation338_spill] sm:$0xff] %v12496_v55 }
 0x63f   :  { %15452 = vst [vmem:[#allocation283_spill] sm:$0xff] %v12478_v32 }
 0x641   :  { %v12500_v32 = vpop.permute.xlu1 %4634 }
 0x642   :  { %v12482_v20 = vpop.permute.xlu0 %4559  ;;  %15461 = vst [vmem:[#allocation340_spill] sm:$0xff] %v12500_v32 }
 0x643   :  { %15454 = vst [vmem:[#allocation287_spill] sm:$0xff] %v12482_v20  ;;  %v4790_v20 = vrot.slane %v12210_v29, %v11154_v23  ;;  %v4720_v29 = vrot.slane %v12034_v14, %v11158_v16 }
 0x646   :  { %v12484_v43 = vpop.permute.xlu0 %4565 }
 0x64a   :  { %v12488_v47 = vpop.permute.xlu0 %4571 }
 0x64b   :  { %15456 = vst [vmem:[#allocation291_spill] sm:$0xff] %v12488_v47  ;;  %v12510_v47 = vpop.permute.xlu1 %4640 }
 0x64c   :  { %15463 = vst [vmem:[#allocation342_spill] sm:$0xff] %v12510_v47  ;;  %v4711_v47 = vrot.slane %v12006_v26, %v11154_v23  ;;  %v4869_v26 = vrot.slane %v12320_v45, %v11154_v23  ;;  %v4740_v45 = vrot.slane %v12094_v15, %v11202_v61 }
 0x64e   :  { %v12492_v35 = vpop.permute.xlu0 %4577 }
 0x652   :  { %v12494_v18 = vpop.permute.xlu0 %4583 }
 0x653   :  { %15458 = vst [vmem:[#allocation295_spill] sm:$0xff] %v12494_v18  ;;  %v4794_v18 = vrot.slane %v12030_v59, %v11150_v57  ;;  %v4804_v59 = vrot.slane %v12044_v48, %v11171_v63 }
 0x655   :  { %v4795_v32 = vsel %vm3101_vm1, %v4794_v18, %v4790_v20  ;;  %v4730_v20 = vrot.slane %v12062_v8, %v11176_v30  ;;  %v12532_v18 = vpop.permute.xlu1 %4646  ;;  %v4819_v8 = vrot.slane %v12252_v34, %v11202_v61 }
 0x656   :  { %v12498_v31 = vpop.permute.xlu0 %4589 }
 0x657   :  { %15460 = vst [vmem:[#allocation339_spill] sm:$0xff] %v12498_v31  ;;  %v4715_v31 = vrot.slane %v12020_v38, %v11150_v57  ;;  %v4725_v38 = vrot.slane %v12048_v41, %v11171_v63 }
 0x659   :  { %v4716_v14 = vsel %vm3101_vm1, %v4715_v31, %v4711_v47  ;;  %v4878_v31 = vrot.slane %v12332_v44, %v11158_v16  ;;  %v4750_v44 = vrot.slane %v12122_v33, %v11210_v5  ;;  %v4824_v33 = vrot.slane %v12076_v2, %v11207_v22 }
 0x65a   :  { %v12502_v1 = vpop.permute.xlu0 %4595  ;;  %v4721_v48 = vsel %vm3108_vm2, %v4720_v29, %v4716_v14  ;;  %v12571_v14 = vpop.permute.xlu1 %4652  ;;  %v4839_v2 = vrot.slane %v12280_v4, %v11238_v9  ;;  %v4844_v4 = vrot.slane %v12104_v60, %v11247_v49  ;;  %v4849_v60 = vrot.slane %v12294_v24, %v11268_v25  ;;  %v15478_v24 = vld [vmem:[#allocation149_spill] sm:$0xff] }
 0x65b   :  { %v4726_v47 = vsel %vm3115_vm3, %v4725_v38, %v4721_v48 }
 0x65c   :  { %v4731_v29 = vsel %vm3122_vm4, %v4730_v20, %v4726_v47  ;;  %v4755_v47 = vrot.slane %v12002_v10, %v11216_v62  ;;  %v4770_v10 = vrot.slane %v12164_v13, %v11268_v25  ;;  %v4775_v13 = vrot.slane %v12178_v7, %v11271_v39 }
 0x65e   :  { %v12506_v6 = vpop.permute.xlu0 %4601 }
 0x65f   :  { %15462 = vst [vmem:[#allocation341_spill] sm:$0xff] %v12506_v6  ;;  %v4800_v6 = vsel %vm3108_vm2, %v4799_v56, %v4795_v32  ;;  %v4735_v56 = vrot.slane %v12080_v36, %v11186_v42  ;;  %v4814_v36 = vrot.slane %v12058_v50, %v11186_v42 }
 0x660   :  { %v4805_v52 = vsel %vm3115_vm3, %v4804_v59, %v4800_v6  ;;  %v4873_v6 = vrot.slane %v12146_v17, %v11150_v57  ;;  %v4829_v17 = vrot.slane %v12266_v51, %v11210_v5 }
 0x661   :  { %v4810_v41 = vsel %vm3122_vm4, %v4809_v40, %v4805_v52  ;;  %v4745_v40 = vrot.slane %v12108_v21, %v11207_v22  ;;  %v4736_v34 = vsel %vm15464_vm0, %v4735_v56, %v4731_v29  ;;  %v4888_v21 = vrot.slane %v12344_v0, %v11176_v30 }
 0x662   :  { %v12517_v55 = vpop.permute.xlu0 %4607  ;;  %v4815_v59 = vsel %vm15465_vm11, %v4814_v36, %v4810_v41  ;;  %v4874_v50 = vsel %vm3101_vm1, %v4873_v6, %v4869_v26  ;;  %vm15467_vm11 = vmmov %vm15466_vm9  ;;  %v4883_v52 = vrot.slane %v12160_v27, %v11171_v63  ;;  %v4898_v27 = vrot.slane %v12356_v11, %v11202_v61 }
 0x663   :  { %v4820_v15 = vsel %vm15466_vm9, %v4819_v8, %v4815_v59  ;;  %v4879_v20 = vsel %vm3108_vm2, %v4878_v31, %v4874_v50  ;;  %v4741_v56 = vsel %vm15467_vm11, %v4740_v45, %v4736_v34  ;;  %v4834_v36 = vrot.slane %v12090_v53, %v11216_v62 }
 0x664   :  { %v4746_v26 = vsel %vm3143_vm7, %v4745_v40, %v4741_v56  ;;  %v4825_v51 = vsel %vm3143_vm7, %v4824_v33, %v4820_v15  ;;  %v4884_v41 = vsel %vm3115_vm3, %v4883_v52, %v4879_v20  ;;  %v4760_v45 = vrot.slane %v12136_v3, %v11238_v9  ;;  %v12602_v40 = vpop.permute.xlu1 %4658  ;;  %v15475_v15 = vld [vmem:[#allocation238_spill] sm:$0xff]  ;;  %v15479_v56 = vld [vmem:[#allocation275_spill] sm:$0xff] }
 0x665   :  { %v4751_v48 = vsel %vm3150_vm8, %v4750_v44, %v4746_v26  ;;  %v4830_v0 = vsel %vm3150_vm8, %v4829_v17, %v4825_v51  ;;  %v4889_v31 = vsel %vm3122_vm4, %v4888_v21, %v4884_v41  ;;  %v4893_v6 = vrot.slane %v12174_v54, %v11186_v42  ;;  %15468 = vst [vmem:[#allocation343_spill] sm:$0xff] %v12602_v40  ;;  %v15477_v21 = vld [vmem:[#allocation336_spill] sm:$0xff]  ;;  %v15480_v26 = vld [vmem:[#allocation219_spill] sm:$0xff] }
 0x666   :  { %v12540_v32 = vpop.permute.xlu0 %4613  ;;  %v4765_v29 = vrot.slane %v12150_v37, %v11247_v49  ;;  %vm15469_vm9 = vcmask 654912   ;;  %vm15471_vm11 = vcmask 392512   ;;  %v4908_v44 = vrot.slane %v12366_v12, %v11210_v5 }
 0x667   :  { %v4756_v11 = vsel %vm15469_vm9, %v4755_v47, %v4751_v48  ;;  %vm15470_vm0 = vmmov %vm15469_vm9  ;;  %v4894_v3 = vsel %vm15471_vm11, %v4893_v6, %v4889_v31  ;;  %v4903_v50 = vrot.slane %v12192_v46, %v11207_v22  ;;  %v4948_v17 = vrot.slane %v15475_v15, %v11154_v23 }
 0x668   :  { %v4835_v53 = vsel %vm15470_vm0, %v4834_v36, %v4830_v0  ;;  %v4899_v37 = vsel %vm15473_vm6, %v4898_v27, %v4894_v3  ;;  %vm15474_vm9 = vmmov %vm15472_vm10  ;;  %v4780_v33 = vrot.slane %v15478_v24, %v15477_v21  ;;  %v4957_v52 = vrot.slane %v15479_v56, %v11158_v16  ;;  %v15482_v0 = vld [vmem:[#allocation143_spill] sm:$0xff]  ;;  %v15483_v27 = vld [vmem:[#allocation25_spill] sm:$0xff]  ;;  %v12642_v36 = vpop.permute.xlu1 %4664 }
 0x669   :  { %v4840_v54 = vsel %vm15472_vm10, %v4839_v2, %v4835_v53  ;;  %v4761_v59 = vsel %vm15474_vm9, %v4760_v45, %v4756_v11  ;;  %vm15476_vm10 = vcmask 786112   ;;  %v4952_v48 = vrot.slane %v15480_v26, %v11150_v57  ;;  %v15484_v45 = vld [vmem:[#allocation42_spill] sm:$0xff]  ;;  %vm15490_vm11 = vmmov %vm15474_vm9  ;;  %v15493_v26 = vld [vmem:[#allocation89_spill] sm:$0xff] }
 0x66a   :  { %v12563_v38 = vpop.permute.xlu0 %4619  ;;  %v4766_v20 = vsel %vm15476_vm10, %v4765_v29, %v4761_v59  ;;  %vm15481_vm6 = vmmov %vm15476_vm10  ;;  %v4904_v46 = vsel %vm3143_vm7, %v4903_v50, %v4899_v37  ;;  %v4859_v2 = vrot.slane %v15482_v0, %v15477_v21  ;;  %v4918_v47 = vrot.slane %v15483_v27, %v11238_v9  ;;  %v15485_v29 = vld [vmem:[#allocation195_spill] sm:$0xff]  ;;  %v15487_v37 = vld [vmem:[#allocation73_spill] sm:$0xff] }
 0x66b   :  { %v4771_v12 = vsel %vm3178_vm12, %v4770_v10, %v4766_v20  ;;  %v4845_v7 = vsel %vm15481_vm6, %v4844_v4, %v4840_v54  ;;  %v4909_v31 = vsel %vm3150_vm8, %v4908_v44, %v4904_v46  ;;  %v4854_v6 = vrot.slane %v15484_v45, %v11271_v39  ;;  %v15488_v59 = vld [vmem:[#allocation120_spill] sm:$0xff]  ;;  %vm15500_vm9 = vmmov %vm15481_vm6 }
 0x66c   :  { %v4850_v41 = vsel %vm3178_vm12, %v4849_v60, %v4845_v7  ;;  %v4776_v4 = vsel %vm3185_vm13, %v4775_v13, %v4771_v12  ;;  %v4913_v11 = vrot.slane %v15485_v29, %v11216_v62  ;;  %v4953_v10 = vsel %vm3101_vm1, %v4952_v48, %v4948_v17  ;;  %v15486_v60 = vld [vmem:[#allocation337_spill] sm:$0xff]  ;;  %v15494_v7 = vld [vmem:[#allocation208_spill] sm:$0xff] }
 0x66d   :  { %v4781_v53 = vsel %vm3192_vm14, %v4780_v33, %v4776_v4  ;;  %v4958_v3 = vsel %vm3108_vm2, %v4957_v52, %v4953_v10  ;;  %v4967_v54 = vrot.slane %v12420_v28, %v11176_v30  ;;  %v4785_v44 = vrot.slane %v15487_v37, %v15486_v60  ;;  %v15489_v17 = vld [vmem:[#allocation117_spill] sm:$0xff]  ;;  %v15495_v0 = vld [vmem:[#allocation104_spill] sm:$0xff]  ;;  %v15497_v4 = vld [vmem:[#allocation134_spill] sm:$0xff] }
 0x66e   :  { %v12582_v8 = vpop.permute.xlu0 %4625  ;;  %v4962_v50 = vrot.slane %v15488_v59, %v11171_v63  ;;  %v4855_v13 = vsel %vm3185_vm13, %v4854_v6, %v4850_v41  ;;  %v4914_v15 = vsel %vm15470_vm0, %v4913_v11, %v4909_v31  ;;  %v4864_v24 = vrot.slane %v15489_v17, %v15486_v60  ;;  %v15491_v28 = vld [vmem:[#allocation221_spill] sm:$0xff]  ;;  %v12683_v6 = vpop.permute.xlu1 %4670  ;;  %v15499_v10 = vld [vmem:[#allocation150_spill] sm:$0xff] }
 0x66f   :  { %v4860_v33 = vsel %vm3192_vm14, %v4859_v2, %v4855_v13  ;;  %v4919_v56 = vsel %vm15490_vm11, %v4918_v47, %v4914_v15  ;;  %v4928_v52 = vrot.slane %v15491_v28, %v11268_v25  ;;  %v12669_v12 = vsel %vm3199_vm15, %v4785_v44, %v4781_v53  ;;  %v15496_v2 = vld [vmem:[#allocation227_spill] sm:$0xff]  ;;  %v15503_v13 = vld [vmem:[#allocation268_spill] sm:$0xff]  ;;  %v15504_v17 = vld [vmem:[#allocation254_spill] sm:$0xff] }
 0x670   :  { %15492 = vst [vmem:[#allocation238_spill] sm:$0xff] %v12669_v12  ;;  %v4923_v48 = vrot.slane %v15493_v26, %v11247_v49  ;;  %v4933_v46 = vrot.slane %v15494_v7, %v11271_v39  ;;  %v4963_v41 = vsel %vm3115_vm3, %v4962_v50, %v4958_v3  ;;  %v4972_v27 = vrot.slane %v15496_v2, %v11186_v42  ;;  %v15508_v7 = vld [vmem:[#allocation220_spill] sm:$0xff] }
 0x671   :  { %v4968_v47 = vsel %vm3122_vm4, %v4967_v54, %v4963_v41  ;;  %v4977_v45 = vrot.slane %v12429_v19, %v11202_v61  ;;  %v4982_v29 = vrot.slane %v15497_v4, %v11207_v22  ;;  %v12688_v11 = vsel %vm3199_vm15, %v4864_v24, %v4860_v33  ;;  %v15501_v54 = vld [vmem:[#allocation245_spill] sm:$0xff]  ;;  %v15502_v19 = vld [vmem:[#allocation170_spill] sm:$0xff]  ;;  %v15505_v33 = vld [vmem:[#allocation256_spill] sm:$0xff] }
 0x672   :  { %v12609_v34 = vpop.permute.xlu0 %4631  ;;  %15498 = vst [vmem:[#allocation336_spill] sm:$0xff] %v12688_v11  ;;  %v4992_v53 = vrot.slane %v15499_v10, %v11216_v62  ;;  %v4924_v3 = vsel %vm15500_vm9, %v4923_v48, %v4919_v56  ;;  %v5002_v44 = vrot.slane %v15501_v54, %v11247_v49  ;;  %v4938_v15 = vrot.slane %v15503_v13, %v15477_v21  ;;  %v15506_v56 = vld [vmem:[#allocation261_spill] sm:$0xff]  ;;  %v12732_v24 = vpop.permute.xlu1 %4676 }
 0x673   :  { %v4929_v50 = vsel %vm3178_vm12, %v4928_v52, %v4924_v3  ;;  %v5031_v28 = vrot.slane %v15505_v33, %v11150_v57  ;;  %v5041_v26 = vrot.slane %v15506_v56, %v11171_v63  ;;  %vm15507_vm10 = vcmask 392512   ;;  %v15510_v4 = vld [vmem:[#allocation265_spill] sm:$0xff]  ;;  %v15511_v3 = vld [vmem:[#allocation266_spill] sm:$0xff]  ;;  %v15512_v33 = vld [vmem:[#allocation267_spill] sm:$0xff] }
 0x674   :  { %v4973_v48 = vsel %vm15507_vm10, %v4972_v27, %v4968_v47  ;;  %v5051_v41 = vrot.slane %v15508_v7, %v11186_v42  ;;  %vm15509_vm6 = vcmask 458112   ;;  %v4987_v52 = vrot.slane %v12434_v58, %v11210_v5  ;;  %v15513_v58 = vld [vmem:[#allocation228_spill] sm:$0xff]  ;;  %v15514_v7 = vld [vmem:[#allocation291_spill] sm:$0xff] }
 0x675   :  { %v4978_v2 = vsel %vm15509_vm6, %v4977_v45, %v4973_v48  ;;  %v5027_v10 = vrot.slane %v15510_v4, %v11154_v23  ;;  %v4934_v13 = vsel %vm3185_vm13, %v4933_v46, %v4929_v50  ;;  %v5036_v56 = vrot.slane %v15512_v33, %v11158_v16  ;;  %v15515_v50 = vld [vmem:[#allocation272_spill] sm:$0xff]  ;;  %v15519_v33 = vld [vmem:[#allocation246_spill] sm:$0xff] }
 0x676   :  { %v12634_v51 = vpop.permute.xlu0 %4637  ;;  %v5106_v27 = vrot.slane %v12484_v43, %v11154_v23  ;;  %v12726_v45 = vsel %vm3192_vm14, %v4938_v15, %v4934_v13  ;;  %v5115_v4 = vrot.slane %v15514_v7, %v11158_v16  ;;  %v5185_v46 = vrot.slane %v12540_v32, %v11154_v23  ;;  %v15516_v43 = vld [vmem:[#allocation281_spill] sm:$0xff]  ;;  %v15517_v7 = vld [vmem:[#allocation284_spill] sm:$0xff] }
 0x677   :  { %v5110_v31 = vrot.slane %v15516_v43, %v11150_v57  ;;  %v4983_v15 = vsel %vm3143_vm7, %v4982_v29, %v4978_v2  ;;  %v5194_v13 = vrot.slane %v12563_v38, %v11158_v16  ;;  %v4997_v59 = vrot.slane %v15517_v7, %v11238_v9  ;;  %v15518_v32 = vld [vmem:[#allocation289_spill] sm:$0xff]  ;;  %v15520_v29 = vld [vmem:[#allocation206_spill] sm:$0xff] }
 0x678   :  { %v4988_v48 = vsel %vm3150_vm8, %v4987_v52, %v4983_v15  ;;  %v5032_v54 = vsel %vm3101_vm1, %v5031_v28, %v5027_v10  ;;  %v5189_v40 = vrot.slane %v15518_v32, %v11150_v57  ;;  %v5091_v11 = vrot.slane %v15519_v33, %v11271_v39  ;;  %v15521_v52 = vld [vmem:[#allocation257_spill] sm:$0xff] }
 0x679   :  { %v5037_v43 = vsel %vm3108_vm2, %v5036_v56, %v5032_v54  ;;  %v5046_v2 = vrot.slane %v15520_v29, %v11176_v30  ;;  %v5111_v38 = vsel %vm3101_vm1, %v5110_v31, %v5106_v27  ;;  %v5120_v15 = vrot.slane %v15521_v52, %v11171_v63  ;;  %v15522_v29 = vld [vmem:[#allocation157_spill] sm:$0xff] }
 0x67a   :  { %v12660_v20 = vpop.permute.xlu0 %4643  ;;  %v5116_v7 = vsel %vm3108_vm2, %v5115_v4, %v5111_v38  ;;  %v5125_v28 = vrot.slane %v12492_v35, %v11176_v30  ;;  %v5190_v10 = vsel %vm3101_vm1, %v5189_v40, %v5185_v46  ;;  %v4993_v32 = vsel %vm15470_vm0, %v4992_v53, %v4988_v48  ;;  %v15523_v35 = vld [vmem:[#allocation293_spill] sm:$0xff]  ;;  %v12772_v40 = vpop.permute.xlu1 %4682  ;;  %v15524_v48 = vld [vmem:[#allocation271_spill] sm:$0xff]  ;;  %vm15529_vm0 = vmmov %vm15507_vm10 }
 0x67b   :  { %v5195_v54 = vsel %vm3108_vm2, %v5194_v13, %v5190_v10  ;;  %v5204_v56 = vrot.slane %v12582_v8, %v11176_v30  ;;  %v4998_v27 = vsel %vm15490_vm11, %v4997_v59, %v4993_v32  ;;  %v5130_v52 = vrot.slane %v15522_v29, %v11186_v42  ;;  %vm15530_vm11 = vmmov %vm15509_vm6 }
 0x67c   :  { %v5042_v4 = vsel %vm3115_vm3, %v5041_v26, %v5037_v43  ;;  %v5199_v38 = vrot.slane %v15523_v35, %v11171_v63  ;;  %v5056_v46 = vrot.slane %v15524_v48, %v11202_v61  ;;  %v5121_v8 = vsel %vm3115_vm3, %v5120_v15, %v5116_v7  ;;  %v15525_v26 = vld [vmem:[#allocation295_spill] sm:$0xff]  ;;  %v15527_v35 = vld [vmem:[#allocation338_spill] sm:$0xff] }
 0x67d   :  { %v5047_v53 = vsel %vm3122_vm4, %v5046_v2, %v5042_v4  ;;  %v5126_v13 = vsel %vm3122_vm4, %v5125_v28, %v5121_v8  ;;  %v5135_v43 = vrot.slane %v15525_v26, %v11202_v61  ;;  %v5003_v2 = vsel %vm15500_vm9, %v5002_v44, %v4998_v27  ;;  %v15528_v44 = vld [vmem:[#allocation276_spill] sm:$0xff]  ;;  %vm15532_vm9 = vmmov %vm15529_vm0 }
 0x67e   :  { %v12693_v37 = vpop.permute.xlu0 %4649  ;;  %v5200_v10 = vsel %vm3115_vm3, %v5199_v38, %v5195_v54  ;;  %v5214_v15 = vrot.slane %v12609_v34, %v11202_v61  ;;  %v5052_v28 = vsel %vm15507_vm10, %v5051_v41, %v5047_v53  ;;  %v5209_v48 = vrot.slane %v15527_v35, %v11186_v42  ;;  %v15531_v41 = vld [vmem:[#allocation339_spill] sm:$0xff]  ;;  %vm15534_vm10 = vmmov %vm15509_vm6 }
 0x67f   :  { %v5205_v29 = vsel %vm3122_vm4, %v5204_v56, %v5200_v10  ;;  %v5057_v38 = vsel %vm15509_vm6, %v5056_v46, %v5052_v28  ;;  %v5066_v56 = vrot.slane %v15528_v44, %v11210_v5  ;;  %v5131_v27 = vsel %vm15529_vm0, %v5130_v52, %v5126_v13  ;;  %v15533_v46 = vld [vmem:[#allocation204_spill] sm:$0xff]  ;;  %vm15539_vm6 = vmmov %vm15529_vm0 }
 0x680   :  { %v5278_v34 = vrot.slane %v12683_v6, %v11171_v63  ;;  %v5136_v8 = vsel %vm15530_vm11, %v5135_v43, %v5131_v27  ;;  %v5145_v53 = vrot.slane %v15531_v41, %v11210_v5  ;;  %v5140_v10 = vrot.slane %v15533_v46, %v11207_v22  ;;  %vm15544_vm11 = vmmov %vm15534_vm10 }
 0x681   :  { %v5224_v52 = vrot.slane %v12634_v51, %v11210_v5  ;;  %v15535_v43 = vrot.slane %v15511_v3, %v11207_v22  ;;  %vm15542_vm0 = vcmask 654912  }
 0x682   :  { %v12723_v47 = vpop.permute.xlu0 %4655  ;;  %v5141_v51 = vsel %vm3143_vm7, %v5140_v10, %v5136_v8  ;;  %v15540_v8 = vrot.slane %v15502_v19, %v11271_v39 }
 0x683   :  { %v5146_v3 = vsel %vm3150_vm8, %v5145_v53, %v5141_v51  ;;  %v15552_v51 = vld [vmem:[#allocation262_spill] sm:$0xff] }
 0x686   :  { %v4662_v12 = vpop.permute.xlu0 %4661 }
 0x687   :  { %v5264_v31 = vrot.slane %v4662_v12, %v11154_v23  ;;  %v5268_v12 = vrot.slane %v12642_v36, %v11150_v57  ;;  %v15526_v36 = vld [vmem:[#allocation258_spill] sm:$0xff] }
 0x688   :  { %v5007_v4 = vrot.slane %v15526_v36, %v11268_v25 }
 0x689   :  { %v5269_v7 = vsel %vm3101_vm1, %v5268_v12, %v5264_v31  ;;  %v4689_v12 = vpop.permute.xlu1 %4688 }
 0x68a   :  { %v4668_v59 = vpop.permute.xlu0 %4667  ;;  %v5008_v13 = vsel %vm3178_vm12, %v5007_v4, %v5003_v2  ;;  %v5288_v2 = vrot.slane %v12732_v24, %v11186_v42 }
 0x68b   :  { %v5273_v32 = vrot.slane %v4668_v59, %v11158_v16  ;;  %v5210_v59 = vsel %vm15532_vm9, %v5209_v48, %v5205_v29  ;;  %v15536_v29 = vld [vmem:[#allocation340_spill] sm:$0xff]  ;;  %v5013_v41 = vsel %vm3185_vm13, %v15540_v8, %v5008_v13  ;;  %vm15545_vm9 = vcmask 720512  }
 0x68c   :  { %v5219_v36 = vrot.slane %v15536_v29, %v11207_v22 }
 0x68d   :  { %v5274_v54 = vsel %vm3108_vm2, %v5273_v32, %v5269_v7  ;;  %v5215_v32 = vsel %vm15534_vm10, %v5214_v15, %v5210_v59  ;;  %v5062_v7 = vsel %vm3143_vm7, %v15535_v43, %v5057_v38  ;;  %v15537_v15 = vld [vmem:[#allocation278_spill] sm:$0xff]  ;;  %v4695_v46 = vpop.permute.xlu1 %4694  ;;  %vm15547_vm10 = vmmov %vm15542_vm0  ;;  %v15549_v43 = vld [vmem:[#allocation341_spill] sm:$0xff] }
 0x68e   :  { %v4674_v31 = vpop.permute.xlu0 %4673  ;;  %v5279_v6 = vsel %vm3115_vm3, %v5278_v34, %v5274_v54  ;;  %v5067_v35 = vsel %vm3150_vm8, %v5066_v56, %v5062_v7  ;;  %v5076_v48 = vrot.slane %v15537_v15, %v11238_v9  ;;  %v5155_v54 = vrot.slane %v12502_v1, %v11238_v9  ;;  %v15538_v56 = vld [vmem:[#allocation269_spill] sm:$0xff]  ;;  %v15543_v59 = vld [vmem:[#allocation342_spill] sm:$0xff] }
 0x68f   :  { %v5283_v26 = vrot.slane %v4674_v31, %v11176_v30  ;;  %v5220_v38 = vsel %vm3143_vm7, %v5219_v36, %v5215_v32  ;;  %v5150_v27 = vrot.slane %v15538_v56, %v11216_v62  ;;  %v5234_v31 = vrot.slane %v12660_v20, %v11238_v9  ;;  %v15546_v32 = vld [vmem:[#allocation283_spill] sm:$0xff] }
 0x690   :  { %v5225_v34 = vsel %vm3150_vm8, %v5224_v52, %v5220_v38  ;;  %v15541_v1 = vrot.slane %v15513_v58, %v11216_v62  ;;  %v5086_v52 = vrot.slane %v15546_v32, %v11268_v25  ;;  %v5165_v7 = vrot.slane %v15549_v43, %v11268_v25  ;;  %v15555_v56 = vld [vmem:[#allocation287_spill] sm:$0xff] }
 0x691   :  { %v5284_v28 = vsel %vm3122_vm4, %v5283_v26, %v5279_v6  ;;  %v5229_v26 = vrot.slane %v15543_v59, %v11216_v62  ;;  %v5151_v19 = vsel %vm15547_vm10, %v5150_v27, %v5146_v3  ;;  %v5298_v6 = vrot.slane %v12772_v40, %v11207_v22  ;;  %v4701_v8 = vpop.permute.xlu1 %4700 }
 0x692   :  { %v4680_v4 = vpop.permute.xlu0 %4679  ;;  %v5289_v24 = vsel %vm15539_vm6, %v5288_v2, %v5284_v28  ;;  %v5072_v53 = vsel %vm15542_vm0, %v15541_v1, %v5067_v35  ;;  %vm15548_vm6 = vmmov %vm15545_vm9  ;;  %v15550_v28 = vld [vmem:[#allocation274_spill] sm:$0xff]  ;;  %v5017_v2 = vrot.slane %v15552_v51, %v15477_v21  ;;  %v5249_v32 = vrot.slane %v12571_v14, %v11271_v39  ;;  %v15567_v51 = vld [vmem:[#allocation343_spill] sm:$0xff] }
 0x693   :  { %v5293_v44 = vrot.slane %v4680_v4, %v11202_v61  ;;  %v5077_v20 = vsel %vm15545_vm9, %v5076_v48, %v5072_v53  ;;  %v5156_v58 = vsel %vm15548_vm6, %v5155_v54, %v5151_v19  ;;  %v5230_v29 = vsel %vm15542_vm0, %v5229_v26, %v5225_v34  ;;  %v15558_v53 = vld [vmem:[#allocation280_spill] sm:$0xff] }
 0x694   :  { %v5160_v35 = vrot.slane %v15550_v28, %v11247_v49  ;;  %v5244_v48 = vrot.slane %v12693_v37, %v11268_v25  ;;  %v15553_v4 = vrot.slane %v15515_v50, %v11247_v49  ;;  %vm15554_vm9 = vcmask 786112  }
 0x695   :  { %v5294_v10 = vsel %vm15544_vm11, %v5293_v44, %v5289_v24  ;;  %vm15551_vm11 = vmmov %vm15548_vm6  ;;  %v5239_v54 = vrot.slane %v12532_v18, %v11247_v49  ;;  %v5096_v37 = vrot.slane %v15555_v56, %v15477_v21  ;;  %v5308_v34 = vrot.slane %v4689_v12, %v11216_v62 }
 0x696   :  { %v4686_v13 = vpop.permute.xlu0 %4685  ;;  %v5235_v15 = vsel %vm15551_vm11, %v5234_v31, %v5230_v29  ;;  %v5299_v40 = vsel %vm3143_vm7, %v5298_v6, %v5294_v10  ;;  %v5082_v3 = vsel %vm15554_vm9, %v15553_v4, %v5077_v20  ;;  %vm15556_vm10 = vmmov %vm15554_vm9  ;;  %v5175_v50 = vrot.slane %v12517_v55, %v15477_v21  ;;  %v15562_v29 = vld [vmem:[#allocation285_spill] sm:$0xff]  ;;  %v4707_v4 = vpop.permute.xlu1 %4706 }
 0x697   :  { %v5303_v36 = vrot.slane %v4686_v13, %v11210_v5  ;;  %v5087_v44 = vsel %vm3178_vm12, %v5086_v52, %v5082_v3  ;;  %v5161_v27 = vsel %vm15556_vm10, %v5160_v35, %v5156_v58  ;;  %vm15557_vm6 = vmmov %vm15554_vm9  ;;  %v5170_v59 = vrot.slane %v15558_v53, %v11271_v39  ;;  %v15564_v35 = vld [vmem:[#allocation238_spill] sm:$0xff] }
 0x698   :  { %v5166_v24 = vsel %vm3178_vm12, %v5165_v7, %v5161_v27  ;;  %v5240_v18 = vsel %vm15557_vm6, %v5239_v54, %v5235_v15  ;;  %v5254_v10 = vrot.slane %v12723_v47, %v15477_v21  ;;  %v5018_v20 = vsel %vm3192_vm14, %v5017_v2, %v5013_v41  ;;  %vm15563_vm9 = vmmov %vm15557_vm6  ;;  %v15565_v15 = vld [vmem:[#allocation336_spill] sm:$0xff] }
 0x699   :  { %v5304_v38 = vsel %vm3150_vm8, %v5303_v36, %v5299_v40  ;;  %v5245_v26 = vsel %vm3178_vm12, %v5244_v48, %v5240_v18  ;;  %v5092_v55 = vsel %vm3185_vm13, %v5091_v11, %v5087_v44  ;;  %v15559_v19 = vrot.slane %v15495_v0, %v15486_v60  ;;  %v15560_v11 = vld [vmem:[#allocation251_spill] sm:$0xff] }
 0x69a   :  { %v4692_v31 = vpop.permute.xlu0 %4691  ;;  %v5309_v12 = vsel %vm15542_vm0, %v5308_v34, %v5304_v38  ;;  %v5097_v6 = vsel %vm3192_vm14, %v5096_v37, %v5092_v55  ;;  %v5171_v41 = vsel %vm3185_vm13, %v5170_v59, %v5166_v24  ;;  %v5318_v13 = vrot.slane %v4695_v46, %v11247_v49 }
 0x69b   :  { %v5313_v1 = vrot.slane %v4692_v31, %v11238_v9  ;;  %v4944_v47 = vsel %vm3199_vm15, %v15559_v19, %v12726_v45  ;;  %v5101_v58 = vrot.slane %v15560_v11, %v15486_v60  ;;  %v5176_v14 = vsel %vm3192_vm14, %v5175_v50, %v5171_v41  ;;  %v15576_v19 = vld [vmem:[#allocation303_spill] sm:$0xff]  ;;  %v15579_v11 = vld [vmem:[#allocation232_spill] sm:$0xff] }
 0x69c   :  { %v5250_v43 = vsel %vm3185_vm13, %v5249_v32, %v5245_v26  ;;  %v15561_v0 = vrot.slane %v15504_v17, %v15486_v60  ;;  %v5180_v36 = vrot.slane %v15562_v29, %v15486_v60  ;;  %vm15566_vm10 = vcmask 1041409   ;;  %v15575_v32 = vld [vmem:[#allocation259_spill] sm:$0xff] }
 0x69d   :  { %v5314_v52 = vsel %vm15551_vm11, %v5313_v1, %v5309_v12  ;;  %v5255_v46 = vsel %vm3192_vm14, %v5254_v10, %v5250_v43  ;;  %v5340_v48 = vsel %vm15566_vm10, %v15565_v15, %v15564_v35  ;;  %v5102_v40 = vsel %vm3199_vm15, %v5101_v58, %v5097_v6  ;;  %v15573_v10 = vld [vmem:[#allocation20_spill] sm:$0xff]  ;;  %v15585_v15 = vld [vmem:[#allocation307_spill] sm:$0xff] }
 0x69e   :  { %v4698_v33 = vpop.permute.xlu0 %4697  ;;  %v5023_v45 = vsel %vm3199_vm15, %v15561_v0, %v5018_v20  ;;  %v5319_v28 = vsel %vm15563_vm9, %v5318_v13, %v5314_v52  ;;  %v5259_v2 = vrot.slane %v15567_v51, %v15486_v60  ;;  %v5341_v3 = vsel %vm3756_vm5, %v4944_v47, %v5340_v48  ;;  %v15574_v20 = vld [vmem:[#allocation310_spill] sm:$0xff]  ;;  %v15577_v6 = vld [vmem:[#allocation260_spill] sm:$0xff]  ;;  %v15578_v13 = vld [vmem:[#allocation21_spill] sm:$0xff] }
 0x69f   :  { %v5323_v7 = vrot.slane %v4698_v33, %v11268_v25  ;;  %v5328_v54 = vrot.slane %v4701_v8, %v11271_v39  ;;  %v5181_v44 = vsel %vm3199_vm15, %v5180_v36, %v5176_v14  ;;  %vm15568_vm6 = vcmask 1043459   ;;  %v15580_v14 = vld [vmem:[#allocation297_spill] sm:$0xff]  ;;  %v15583_v36 = vld [vmem:[#allocation296_spill] sm:$0xff] }
 0x6a0   :  { %v5260_v37 = vsel %vm3199_vm15, %v5259_v2, %v5255_v46  ;;  %v5342_v27 = vsel %vm15568_vm6, %v5023_v45, %v5341_v3  ;;  %v5338_v34 = vrot.slane %v4707_v4, %v15486_v60  ;;  %vm15569_vm0 = vcmask 1044484   ;;  %v15582_v45 = vld [vmem:[#allocation304_spill] sm:$0xff]  ;;  %v15587_v2 = vld [vmem:[#allocation299_spill] sm:$0xff] }
 0x6a1   :  { %v5324_v17 = vsel %vm3178_vm12, %v5323_v7, %v5319_v28  ;;  %v5343_v24 = vsel %vm15569_vm0, %v5102_v40, %v5342_v27  ;;  %vm15570_vm11 = vcmask 1045509   ;;  %vm15571_vm9 = vcmask 1046534   ;;  %v15581_v7 = vld [vmem:[#allocation298_spill] sm:$0xff]  ;;  %v15584_v28 = vld [vmem:[#allocation305_spill] sm:$0xff]  ;;  %v15586_v40 = vld [vmem:[#allocation308_spill] sm:$0xff] }
 0x6a2   :  { %v4704_v38 = vpop.permute.xlu0 %4703  ;;  %v5329_v31 = vsel %vm3185_vm13, %v5328_v54, %v5324_v17  ;;  %v5344_v18 = vsel %vm15570_vm11, %v5181_v44, %v5343_v24  ;;  %vm15572_vm10 = vcmask 1047559   ;;  %v15588_v17 = vld [vmem:[#allocation309_spill] sm:$0xff]  ;;  %v15589_v54 = vld [vmem:[#allocation306_spill] sm:$0xff]  ;;  %v15590_v44 = vld [vmem:[#allocation300_spill] sm:$0xff]  ;;  %vm15695_vm6 = vcmask 392512  }
 0x6a3   :  { %v5333_v56 = vrot.slane %v4704_v38, %v15477_v21  ;;  %v5345_v1 = vsel %vm15571_vm9, %v5260_v37, %v5344_v18  ;;  %v15591_v37 = vld [vmem:[#allocation290_spill] sm:$0xff]  ;;  %v15593_v24 = vld [vmem:[#allocation323_spill] sm:$0xff]  ;;  %v15594_v18 = vld [vmem:[#allocation324_spill] sm:$0xff]  ;;  %vm15699_vm0 = vcmask 458112   ;;  %vm15711_vm11 = vcmask 654912  }
 0x6a4   :  { %vm15713_vm9 = vcmask 720512  }
 0x6a5   :  { %v5334_v50 = vsel %vm3192_vm14, %v5333_v56, %v5329_v31 }
 0x6a6   :  { %v5339_v8 = vsel %vm3199_vm15, %v5338_v34, %v5334_v50  ;;  %v15592_v34 = vld [vmem:[#allocation302_spill] sm:$0xff] }
 0x6a7   :  { %v5346_v53 = vsel %vm15572_vm10, %v5339_v8, %v5345_v1  ;;  %v15595_v1 = vld [vmem:[#allocation22_spill] sm:$0xff]  ;;  %vm15720_vm10 = vcmask 786112  }
 0x6a8   :  { %5348 = vadd.xlane.f32.xlu0 %v5346_v53 }
 0x735   :  { %v5349_v59 = vpop.xlane.xlu0 %5348 }
 0x736   :  { %8168 = vrcp.f32 %v5349_v59  ;;  %v15596_v59 = vld [vmem:[#allocation311_spill] sm:$0xff] }
 0x740   :  { %v12941_v26 = vpop.eup %8168 }
 0x741   :  { %v5355_v12 = vrot.slane %v12941_v26, %v15573_v10  ;;  %v12951_v33 = vrot.slane %v12941_v26, %v15578_v13  ;;  %v12979_v53 = vrot.slane %v12941_v26, %v15595_v1  ;;  %v15601_v13 = vld [vmem:[#allocation312_spill] sm:$0xff]  ;;  %v15618_v1 = vld [vmem:[#allocation19_spill] sm:$0xff] }
 0x743   :  { %v5400_v55 = vmul.f32 %v15574_v20, %v5355_v12  ;;  %v5392_v52 = vmul.f32 %v15575_v32, %v5355_v12  ;;  %v5407_v47 = vmul.f32 %v15576_v19, %v5355_v12  ;;  %v5393_v41 = vmul.f32 %v15577_v6, %v5355_v12  ;;  %v15597_v20 = vld [vmem:[#allocation325_spill] sm:$0xff]  ;;  %v15598_v32 = vld [vmem:[#allocation198_spill] sm:$0xff] }
 0x744   :  { %v5409_v58 = vmul.f32 %v15579_v11, %v12951_v33  ;;  %v5394_v43 = vmul.f32 %v15580_v14, %v5355_v12  ;;  %v5411_v0 = vmul.f32 %v15581_v7, %v12951_v33  ;;  %v5395_v29 = vmul.f32 %v15582_v45, %v5355_v12  ;;  %v15599_v19 = vld [vmem:[#allocation214_spill] sm:$0xff]  ;;  %v15600_v6 = vld [vmem:[#allocation301_spill] sm:$0xff] }
 0x745   :  { %5673 = vperm.xlu0 %7654, %v5400_v55   ;;  %5649 = vperm.xlu1 %7655, %v5392_v52   ;;  %v5413_v46 = vmul.f32 %v15583_v36, %v12951_v33  ;;  %v5396_v35 = vmul.f32 %v15584_v28, %v5355_v12  ;;  %v5415_v48 = vmul.f32 %v15585_v15, %v12951_v33 }
 0x746   :  { %v5397_v51 = vmul.f32 %v15586_v40, %v5355_v12  ;;  %v5417_v4 = vmul.f32 %v15587_v2, %v12951_v33  ;;  %v5398_v3 = vmul.f32 %v15588_v17, %v5355_v12  ;;  %v5419_v38 = vmul.f32 %v15589_v54, %v12951_v33  ;;  %v15609_v40 = vld [vmem:[#allocation329_spill] sm:$0xff]  ;;  %v15610_v2 = vld [vmem:[#allocation315_spill] sm:$0xff]  ;;  %v15611_v17 = vld [vmem:[#allocation330_spill] sm:$0xff] }
 0x747   :  { %v5399_v56 = vmul.f32 %v15590_v44, %v5355_v12  ;;  %v5421_v27 = vmul.f32 %v15591_v37, %v12951_v33  ;;  %v5401_v31 = vmul.f32 %v15592_v34, %v5355_v12  ;;  %v5423_v50 = vmul.f32 %v15593_v24, %v12951_v33  ;;  %v15612_v54 = vld [vmem:[#allocation23_spill] sm:$0xff]  ;;  %v15613_v44 = vld [vmem:[#allocation316_spill] sm:$0xff]  ;;  %v15616_v24 = vld [vmem:[#allocation294_spill] sm:$0xff] }
 0x748   :  { %v5402_v8 = vmul.f32 %v15594_v18, %v5355_v12  ;;  %v5425_v10 = vmul.f32 %v15596_v59, %v12979_v53  ;;  %v5403_v55 = vmul.f32 %v15597_v20, %v5355_v12  ;;  %v5427_v52 = vmul.f32 %v15598_v32, %v12979_v53  ;;  %v15614_v37 = vld [vmem:[#allocation331_spill] sm:$0xff]  ;;  %v15615_v34 = vld [vmem:[#allocation332_spill] sm:$0xff]  ;;  %v15617_v18 = vld [vmem:[#allocation317_spill] sm:$0xff] }
 0x749   :  { %5694 = vperm.xlu0 %7654, %v5407_v47   ;;  %5652 = vperm.xlu1 %7655, %v5393_v41   ;;  %v5404_v47 = vmul.f32 %v15599_v19, %v5355_v12  ;;  %v5429_v41 = vmul.f32 %v15600_v6, %v12979_v53  ;;  %v5405_v11 = vmul.f32 %v15601_v13, %v5355_v12 }
 0x74a   :  { %v5420_v59 = vmul.f32 %v15618_v1, %v12951_v33 }
 0x74d   :  { %5700 = vperm.xlu0 %7654, %v5409_v58   ;;  %5655 = vperm.xlu1 %7655, %v5394_v43   ;;  %v15602_v58 = vld [vmem:[#allocation326_spill] sm:$0xff]  ;;  %v15603_v43 = vld [vmem:[#allocation313_spill] sm:$0xff] }
 0x74e   :  { %v5431_v14 = vmul.f32 %v15602_v58, %v12979_v53  ;;  %v5406_v7 = vmul.f32 %v15603_v43, %v5355_v12  ;;  %v15608_v12 = vld [vmem:[#allocation314_spill] sm:$0xff] }
 0x74f   :  { %v15626_v43 = vld [vmem:[#allocation334_spill] sm:$0xff] }
 0x751   :  { %5706 = vperm.xlu0 %7654, %v5411_v0   ;;  %5658 = vperm.xlu1 %7655, %v5395_v29   ;;  %v15604_v0 = vld [vmem:[#allocation327_spill] sm:$0xff]  ;;  %v15605_v29 = vld [vmem:[#allocation292_spill] sm:$0xff] }
 0x752   :  { %v5433_v45 = vmul.f32 %v15604_v0, %v12979_v53  ;;  %v5408_v36 = vmul.f32 %v15605_v29, %v12951_v33  ;;  %v15627_v0 = vld [vmem:[#allocation216_spill] sm:$0xff]  ;;  %v15628_v29 = vld [vmem:[#allocation322_spill] sm:$0xff] }
 0x755   :  { %5712 = vperm.xlu0 %7654, %v5413_v46   ;;  %5661 = vperm.xlu1 %7655, %v5396_v35   ;;  %v15606_v46 = vld [vmem:[#allocation202_spill] sm:$0xff]  ;;  %v15607_v35 = vld [vmem:[#allocation328_spill] sm:$0xff] }
 0x756   :  { %v5435_v28 = vmul.f32 %v15606_v46, %v12979_v53  ;;  %v5410_v15 = vmul.f32 %v15607_v35, %v12951_v33  ;;  %v15629_v46 = vld [vmem:[#allocation24_spill] sm:$0xff]  ;;  %v15630_v35 = vld [vmem:[#allocation335_spill] sm:$0xff] }
 0x759   :  { %5718 = vperm.xlu0 %7654, %v5415_v48   ;;  %5664 = vperm.xlu1 %7655, %v5397_v51   ;;  %v5437_v48 = vmul.f32 %v15608_v12, %v12979_v53  ;;  %v5412_v51 = vmul.f32 %v15609_v40, %v12951_v33  ;;  %v15631_v12 = vld [vmem:[#allocation35_spill] sm:$0xff]  ;;  %v15632_v40 = vld [vmem:[#allocation28_spill] sm:$0xff] }
 0x75d   :  { %5724 = vperm.xlu0 %7654, %v5417_v4   ;;  %5667 = vperm.xlu1 %7655, %v5398_v3   ;;  %v5439_v4 = vmul.f32 %v15610_v2, %v12979_v53  ;;  %v5414_v3 = vmul.f32 %v15611_v17, %v12951_v33  ;;  %v15633_v2 = vld [vmem:[#allocation41_spill] sm:$0xff]  ;;  %v15634_v17 = vld [vmem:[#allocation26_spill] sm:$0xff] }
 0x761   :  { %5730 = vperm.xlu0 %7654, %v5419_v38   ;;  %5670 = vperm.xlu1 %7655, %v5399_v56   ;;  %v13011_v38 = vrot.slane %v12941_v26, %v15612_v54  ;;  %v15635_v54 = vld [vmem:[#allocation45_spill] sm:$0xff] }
 0x763   :  { %v5441_v56 = vmul.f32 %v15613_v44, %v13011_v38  ;;  %v5436_v44 = vmul.f32 %v15635_v54, %v12979_v53 }
 0x765   :  { %5736 = vperm.xlu0 %7654, %v5421_v27   ;;  %5676 = vperm.xlu1 %7655, %v5401_v31   ;;  %v5416_v27 = vmul.f32 %v15614_v37, %v12951_v33  ;;  %v5443_v31 = vmul.f32 %v15615_v34, %v13011_v38 }
 0x769   :  { %5742 = vperm.xlu0 %7654, %v5423_v50   ;;  %5679 = vperm.xlu1 %7655, %v5402_v8   ;;  %v5418_v50 = vmul.f32 %v15616_v24, %v12951_v33  ;;  %v5445_v8 = vmul.f32 %v15617_v18, %v13011_v38 }
 0x76d   :  { %5748 = vperm.xlu0 %7654, %v5425_v10   ;;  %5682 = vperm.xlu1 %7655, %v5403_v55   ;;  %v15619_v10 = vld [vmem:[#allocation318_spill] sm:$0xff]  ;;  %v15620_v55 = vld [vmem:[#allocation333_spill] sm:$0xff] }
 0x76e   :  { %v5447_v20 = vmul.f32 %v15619_v10, %v13011_v38  ;;  %v5422_v32 = vmul.f32 %v15620_v55, %v12951_v33  ;;  %v15625_v33 = vld [vmem:[#allocation321_spill] sm:$0xff] }
 0x771   :  { %5754 = vperm.xlu0 %7654, %v5427_v52   ;;  %5685 = vperm.xlu1 %7655, %v5404_v47   ;;  %v15621_v52 = vld [vmem:[#allocation319_spill] sm:$0xff] }
 0x772   :  { %v5449_v19 = vmul.f32 %v15621_v52, %v13011_v38  ;;  %v15622_v47 = vld [vmem:[#allocation179_spill] sm:$0xff] }
 0x773   :  { %v5424_v6 = vmul.f32 %v15622_v47, %v12979_v53  ;;  %v15643_v52 = vld [vmem:[#allocation67_spill] sm:$0xff]  ;;  %v15644_v47 = vld [vmem:[#allocation32_spill] sm:$0xff] }
 0x775   :  { %5760 = vperm.xlu0 %7654, %v5429_v41   ;;  %5688 = vperm.xlu1 %7655, %v5405_v11   ;;  %v15623_v41 = vld [vmem:[#allocation173_spill] sm:$0xff]  ;;  %v15624_v11 = vld [vmem:[#allocation320_spill] sm:$0xff] }
 0x776   :  { %v5451_v13 = vmul.f32 %v15623_v41, %v13011_v38  ;;  %v5426_v58 = vmul.f32 %v15624_v11, %v12979_v53  ;;  %v15645_v41 = vld [vmem:[#allocation264_spill] sm:$0xff] }
 0x779   :  { %5766 = vperm.xlu0 %7654, %v5431_v14   ;;  %5691 = vperm.xlu1 %7655, %v5406_v7   ;;  %v5453_v14 = vmul.f32 %v15625_v33, %v13011_v38  ;;  %v5428_v7 = vmul.f32 %v15626_v43, %v12979_v53  ;;  %v15647_v33 = vld [vmem:[#allocation33_spill] sm:$0xff] }
 0x77a   :  { %v15648_v43 = vld [vmem:[#allocation77_spill] sm:$0xff] }
 0x77d   :  { %5772 = vperm.xlu0 %7654, %v5433_v45   ;;  %5697 = vperm.xlu1 %7655, %v5408_v36   ;;  %v5455_v45 = vmul.f32 %v15627_v0, %v13011_v38  ;;  %v5430_v36 = vmul.f32 %v15628_v29, %v12979_v53  ;;  %v15649_v29 = vld [vmem:[#allocation34_spill] sm:$0xff] }
 0x781   :  { %5778 = vperm.xlu0 %7654, %v5435_v28   ;;  %5703 = vperm.xlu1 %7655, %v5410_v15   ;;  %v13047_v28 = vrot.slane %v12941_v26, %v15629_v46  ;;  %v15650_v46 = vld [vmem:[#allocation83_spill] sm:$0xff] }
 0x783   :  { %v5457_v15 = vmul.f32 %v15630_v35, %v13047_v28 }
 0x785   :  { %5784 = vperm.xlu0 %7654, %v5437_v48   ;;  %5709 = vperm.xlu1 %7655, %v5412_v51   ;;  %v5432_v48 = vmul.f32 %v15631_v12, %v12979_v53  ;;  %v5459_v51 = vmul.f32 %v15632_v40, %v13047_v28 }
 0x789   :  { %5790 = vperm.xlu0 %7654, %v5439_v4   ;;  %5715 = vperm.xlu1 %7655, %v5414_v3   ;;  %v5434_v4 = vmul.f32 %v15633_v2, %v12979_v53  ;;  %v5461_v3 = vmul.f32 %v15634_v17, %v13047_v28 }
 0x78d   :  { %5796 = vperm.xlu0 %7654, %v5441_v56   ;;  %5721 = vperm.xlu1 %7655, %v5416_v27   ;;  %v15636_v56 = vld [vmem:[#allocation27_spill] sm:$0xff]  ;;  %v15637_v27 = vld [vmem:[#allocation53_spill] sm:$0xff] }
 0x78e   :  { %v5463_v37 = vmul.f32 %v15636_v56, %v13047_v28  ;;  %v5438_v34 = vmul.f32 %v15637_v27, %v12979_v53  ;;  %v15642_v53 = vld [vmem:[#allocation31_spill] sm:$0xff] }
 0x791   :  { %5802 = vperm.xlu0 %7654, %v5443_v31   ;;  %5727 = vperm.xlu1 %7655, %v5418_v50   ;;  %v15638_v31 = vld [vmem:[#allocation29_spill] sm:$0xff] }
 0x792   :  { %v5465_v24 = vmul.f32 %v15638_v31, %v13047_v28  ;;  %v15639_v50 = vld [vmem:[#allocation57_spill] sm:$0xff] }
 0x793   :  { %v5440_v18 = vmul.f32 %v15639_v50, %v13011_v38 }
 0x795   :  { %5808 = vperm.xlu0 %7654, %v5445_v8   ;;  %5733 = vperm.xlu1 %7655, %v5420_v59   ;;  %v15640_v8 = vld [vmem:[#allocation30_spill] sm:$0xff]  ;;  %v15641_v59 = vld [vmem:[#allocation63_spill] sm:$0xff] }
 0x796   :  { %v5467_v1 = vmul.f32 %v15640_v8, %v13047_v28  ;;  %v5442_v10 = vmul.f32 %v15641_v59, %v13011_v38 }
 0x799   :  { %5814 = vperm.xlu0 %7654, %v5447_v20   ;;  %5739 = vperm.xlu1 %7655, %v5422_v32   ;;  %v5469_v20 = vmul.f32 %v15642_v53, %v13047_v28 }
 0x79d   :  { %5820 = vperm.xlu0 %7654, %v5449_v19   ;;  %5745 = vperm.xlu1 %7655, %v5424_v6   ;;  %v5444_v19 = vmul.f32 %v15643_v52, %v13011_v38  ;;  %v5471_v6 = vmul.f32 %v15644_v47, %v13047_v28  ;;  %v15659_v52 = vld [vmem:[#allocation40_spill] sm:$0xff]  ;;  %v15660_v47 = vld [vmem:[#allocation107_spill] sm:$0xff] }
 0x7a1   :  { %5826 = vperm.xlu0 %7654, %v5451_v13   ;;  %5751 = vperm.xlu1 %7655, %v5426_v58   ;;  %v13085_v13 = vrot.slane %v12941_v26, %v15645_v41 }
 0x7a3   :  { %v5475_v35 = vmul.f32 %v15650_v46, %v13085_v13 }
 0x7a5   :  { %5832 = vperm.xlu0 %7654, %v5453_v14   ;;  %5757 = vperm.xlu1 %7655, %v5428_v7   ;;  %v5446_v14 = vmul.f32 %v15647_v33, %v13011_v38  ;;  %v5473_v7 = vmul.f32 %v15648_v43, %v13085_v13 }
 0x7a9   :  { %5838 = vperm.xlu0 %7654, %v5455_v45   ;;  %5763 = vperm.xlu1 %7655, %v5430_v36   ;;  %v5448_v36 = vmul.f32 %v15649_v29, %v13011_v38 }
 0x7ad   :  { %5844 = vperm.xlu0 %7654, %v5457_v15   ;;  %5769 = vperm.xlu1 %7655, %v5432_v48   ;;  %v15651_v48 = vld [vmem:[#allocation36_spill] sm:$0xff] }
 0x7ae   :  { %v5450_v40 = vmul.f32 %v15651_v48, %v13011_v38 }
 0x7b1   :  { %5850 = vperm.xlu0 %7654, %v5459_v51   ;;  %5775 = vperm.xlu1 %7655, %v5434_v4   ;;  %v15652_v51 = vld [vmem:[#allocation87_spill] sm:$0xff] }
 0x7b2   :  { %v5477_v2 = vmul.f32 %v15652_v51, %v13085_v13 }
 0x7b5   :  { %5856 = vperm.xlu0 %7654, %v5461_v3   ;;  %5781 = vperm.xlu1 %7655, %v5436_v44   ;;  %v15653_v3 = vld [vmem:[#allocation37_spill] sm:$0xff] }
 0x7b6   :  { %v5452_v54 = vmul.f32 %v15653_v3, %v13011_v38  ;;  %v15654_v44 = vld [vmem:[#allocation93_spill] sm:$0xff] }
 0x7b7   :  { %v5479_v56 = vmul.f32 %v15654_v44, %v13085_v13 }
 0x7b9   :  { %5862 = vperm.xlu0 %7654, %v5463_v37   ;;  %5787 = vperm.xlu1 %7655, %v5438_v34   ;;  %v15655_v34 = vld [vmem:[#allocation38_spill] sm:$0xff] }
 0x7ba   :  { %v5454_v31 = vmul.f32 %v15655_v34, %v13011_v38 }
 0x7bd   :  { %5868 = vperm.xlu0 %7654, %v5465_v24   ;;  %5793 = vperm.xlu1 %7655, %v5440_v18   ;;  %v15656_v24 = vld [vmem:[#allocation97_spill] sm:$0xff] }
 0x7be   :  { %v5481_v50 = vmul.f32 %v15656_v24, %v13085_v13 }
 0x7c1   :  { %5874 = vperm.xlu0 %7654, %v5467_v1   ;;  %5799 = vperm.xlu1 %7655, %v5442_v10   ;;  %v15657_v1 = vld [vmem:[#allocation39_spill] sm:$0xff] }
 0x7c2   :  { %v5456_v59 = vmul.f32 %v15657_v1, %v13047_v28  ;;  %v15658_v10 = vld [vmem:[#allocation103_spill] sm:$0xff] }
 0x7c3   :  { %v5483_v53 = vmul.f32 %v15658_v10, %v13085_v13 }
 0x7c4   :  { %v13075_v55 = vpop.permute.xlu0 %5673  ;;  %v13077_v32 = vpop.permute.xlu1 %5649 }
 0x7c5   :  { %5880 = vperm.xlu0 %7654, %v5469_v20   ;;  %5805 = vperm.xlu1 %7655, %v5444_v19   ;;  %v5458_v19 = vmul.f32 %v15659_v52, %v13047_v28 }
 0x7c8   :  { %v13087_v11 = vpop.permute.xlu0 %5694  ;;  %v13089_v58 = vpop.permute.xlu1 %5652 }
 0x7c9   :  { %15646 = vst [vmem:[#allocation149_spill] sm:$0xff] %v13087_v11  ;;  %5886 = vperm.xlu0 %7654, %v5471_v6   ;;  %5811 = vperm.xlu1 %7655, %v5446_v14   ;;  %v5485_v6 = vmul.f32 %v15660_v47, %v13085_v13  ;;  %v15661_v14 = vld [vmem:[#allocation113_spill] sm:$0xff]  ;;  %v15685_v11 = vld [vmem:[#allocation279_spill] sm:$0xff] }
 0x7ca   :  { %v5460_v43 = vmul.f32 %v15661_v14, %v13047_v28 }
 0x7cc   :  { %v13095_v0 = vpop.permute.xlu0 %5700  ;;  %v13097_v45 = vpop.permute.xlu1 %5655 }
 0x7cd   :  { %5892 = vperm.xlu0 %7654, %v5473_v7   ;;  %5817 = vperm.xlu1 %7655, %v5448_v36   ;;  %v15662_v7 = vld [vmem:[#allocation48_spill] sm:$0xff]  ;;  %v15663_v36 = vld [vmem:[#allocation273_spill] sm:$0xff] }
 0x7ce   :  { %v5487_v29 = vmul.f32 %v15662_v7, %v13085_v13  ;;  %v13153_v46 = vrot.slane %v12941_v26, %v15663_v36  ;;  %v15672_v7 = vld [vmem:[#allocation241_spill] sm:$0xff] }
 0x7d0   :  { %v13103_v15 = vpop.permute.xlu0 %5706  ;;  %v13105_v12 = vpop.permute.xlu1 %5658 }
 0x7d1   :  { %5898 = vperm.xlu0 %7654, %v5475_v35   ;;  %5823 = vperm.xlu1 %7655, %v5450_v40   ;;  %v15664_v40 = vld [vmem:[#allocation54_spill] sm:$0xff] }
 0x7d2   :  { %v5462_v51 = vmul.f32 %v15664_v40, %v13047_v28 }
 0x7d4   :  { %v13111_v4 = vpop.permute.xlu0 %5712  ;;  %v13113_v17 = vpop.permute.xlu1 %5661 }
 0x7d5   :  { %5904 = vperm.xlu0 %7654, %v5477_v2   ;;  %5829 = vperm.xlu1 %7655, %v5452_v54   ;;  %v15665_v2 = vld [vmem:[#allocation123_spill] sm:$0xff] }
 0x7d6   :  { %v5489_v3 = vmul.f32 %v15665_v2, %v13153_v46 }
 0x7d8   :  { %v13119_v37 = vpop.permute.xlu0 %5718  ;;  %v13121_v27 = vpop.permute.xlu1 %5664 }
 0x7d9   :  { %5910 = vperm.xlu0 %7654, %v5479_v56   ;;  %5835 = vperm.xlu1 %7655, %v5454_v31   ;;  %v15666_v56 = vld [vmem:[#allocation59_spill] sm:$0xff]  ;;  %v15667_v31 = vld [vmem:[#allocation128_spill] sm:$0xff] }
 0x7da   :  { %v5464_v34 = vmul.f32 %v15666_v56, %v13047_v28  ;;  %v5491_v24 = vmul.f32 %v15667_v31, %v13153_v46 }
 0x7dc   :  { %v13127_v18 = vpop.permute.xlu0 %5724  ;;  %v13129_v8 = vpop.permute.xlu1 %5667 }
 0x7dd   :  { %5916 = vperm.xlu0 %7654, %v5481_v50   ;;  %5841 = vperm.xlu1 %7655, %v5456_v59   ;;  %v15668_v50 = vld [vmem:[#allocation282_spill] sm:$0xff] }
 0x7de   :  { %v13173_v1 = vrot.slane %v12941_v26, %v15668_v50 }
 0x7e0   :  { %v13135_v20 = vpop.permute.xlu0 %5730  ;;  %v13137_v38 = vpop.permute.xlu1 %5670 }
 0x7e1   :  { %5922 = vperm.xlu0 %7654, %v5483_v53   ;;  %5847 = vperm.xlu1 %7655, %v5458_v19   ;;  %v15669_v53 = vld [vmem:[#allocation64_spill] sm:$0xff]  ;;  %v15670_v19 = vld [vmem:[#allocation270_spill] sm:$0xff] }
 0x7e2   :  { %v5466_v52 = vmul.f32 %v15669_v53, %v13047_v28  ;;  %v5504_v47 = vmul.f32 %v15670_v19, %v13173_v1 }
 0x7e4   :  { %v13143_v41 = vpop.permute.xlu0 %5736  ;;  %v13145_v33 = vpop.permute.xlu1 %5676 }
 0x7e5   :  { %5928 = vperm.xlu0 %7654, %v5485_v6   ;;  %5853 = vperm.xlu1 %7655, %v5460_v43   ;;  %v15671_v43 = vld [vmem:[#allocation69_spill] sm:$0xff] }
 0x7e6   :  { %v5468_v26 = vmul.f32 %v15671_v43, %v13047_v28  ;;  %v6118_v43 = vrot.slane %v13095_v0, %v11150_v57 }
 0x7e8   :  { %v13155_v35 = vpop.permute.xlu0 %5742  ;;  %v13157_v48 = vpop.permute.xlu1 %5679 }
 0x7e9   :  { %5934 = vperm.xlu0 %7654, %v5487_v29   ;;  %5859 = vperm.xlu1 %7655, %v5462_v51   ;;  %v5506_v29 = vmul.f32 %v15672_v7, %v13173_v1  ;;  %v15675_v51 = vld [vmem:[#allocation74_spill] sm:$0xff] }
 0x7ea   :  { %v5470_v2 = vmul.f32 %v15675_v51, %v13047_v28 }
 0x7ec   :  { %v13163_v54 = vpop.permute.xlu0 %5748  ;;  %v13165_v44 = vpop.permute.xlu1 %5682 }
 0x7ed   :  { %5940 = vperm.xlu0 %7654, %v5489_v3   ;;  %5865 = vperm.xlu1 %7655, %v5464_v34   ;;  %v15676_v3 = vld [vmem:[#allocation277_spill] sm:$0xff] }
 0x7ee   :  { %v5508_v56 = vmul.f32 %v15676_v3, %v13173_v1 }
 0x7f0   :  { %v13175_v59 = vpop.permute.xlu0 %5754  ;;  %v13177_v10 = vpop.permute.xlu1 %5685 }
 0x7f1   :  { %5946 = vperm.xlu0 %7654, %v5491_v24   ;;  %5871 = vperm.xlu1 %7655, %v5466_v52   ;;  %v15678_v24 = vld [vmem:[#allocation84_spill] sm:$0xff]  ;;  %v15679_v52 = vld [vmem:[#allocation126_spill] sm:$0xff] }
 0x7f2   :  { %v5472_v50 = vmul.f32 %v15678_v24, %v13085_v13 }
 0x7f4   :  { %v13183_v6 = vpop.permute.xlu0 %5760  ;;  %v13185_v14 = vpop.permute.xlu1 %5688 }
 0x7f5   :  { %5985 = vperm.xlu0 %7654, %v5504_v47   ;;  %5877 = vperm.xlu1 %7655, %v5468_v26   ;;  %v15680_v47 = vld [vmem:[#allocation124_spill] sm:$0xff]  ;;  %v15681_v26 = vld [vmem:[#allocation125_spill] sm:$0xff] }
 0x7f6   :  { %v5509_v28 = vmul.f32 %v15680_v47, %v13173_v1  ;;  %v6818_v7 = vmul.f32 %v13095_v0, %v15681_v26  ;;  %v5510_v0 = vmul.f32 %v15685_v11, %v13173_v1  ;;  %v6128_v26 = vrot.slane %v13103_v15, %v11171_v63  ;;  %v15689_v11 = vld [vmem:[#allocation142_spill] sm:$0xff] }
 0x7f8   :  { %v13191_v36 = vpop.permute.xlu0 %5766  ;;  %v13193_v40 = vpop.permute.xlu1 %5691 }
 0x7f9   :  { %15673 = vst [vmem:[#allocation275_spill] sm:$0xff] %v13191_v36  ;;  %15674 = vst [vmem:[#allocation219_spill] sm:$0xff] %v13193_v40  ;;  %5991 = vperm.xlu0 %7654, %v5506_v29   ;;  %5883 = vperm.xlu1 %7655, %v5470_v2   ;;  %v15683_v2 = vld [vmem:[#allocation165_spill] sm:$0xff] }
 0x7fa   :  { %v5474_v3 = vmul.f32 %v15683_v2, %v13085_v13 }
 0x7fc   :  { %v13199_v34 = vpop.permute.xlu0 %5772  ;;  %v5698_v31 = vpop.permute.xlu1 %5697 }
 0x7fd   :  { %15677 = vst [vmem:[#allocation143_spill] sm:$0xff] %v13199_v34  ;;  %5997 = vperm.xlu0 %7654, %v5508_v56   ;;  %v6114_v53 = vrot.slane %v5698_v31, %v11154_v23  ;;  %v6817_v19 = vmul.f32 %v5698_v31, %v15679_v52  ;;  %5889 = vperm.xlu1 %7655, %v5472_v50   ;;  %v15684_v50 = vld [vmem:[#allocation132_spill] sm:$0xff] }
 0x7ff   :  { %v6119_v31 = vsel %vm3101_vm1, %v6118_v43, %v6114_v53  ;;  %v6950_v24 = vadd.f32 %v6818_v7, %v6817_v19  ;;  %v15688_v53 = vld [vmem:[#allocation99_spill] sm:$0xff] }
 0x800   :  { %v13211_v29 = vpop.permute.xlu0 %5778  ;;  %v5704_v51 = vpop.permute.xlu1 %5703  ;;  %v5476_v19 = vmul.f32 %v15688_v53, %v13085_v13 }
 0x801   :  { %15682 = vst [vmem:[#allocation25_spill] sm:$0xff] %v13211_v29  ;;  %v6123_v56 = vrot.slane %v5704_v51, %v11158_v16  ;;  %6000 = vperm.xlu0 %7654, %v5509_v28   ;;  %v6819_v52 = vmul.f32 %v5704_v51, %v15684_v50  ;;  %5895 = vperm.xlu1 %7655, %v5474_v3   ;;  %v15686_v29 = vld [vmem:[#allocation131_spill] sm:$0xff] }
 0x802   :  { %v6820_v2 = vmul.f32 %v13103_v15, %v15686_v29  ;;  %v15690_v15 = vld [vmem:[#allocation229_spill] sm:$0xff] }
 0x803   :  { %v6124_v47 = vsel %vm3108_vm2, %v6123_v56, %v6119_v31  ;;  %v6951_v34 = vadd.f32 %v6950_v24, %v6819_v52  ;;  %v5511_v29 = vmul.f32 %v15690_v15, %v13173_v1  ;;  %v6138_v31 = vrot.slane %v13111_v4, %v11186_v42  ;;  %v15691_v24 = vld [vmem:[#allocation140_spill] sm:$0xff] }
 0x804   :  { %v13225_v36 = vpop.permute.xlu0 %5784  ;;  %v5710_v28 = vpop.permute.xlu1 %5709  ;;  %v6129_v7 = vsel %vm3115_vm3, %v6128_v26, %v6124_v47  ;;  %v6822_v50 = vmul.f32 %v13111_v4, %v15691_v24  ;;  %v15694_v26 = vld [vmem:[#allocation72_spill] sm:$0xff] }
 0x805   :  { %15687 = vst [vmem:[#allocation42_spill] sm:$0xff] %v13225_v36  ;;  %v6133_v43 = vrot.slane %v5710_v28, %v11176_v30  ;;  %6003 = vperm.xlu0 %7654, %v5510_v0   ;;  %v6952_v51 = vadd.f32 %v6951_v34, %v6820_v2  ;;  %v6821_v3 = vmul.f32 %v5710_v28, %v15689_v11  ;;  %v15693_v34 = vld [vmem:[#allocation183_spill] sm:$0xff]  ;;  %v15697_v4 = vld [vmem:[#allocation76_spill] sm:$0xff] }
 0x806   :  { %5901 = vperm.xlu1 %7655, %v5476_v19   ;;  %v5478_v47 = vmul.f32 %v15693_v34, %v13085_v13  ;;  %v6802_v2 = vmul.f32 %v13089_v58, %v15694_v26  ;;  %v15700_v34 = vld [vmem:[#allocation253_spill] sm:$0xff] }
 0x807   :  { %v6134_v56 = vsel %vm3122_vm4, %v6133_v43, %v6129_v7  ;;  %v6953_v52 = vadd.f32 %v6952_v51, %v6821_v3  ;;  %v15696_v7 = vld [vmem:[#allocation153_spill] sm:$0xff]  ;;  %v6801_v51 = vmul.f32 %v13077_v32, %v15697_v4  ;;  %v15698_v3 = vld [vmem:[#allocation78_spill] sm:$0xff]  ;;  %v5512_v26 = vmul.f32 %v15700_v34, %v13173_v1  ;;  %v15703_v4 = vld [vmem:[#allocation75_spill] sm:$0xff] }
 0x808   :  { %v13239_v53 = vpop.permute.xlu0 %5790  ;;  %v5716_v0 = vpop.permute.xlu1 %5715  ;;  %v6139_v19 = vsel %vm15695_vm6, %v6138_v31, %v6134_v56  ;;  %v6803_v15 = vmul.f32 %v13097_v45, %v15698_v3  ;;  %v15704_v3 = vld [vmem:[#allocation163_spill] sm:$0xff] }
 0x809   :  { %15692 = vst [vmem:[#allocation195_spill] sm:$0xff] %v13239_v53  ;;  %v6143_v28 = vrot.slane %v5716_v0, %v11202_v61  ;;  %6006 = vperm.xlu0 %7654, %v5511_v29   ;;  %v6954_v43 = vadd.f32 %v6953_v52, %v6822_v50  ;;  %v6823_v11 = vmul.f32 %v5716_v0, %v15696_v7  ;;  %v15701_v53 = vld [vmem:[#allocation152_spill] sm:$0xff]  ;;  %v15702_v0 = vld [vmem:[#allocation114_spill] sm:$0xff] }
 0x80a   :  { %5907 = vperm.xlu1 %7655, %v5478_v47   ;;  %v6148_v29 = vrot.slane %v13119_v37, %v11207_v22  ;;  %v6824_v56 = vmul.f32 %v13119_v37, %v15701_v53  ;;  %v5480_v47 = vmul.f32 %v15702_v0, %v13085_v13  ;;  %v6929_v7 = vadd.f32 %v6802_v2, %v6801_v51  ;;  %v15705_v53 = vld [vmem:[#allocation86_spill] sm:$0xff]  ;;  %v15706_v2 = vld [vmem:[#allocation236_spill] sm:$0xff] }
 0x80b   :  { %v6144_v24 = vsel %vm15699_vm0, %v6143_v28, %v6139_v19  ;;  %v6955_v31 = vadd.f32 %v6954_v43, %v6823_v11  ;;  %v6804_v28 = vmul.f32 %v13105_v12, %v15703_v4  ;;  %v6805_v43 = vmul.f32 %v13113_v17, %v15705_v53  ;;  %v15707_v4 = vld [vmem:[#allocation161_spill] sm:$0xff]  ;;  %vm15751_vm0 = vmmov %vm15695_vm6 }
 0x80c   :  { %v13259_v50 = vpop.permute.xlu0 %5796  ;;  %v5722_v52 = vpop.permute.xlu1 %5721  ;;  %v6149_v36 = vsel %vm3143_vm7, %v6148_v29, %v6144_v24  ;;  %v6930_v37 = vadd.f32 %v6929_v7, %v6803_v15  ;;  %v5513_v51 = vmul.f32 %v15706_v2, %v13173_v1  ;;  %v6158_v0 = vrot.slane %v13127_v18, %v11216_v62  ;;  %v15708_v15 = vld [vmem:[#allocation189_spill] sm:$0xff]  ;;  %v15710_v7 = vld [vmem:[#allocation172_spill] sm:$0xff] }
 0x80d   :  { %v6153_v19 = vrot.slane %v5722_v52, %v11210_v5  ;;  %v6825_v34 = vmul.f32 %v5722_v52, %v15704_v3  ;;  %6009 = vperm.xlu0 %7654, %v5512_v26   ;;  %v6956_v40 = vadd.f32 %v6955_v31, %v6824_v56  ;;  %v6826_v52 = vmul.f32 %v13127_v18, %v15707_v4  ;;  %v15709_v31 = vld [vmem:[#allocation85_spill] sm:$0xff] }
 0x80e   :  { %5913 = vperm.xlu1 %7655, %v5480_v47   ;;  %v5482_v29 = vmul.f32 %v15708_v15, %v13085_v13  ;;  %v6931_v56 = vadd.f32 %v6930_v37, %v6804_v28  ;;  %v15714_v28 = vld [vmem:[#allocation255_spill] sm:$0xff]  ;;  %v6168_v15 = vrot.slane %v13135_v20, %v11247_v49 }
 0x80f   :  { %v6154_v11 = vsel %vm3150_vm8, %v6153_v19, %v6149_v36  ;;  %v6957_v26 = vadd.f32 %v6956_v40, %v6825_v34  ;;  %v6806_v36 = vmul.f32 %v13121_v27, %v15709_v31  ;;  %v15712_v40 = vld [vmem:[#allocation92_spill] sm:$0xff]  ;;  %v5514_v37 = vmul.f32 %v15714_v28, %v13173_v1  ;;  %v15715_v31 = vld [vmem:[#allocation169_spill] sm:$0xff] }
 0x810   :  { %v13277_v3 = vpop.permute.xlu0 %5802  ;;  %v5728_v24 = vpop.permute.xlu1 %5727  ;;  %v6159_v53 = vsel %vm15711_vm11, %v6158_v0, %v6154_v11  ;;  %v6932_v18 = vadd.f32 %v6931_v56, %v6805_v43  ;;  %v6807_v34 = vmul.f32 %v13129_v8, %v15712_v40  ;;  %v15717_v43 = vld [vmem:[#allocation130_spill] sm:$0xff]  ;;  %vm15752_vm11 = vcmask 458112  }
 0x811   :  { %v6163_v47 = vrot.slane %v5728_v24, %v11238_v9  ;;  %v6827_v19 = vmul.f32 %v5728_v24, %v15710_v7  ;;  %6012 = vperm.xlu0 %7654, %v5513_v51   ;;  %v6958_v2 = vadd.f32 %v6957_v26, %v6826_v52  ;;  %v6828_v24 = vmul.f32 %v13135_v20, %v15715_v31  ;;  %v15718_v26 = vld [vmem:[#allocation91_spill] sm:$0xff] }
 0x812   :  { %5919 = vperm.xlu1 %7655, %v5482_v29   ;;  %v5484_v0 = vmul.f32 %v15717_v43, %v13085_v13  ;;  %v6933_v52 = vadd.f32 %v6932_v18, %v6806_v36  ;;  %v6808_v29 = vmul.f32 %v13137_v38, %v15718_v26  ;;  %v6178_v36 = vrot.slane %v13143_v41, %v11271_v39  ;;  %v15722_v18 = vld [vmem:[#allocation180_spill] sm:$0xff] }
 0x813   :  { %v6164_v4 = vsel %vm15713_vm9, %v6163_v47, %v6159_v53  ;;  %v6959_v51 = vadd.f32 %v6958_v2, %v6827_v19  ;;  %v15719_v47 = vld [vmem:[#allocation181_spill] sm:$0xff]  ;;  %v15721_v2 = vld [vmem:[#allocation200_spill] sm:$0xff]  ;;  %v6830_v43 = vmul.f32 %v13143_v41, %v15722_v18  ;;  %vm15754_vm9 = vmmov %vm15752_vm11 }
 0x814   :  { %v13295_v7 = vpop.permute.xlu0 %5808  ;;  %v5734_v11 = vpop.permute.xlu1 %5733  ;;  %v6169_v40 = vsel %vm15720_vm10, %v6168_v15, %v6164_v4  ;;  %v6934_v20 = vadd.f32 %v6933_v52, %v6807_v34  ;;  %v5515_v31 = vmul.f32 %v15721_v2, %v13173_v1  ;;  %v15723_v4 = vld [vmem:[#allocation234_spill] sm:$0xff]  ;;  %v15725_v41 = vld [vmem:[#allocation100_spill] sm:$0xff]  ;;  %vm15762_vm10 = vcmask 654912  }
 0x815   :  { %15716 = vst [vmem:[#allocation337_spill] sm:$0xff] %v13295_v7  ;;  %v6173_v56 = vrot.slane %v5734_v11, %v11268_v25  ;;  %v6829_v53 = vmul.f32 %v5734_v11, %v15719_v47  ;;  %6015 = vperm.xlu0 %7654, %v5514_v37   ;;  %v6960_v28 = vadd.f32 %v6959_v51, %v6828_v24  ;;  %v15724_v51 = vld [vmem:[#allocation187_spill] sm:$0xff]  ;;  %v15728_v2 = vld [vmem:[#allocation186_spill] sm:$0xff] }
 0x816   :  { %5925 = vperm.xlu1 %7655, %v5484_v0   ;;  %v5486_v15 = vmul.f32 %v15723_v4, %v13085_v13  ;;  %v6935_v24 = vadd.f32 %v6934_v20, %v6808_v29  ;;  %v6188_v0 = vrot.slane %v13155_v35, %v15486_v60  ;;  %v6809_v47 = vmul.f32 %v13075_v55, %v15725_v41  ;;  %v15726_v13 = vld [vmem:[#allocation286_spill] sm:$0xff] }
 0x817   :  { %v6174_v19 = vsel %vm3178_vm12, %v6173_v56, %v6169_v40  ;;  %v6961_v26 = vadd.f32 %v6960_v28, %v6829_v53  ;;  %v5516_v29 = vmul.f32 %v15726_v13, %v13173_v1  ;;  %v15727_v40 = vld [vmem:[#allocation240_spill] sm:$0xff]  ;;  %v6039_v20 = vrot.slane %v13089_v58, %v11150_v57  ;;  %v15729_v58 = vld [vmem:[#allocation98_spill] sm:$0xff] }
 0x818   :  { %v13311_v7 = vpop.permute.xlu0 %5814  ;;  %v5740_v37 = vpop.permute.xlu1 %5739  ;;  %v6179_v52 = vsel %vm3185_vm13, %v6178_v36, %v6174_v19  ;;  %v5488_v28 = vmul.f32 %v15727_v40, %v13153_v46  ;;  %v6197_v4 = vrot.slane %v13163_v54, %v11150_v57 }
 0x819   :  { %v6183_v34 = vrot.slane %v5740_v37, %v15477_v21  ;;  %v6831_v11 = vmul.f32 %v5740_v37, %v15724_v51  ;;  %6018 = vperm.xlu0 %7654, %v5515_v31   ;;  %v6962_v56 = vadd.f32 %v6961_v26, %v6830_v43  ;;  %v6832_v31 = vmul.f32 %v13155_v35, %v15728_v2 }
 0x81a   :  { %5931 = vperm.xlu1 %7655, %v5486_v15   ;;  %v6044_v26 = vrot.slane %v13097_v45, %v11158_v16  ;;  %v6936_v37 = vadd.f32 %v6935_v24, %v6809_v47  ;;  %v6810_v35 = vmul.f32 %v13145_v33, %v15729_v58  ;;  %v6035_v45 = vrot.slane %v13077_v32, %v11154_v23 }
 0x81b   :  { %v6184_v53 = vsel %vm3192_vm14, %v6183_v34, %v6179_v52  ;;  %v6963_v36 = vadd.f32 %v6962_v56, %v6831_v11  ;;  %v15730_v34 = vld [vmem:[#allocation192_spill] sm:$0xff]  ;;  %v15732_v56 = vld [vmem:[#allocation250_spill] sm:$0xff]  ;;  %v6049_v47 = vrot.slane %v13105_v12, %v11171_v63 }
 0x81c   :  { %v13332_v19 = vsel %vm3199_vm15, %v6188_v0, %v6184_v53  ;;  %v13334_v18 = vpop.permute.xlu0 %5820  ;;  %v5746_v43 = vpop.permute.xlu1 %5745  ;;  %v6834_v51 = vmul.f32 %v13163_v54, %v15730_v34  ;;  %v15731_v0 = vld [vmem:[#allocation193_spill] sm:$0xff]  ;;  %v5517_v41 = vmul.f32 %v15732_v56, %v13173_v1  ;;  %v6040_v32 = vsel %vm3101_vm1, %v6039_v20, %v6035_v45 }
 0x81d   :  { %v6193_v15 = vrot.slane %v5746_v43, %v11154_v23  ;;  %6021 = vperm.xlu0 %7654, %v5516_v29   ;;  %v13345_v11 = vadd.f32 %v6963_v36, %v6832_v31  ;;  %v6833_v52 = vmul.f32 %v5746_v43, %v15731_v0  ;;  %v15733_v29 = vld [vmem:[#allocation164_spill] sm:$0xff]  ;;  %v15735_v31 = vld [vmem:[#allocation106_spill] sm:$0xff]  ;;  %v6045_v12 = vsel %vm3108_vm2, %v6044_v26, %v6040_v32  ;;  %v15739_v45 = vld [vmem:[#allocation197_spill] sm:$0xff] }
 0x81e   :  { %5937 = vperm.xlu1 %7655, %v5488_v28   ;;  %v5490_v40 = vmul.f32 %v15733_v29, %v13153_v46  ;;  %v15734_v28 = vld [vmem:[#allocation288_spill] sm:$0xff]  ;;  %v6811_v36 = vmul.f32 %v13157_v48, %v15735_v31  ;;  %v6937_v58 = vadd.f32 %v6936_v37, %v6810_v35  ;;  %v6207_v34 = vrot.slane %v13175_v59, %v11171_v63  ;;  %v15741_v32 = vld [vmem:[#allocation110_spill] sm:$0xff] }
 0x81f   :  { %v6198_v24 = vsel %vm3101_vm1, %v6197_v4, %v6193_v15  ;;  %v6971_v53 = vadd.f32 %v6834_v51, %v6833_v52  ;;  %v5518_v2 = vmul.f32 %v15734_v28, %v13173_v1  ;;  %v15736_v4 = vld [vmem:[#allocation199_spill] sm:$0xff]  ;;  %v15737_v51 = vld [vmem:[#allocation252_spill] sm:$0xff]  ;;  %v15738_v52 = vld [vmem:[#allocation105_spill] sm:$0xff]  ;;  %v6836_v56 = vmul.f32 %v13175_v59, %v15739_v45 }
 0x820   :  { %v13355_v13 = vpop.permute.xlu0 %5826  ;;  %v5752_v54 = vpop.permute.xlu1 %5751  ;;  %v5492_v0 = vmul.f32 %v15737_v51, %v13153_v46  ;;  %v6812_v20 = vmul.f32 %v13165_v44, %v15738_v52  ;;  %v5505_v31 = vmul.f32 %v15741_v32, %v13173_v1  ;;  %v15742_v51 = vld [vmem:[#allocation112_spill] sm:$0xff] }
 0x821   :  { %v6202_v43 = vrot.slane %v5752_v54, %v11158_v16  ;;  %v6835_v15 = vmul.f32 %v5752_v54, %v15736_v4  ;;  %6024 = vperm.xlu0 %7654, %v5517_v41   ;;  %v6050_v41 = vsel %vm3115_vm3, %v6049_v47, %v6045_v12  ;;  %v6938_v4 = vadd.f32 %v6937_v58, %v6811_v36 }
 0x822   :  { %5943 = vperm.xlu1 %7655, %v5490_v40   ;;  %v15740_v40 = vld [vmem:[#allocation178_spill] sm:$0xff]  ;;  %v6813_v59 = vmul.f32 %v13177_v10, %v15742_v51  ;;  %v6054_v47 = vrot.slane %v13113_v17, %v11176_v30  ;;  %v6064_v36 = vrot.slane %v13129_v8, %v11202_v61  ;;  %v6069_v17 = vrot.slane %v13137_v38, %v11207_v22  ;;  %v15746_v8 = vld [vmem:[#allocation119_spill] sm:$0xff] }
 0x823   :  { %v6203_v29 = vsel %vm3108_vm2, %v6202_v43, %v6198_v24  ;;  %v6972_v54 = vadd.f32 %v6971_v53, %v6835_v15  ;;  %v5519_v28 = vmul.f32 %v15740_v40, %v13173_v1  ;;  %v6059_v53 = vrot.slane %v13121_v27, %v11186_v42  ;;  %v15743_v15 = vld [vmem:[#allocation207_spill] sm:$0xff] }
 0x824   :  { %v13377_v26 = vpop.permute.xlu0 %5832  ;;  %v6208_v37 = vsel %vm3115_vm3, %v6207_v34, %v6203_v29  ;;  %v5758_v35 = vpop.permute.xlu1 %5757  ;;  %v6217_v43 = vrot.slane %v13183_v6, %v11186_v42  ;;  %v6939_v58 = vadd.f32 %v6938_v4, %v6812_v20  ;;  %v15744_v34 = vld [vmem:[#allocation111_spill] sm:$0xff]  ;;  %v6055_v38 = vsel %vm3122_vm4, %v6054_v47, %v6050_v41 }
 0x825   :  { %v6973_v52 = vadd.f32 %v6972_v54, %v6836_v56  ;;  %v6212_v24 = vrot.slane %v5758_v35, %v11176_v30  ;;  %6027 = vperm.xlu0 %7654, %v5518_v2   ;;  %v6837_v12 = vmul.f32 %v5758_v35, %v15743_v15  ;;  %v6814_v45 = vmul.f32 %v13185_v14, %v15744_v34  ;;  %v15745_v56 = vld [vmem:[#allocation205_spill] sm:$0xff]  ;;  %v15747_v20 = vld [vmem:[#allocation219_spill] sm:$0xff]  ;;  %v15750_v15 = vld [vmem:[#allocation188_spill] sm:$0xff] }
 0x826   :  { %5949 = vperm.xlu1 %7655, %v5492_v0   ;;  %v6838_v27 = vmul.f32 %v13183_v6, %v15745_v56  ;;  %v6940_v40 = vadd.f32 %v6939_v58, %v6813_v59  ;;  %v6815_v32 = vmul.f32 %v15747_v20, %v15746_v8  ;;  %v15748_v51 = vld [vmem:[#allocation215_spill] sm:$0xff]  ;;  %v6060_v59 = vsel %vm15751_vm0, %v6059_v53, %v6055_v38  ;;  %v15753_v34 = vld [vmem:[#allocation133_spill] sm:$0xff] }
 0x827   :  { %v6213_v2 = vsel %vm3122_vm4, %v6212_v24, %v6208_v37  ;;  %v6974_v29 = vadd.f32 %v6973_v52, %v6837_v12  ;;  %v15749_v24 = vld [vmem:[#allocation275_spill] sm:$0xff]  ;;  %v15755_v56 = vld [vmem:[#allocation213_spill] sm:$0xff]  ;;  %vm15766_vm0 = vcmask 720512  }
 0x828   :  { %v13403_v54 = vpop.permute.xlu0 %5838  ;;  %v6218_v0 = vsel %vm15695_vm6, %v6217_v43, %v6213_v2  ;;  %v5764_v35 = vpop.permute.xlu1 %5763  ;;  %v6227_v6 = vrot.slane %v15749_v24, %v11207_v22  ;;  %v5507_v43 = vmul.f32 %v15750_v15, %v13173_v1  ;;  %v6941_v12 = vadd.f32 %v6940_v40, %v6814_v45  ;;  %v15757_v8 = vld [vmem:[#allocation143_spill] sm:$0xff]  ;;  %v15759_v38 = vld [vmem:[#allocation149_spill] sm:$0xff]  ;;  %vm15764_vm6 = vmmov %vm15762_vm10 }
 0x829   :  { %v6222_v4 = vrot.slane %v5764_v35, %v11202_v61  ;;  %v6839_v37 = vmul.f32 %v5764_v35, %v15748_v51  ;;  %6030 = vperm.xlu0 %7654, %v5519_v28   ;;  %v6975_v52 = vadd.f32 %v6974_v29, %v6838_v27  ;;  %v5493_v2 = vmul.f32 %v15753_v34, %v13153_v46  ;;  %v15756_v29 = vld [vmem:[#allocation222_spill] sm:$0xff]  ;;  %v15761_v15 = vld [vmem:[#allocation135_spill] sm:$0xff] }
 0x82a   :  { %5988 = vperm.xlu1 %7655, %v5505_v31   ;;  %v6065_v28 = vsel %vm15754_vm9, %v6064_v36, %v6060_v59  ;;  %v6840_v41 = vmul.f32 %v15749_v24, %v15755_v56  ;;  %v6942_v53 = vadd.f32 %v6941_v12, %v6815_v32  ;;  %v6074_v40 = vrot.slane %v13075_v55, %v11210_v5  ;;  %v15763_v56 = vld [vmem:[#allocation225_spill] sm:$0xff] }
 0x82b   :  { %v6223_v58 = vsel %vm15752_vm11, %v6222_v4, %v6218_v0  ;;  %v6976_v47 = vadd.f32 %v6975_v52, %v6839_v37  ;;  %v6070_v1 = vsel %vm3143_vm7, %v6069_v17, %v6065_v28  ;;  %v6079_v36 = vrot.slane %v13145_v33, %v11216_v62  ;;  %v15758_v37 = vld [vmem:[#allocation118_spill] sm:$0xff]  ;;  %vm15767_vm11 = vmmov %vm15766_vm0 }
 0x82c   :  { %v13422_v35 = vpop.permute.xlu0 %5844  ;;  %v6228_v31 = vsel %vm3143_vm7, %v6227_v6, %v6223_v58  ;;  %v5770_v27 = vpop.permute.xlu1 %5769  ;;  %v6237_v4 = vrot.slane %v15757_v8, %v11216_v62  ;;  %v6816_v24 = vmul.f32 %v15759_v38, %v15758_v37  ;;  %v6084_v17 = vrot.slane %v13157_v48, %v11238_v9  ;;  %v15760_v6 = vld [vmem:[#allocation211_spill] sm:$0xff] }
 0x82d   :  { %v6232_v45 = vrot.slane %v5770_v27, %v11210_v5  ;;  %v6841_v0 = vmul.f32 %v5770_v27, %v15756_v29  ;;  %v6977_v51 = vadd.f32 %v6976_v47, %v6840_v41  ;;  %v5494_v52 = vmul.f32 %v15760_v6, %v13153_v46  ;;  %v15765_v27 = vld [vmem:[#allocation25_spill] sm:$0xff] }
 0x82e   :  { %5994 = vperm.xlu1 %7655, %v5507_v43   ;;  %v6075_v55 = vsel %vm3150_vm8, %v6074_v40, %v6070_v1  ;;  %v6842_v33 = vmul.f32 %v15757_v8, %v15761_v15  ;;  %v6089_v34 = vrot.slane %v13165_v44, %v11247_v49  ;;  %v6943_v48 = vadd.f32 %v6942_v53, %v6816_v24 }
 0x82f   :  { %v6233_v32 = vsel %vm3150_vm8, %v6232_v45, %v6228_v31  ;;  %v6978_v59 = vadd.f32 %v6977_v51, %v6841_v0  ;;  %v6080_v47 = vsel %vm15764_vm6, %v6079_v36, %v6075_v55  ;;  %v6094_v31 = vrot.slane %v13177_v10, %v11268_v25  ;;  %v15768_v36 = vld [vmem:[#allocation139_spill] sm:$0xff] }
 0x830   :  { %v13444_v12 = vpop.permute.xlu0 %5850  ;;  %v6238_v43 = vsel %vm15762_vm10, %v6237_v4, %v6233_v32  ;;  %v5776_v58 = vpop.permute.xlu1 %5775  ;;  %v6247_v1 = vrot.slane %v15765_v27, %v11247_v49  ;;  %v6085_v29 = vsel %vm15766_vm0, %v6084_v17, %v6080_v47  ;;  %v6099_v44 = vrot.slane %v13185_v14, %v11271_v39  ;;  %v15771_v17 = vld [vmem:[#allocation147_spill] sm:$0xff] }
 0x831   :  { %v6242_v28 = vrot.slane %v5776_v58, %v11238_v9  ;;  %v6843_v41 = vmul.f32 %v5776_v58, %v15763_v56  ;;  %v6979_v45 = vadd.f32 %v6978_v59, %v6842_v33  ;;  %v6965_v53 = vrot.slane %v13345_v11, 4  ;;  %v15773_v58 = vld [vmem:[#allocation141_spill] sm:$0xff] }
 0x832   :  { %5952 = vperm.xlu1 %7655, %v5493_v2   ;;  %v6104_v40 = vrot.slane %v15747_v20, %v15477_v21  ;;  %v6844_v10 = vmul.f32 %v15765_v27, %v15768_v36  ;;  %vm15769_vm9 = vcmask 786112   ;;  %v6944_v24 = vrot.slane %v6943_v48, 4  ;;  %v15772_v20 = vld [vmem:[#allocation42_spill] sm:$0xff]  ;;  %v15774_v56 = vld [vmem:[#allocation145_spill] sm:$0xff] }
 0x833   :  { %v6243_v0 = vsel %vm15767_vm11, %v6242_v28, %v6238_v43  ;;  %v6980_v8 = vadd.f32 %v6979_v45, %v6843_v41  ;;  %vm15770_vm10 = vmmov %vm15769_vm9  ;;  %v6257_v55 = vrot.slane %v15772_v20, %v11271_v39  ;;  %v6966_v59 = vadd.f32 %v6965_v53, %v13345_v11  ;;  %v15776_v53 = vld [vmem:[#allocation195_spill] sm:$0xff] }
 0x834   :  { %v13465_v4 = vpop.permute.xlu0 %5856  ;;  %v6248_v2 = vsel %vm15769_vm9, %v6247_v1, %v6243_v0  ;;  %v5782_v51 = vpop.permute.xlu1 %5781  ;;  %v6090_v37 = vsel %vm15770_vm10, %v6089_v34, %v6085_v29  ;;  %v5495_v34 = vmul.f32 %v15773_v58, %v13153_v46  ;;  %v6846_v41 = vmul.f32 %v15772_v20, %v15774_v56  ;;  %v15775_v29 = vld [vmem:[#allocation233_spill] sm:$0xff] }
 0x835   :  { %v6252_v14 = vrot.slane %v5782_v51, %v11268_v25  ;;  %v6845_v32 = vmul.f32 %v5782_v51, %v15771_v17  ;;  %v6095_v6 = vsel %vm3178_vm12, %v6094_v31, %v6090_v37  ;;  %v6981_v15 = vadd.f32 %v6980_v8, %v6844_v10  ;;  %v15778_v37 = vld [vmem:[#allocation151_spill] sm:$0xff] }
 0x836   :  { %5955 = vperm.xlu1 %7655, %v5494_v52   ;;  %v6100_v33 = vsel %vm3185_vm13, %v6099_v44, %v6095_v6  ;;  %v6109_v1 = vrot.slane %v15759_v38, %v15486_v60  ;;  %v6945_v11 = vadd.f32 %v6944_v24, %v6943_v48  ;;  %v6267_v0 = vrot.slane %v15776_v53, %v15486_v60 }
 0x837   :  { %v6253_v43 = vsel %vm3178_vm12, %v6252_v14, %v6248_v2  ;;  %v6105_v28 = vsel %vm3192_vm14, %v6104_v40, %v6100_v33  ;;  %v6982_v47 = vadd.f32 %v6981_v15, %v6845_v32  ;;  %v6967_v10 = vrot.slane %v6966_v59, 2  ;;  %v15777_v2 = vld [vmem:[#allocation185_spill] sm:$0xff]  ;;  %v15780_v33 = vld [vmem:[#allocation155_spill] sm:$0xff] }
 0x838   :  { %v13482_v31 = vpop.permute.xlu0 %5862  ;;  %v6258_v27 = vsel %vm3185_vm13, %v6257_v55, %v6253_v43  ;;  %v5788_v52 = vpop.permute.xlu1 %5787  ;;  %v6110_v36 = vsel %vm3199_vm15, %v6109_v1, %v6105_v28  ;;  %v5496_v51 = vmul.f32 %v15777_v2, %v13153_v46  ;;  %v6848_v38 = vmul.f32 %v15776_v53, %v15778_v37  ;;  %v15782_v1 = vld [vmem:[#allocation79_spill] sm:$0xff]  ;;  %v15783_v53 = vld [vmem:[#allocation162_spill] sm:$0xff] }
 0x839   :  { %v6262_v45 = vrot.slane %v5788_v52, %v15477_v21  ;;  %v6847_v44 = vmul.f32 %v5788_v52, %v15775_v29  ;;  %v6983_v40 = vadd.f32 %v6982_v47, %v6846_v41  ;;  %vm15779_vm6 = vcmask 1041409  }
 0x83a   :  { %5958 = vperm.xlu1 %7655, %v5495_v34   ;;  %v6664_v48 = vsel %vm15779_vm6, %v13332_v19, %v6110_v36  ;;  %v6946_v6 = vrot.slane %v6945_v11, 2  ;;  %v6276_v20 = vrot.slane %v13259_v50, %v11150_v57  ;;  %v6850_v43 = vmul.f32 %v13259_v50, %v15780_v33  ;;  %v15781_v19 = vld [vmem:[#allocation237_spill] sm:$0xff]  ;;  %vm15793_vm11 = vmmov %vm15779_vm6 }
 0x83b   :  { %v6263_v8 = vsel %vm3192_vm14, %v6262_v45, %v6258_v27  ;;  %v6984_v14 = vadd.f32 %v6983_v40, %v6847_v44  ;;  %v6968_v28 = vadd.f32 %v6967_v10, %v6966_v59  ;;  %v5497_v45 = vmul.f32 %v15782_v1, %v13153_v46  ;;  %v15784_v59 = vld [vmem:[#allocation160_spill] sm:$0xff]  ;;  %v15787_v33 = vld [vmem:[#allocation337_spill] sm:$0xff] }
 0x83c   :  { %v6268_v24 = vsel %vm3199_vm15, %v6267_v0, %v6263_v8  ;;  %v13500_v17 = vpop.permute.xlu0 %5868  ;;  %v5794_v32 = vpop.permute.xlu1 %5793  ;;  %v6947_v29 = vadd.f32 %v6946_v6, %v6945_v11  ;;  %v6286_v0 = vrot.slane %v13277_v3, %v11171_v63  ;;  %v6852_v36 = vmul.f32 %v13277_v3, %v15784_v59  ;;  %v15791_v59 = vld [vmem:[#allocation171_spill] sm:$0xff] }
 0x83d   :  { %v13505_v55 = vsel %vm3756_vm5, %v6268_v24, %v6664_v48  ;;  %v6272_v15 = vrot.slane %v5794_v32, %v11154_v23  ;;  %v6985_v58 = vadd.f32 %v6984_v14, %v6848_v38  ;;  %v6849_v34 = vmul.f32 %v5794_v32, %v15781_v19  ;;  %v15785_v38 = vld [vmem:[#allocation44_spill] sm:$0xff]  ;;  %v15788_v19 = vld [vmem:[#allocation159_spill] sm:$0xff] }
 0x83e   :  { %5961 = vperm.xlu1 %7655, %v5496_v51   ;;  %v6969_v10 = vrot.slane %v6968_v28, 1  ;;  %v5498_v48 = vmul.f32 %v15785_v38, %v13153_v46  ;;  %v6948_v24 = vrot.slane %v6947_v29, 1  ;;  %vm15790_vm0 = vcmask 392512  }
 0x83f   :  { %v6277_v56 = vsel %vm3101_vm1, %v6276_v20, %v6272_v15  ;;  %v6986_v41 = vrot.slane %v6985_v58, 4  ;;  %v6992_v47 = vadd.f32 %v6850_v43, %v6849_v34  ;;  %v15786_v15 = vld [vmem:[#allocation167_spill] sm:$0xff]  ;;  %v6296_v43 = vrot.slane %v15787_v33, %v11186_v42 }
 0x840   :  { %v13512_v27 = vpop.permute.xlu0 %5874  ;;  %v5800_v52 = vpop.permute.xlu1 %5799  ;;  %v5499_v34 = vmul.f32 %v15788_v19, %v13153_v46  ;;  %vm15795_vm9 = vcmask 458112   ;;  %vm15802_vm10 = vcmask 720512   ;;  %vm15804_vm6 = vcmask 786112  }
 0x841   :  { %v6281_v44 = vrot.slane %v5800_v52, %v11158_v16  ;;  %v6851_v50 = vmul.f32 %v5800_v52, %v15783_v53  ;;  %v6987_v40 = vadd.f32 %v6986_v41, %v6985_v58  ;;  %v6970_v58 = vadd.f32 %v6969_v10, %v6968_v28 }
 0x842   :  { %5964 = vperm.xlu1 %7655, %v5497_v45   ;;  %v6306_v10 = vrot.slane %v13311_v7, %v11207_v22 }
 0x843   :  { %v6282_v8 = vsel %vm3108_vm2, %v6281_v44, %v6277_v56  ;;  %v6993_v2 = vadd.f32 %v6992_v47, %v6851_v50  ;;  %v6988_v51 = vrot.slane %v6987_v40, 2  ;;  %v15789_v56 = vld [vmem:[#allocation244_spill] sm:$0xff]  ;;  %v6949_v44 = vadd.f32 %v6948_v24, %v6947_v29 }
 0x844   :  { %v13523_v37 = vpop.permute.xlu0 %5880  ;;  %v6287_v11 = vsel %vm3115_vm3, %v6286_v0, %v6282_v8  ;;  %v5806_v32 = vpop.permute.xlu1 %5805  ;;  %v6854_v41 = vmul.f32 %v15787_v33, %v15789_v56  ;;  %v15792_v8 = vld [vmem:[#allocation263_spill] sm:$0xff] }
 0x845   :  { %v6994_v14 = vadd.f32 %v6993_v2, %v6852_v36  ;;  %v6989_v6 = vadd.f32 %v6988_v51, %v6987_v40  ;;  %v6291_v20 = vrot.slane %v5806_v32, %v11176_v30  ;;  %v6853_v3 = vmul.f32 %v5806_v32, %v15786_v15 }
 0x846   :  { %5967 = vperm.xlu1 %7655, %v5498_v48   ;;  %v5500_v2 = vmul.f32 %v15792_v8, %v13153_v46  ;;  %v7105_v51 = vsel %vm15793_vm11, %v6970_v58, %v6949_v44  ;;  %v15803_v8 = vld [vmem:[#allocation224_spill] sm:$0xff]  ;;  %vm15817_vm11 = vcmask 392512  }
 0x847   :  { %v6990_v47 = vrot.slane %v6989_v6, 1  ;;  %v6292_v52 = vsel %vm3122_vm4, %v6291_v20, %v6287_v11  ;;  %v6995_v1 = vadd.f32 %v6994_v14, %v6853_v3  ;;  %v15794_v11 = vld [vmem:[#allocation249_spill] sm:$0xff]  ;;  %v15796_v3 = vld [vmem:[#allocation46_spill] sm:$0xff] }
 0x848   :  { %v13537_v45 = vpop.permute.xlu0 %5886  ;;  %v6297_v53 = vsel %vm15790_vm0, %v6296_v43, %v6292_v52  ;;  %v5812_v50 = vpop.permute.xlu1 %5811  ;;  %v6856_v29 = vmul.f32 %v13311_v7, %v15794_v11  ;;  %v6316_v7 = vrot.slane %v13334_v18, %v11216_v62  ;;  %v15797_v43 = vld [vmem:[#allocation43_spill] sm:$0xff]  ;;  %vm15811_vm0 = vcmask 1043459  }
 0x849   :  { %v6991_v0 = vadd.f32 %v6990_v47, %v6989_v6  ;;  %v6996_v40 = vadd.f32 %v6995_v1, %v6854_v41  ;;  %v6301_v28 = vrot.slane %v5812_v50, %v11202_v61  ;;  %v6855_v36 = vmul.f32 %v5812_v50, %v15791_v59  ;;  %v15798_v41 = vld [vmem:[#allocation94_spill] sm:$0xff]  ;;  %v15800_v50 = vld [vmem:[#allocation49_spill] sm:$0xff] }
 0x84a   :  { %5970 = vperm.xlu1 %7655, %v5499_v34   ;;  %v6858_v58 = vmul.f32 %v13334_v18, %v15797_v43  ;;  %v5501_v47 = vmul.f32 %v15798_v41, %v13153_v46  ;;  %v6326_v18 = vrot.slane %v13355_v13, %v11247_v49 }
 0x84b   :  { %v6302_v38 = vsel %vm15795_vm9, %v6301_v28, %v6297_v53  ;;  %v6997_v48 = vadd.f32 %v6996_v40, %v6855_v36  ;;  %v13553_v14 = vsel %vm3756_vm5, %v6991_v0, %v7105_v51  ;;  %vm15799_vm5 = vcmask 654912   ;;  %v15801_v40 = vld [vmem:[#allocation47_spill] sm:$0xff] }
 0x84c   :  { %v13550_v24 = vpop.permute.xlu0 %5892  ;;  %v6307_v32 = vsel %vm3143_vm7, %v6306_v10, %v6302_v38  ;;  %v5818_v6 = vpop.permute.xlu1 %5817  ;;  %v6860_v28 = vmul.f32 %v13355_v13, %v15801_v40  ;;  %v6336_v13 = vrot.slane %v13377_v26, %v11271_v39 }
 0x84d   :  { %v6998_v20 = vadd.f32 %v6997_v48, %v6856_v29  ;;  %v6311_v15 = vrot.slane %v5818_v6, %v11210_v5  ;;  %v6857_v33 = vmul.f32 %v5818_v6, %v15796_v3  ;;  %v15805_v48 = vld [vmem:[#allocation52_spill] sm:$0xff]  ;;  %v15806_v6 = vld [vmem:[#allocation51_spill] sm:$0xff] }
 0x84e   :  { %5973 = vperm.xlu1 %7655, %v5500_v2   ;;  %v5502_v2 = vmul.f32 %v15803_v8, %v13153_v46 }
 0x84f   :  { %v6312_v19 = vsel %vm3150_vm8, %v6311_v15, %v6307_v32  ;;  %v6999_v34 = vadd.f32 %v6998_v20, %v6857_v33  ;;  %v6862_v20 = vmul.f32 %v13377_v26, %v15806_v6  ;;  %v6346_v26 = vrot.slane %v13403_v54, %v15486_v60  ;;  %v15813_v6 = vld [vmem:[#allocation62_spill] sm:$0xff] }
 0x850   :  { %v13563_v56 = vpop.permute.xlu0 %5898  ;;  %v6317_v52 = vsel %vm15799_vm5, %v6316_v7, %v6312_v19  ;;  %v5824_v1 = vpop.permute.xlu1 %5823  ;;  %v15807_v7 = vld [vmem:[#allocation212_spill] sm:$0xff]  ;;  %vm15820_vm5 = vmmov %vm15811_vm0 }
 0x851   :  { %v7000_v44 = vadd.f32 %v6999_v34, %v6858_v58  ;;  %v6321_v53 = vrot.slane %v5824_v1, %v11238_v9  ;;  %v6859_v0 = vmul.f32 %v5824_v1, %v15800_v50  ;;  %v5503_v43 = vmul.f32 %v15807_v7, %v13153_v46  ;;  %v15809_v1 = vld [vmem:[#allocation55_spill] sm:$0xff] }
 0x852   :  { %5976 = vperm.xlu1 %7655, %v5501_v47   ;;  %v15808_v47 = vld [vmem:[#allocation56_spill] sm:$0xff]  ;;  %v6355_v46 = vrot.slane %v13422_v35, %v11150_v57 }
 0x853   :  { %v6322_v59 = vsel %vm15802_vm10, %v6321_v53, %v6317_v52  ;;  %v7001_v36 = vadd.f32 %v7000_v44, %v6859_v0  ;;  %v6864_v44 = vmul.f32 %v13403_v54, %v15809_v1  ;;  %v15815_v1 = vld [vmem:[#allocation66_spill] sm:$0xff]  ;;  %vm15823_vm10 = vcmask 654912  }
 0x854   :  { %v13575_v10 = vpop.permute.xlu0 %5904  ;;  %v6327_v51 = vsel %vm15804_vm6, %v6326_v18, %v6322_v59  ;;  %v5830_v11 = vpop.permute.xlu1 %5829  ;;  %v15810_v18 = vld [vmem:[#allocation58_spill] sm:$0xff]  ;;  %vm15826_vm6 = vcmask 720512  }
 0x855   :  { %v7002_v29 = vadd.f32 %v7001_v36, %v6860_v28  ;;  %v6331_v38 = vrot.slane %v5830_v11, %v11268_v25  ;;  %v6861_v32 = vmul.f32 %v5830_v11, %v15805_v48  ;;  %v6866_v40 = vmul.f32 %v13422_v35, %v15810_v18 }
 0x856   :  { %5979 = vperm.xlu1 %7655, %v5502_v2   ;;  %v15812_v2 = vld [vmem:[#allocation60_spill] sm:$0xff] }
 0x857   :  { %v6332_v15 = vsel %vm3178_vm12, %v6331_v38, %v6327_v51  ;;  %v7003_v3 = vadd.f32 %v7002_v29, %v6861_v32 }
 0x858   :  { %v13587_v33 = vpop.permute.xlu0 %5910  ;;  %v6337_v58 = vsel %vm3185_vm13, %v6336_v13, %v6332_v15  ;;  %v5836_v19 = vpop.permute.xlu1 %5835  ;;  %v15814_v15 = vld [vmem:[#allocation61_spill] sm:$0xff] }
 0x859   :  { %v7004_v34 = vadd.f32 %v7003_v3, %v6862_v20  ;;  %v6341_v41 = vrot.slane %v5836_v19, %v15477_v21  ;;  %v6863_v52 = vmul.f32 %v5836_v19, %v15808_v47  ;;  %v6868_v3 = vmul.f32 %v13444_v12, %v15814_v15 }
 0x85a   :  { %5982 = vperm.xlu1 %7655, %v5503_v43  }
 0x85b   :  { %v6342_v53 = vsel %vm3192_vm14, %v6341_v41, %v6337_v58  ;;  %v7005_v50 = vadd.f32 %v7004_v34, %v6863_v52 }
 0x85c   :  { %v13599_v0 = vpop.permute.xlu0 %5916  ;;  %v6347_v28 = vsel %vm3199_vm15, %v6346_v26, %v6342_v53  ;;  %v5842_v59 = vpop.permute.xlu1 %5841  ;;  %v6375_v53 = vrot.slane %v13465_v4, %v11186_v42 }
 0x85d   :  { %v13608_v36 = vsel %vm15811_vm0, %v6347_v28, %v13505_v55  ;;  %v7006_v8 = vadd.f32 %v7005_v50, %v6864_v44  ;;  %v6351_v54 = vrot.slane %v5842_v59, %v11154_v23  ;;  %v6865_v51 = vmul.f32 %v5842_v59, %v15812_v2  ;;  %v15816_v50 = vld [vmem:[#allocation65_spill] sm:$0xff] }
 0x85e   :  { %v6365_v55 = vrot.slane %v13444_v12, %v11171_v63  ;;  %v6870_v12 = vmul.f32 %v13465_v4, %v15816_v50  ;;  %vm15827_vm0 = vcmask 786112  }
 0x85f   :  { %v7007_v11 = vrot.slane %v7006_v8, 4  ;;  %v6356_v29 = vsel %vm3101_vm1, %v6355_v46, %v6351_v54  ;;  %v7013_v38 = vadd.f32 %v6866_v40, %v6865_v51  ;;  %v15818_v51 = vld [vmem:[#allocation70_spill] sm:$0xff] }
 0x860   :  { %v13613_v48 = vpop.permute.xlu0 %5922  ;;  %v5848_v32 = vpop.permute.xlu1 %5847 }
 0x861   :  { %v7008_v35 = vadd.f32 %v7007_v11, %v7006_v8  ;;  %v6360_v13 = vrot.slane %v5848_v32, %v11158_v16  ;;  %v6867_v20 = vmul.f32 %v5848_v32, %v15813_v6 }
 0x863   :  { %v7009_v7 = vrot.slane %v7008_v35, 2  ;;  %v6361_v43 = vsel %vm3108_vm2, %v6360_v13, %v6356_v29  ;;  %v7014_v58 = vadd.f32 %v7013_v38, %v6867_v20  ;;  %v6385_v29 = vrot.slane %v13482_v31, %v11207_v22  ;;  %v15819_v38 = vld [vmem:[#allocation68_spill] sm:$0xff] }
 0x864   :  { %v6366_v19 = vsel %vm3115_vm3, %v6365_v55, %v6361_v43  ;;  %v5854_v34 = vpop.permute.xlu1 %5853  ;;  %v13623_v47 = vpop.permute.xlu0 %5928  ;;  %v6872_v32 = vmul.f32 %v13482_v31, %v15819_v38  ;;  %v6395_v31 = vrot.slane %v13500_v17, %v11216_v62 }
 0x865   :  { %v7010_v41 = vadd.f32 %v7009_v7, %v7008_v35  ;;  %v7015_v52 = vadd.f32 %v7014_v58, %v6868_v3  ;;  %v6370_v26 = vrot.slane %v5854_v34, %v11176_v30  ;;  %v6869_v44 = vmul.f32 %v5854_v34, %v15815_v1  ;;  %v15821_v7 = vld [vmem:[#allocation80_spill] sm:$0xff]  ;;  %v15822_v58 = vld [vmem:[#allocation71_spill] sm:$0xff] }
 0x867   :  { %v7011_v46 = vrot.slane %v7010_v41, 1  ;;  %v6371_v18 = vsel %vm3122_vm4, %v6370_v26, %v6366_v19  ;;  %v7016_v40 = vadd.f32 %v7015_v52, %v6869_v44  ;;  %v6874_v19 = vmul.f32 %v13500_v17, %v15822_v58 }
 0x868   :  { %v6376_v28 = vsel %vm15817_vm11, %v6375_v53, %v6371_v18  ;;  %v5860_v59 = vpop.permute.xlu1 %5859  ;;  %v13639_v4 = vpop.permute.xlu0 %5934  ;;  %v15824_v53 = vld [vmem:[#allocation82_spill] sm:$0xff]  ;;  %vm15832_vm11 = vcmask 1044484  }
 0x869   :  { %v7012_v8 = vadd.f32 %v7011_v46, %v7010_v41  ;;  %v7017_v54 = vadd.f32 %v7016_v40, %v6870_v12  ;;  %v6380_v2 = vrot.slane %v5860_v59, %v11202_v61  ;;  %v6871_v11 = vmul.f32 %v5860_v59, %v15818_v51  ;;  %v15825_v46 = vld [vmem:[#allocation81_spill] sm:$0xff] }
 0x86a   :  { %v6405_v12 = vrot.slane %v13512_v27, %v11247_v49  ;;  %v6876_v18 = vmul.f32 %v13512_v27, %v15825_v46 }
 0x86b   :  { %v6381_v35 = vsel %vm15795_vm9, %v6380_v2, %v6376_v28  ;;  %v7018_v13 = vadd.f32 %v7017_v54, %v6871_v11  ;;  %v13644_v6 = vsel %vm15820_vm5, %v7012_v8, %v13553_v14  ;;  %v15828_v2 = vld [vmem:[#allocation90_spill] sm:$0xff]  ;;  %v6415_v11 = vrot.slane %v13523_v37, %v11271_v39 }
 0x86c   :  { %v6386_v20 = vsel %vm3143_vm7, %v6385_v29, %v6381_v35  ;;  %v5866_v55 = vpop.permute.xlu1 %5865  ;;  %v13655_v26 = vpop.permute.xlu0 %5940  ;;  %v15829_v29 = vld [vmem:[#allocation88_spill] sm:$0xff]  ;;  %vm15833_vm9 = vcmask 392512   ;;  %vm15834_vm5 = vcmask 458112  }
 0x86d   :  { %v7019_v15 = vadd.f32 %v7018_v13, %v6872_v32  ;;  %v6390_v3 = vrot.slane %v5866_v55, %v11210_v5  ;;  %v6873_v43 = vmul.f32 %v5866_v55, %v15821_v7  ;;  %v6878_v38 = vmul.f32 %v13523_v37, %v15829_v29 }
 0x86f   :  { %v6391_v34 = vsel %vm3150_vm8, %v6390_v3, %v6386_v20  ;;  %v7020_v41 = vadd.f32 %v7019_v15, %v6873_v43  ;;  %v15830_v3 = vld [vmem:[#allocation96_spill] sm:$0xff]  ;;  %v6425_v43 = vrot.slane %v13537_v45, %v15486_v60 }
 0x870   :  { %v6396_v14 = vsel %vm15823_vm10, %v6395_v31, %v6391_v34  ;;  %v5872_v52 = vpop.permute.xlu1 %5871  ;;  %v13671_v32 = vpop.permute.xlu0 %5946  ;;  %v15831_v31 = vld [vmem:[#allocation95_spill] sm:$0xff]  ;;  %vm15835_vm10 = vmmov %vm15832_vm11 }
 0x871   :  { %v7021_v1 = vadd.f32 %v7020_v41, %v6874_v19  ;;  %v6400_v44 = vrot.slane %v5872_v52, %v11238_v9  ;;  %v6875_v50 = vmul.f32 %v5872_v52, %v15824_v53  ;;  %v6880_v58 = vmul.f32 %v13537_v45, %v15831_v31 }
 0x873   :  { %v6401_v17 = vsel %vm15826_vm6, %v6400_v44, %v6396_v14  ;;  %v7022_v40 = vadd.f32 %v7021_v1, %v6875_v50  ;;  %v6434_v14 = vrot.slane %v13550_v24, %v11150_v57  ;;  %vm15839_vm6 = vcmask 654912  }
 0x874   :  { %v6406_v28 = vsel %vm15827_vm0, %v6405_v12, %v6401_v17  ;;  %v5878_v59 = vpop.permute.xlu1 %5877  ;;  %v13685_v52 = vpop.permute.xlu0 %5985  ;;  %v6444_v17 = vrot.slane %v13563_v56, %v11171_v63  ;;  %vm15840_vm0 = vcmask 720512  }
 0x875   :  { %v7023_v8 = vadd.f32 %v7022_v40, %v6876_v18  ;;  %v6410_v54 = vrot.slane %v5878_v59, %v11268_v25  ;;  %v6877_v51 = vmul.f32 %v5878_v59, %v15828_v2 }
 0x877   :  { %v6411_v27 = vsel %vm3178_vm12, %v6410_v54, %v6406_v28  ;;  %v7024_v35 = vadd.f32 %v7023_v8, %v6877_v51  ;;  %v6454_v51 = vrot.slane %v13575_v10, %v11186_v42 }
 0x878   :  { %v6416_v13 = vsel %vm3185_vm13, %v6415_v11, %v6411_v27  ;;  %v5884_v20 = vpop.permute.xlu1 %5883  ;;  %v13694_v40 = vpop.permute.xlu0 %5991 }
 0x879   :  { %v7025_v55 = vadd.f32 %v7024_v35, %v6878_v38  ;;  %v6420_v15 = vrot.slane %v5884_v20, %v15477_v21  ;;  %v6879_v7 = vmul.f32 %v5884_v20, %v15830_v3 }
 0x87b   :  { %v6421_v37 = vsel %vm3192_vm14, %v6420_v15, %v6416_v13  ;;  %v7026_v19 = vadd.f32 %v7025_v55, %v6879_v7  ;;  %v6464_v55 = vrot.slane %v13587_v33, %v11207_v22 }
 0x87c   :  { %v6426_v34 = vsel %vm3199_vm15, %v6425_v43, %v6421_v37  ;;  %v5890_v41 = vpop.permute.xlu1 %5889  ;;  %v13703_v13 = vpop.permute.xlu0 %5997  ;;  %v15836_v37 = vld [vmem:[#allocation102_spill] sm:$0xff] }
 0x87d   :  { %v7027_v1 = vadd.f32 %v7026_v19, %v6880_v58  ;;  %v6430_v44 = vrot.slane %v5890_v41, %v11154_v23  ;;  %v6667_v53 = vsel %vm15832_vm11, %v6426_v34, %v13608_v36  ;;  %v6474_v58 = vrot.slane %v13599_v0, %v11216_v62 }
 0x87e   :  { %v6881_v19 = vmul.f32 %v5890_v41, %v15836_v37  ;;  %vm15841_vm11 = vcmask 786112  }
 0x87f   :  { %v7028_v50 = vrot.slane %v7027_v1, 4  ;;  %v6435_v45 = vsel %vm3101_vm1, %v6434_v14, %v6430_v44 }
 0x880   :  { %v5896_v12 = vpop.permute.xlu1 %5895  ;;  %v13718_v34 = vpop.permute.xlu0 %6000 }
 0x881   :  { %v7029_v46 = vadd.f32 %v7028_v50, %v7027_v1  ;;  %v6439_v18 = vrot.slane %v5896_v12, %v11158_v16  ;;  %v15837_v1 = vld [vmem:[#allocation101_spill] sm:$0xff] }
 0x882   :  { %v6882_v44 = vmul.f32 %v13550_v24, %v15837_v1  ;;  %v15838_v50 = vld [vmem:[#allocation109_spill] sm:$0xff]  ;;  %v15845_v1 = vld [vmem:[#allocation115_spill] sm:$0xff] }
 0x883   :  { %v7030_v28 = vrot.slane %v7029_v46, 2  ;;  %v6440_v59 = vsel %vm3108_vm2, %v6439_v18, %v6435_v45 }
 0x884   :  { %v6445_v8 = vsel %vm3115_vm3, %v6444_v17, %v6440_v59  ;;  %v6484_v17 = vrot.slane %v13613_v48, %v11247_v49 }
 0x885   :  { %v5902_v54 = vpop.permute.xlu1 %5901  ;;  %v7031_v2 = vadd.f32 %v7030_v28, %v7029_v46  ;;  %v7034_v28 = vadd.f32 %v6882_v44, %v6881_v19  ;;  %v6886_v44 = vmul.f32 %v13575_v10, %v15845_v1  ;;  %v15849_v10 = vld [vmem:[#allocation138_spill] sm:$0xff]  ;;  %v15853_v1 = vld [vmem:[#allocation127_spill] sm:$0xff] }
 0x886   :  { %v6449_v36 = vrot.slane %v5902_v54, %v11176_v30 }
 0x887   :  { %v7032_v11 = vrot.slane %v7031_v2, 1 }
 0x888   :  { %v6450_v29 = vsel %vm3122_vm4, %v6449_v36, %v6445_v8  ;;  %v13732_v36 = vpop.permute.xlu0 %6003 }
 0x889   :  { %v6455_v38 = vsel %vm15833_vm9, %v6454_v51, %v6450_v29  ;;  %v5908_v27 = vpop.permute.xlu1 %5907  ;;  %v7033_v35 = vadd.f32 %v7032_v11, %v7031_v2  ;;  %v6494_v11 = vrot.slane %v13623_v47, %v11271_v39  ;;  %vm15844_vm9 = vcmask 1045509  }
 0x88a   :  { %v6459_v20 = vrot.slane %v5908_v27, %v11202_v61 }
 0x88b   :  { %v13711_v3 = vsel %vm15835_vm10, %v7033_v35, %v13644_v6  ;;  %v6883_v6 = vmul.f32 %v5896_v12, %v15838_v50  ;;  %v15842_v12 = vld [vmem:[#allocation108_spill] sm:$0xff]  ;;  %vm15871_vm10 = vcmask 458112  }
 0x88c   :  { %v6460_v15 = vsel %vm15834_vm5, %v6459_v20, %v6455_v38  ;;  %v6884_v51 = vmul.f32 %v13563_v56, %v15842_v12  ;;  %v15843_v35 = vld [vmem:[#allocation116_spill] sm:$0xff]  ;;  %v15848_v12 = vld [vmem:[#allocation129_spill] sm:$0xff]  ;;  %vm15867_vm5 = vcmask 392512  }
 0x88d   :  { %v6465_v7 = vsel %vm3143_vm7, %v6464_v55, %v6460_v15  ;;  %v5914_v43 = vpop.permute.xlu1 %5913  ;;  %v7035_v59 = vadd.f32 %v7034_v28, %v6883_v6  ;;  %v6885_v20 = vmul.f32 %v5902_v54, %v15843_v35  ;;  %v15846_v6 = vld [vmem:[#allocation122_spill] sm:$0xff]  ;;  %v15851_v35 = vld [vmem:[#allocation144_spill] sm:$0xff] }
 0x88e   :  { %v6469_v31 = vrot.slane %v5914_v43, %v11210_v5 }
 0x88f   :  { %v7036_v38 = vadd.f32 %v7035_v59, %v6884_v51  ;;  %v15847_v59 = vld [vmem:[#allocation121_spill] sm:$0xff]  ;;  %v6889_v51 = vmul.f32 %v5914_v43, %v15848_v12  ;;  %v6890_v43 = vmul.f32 %v13599_v0, %v15853_v1  ;;  %v15859_v1 = vld [vmem:[#allocation136_spill] sm:$0xff] }
 0x890   :  { %v6470_v14 = vsel %vm3150_vm8, %v6469_v31, %v6465_v7  ;;  %v6504_v31 = vrot.slane %v13639_v4, %v15486_v60 }
 0x891   :  { %v6475_v45 = vsel %vm15839_vm6, %v6474_v58, %v6470_v14  ;;  %v5920_v46 = vpop.permute.xlu1 %5919  ;;  %v13749_v58 = vpop.permute.xlu0 %6006  ;;  %v7037_v37 = vadd.f32 %v7036_v38, %v6885_v20  ;;  %v6915_v20 = vmul.f32 %v13694_v40, %v15851_v35 }
 0x892   :  { %v6479_v18 = vrot.slane %v5920_v46, %v11238_v9 }
 0x893   :  { %v7038_v50 = vadd.f32 %v7037_v37, %v6886_v44  ;;  %v15852_v37 = vld [vmem:[#allocation226_spill] sm:$0xff] }
 0x894   :  { %v6480_v41 = vsel %vm15840_vm0, %v6479_v18, %v6475_v45  ;;  %v6887_v45 = vmul.f32 %v5908_v27, %v15846_v6  ;;  %v15850_v27 = vld [vmem:[#allocation223_spill] sm:$0xff] }
 0x895   :  { %v6485_v8 = vsel %vm15841_vm11, %v6484_v17, %v6480_v41  ;;  %v13730_v2 = vpop.permute.xlu1 %5925  ;;  %v13763_v17 = vpop.permute.xlu0 %6009 }
 0x896   :  { %v6489_v24 = vrot.slane %v13730_v2, %v11268_v25  ;;  %v7039_v28 = vadd.f32 %v7038_v50, %v6887_v45  ;;  %v15854_v50 = vld [vmem:[#allocation231_spill] sm:$0xff] }
 0x897   :  { %v6917_v6 = vmul.f32 %v13703_v13, %v15854_v50 }
 0x898   :  { %v6490_v29 = vsel %vm3178_vm12, %v6489_v24, %v6485_v8  ;;  %v6888_v8 = vmul.f32 %v13587_v33, %v15847_v59 }
 0x899   :  { %v6495_v55 = vsel %vm3185_vm13, %v6494_v11, %v6490_v29  ;;  %v13743_v15 = vpop.permute.xlu1 %5931  ;;  %v13769_v24 = vpop.permute.xlu0 %6012  ;;  %v6913_v29 = vmul.f32 %v13685_v52, %v15849_v10 }
 0x89a   :  { %v6499_v7 = vrot.slane %v13743_v15, %v15477_v21 }
 0x89c   :  { %v6500_v56 = vsel %vm3192_vm14, %v6499_v7, %v6495_v55 }
 0x89d   :  { %v6505_v19 = vsel %vm3199_vm15, %v6504_v31, %v6500_v56  ;;  %v13753_v14 = vpop.permute.xlu1 %5937  ;;  %v13777_v56 = vpop.permute.xlu0 %6015 }
 0x89e   :  { %v13756_v54 = vsel %vm15844_vm9, %v6505_v19, %v6667_v53  ;;  %v7040_v53 = vadd.f32 %v7039_v28, %v6888_v8  ;;  %v6588_v28 = vrot.slane %v13685_v52, %v11154_v23  ;;  %v15855_v8 = vld [vmem:[#allocation137_spill] sm:$0xff] }
 0x8a0   :  { %v7041_v7 = vadd.f32 %v7040_v53, %v6889_v51  ;;  %v6891_v53 = vmul.f32 %v5920_v46, %v15855_v8  ;;  %v15856_v51 = vld [vmem:[#allocation230_spill] sm:$0xff] }
 0x8a1   :  { %v13761_v18 = vpop.permute.xlu1 %5943  ;;  %v6918_v10 = vmul.f32 %v13718_v34, %v15856_v51  ;;  %v13798_v52 = vpop.permute.xlu0 %6018  ;;  %v15863_v51 = vld [vmem:[#allocation148_spill] sm:$0xff] }
 0x8a2   :  { %v7042_v59 = vadd.f32 %v7041_v7, %v6890_v43  ;;  %v15858_v7 = vld [vmem:[#allocation235_spill] sm:$0xff]  ;;  %v6607_v43 = vrot.slane %v13703_v13, %v11176_v30 }
 0x8a4   :  { %v7043_v46 = vadd.f32 %v7042_v59, %v6891_v53  ;;  %v15862_v59 = vld [vmem:[#allocation166_spill] sm:$0xff] }
 0x8a5   :  { %v13765_v41 = vpop.permute.xlu1 %5949  ;;  %v6898_v8 = vmul.f32 %v13655_v26, %v15862_v59  ;;  %v13822_v13 = vpop.permute.xlu0 %6021 }
 0x8a9   :  { %v5989_v11 = vpop.permute.xlu1 %5988  ;;  %v13842_v59 = vpop.permute.xlu0 %6024 }
 0x8aa   :  { %v6914_v38 = vmul.f32 %v5989_v11, %v15850_v27  ;;  %v6592_v44 = vrot.slane %v5989_v11, %v11150_v57  ;;  %v6597_v27 = vrot.slane %v13694_v40, %v11158_v16 }
 0x8ac   :  { %v7076_v55 = vadd.f32 %v6914_v38, %v6913_v29  ;;  %v6593_v0 = vsel %vm3101_vm1, %v6592_v44, %v6588_v28  ;;  %v15857_v38 = vld [vmem:[#allocation154_spill] sm:$0xff]  ;;  %v15860_v44 = vld [vmem:[#allocation239_spill] sm:$0xff] }
 0x8ad   :  { %v5995_v31 = vpop.permute.xlu1 %5994  ;;  %v6919_v35 = vmul.f32 %v13732_v36, %v15857_v38  ;;  %v6921_v50 = vmul.f32 %v13763_v17, %v15860_v44 }
 0x8ae   :  { %v7077_v33 = vadd.f32 %v7076_v55, %v6915_v20  ;;  %v6916_v19 = vmul.f32 %v5995_v31, %v15852_v37  ;;  %v6602_v11 = vrot.slane %v5995_v31, %v11171_v63  ;;  %v6598_v37 = vsel %vm3108_vm2, %v6597_v27, %v6593_v0 }
 0x8af   :  { %v6892_v31 = vmul.f32 %v13613_v48, %v15859_v1 }
 0x8b0   :  { %v7078_v45 = vadd.f32 %v7077_v33, %v6916_v19  ;;  %v6920_v33 = vmul.f32 %v13749_v58, %v15858_v7  ;;  %v6603_v40 = vsel %vm3115_vm3, %v6602_v11, %v6598_v37  ;;  %v15865_v11 = vld [vmem:[#allocation177_spill] sm:$0xff] }
 0x8b1   :  { %v13788_v12 = vpop.permute.xlu1 %5952  ;;  %v7044_v53 = vadd.f32 %v7043_v46, %v6892_v31  ;;  %v6899_v27 = vmul.f32 %v13761_v18, %v15865_v11  ;;  %v6608_v38 = vsel %vm3122_vm4, %v6607_v43, %v6603_v40  ;;  %v15866_v46 = vld [vmem:[#allocation243_spill] sm:$0xff]  ;;  %v6617_v31 = vrot.slane %v13732_v36, %v11202_v61  ;;  %v15868_v40 = vld [vmem:[#allocation146_spill] sm:$0xff]  ;;  %v15873_v11 = vld [vmem:[#allocation184_spill] sm:$0xff] }
 0x8b2   :  { %v7079_v29 = vadd.f32 %v7078_v45, %v6917_v6  ;;  %v15861_v6 = vld [vmem:[#allocation168_spill] sm:$0xff]  ;;  %v6923_v7 = vmul.f32 %v13777_v56, %v15866_v46  ;;  %v6894_v43 = vmul.f32 %v13623_v47, %v15868_v40  ;;  %v15872_v36 = vld [vmem:[#allocation158_spill] sm:$0xff]  ;;  %v6627_v46 = vrot.slane %v13763_v17, %v11210_v5 }
 0x8b3   :  { %v6897_v45 = vmul.f32 %v13753_v14, %v15861_v6  ;;  %v6632_v17 = vrot.slane %v13769_v24, %v11216_v62 }
 0x8b4   :  { %v7080_v20 = vadd.f32 %v7079_v29, %v6918_v10  ;;  %v6893_v10 = vmul.f32 %v13730_v2, %v15863_v51  ;;  %v15864_v29 = vld [vmem:[#allocation50_spill] sm:$0xff] }
 0x8b5   :  { %v13800_v55 = vpop.permute.xlu1 %5955  ;;  %v6922_v0 = vmul.f32 %v13769_v24, %v15864_v29  ;;  %v7055_v2 = vadd.f32 %v6898_v8, %v6897_v45 }
 0x8b6   :  { %v7081_v19 = vadd.f32 %v7080_v20, %v6919_v35  ;;  %v6612_v20 = vrot.slane %v13718_v34, %v11186_v42  ;;  %v7045_v37 = vadd.f32 %v7044_v53, %v6893_v10  ;;  %v6622_v53 = vrot.slane %v13749_v58, %v11207_v22  ;;  %v15875_v58 = vld [vmem:[#allocation182_spill] sm:$0xff] }
 0x8b7   :  { %v7056_v44 = vadd.f32 %v7055_v2, %v6899_v27  ;;  %v6895_v10 = vmul.f32 %v13743_v15, %v15872_v36  ;;  %v6901_v27 = vmul.f32 %v13765_v41, %v15873_v11 }
 0x8b8   :  { %v7082_v28 = vadd.f32 %v7081_v19, %v6920_v33  ;;  %v6613_v19 = vsel %vm15867_vm5, %v6612_v20, %v6608_v38  ;;  %v7046_v51 = vadd.f32 %v7045_v37, %v6894_v43  ;;  %v15874_v38 = vld [vmem:[#allocation248_spill] sm:$0xff]  ;;  %v6509_v37 = vrot.slane %v13753_v14, %v11154_v23  ;;  %v15877_v43 = vld [vmem:[#allocation247_spill] sm:$0xff] }
 0x8b9   :  { %v13818_v48 = vpop.permute.xlu1 %5958  ;;  %v6618_v8 = vsel %vm15871_vm10, %v6617_v31, %v6613_v19  ;;  %v13864_v19 = vpop.permute.xlu0 %6027  ;;  %v6513_v14 = vrot.slane %v13655_v26, %v11150_v57  ;;  %v15881_v26 = vld [vmem:[#allocation175_spill] sm:$0xff] }
 0x8ba   :  { %v7083_v35 = vadd.f32 %v7082_v28, %v6921_v50  ;;  %v15869_v50 = vld [vmem:[#allocation242_spill] sm:$0xff]  ;;  %v15870_v28 = vld [vmem:[#allocation176_spill] sm:$0xff]  ;;  %v6623_v20 = vsel %vm3143_vm7, %v6622_v53, %v6618_v8  ;;  %v7047_v2 = vadd.f32 %v7046_v51, %v6895_v10  ;;  %v6637_v51 = vrot.slane %v13777_v56, %v11238_v9 }
 0x8bb   :  { %v6924_v34 = vmul.f32 %v13798_v52, %v15869_v50  ;;  %v6900_v45 = vmul.f32 %v13671_v32, %v15870_v28  ;;  %v6926_v50 = vmul.f32 %v13842_v59, %v15877_v43  ;;  %v15878_v28 = vld [vmem:[#allocation156_spill] sm:$0xff]  ;;  %v15879_v8 = vld [vmem:[#allocation190_spill] sm:$0xff]  ;;  %v6927_v11 = vmul.f32 %v13864_v19, %v15881_v26  ;;  %v15886_v43 = vld [vmem:[#allocation201_spill] sm:$0xff] }
 0x8bc   :  { %v7084_v33 = vadd.f32 %v7083_v35, %v6922_v0  ;;  %v6925_v35 = vmul.f32 %v13822_v13, %v15874_v38  ;;  %v6896_v23 = vmul.f32 %v13639_v4, %v15878_v28  ;;  %v6904_v53 = vmul.f32 %v13818_v48, %v15879_v8 }
 0x8bd   :  { %v13832_v1 = vpop.permute.xlu1 %5961  ;;  %v7057_v47 = vadd.f32 %v7056_v44, %v6900_v45  ;;  %v6628_v44 = vsel %vm3150_vm8, %v6627_v46, %v6623_v20  ;;  %v13892_v56 = vpop.permute.xlu0 %6030 }
 0x8be   :  { %v7085_v6 = vadd.f32 %v7084_v33, %v6923_v7  ;;  %v6902_v7 = vmul.f32 %v13788_v12, %v15875_v58  ;;  %v6633_v10 = vsel %vm15839_vm6, %v6632_v17, %v6628_v44  ;;  %v6523_v58 = vrot.slane %v13671_v32, %v11171_v63  ;;  %v15883_v44 = vld [vmem:[#allocation203_spill] sm:$0xff]  ;;  %v15884_v17 = vld [vmem:[#allocation174_spill] sm:$0xff] }
 0x8bf   :  { %v7058_v31 = vadd.f32 %v7057_v47, %v6901_v27  ;;  %v15880_v47 = vld [vmem:[#allocation196_spill] sm:$0xff]  ;;  %v6528_v27 = vrot.slane %v13765_v41, %v11176_v30  ;;  %v6638_v46 = vsel %vm15840_vm0, %v6637_v51, %v6633_v10  ;;  %v6647_v41 = vrot.slane %v13822_v13, %v11268_v25 }
 0x8c0   :  { %v7086_v29 = vadd.f32 %v7085_v6, %v6924_v34  ;;  %v15876_v6 = vld [vmem:[#allocation191_spill] sm:$0xff]  ;;  %v6518_v34 = vrot.slane %v13761_v18, %v11158_v16  ;;  %v6514_v16 = vsel %vm3101_vm1, %v6513_v14, %v6509_v37  ;;  %v6905_v4 = vmul.f32 %v13832_v1, %v15880_v47  ;;  %vm15885_vm1 = vmmov %vm15841_vm11 }
 0x8c1   :  { %v13849_v0 = vpop.permute.xlu1 %5964  ;;  %v6903_v40 = vmul.f32 %v13800_v55, %v15876_v6  ;;  %v7059_v45 = vadd.f32 %v7058_v31, %v6902_v7  ;;  %v6642_v7 = vrot.slane %v13798_v52, %v11247_v49  ;;  %v6928_v63 = vmul.f32 %v13892_v56, %v15884_v17 }
 0x8c2   :  { %v7087_v33 = vadd.f32 %v7086_v29, %v6925_v35  ;;  %v7048_v29 = vadd.f32 %v7047_v2, %v6896_v23  ;;  %v6519_v57 = vsel %vm3108_vm2, %v6518_v34, %v6514_v16  ;;  %v15882_v35 = vld [vmem:[#allocation194_spill] sm:$0xff]  ;;  %v6533_v2 = vrot.slane %v13788_v12, %v11186_v42  ;;  %vm15887_vm2 = vmmov %vm15867_vm5 }
 0x8c3   :  { %v7060_v18 = vadd.f32 %v7059_v45, %v6903_v40  ;;  %v6906_v20 = vmul.f32 %v13849_v0, %v15882_v35  ;;  %v6524_v40 = vsel %vm3115_vm3, %v6523_v58, %v6519_v57  ;;  %v6538_v32 = vrot.slane %v13800_v55, %v11202_v61  ;;  %v15888_v45 = vld [vmem:[#allocation210_spill] sm:$0xff]  ;;  %vm15889_vm3 = vmmov %vm15871_vm10 }
 0x8c4   :  { %v7088_v36 = vadd.f32 %v7087_v33, %v6926_v50  ;;  %v7049_v30 = vrot.slane %v7048_v29, 4  ;;  %v6643_v42 = vsel %vm15885_vm1, %v6642_v7, %v6638_v46  ;;  %v6529_v12 = vsel %vm3122_vm4, %v6528_v27, %v6524_v40  ;;  %vm15891_vm4 = vmmov %vm15839_vm6 }
 0x8c5   :  { %v13860_v15 = vpop.permute.xlu1 %5967  ;;  %v7061_v38 = vadd.f32 %v7060_v18, %v6904_v53  ;;  %v6543_v52 = vrot.slane %v13818_v48, %v11207_v22  ;;  %v6534_v34 = vsel %vm15887_vm2, %v6533_v2, %v6529_v12  ;;  %v6548_v28 = vrot.slane %v13832_v1, %v11210_v5 }
 0x8c6   :  { %v7089_v37 = vadd.f32 %v7088_v36, %v6927_v11  ;;  %v6907_v6 = vmul.f32 %v13860_v15, %v15883_v44  ;;  %v6553_v61 = vrot.slane %v13849_v0, %v11216_v62  ;;  %v6648_v53 = vsel %vm3178_vm12, %v6647_v41, %v6643_v42  ;;  %v15890_v62 = vld [vmem:[#allocation209_spill] sm:$0xff] }
 0x8c7   :  { %v7062_v31 = vadd.f32 %v7061_v38, %v6905_v4  ;;  %v7050_v51 = vadd.f32 %v7049_v30, %v7048_v29  ;;  %v6652_v22 = vrot.slane %v13842_v59, %v11271_v39  ;;  %v6539_v48 = vsel %vm15889_vm3, %v6538_v32, %v6534_v34 }
 0x8c8   :  { %v7090_v14 = vadd.f32 %v7089_v37, %v6928_v63  ;;  %v6558_v36 = vrot.slane %v13860_v15, %v11238_v9  ;;  %v6544_v5 = vsel %vm3143_vm7, %v6543_v52, %v6539_v48  ;;  %v15892_v15 = vld [vmem:[#allocation218_spill] sm:$0xff]  ;;  %vm15893_vm7 = vmmov %vm15840_vm0 }
 0x8c9   :  { %v5971_v24 = vpop.permute.xlu1 %5970  ;;  %v7063_v13 = vadd.f32 %v7062_v31, %v6906_v20  ;;  %v6549_v16 = vsel %vm3150_vm8, %v6548_v28, %v6544_v5  ;;  %v6653_v59 = vsel %vm3185_vm13, %v6652_v22, %v6648_v53  ;;  %vm15894_vm8 = vmmov %vm15885_vm1  ;;  %v7051_v38 = vrot.slane %v7050_v51, 2 }
 0x8ca   :  { %v6908_v50 = vmul.f32 %v5971_v24, %v15886_v43  ;;  %v6563_v1 = vrot.slane %v5971_v24, %v11247_v49  ;;  %v7091_v47 = vrot.slane %v7090_v14, 4  ;;  %v6554_v4 = vsel %vm15891_vm4, %v6553_v61, %v6549_v16 }
 0x8cb   :  { %v7064_v55 = vadd.f32 %v7063_v13, %v6907_v6  ;;  %v6657_v49 = vrot.slane %v13864_v19, %v15477_v21  ;;  %v6559_v24 = vsel %vm15893_vm7, %v6558_v36, %v6554_v4  ;;  %v15895_v19 = vld [vmem:[#allocation217_spill] sm:$0xff]  ;;  %v7052_v31 = vadd.f32 %v7051_v38, %v7050_v51 }
 0x8cc   :  { %v7092_v46 = vadd.f32 %v7091_v47, %v7090_v14 }
 0x8cd   :  { %v5974_v33 = vpop.permute.xlu1 %5973  ;;  %v7065_v10 = vadd.f32 %v7064_v55, %v6908_v50  ;;  %v6658_v58 = vsel %vm3192_vm14, %v6657_v49, %v6653_v59 }
 0x8ce   :  { %v6909_v8 = vmul.f32 %v5974_v33, %v15888_v45  ;;  %v6568_v18 = vrot.slane %v5974_v33, %v11268_v25  ;;  %v6564_v25 = vsel %vm15894_vm8, %v6563_v1, %v6559_v24  ;;  %v7093_v44 = vrot.slane %v7092_v46, 2 }
 0x8d0   :  { %v7066_v57 = vadd.f32 %v7065_v10, %v6909_v8  ;;  %v6569_v35 = vsel %vm3178_vm12, %v6568_v18, %v6564_v25  ;;  %vm15896_vm12 = vcmask 1046534  }
 0x8d1   :  { %v5977_v23 = vpop.permute.xlu1 %5976 }
 0x8d2   :  { %v6910_v0 = vmul.f32 %v5977_v23, %v15890_v62  ;;  %v6573_v9 = vrot.slane %v5977_v23, %v11271_v39 }
 0x8d4   :  { %v7067_v27 = vadd.f32 %v7066_v57, %v6910_v0  ;;  %v6574_v39 = vsel %vm3185_vm13, %v6573_v9, %v6569_v35  ;;  %vm15897_vm13 = vcmask 1047559  }
 0x8d5   :  { %v5980_v29 = vpop.permute.xlu1 %5979 }
 0x8d6   :  { %v6911_v26 = vmul.f32 %v5980_v29, %v15892_v15  ;;  %v6578_v11 = vrot.slane %v5980_v29, %v15477_v21  ;;  %v6662_v21 = vrot.slane %v13892_v56, %v15486_v60 }
 0x8d8   :  { %v7068_v7 = vadd.f32 %v7067_v27, %v6911_v26  ;;  %v6579_v37 = vsel %vm3192_vm14, %v6578_v11, %v6574_v39  ;;  %v6663_v6 = vsel %vm3199_vm15, %v6662_v21, %v6658_v58 }
 0x8d9   :  { %v5983_v20 = vpop.permute.xlu1 %5982 }
 0x8da   :  { %v6583_v2 = vrot.slane %v5983_v20, %v15486_v60  ;;  %v6912_v33 = vmul.f32 %v5983_v20, %v15895_v19 }
 0x8dc   :  { %v6584_v30 = vsel %vm3199_vm15, %v6583_v2, %v6579_v37  ;;  %v7069_v41 = vadd.f32 %v7068_v7, %v6912_v33 }
 0x8dd   :  { %v6669_v40 = vsel %vm15896_vm12, %v6584_v30, %v13756_v54 }
 0x8de   :  { %v7070_v17 = vrot.slane %v7069_v41, 4  ;;  %v6670_v63 = vsel %vm15897_vm13, %v6663_v6, %v6669_v40 }
 0x8df   :  { %6672 = vst [vmem:[#allocation12] sm:$0xff] %v6670_v63 }
 0x8e0   :  { %v7071_v32 = vadd.f32 %v7070_v17, %v7069_v41 }
 0x8e1   :  { %8294 = shalt.err (!%p8291_p2)
}
 0x8e2   :  { %s8295_s15 = scalar_lea.hbm %s13993_s9, 128 }
 0x8e3   :  { %p8296_p3 = scmp.ne.s32.totalorder %s13993_s9, %s8295_s15  ;;  %p8299_p4 = scmp.lt.u32.totalorder %s8295_s15, %s13993_s9 }
 0x8e5   :  { %p8301_p5 = pnand %p8299_p4, %p8296_p3 }
 0x8e7   :  { %8304 = shalt.err (!%p8301_p5)
}
 0x8e8   :  { %7133 = dma.vmem_to_hbm [thread:$0]  %s7131_s13, 128, %s13993_s9, [#allocation13]   ;;  %v7053_v60 = vrot.slane %v7052_v31, 1  ;;  %v7094_v54 = vadd.f32 %v7093_v44, %v7092_v46  ;;  %v7072_v56 = vrot.slane %v7071_v32, 2  ;;  %vm15898_vm14 = vmmov %vm15844_vm9 }
 0x8e9   :  { %s8350_s22 = smov [#allocation11]   ;;  %vm15899_vm15 = vmmov %vm15896_vm12 }
 0x8ea   :  { %v7073_v42 = vadd.f32 %v7072_v56, %v7071_v32  ;;  %v7054_v12 = vadd.f32 %v7053_v60, %v7052_v31  ;;  %v7095_v52 = vrot.slane %v7094_v54, 1  ;;  %s7120_s23 = sshll.u32 %s8350_s22, 4  ;;  %vm15900_vm11 = vmmov %vm15897_vm13  ;;  %s7121_s23 = int_to_ptr.vmem [resolvable:$true] %s7120_s23 }
 0x8eb   :  { %s8305_s9 = scalar_lea.vmem %s7121_s23, 128  ;;  %p8310_p7 = scmp.lt.s32.totalorder %s7121_s23, %s7121_s23 }
 0x8ec   :  { %v7074_v13 = vrot.slane %v7073_v42, 1  ;;  %v7096_v50 = vadd.f32 %v7095_v52, %v7094_v54  ;;  %v7109_v34 = vsel %vm15898_vm14, %v7054_v12, %v13711_v3  ;;  %p8306_p6 = scmp.ne.s32.totalorder %s7121_s23, %s8305_s9  ;;  %p8311_p8 = scmp.lt.s32.totalorder %s8305_s9, %s8305_s9 }
 0x8ee   :  { %v7075_v43 = vadd.f32 %v7074_v13, %v7073_v42  ;;  %p8312_p9 = por %p8311_p8, %p8310_p7 }
 0x8f0   :  { %v7110_v28 = vsel %vm15899_vm15, %v7075_v43, %v7109_v34  ;;  %p8313_p10 = pnand %p8312_p9, %p8306_p6 }
 0x8f1   :  { %v7111_v23 = vsel %vm15900_vm11, %v7096_v50, %v7110_v28 }
 0x8f2   :  { %7113 = vst [vmem:[#allocation11] sm:$0xff] %v7111_v23 }
 0x8f3   :  { %8316 = shalt.err (!%p8313_p10)
}
 0x8f4   :  { %s8317_s24 = scalar_lea.hbm %s13992_s8, 128 }
 0x8f5   :  { %p8318_p11 = scmp.ne.s32.totalorder %s13992_s8, %s8317_s24  ;;  %p8321_p12 = scmp.lt.u32.totalorder %s8317_s24, %s13992_s8 }
 0x8f7   :  { %p8323_p13 = pnand %p8321_p12, %p8318_p11 }
 0x8f9   :  { %8326 = shalt.err (!%p8323_p13)
}
 0x8fa   :  { %7123 = dma.vmem_to_hbm [thread:$0]  %s7121_s23, 128, %s13992_s8, [#allocation4]  }
 0x8fb   :  { %8333 = dma.done.wait [#allocation4], 128  }
 0x8fc   :  { %8334 = vsyncadd [#allocation4], 4294967168 }
 0x8fd   :  { %8335 = dma.done.wait [#allocation13], 128  }
 0x8fe   :  { %8336 = vsyncadd [#allocation13], 4294967168 }
 0x8ff   :  { %7140 = vsyncpa [#allocation3], 1 }
 0x900   :  { %7141 = vsyncpa [#allocation6], 1 }
 0x901   :  { %7142 = vsyncpa [#allocation9], 1 }
 0x902   :  { %7143 = vsyncpa [#allocation4], 1 }
 0x903   :  { %7144 = vsyncpa [#allocation13], 1 }

</bundles_post_ra>
